<compile_context>
chip_gen: v6e
topology: v6e:2x2x1
jax: 0.10.0
libtpu: 0.0.40
codegen_flags: <defaults>
</compile_context>

<pallas_src>
import math
import jax
import jax.numpy as jnp
from jax.experimental import pallas as pl
from jax.experimental.pallas import tpu as pltpu

# ---------------- model hyper-parameters (match module defaults) ------------
D = 128            # embedding_dim
H = 8              # n_heads
DK = D // H        # per-head dim
FF = 512           # feed-forward hidden (GraphAttentionEncoder default)
N_LAYERS = 2       # n_encode_layers
TANH_CLIP = 10.0   # tanh_clipping
TEMP = 1.0         # self.temp
EPS_BN = 1e-5      # BatchNorm1d eps
NODE_DIM = 2

VMEM = pltpu.MemorySpace.VMEM
VMEM_LIMIT = 32 * 1024 * 1024


def _vspecs(n):
    return [pl.BlockSpec(memory_space=VMEM) for _ in range(n)]


# ------------------------------ encoder kernel -------------------------------
def _batch_norm(hf, g, b):
    # BatchNorm1d (training-mode batch statistics over the B*N rows)
    mean = jnp.mean(hf, axis=0, keepdims=True)
    var = jnp.mean((hf - mean) ** 2, axis=0, keepdims=True)
    return (hf - mean) * jax.lax.rsqrt(var + EPS_BN) * g + b


def _encoder_kernel(coords_ref, init_w_ref, init_b_ref, wqkv_ref, wo_ref,
                    bn1_g_ref, bn1_b_ref, w1_ref, b1_ref, w2_ref, b2_ref,
                    bn2_g_ref, bn2_b_ref, proj_node_ref, proj_fixed_ref,
                    emb_ref, fixed_ref, kvl_ref):
    Bb, Nn, _ = coords_ref.shape
    M = Bb * Nn
    scale = 1.0 / math.sqrt(DK)

    # _init_embed: (B*N, node_dim) @ (node_dim, D) + b
    x = coords_ref[...].reshape(M, NODE_DIM)
    h = jnp.dot(x, init_w_ref[...], preferred_element_type=jnp.float32) + init_b_ref[...]

    for l in range(N_LAYERS):
        # ---- multi-head self attention (fused QKV projection) ----
        qkv = jnp.dot(h, wqkv_ref[l], preferred_element_type=jnp.float32)   # (M, 3D)
        q = qkv[:, 0 * D:1 * D].reshape(Bb, Nn, D)
        k = qkv[:, 1 * D:2 * D].reshape(Bb, Nn, D)
        v = qkv[:, 2 * D:3 * D].reshape(Bb, Nn, D)
        heads = []
        for hh in range(H):
            sl = slice(hh * DK, (hh + 1) * DK)
            att = jnp.einsum('bqk,bsk->bqs', q[:, :, sl], k[:, :, sl],
                             preferred_element_type=jnp.float32) * scale    # (B,N,N)
            att = jax.nn.softmax(att, axis=-1)
            heads.append(jnp.einsum('bqs,bsk->bqk', att, v[:, :, sl],
                                    preferred_element_type=jnp.float32))    # (B,N,DK)
        mh = jnp.concatenate(heads, axis=-1).reshape(M, D)
        mh = jnp.dot(mh, wo_ref[l], preferred_element_type=jnp.float32)     # fused W_out

        # ---- residual + BatchNorm ----
        h = _batch_norm(h + mh, bn1_g_ref[l], bn1_b_ref[l])

        # ---- feed-forward (Linear-ReLU-Linear) + residual + BatchNorm ----
        hid = jnp.maximum(
            jnp.dot(h, w1_ref[l], preferred_element_type=jnp.float32) + b1_ref[l], 0.0)
        ffo = jnp.dot(hid, w2_ref[l], preferred_element_type=jnp.float32) + b2_ref[l]
        h = _batch_norm(h + ffo, bn2_g_ref[l], bn2_b_ref[l])

    emb = h.reshape(Bb, Nn, D)
    emb_ref[...] = emb

    # ---- _precompute: graph embedding + fixed / node projections ----
    graph_embed = jnp.mean(emb, axis=1)                                     # (B, D)
    fixed_ref[...] = jnp.dot(graph_embed, proj_fixed_ref[...],
                             preferred_element_type=jnp.float32)
    kvl_ref[...] = jnp.dot(h, proj_node_ref[...],
                           preferred_element_type=jnp.float32).reshape(Bb, Nn, 3 * D)


# ------------------------------ decoder kernel --------------------------------
def _decoder_rollout_kernel(coords_ref, emb_ref, fixed_ref, kvl_ref, wstep_ref,
                            wout_ref, wp_ref,
                            pi_ref, ll_ref, cost_ref,
                            visited_ref, femb_ref, lemb_ref, firstpt_ref, prevpt_ref):
    Bb, Nn, _ = emb_ref.shape
    inv_sqrt_dk = 1.0 / math.sqrt(DK)
    inv_sqrt_d = 1.0 / math.sqrt(D)
    neg = jnp.float32(-1e9)

    # ---- hoist every rollout-invariant VMEM read / slice out of the loop ----
    emb = emb_ref[...]                                   # (B, N, D)
    coords = coords_ref[...]                             # (B, N, 2)
    fixed = fixed_ref[...]                               # (B, D)
    kvl = kvl_ref[...]                                   # (B, N, 3D)
    gk_heads = [kvl[:, :, hh * DK:(hh + 1) * DK] for hh in range(H)]
    gv_heads = [kvl[:, :, D + hh * DK:D + (hh + 1) * DK] for hh in range(H)]
    lk = kvl[:, :, 2 * D:]                               # (B, N, D)
    wstep = wstep_ref[...]
    wout = wout_ref[...]
    col = jax.lax.broadcasted_iota(jnp.int32, (Bb, Nn), 1)

    def one_step(ctx, visited):
        # query = fixed_context + W_step @ step_context
        q = fixed + jnp.dot(ctx, wstep, preferred_element_type=jnp.float32)   # (B, D)
        heads = []
        for hh in range(H):
            q_h = q[:, hh * DK:(hh + 1) * DK][:, None, :]                      # (B,1,DK)
            compat = jnp.einsum('bqk,bnk->bqn', q_h, gk_heads[hh],
                                preferred_element_type=jnp.float32)[:, 0, :] * inv_sqrt_dk
            compat = jnp.where(visited > 0.5, neg, compat)                     # mask_inner
            attn = jax.nn.softmax(compat, axis=-1)
            heads.append(jnp.einsum('bqn,bnk->bqk', attn[:, None, :], gv_heads[hh],
                                    preferred_element_type=jnp.float32)[:, 0, :])
        glimpse = jnp.dot(jnp.concatenate(heads, axis=-1), wout,
                          preferred_element_type=jnp.float32)                   # (B, D)
        logits = jnp.einsum('bqd,bnd->bqn', glimpse[:, None, :], lk,
                            preferred_element_type=jnp.float32)[:, 0, :] * inv_sqrt_d
        logits = TANH_CLIP * jnp.tanh(logits)
        logits = jnp.where(visited > 0.5, neg, logits)                          # mask_logits
        logp = jax.nn.log_softmax(logits / TEMP, axis=-1)                       # (B, N)
        # greedy argmax (first max index)
        mx = jnp.max(logp, axis=-1, keepdims=True)
        sel_idx = jnp.min(jnp.where(logp >= mx, col, Nn), axis=-1, keepdims=True)  # (B,1)
        sel_oh = (col == sel_idx).astype(jnp.float32)                           # (B, N)
        sel_logp = jnp.sum(logp * sel_oh, axis=-1, keepdims=True)               # (B, 1)
        return sel_idx, sel_oh, sel_logp

    # ---- step 0: context is W_placeholder ----
    ctx0 = jnp.broadcast_to(wp_ref[...], (Bb, 2 * D))
    sel_idx0, sel0, lp0 = one_step(ctx0, jnp.zeros((Bb, Nn), jnp.float32))
    pi_ref[0] = sel_idx0
    visited_ref[...] = sel0
    f_emb = jnp.sum(sel0[:, :, None] * emb, axis=1)                             # (B, D)
    femb_ref[...] = f_emb
    lemb_ref[...] = f_emb
    pt0 = jnp.sum(sel0[:, :, None] * coords, axis=1)                            # (B, 2)
    firstpt_ref[...] = pt0
    prevpt_ref[...] = pt0
    ll_ref[...] = lp0
    cost_ref[...] = jnp.zeros((Bb, 1), jnp.float32)

    # ---- steps 1..N-1: context is [first_node_emb, last_node_emb] ----
    @pl.loop(1, Nn)
    def _(step):
        visited = visited_ref[...]
        ctx = jnp.concatenate([femb_ref[...], lemb_ref[...]], axis=-1)          # (B, 2D)
        sel_idx, sel_oh, sel_logp = one_step(ctx, visited)
        pi_ref[step] = sel_idx
        visited_ref[...] = jnp.maximum(visited, sel_oh)
        lemb_ref[...] = jnp.sum(sel_oh[:, :, None] * emb, axis=1)               # (B, D)
        cur = jnp.sum(sel_oh[:, :, None] * coords, axis=1)                      # (B, 2)
        seg = cur - prevpt_ref[...]
        cost_ref[...] = cost_ref[...] + jnp.sqrt(
            jnp.sum(seg * seg, axis=-1, keepdims=True))
        prevpt_ref[...] = cur
        ll_ref[...] = ll_ref[...] + sel_logp

    # ---- close the tour (last node back to first node) ----
    seg = firstpt_ref[...] - prevpt_ref[...]
    cost_ref[...] = cost_ref[...] + jnp.sqrt(jnp.sum(seg * seg, axis=-1, keepdims=True))


# ------------------------------ wrappers --------------------------------------
def _cost_estimate_encoder(B, N):
    M = B * N
    flops = 2 * M * NODE_DIM * D
    per_layer = (2 * M * D * 3 * D + 4 * B * H * N * N * DK
                 + 2 * M * D * D + 4 * M * D * FF)
    flops += N_LAYERS * per_layer
    flops += 2 * M * D * 3 * D + 2 * B * D * D
    trans = N_LAYERS * B * H * N * N
    bytes_accessed = 4 * (M * NODE_DIM + NODE_DIM * D + D
                          + N_LAYERS * (D * 3 * D + D * D + 4 * D + D * FF + FF + FF * D + D)
                          + D * 3 * D + D * D
                          + M * D + B * D + M * 3 * D)
    return pl.CostEstimate(flops=int(flops), transcendentals=int(trans),
                           bytes_accessed=int(bytes_accessed))


def _cost_estimate_decoder(B, N):
    per_step = (4 * B * D * D            # step-context projection + W_out
                + 4 * B * H * N * DK     # glimpse compat + weighted values
                + 2 * B * N * D          # logit-key matvec
                + 4 * B * N * D)         # first/last one-hot gathers
    flops = N * per_step
    trans = N * B * (N * (H + 3) + 2)
    bytes_accessed = 4 * (B * N * (NODE_DIM + D + 3 * D) + B * D
                          + 2 * D * D + D * D + 2 * D
                          + N * B + 2 * B)
    return pl.CostEstimate(flops=int(flops), transcendentals=int(trans),
                           bytes_accessed=int(bytes_accessed))


def _encode(params, coords):
    B, N, _ = coords.shape
    out_shape = (jax.ShapeDtypeStruct((B, N, D), jnp.float32),
                 jax.ShapeDtypeStruct((B, D), jnp.float32),
                 jax.ShapeDtypeStruct((B, N, 3 * D), jnp.float32))
    return pl.pallas_call(
        _encoder_kernel,
        out_shape=out_shape,
        in_specs=_vspecs(15),
        out_specs=tuple(_vspecs(3)),
        compiler_params=pltpu.CompilerParams(vmem_limit_bytes=VMEM_LIMIT),
        cost_estimate=_cost_estimate_encoder(B, N),
    )(coords, params['init_w'], params['init_b'],
      params['wqkv'], params['wo'], params['bn1_g'], params['bn1_b'],
      params['w1'], params['b1'], params['w2'], params['b2'],
      params['bn2_g'], params['bn2_b'],
      params['proj_node_w'], params['proj_fixed_w'])


def _decode(params, coords, emb, fixed_ctx, kvl):
    B, N, _ = emb.shape
    out_shape = (jax.ShapeDtypeStruct((N, B, 1), jnp.int32),     # tour node per step
                 jax.ShapeDtypeStruct((B, 1), jnp.float32),      # sum of selected log-probs
                 jax.ShapeDtypeStruct((B, 1), jnp.float32))      # tour length (cost)
    return pl.pallas_call(
        _decoder_rollout_kernel,
        out_shape=out_shape,
        in_specs=_vspecs(7),
        out_specs=tuple(_vspecs(3)),
        scratch_shapes=[pltpu.VMEM((B, N), jnp.float32),    # visited mask
                        pltpu.VMEM((B, D), jnp.float32),    # first-node embedding
                        pltpu.VMEM((B, D), jnp.float32),    # last-node embedding
                        pltpu.VMEM((B, 2), jnp.float32),    # first-node coords
                        pltpu.VMEM((B, 2), jnp.float32)],   # prev-node coords
        compiler_params=pltpu.CompilerParams(vmem_limit_bytes=VMEM_LIMIT),
        cost_estimate=_cost_estimate_decoder(B, N),
    )(coords, emb, fixed_ctx, kvl,
      params['w_step'], params['w_out'], params['w_placeholder'])


def attention_tsp_forward(params, coords):
    emb, fixed_ctx, kvl = _encode(params, coords)
    pi_slab, ll, cost = _decode(params, coords, emb, fixed_ctx, kvl)
    pi = jnp.transpose(pi_slab[:, :, 0], (1, 0)).astype(jnp.int32)   # (B, steps)
    return cost[:, 0], ll[:, 0], pi


# ------------------------------ parameters -----------------------------------
def init_params(key):
    ks = jax.random.split(key, 13)

    def u(k, shape, scale):
        return jax.random.uniform(k, shape, jnp.float32, -scale, scale)

    sd = 1.0 / math.sqrt(D)
    params = {
        'init_w': u(ks[0], (NODE_DIM, D), 1.0 / math.sqrt(NODE_DIM)),
        'init_b': u(ks[1], (1, D), 1.0 / math.sqrt(NODE_DIM)),
        'proj_node_w': u(ks[2], (D, 3 * D), sd),
        'proj_fixed_w': u(ks[3], (D, D), sd),
        'w_placeholder': u(ks[4], (1, 2 * D), 1.0),
        'w_step': u(ks[5], (2 * D, D), 1.0 / math.sqrt(2 * D)),
        'w_out': u(ks[6], (D, D), sd),
        # per-layer encoder weights, stacked along a leading layer axis
        'wqkv': u(ks[7], (N_LAYERS, D, 3 * D), sd),
        'wo': u(ks[8], (N_LAYERS, D, D), sd),
        'bn1_g': jnp.ones((N_LAYERS, 1, D), jnp.float32),
        'bn1_b': jnp.zeros((N_LAYERS, 1, D), jnp.float32),
        'w1': u(ks[9], (N_LAYERS, D, FF), sd),
        'b1': u(ks[10], (N_LAYERS, 1, FF), sd),
        'w2': u(ks[11], (N_LAYERS, FF, D), 1.0 / math.sqrt(FF)),
        'b2': u(ks[12], (N_LAYERS, 1, D), 1.0 / math.sqrt(FF)),
        'bn2_g': jnp.ones((N_LAYERS, 1, D), jnp.float32),
        'bn2_b': jnp.zeros((N_LAYERS, 1, D), jnp.float32),
    }
    return params


# ------------------------------ main ------------------------------------------
if __name__ == "__main__":
    key = jax.random.PRNGKey(0)
    kp, kx = jax.random.split(key)
    params = init_params(kp)

    B, N = 2, 8                      # batch, graph_size (TSP nodes in unit square)
    coords = jax.random.uniform(kx, (B, N, NODE_DIM), dtype=jnp.float32)

    fwd = jax.jit(attention_tsp_forward)
    cost, acc_log_prob, pi = fwd(params, coords)
    jax.block_until_ready((cost, acc_log_prob, pi))
    print("KERNEL_OK")
</pallas_src>

<mosaic_0001>
module attributes {stable_mosaic.version = 11 : i64} {
  func.func @_encoder_kernel(%arg0: memref<2x8x2xf32, #tpu.memory_space<vmem>>, %arg1: memref<2x128xf32, #tpu.memory_space<vmem>>, %arg2: memref<1x128xf32, #tpu.memory_space<vmem>>, %arg3: memref<2x128x384xf32, #tpu.memory_space<vmem>>, %arg4: memref<2x128x128xf32, #tpu.memory_space<vmem>>, %arg5: memref<2x1x128xf32, #tpu.memory_space<vmem>>, %arg6: memref<2x1x128xf32, #tpu.memory_space<vmem>>, %arg7: memref<2x128x512xf32, #tpu.memory_space<vmem>>, %arg8: memref<2x1x512xf32, #tpu.memory_space<vmem>>, %arg9: memref<2x512x128xf32, #tpu.memory_space<vmem>>, %arg10: memref<2x1x128xf32, #tpu.memory_space<vmem>>, %arg11: memref<2x1x128xf32, #tpu.memory_space<vmem>>, %arg12: memref<2x1x128xf32, #tpu.memory_space<vmem>>, %arg13: memref<128x384xf32, #tpu.memory_space<vmem>>, %arg14: memref<128x128xf32, #tpu.memory_space<vmem>>, %arg15: memref<2x8x128xf32, #tpu.memory_space<vmem>>, %arg16: memref<2x128xf32, #tpu.memory_space<vmem>>, %arg17: memref<2x8x384xf32, #tpu.memory_space<vmem>>) attributes {dimension_semantics = [], scalar_prefetch = 0 : i64, scratch_operands = 0 : i64, tpu.core_type = #tpu.core_type<tc>} {
    %c0 = arith.constant 0 : index
    %c0_0 = arith.constant 0 : index
    %c0_1 = arith.constant 0 : index
    %0 = vector.load %arg0[%c0, %c0_0, %c0_1] : memref<2x8x2xf32, #tpu.memory_space<vmem>>, vector<2x8x2xf32>
    %1 = vector.shape_cast %0 : vector<2x8x2xf32> to vector<16x2xf32>
    %c0_2 = arith.constant 0 : index
    %c0_3 = arith.constant 0 : index
    %2 = vector.load %arg1[%c0_2, %c0_3] : memref<2x128xf32, #tpu.memory_space<vmem>>, vector<2x128xf32>
    %cst = arith.constant dense<0.000000e+00> : vector<16x128xf32>
    %3 = tpu.matmul %1, %2, %cst {dimension_numbers = #tpu.dot_dimension_numbers<[1], [0], [0], [1], [0, 0, 1, 1], [], []>} : vector<16x2xf32>, vector<2x128xf32>, vector<16x128xf32> -> vector<16x128xf32>
    %c0_4 = arith.constant 0 : index
    %c0_5 = arith.constant 0 : index
    %4 = vector.load %arg2[%c0_4, %c0_5] : memref<1x128xf32, #tpu.memory_space<vmem>>, vector<1x128xf32>
    %5 = vector.broadcast %4 : vector<1x128xf32> to vector<16x128xf32>
    %6 = arith.addf %3, %5 : vector<16x128xf32>
    %c0_6 = arith.constant 0 : index
    %c0_7 = arith.constant 0 : index
    %c0_8 = arith.constant 0 : index
    %7 = vector.load %arg3[%c0_6, %c0_7, %c0_8] : memref<2x128x384xf32, #tpu.memory_space<vmem>>, vector<1x128x384xf32>
    %8 = vector.shape_cast %7 : vector<1x128x384xf32> to vector<128x384xf32>
    %cst_9 = arith.constant dense<0.000000e+00> : vector<16x384xf32>
    %9 = tpu.matmul %6, %8, %cst_9 {dimension_numbers = #tpu.dot_dimension_numbers<[1], [0], [0], [1], [0, 0, 1, 1], [], []>} : vector<16x128xf32>, vector<128x384xf32>, vector<16x384xf32> -> vector<16x384xf32>
    %10 = vector.extract_strided_slice %9 {offsets = [0, 0], sizes = [16, 128], strides = [1, 1]} : vector<16x384xf32> to vector<16x128xf32>
    %11 = vector.shape_cast %10 : vector<16x128xf32> to vector<2x8x128xf32>
    %12 = vector.extract_strided_slice %9 {offsets = [0, 128], sizes = [16, 128], strides = [1, 1]} : vector<16x384xf32> to vector<16x128xf32>
    %13 = vector.shape_cast %12 : vector<16x128xf32> to vector<2x8x128xf32>
    %14 = vector.extract_strided_slice %9 {offsets = [0, 256], sizes = [16, 128], strides = [1, 1]} : vector<16x384xf32> to vector<16x128xf32>
    %15 = vector.shape_cast %14 : vector<16x128xf32> to vector<2x8x128xf32>
    %16 = vector.extract_strided_slice %11 {offsets = [0, 0, 0], sizes = [2, 8, 16], strides = [1, 1, 1]} : vector<2x8x128xf32> to vector<2x8x16xf32>
    %17 = vector.extract_strided_slice %13 {offsets = [0, 0, 0], sizes = [2, 8, 16], strides = [1, 1, 1]} : vector<2x8x128xf32> to vector<2x8x16xf32>
    "tpu.trace_start"() <{level = 10 : i32, message = "bqk,bsk->bqs"}> : () -> ()
    %cst_10 = arith.constant dense<0.000000e+00> : vector<2x8x8xf32>
    %18 = tpu.matmul %16, %17, %cst_10 {dimension_numbers = #tpu.dot_dimension_numbers<[2], [2], [1], [1], [0, 0, 0, 1, 1, 1], [0], [0]>} : vector<2x8x16xf32>, vector<2x8x16xf32>, vector<2x8x8xf32> -> vector<2x8x8xf32>
    "tpu.trace_stop"() : () -> ()
    %cst_11 = arith.constant 2.500000e-01 : f32
    %19 = vector.broadcast %cst_11 : f32 to vector<2x8x8xf32>
    %20 = arith.mulf %18, %19 : vector<2x8x8xf32>
    %cst_12 = arith.constant dense<0xFF800000> : vector<2x8xf32>
    %21 = vector.multi_reduction <maximumf>, %20, %cst_12 [2] : vector<2x8x8xf32> to vector<2x8xf32>
    %cst_13 = arith.constant 0xFF800000 : f32
    %22 = vector.broadcast %cst_13 : f32 to vector<2x8xf32>
    %23 = arith.maximumf %22, %21 : vector<2x8xf32>
    %24 = vector.shape_cast %23 : vector<2x8xf32> to vector<2x8x1xf32>
    %25 = vector.broadcast %24 : vector<2x8x1xf32> to vector<2x8x8xf32>
    %26 = arith.subf %20, %25 : vector<2x8x8xf32>
    %27 = math.exp %26 : vector<2x8x8xf32>
    %cst_14 = arith.constant dense<0.000000e+00> : vector<2x8xf32>
    %28 = vector.multi_reduction <add>, %27, %cst_14 [2] : vector<2x8x8xf32> to vector<2x8xf32>
    %29 = vector.shape_cast %28 : vector<2x8xf32> to vector<2x8x1xf32>
    %30 = vector.broadcast %29 : vector<2x8x1xf32> to vector<2x8x8xf32>
    %31 = arith.divf %27, %30 : vector<2x8x8xf32>
    %32 = vector.extract_strided_slice %15 {offsets = [0, 0, 0], sizes = [2, 8, 16], strides = [1, 1, 1]} : vector<2x8x128xf32> to vector<2x8x16xf32>
    "tpu.trace_start"() <{level = 10 : i32, message = "bqs,bsk->bqk"}> : () -> ()
    %cst_15 = arith.constant dense<0.000000e+00> : vector<2x8x16xf32>
    %33 = tpu.matmul %31, %32, %cst_15 {dimension_numbers = #tpu.dot_dimension_numbers<[2], [1], [1], [2], [0, 0, 0, 1, 1, 2], [0], [0]>} : vector<2x8x8xf32>, vector<2x8x16xf32>, vector<2x8x16xf32> -> vector<2x8x16xf32>
    "tpu.trace_stop"() : () -> ()
    %34 = vector.extract_strided_slice %11 {offsets = [0, 0, 16], sizes = [2, 8, 16], strides = [1, 1, 1]} : vector<2x8x128xf32> to vector<2x8x16xf32>
    %35 = vector.extract_strided_slice %13 {offsets = [0, 0, 16], sizes = [2, 8, 16], strides = [1, 1, 1]} : vector<2x8x128xf32> to vector<2x8x16xf32>
    "tpu.trace_start"() <{level = 10 : i32, message = "bqk,bsk->bqs"}> : () -> ()
    %cst_16 = arith.constant dense<0.000000e+00> : vector<2x8x8xf32>
    %36 = tpu.matmul %34, %35, %cst_16 {dimension_numbers = #tpu.dot_dimension_numbers<[2], [2], [1], [1], [0, 0, 0, 1, 1, 1], [0], [0]>} : vector<2x8x16xf32>, vector<2x8x16xf32>, vector<2x8x8xf32> -> vector<2x8x8xf32>
    "tpu.trace_stop"() : () -> ()
    %cst_17 = arith.constant 2.500000e-01 : f32
    %37 = vector.broadcast %cst_17 : f32 to vector<2x8x8xf32>
    %38 = arith.mulf %36, %37 : vector<2x8x8xf32>
    %cst_18 = arith.constant dense<0xFF800000> : vector<2x8xf32>
    %39 = vector.multi_reduction <maximumf>, %38, %cst_18 [2] : vector<2x8x8xf32> to vector<2x8xf32>
    %cst_19 = arith.constant 0xFF800000 : f32
    %40 = vector.broadcast %cst_19 : f32 to vector<2x8xf32>
    %41 = arith.maximumf %40, %39 : vector<2x8xf32>
    %42 = vector.shape_cast %41 : vector<2x8xf32> to vector<2x8x1xf32>
    %43 = vector.broadcast %42 : vector<2x8x1xf32> to vector<2x8x8xf32>
    %44 = arith.subf %38, %43 : vector<2x8x8xf32>
    %45 = math.exp %44 : vector<2x8x8xf32>
    %cst_20 = arith.constant dense<0.000000e+00> : vector<2x8xf32>
    %46 = vector.multi_reduction <add>, %45, %cst_20 [2] : vector<2x8x8xf32> to vector<2x8xf32>
    %47 = vector.shape_cast %46 : vector<2x8xf32> to vector<2x8x1xf32>
    %48 = vector.broadcast %47 : vector<2x8x1xf32> to vector<2x8x8xf32>
    %49 = arith.divf %45, %48 : vector<2x8x8xf32>
    %50 = vector.extract_strided_slice %15 {offsets = [0, 0, 16], sizes = [2, 8, 16], strides = [1, 1, 1]} : vector<2x8x128xf32> to vector<2x8x16xf32>
    "tpu.trace_start"() <{level = 10 : i32, message = "bqs,bsk->bqk"}> : () -> ()
    %cst_21 = arith.constant dense<0.000000e+00> : vector<2x8x16xf32>
    %51 = tpu.matmul %49, %50, %cst_21 {dimension_numbers = #tpu.dot_dimension_numbers<[2], [1], [1], [2], [0, 0, 0, 1, 1, 2], [0], [0]>} : vector<2x8x8xf32>, vector<2x8x16xf32>, vector<2x8x16xf32> -> vector<2x8x16xf32>
    "tpu.trace_stop"() : () -> ()
    %52 = vector.extract_strided_slice %11 {offsets = [0, 0, 32], sizes = [2, 8, 16], strides = [1, 1, 1]} : vector<2x8x128xf32> to vector<2x8x16xf32>
    %53 = vector.extract_strided_slice %13 {offsets = [0, 0, 32], sizes = [2, 8, 16], strides = [1, 1, 1]} : vector<2x8x128xf32> to vector<2x8x16xf32>
    "tpu.trace_start"() <{level = 10 : i32, message = "bqk,bsk->bqs"}> : () -> ()
    %cst_22 = arith.constant dense<0.000000e+00> : vector<2x8x8xf32>
    %54 = tpu.matmul %52, %53, %cst_22 {dimension_numbers = #tpu.dot_dimension_numbers<[2], [2], [1], [1], [0, 0, 0, 1, 1, 1], [0], [0]>} : vector<2x8x16xf32>, vector<2x8x16xf32>, vector<2x8x8xf32> -> vector<2x8x8xf32>
    "tpu.trace_stop"() : () -> ()
    %cst_23 = arith.constant 2.500000e-01 : f32
    %55 = vector.broadcast %cst_23 : f32 to vector<2x8x8xf32>
    %56 = arith.mulf %54, %55 : vector<2x8x8xf32>
    %cst_24 = arith.constant dense<0xFF800000> : vector<2x8xf32>
    %57 = vector.multi_reduction <maximumf>, %56, %cst_24 [2] : vector<2x8x8xf32> to vector<2x8xf32>
    %cst_25 = arith.constant 0xFF800000 : f32
    %58 = vector.broadcast %cst_25 : f32 to vector<2x8xf32>
    %59 = arith.maximumf %58, %57 : vector<2x8xf32>
    %60 = vector.shape_cast %59 : vector<2x8xf32> to vector<2x8x1xf32>
    %61 = vector.broadcast %60 : vector<2x8x1xf32> to vector<2x8x8xf32>
    %62 = arith.subf %56, %61 : vector<2x8x8xf32>
    %63 = math.exp %62 : vector<2x8x8xf32>
    %cst_26 = arith.constant dense<0.000000e+00> : vector<2x8xf32>
    %64 = vector.multi_reduction <add>, %63, %cst_26 [2] : vector<2x8x8xf32> to vector<2x8xf32>
    %65 = vector.shape_cast %64 : vector<2x8xf32> to vector<2x8x1xf32>
    %66 = vector.broadcast %65 : vector<2x8x1xf32> to vector<2x8x8xf32>
    %67 = arith.divf %63, %66 : vector<2x8x8xf32>
    %68 = vector.extract_strided_slice %15 {offsets = [0, 0, 32], sizes = [2, 8, 16], strides = [1, 1, 1]} : vector<2x8x128xf32> to vector<2x8x16xf32>
    "tpu.trace_start"() <{level = 10 : i32, message = "bqs,bsk->bqk"}> : () -> ()
    %cst_27 = arith.constant dense<0.000000e+00> : vector<2x8x16xf32>
    %69 = tpu.matmul %67, %68, %cst_27 {dimension_numbers = #tpu.dot_dimension_numbers<[2], [1], [1], [2], [0, 0, 0, 1, 1, 2], [0], [0]>} : vector<2x8x8xf32>, vector<2x8x16xf32>, vector<2x8x16xf32> -> vector<2x8x16xf32>
    "tpu.trace_stop"() : () -> ()
    %70 = vector.extract_strided_slice %11 {offsets = [0, 0, 48], sizes = [2, 8, 16], strides = [1, 1, 1]} : vector<2x8x128xf32> to vector<2x8x16xf32>
    %71 = vector.extract_strided_slice %13 {offsets = [0, 0, 48], sizes = [2, 8, 16], strides = [1, 1, 1]} : vector<2x8x128xf32> to vector<2x8x16xf32>
    "tpu.trace_start"() <{level = 10 : i32, message = "bqk,bsk->bqs"}> : () -> ()
    %cst_28 = arith.constant dense<0.000000e+00> : vector<2x8x8xf32>
    %72 = tpu.matmul %70, %71, %cst_28 {dimension_numbers = #tpu.dot_dimension_numbers<[2], [2], [1], [1], [0, 0, 0, 1, 1, 1], [0], [0]>} : vector<2x8x16xf32>, vector<2x8x16xf32>, vector<2x8x8xf32> -> vector<2x8x8xf32>
    "tpu.trace_stop"() : () -> ()
    %cst_29 = arith.constant 2.500000e-01 : f32
    %73 = vector.broadcast %cst_29 : f32 to vector<2x8x8xf32>
    %74 = arith.mulf %72, %73 : vector<2x8x8xf32>
    %cst_30 = arith.constant dense<0xFF800000> : vector<2x8xf32>
    %75 = vector.multi_reduction <maximumf>, %74, %cst_30 [2] : vector<2x8x8xf32> to vector<2x8xf32>
    %cst_31 = arith.constant 0xFF800000 : f32
    %76 = vector.broadcast %cst_31 : f32 to vector<2x8xf32>
    %77 = arith.maximumf %76, %75 : vector<2x8xf32>
    %78 = vector.shape_cast %77 : vector<2x8xf32> to vector<2x8x1xf32>
    %79 = vector.broadcast %78 : vector<2x8x1xf32> to vector<2x8x8xf32>
    %80 = arith.subf %74, %79 : vector<2x8x8xf32>
    %81 = math.exp %80 : vector<2x8x8xf32>
    %cst_32 = arith.constant dense<0.000000e+00> : vector<2x8xf32>
    %82 = vector.multi_reduction <add>, %81, %cst_32 [2] : vector<2x8x8xf32> to vector<2x8xf32>
    %83 = vector.shape_cast %82 : vector<2x8xf32> to vector<2x8x1xf32>
    %84 = vector.broadcast %83 : vector<2x8x1xf32> to vector<2x8x8xf32>
    %85 = arith.divf %81, %84 : vector<2x8x8xf32>
    %86 = vector.extract_strided_slice %15 {offsets = [0, 0, 48], sizes = [2, 8, 16], strides = [1, 1, 1]} : vector<2x8x128xf32> to vector<2x8x16xf32>
    "tpu.trace_start"() <{level = 10 : i32, message = "bqs,bsk->bqk"}> : () -> ()
    %cst_33 = arith.constant dense<0.000000e+00> : vector<2x8x16xf32>
    %87 = tpu.matmul %85, %86, %cst_33 {dimension_numbers = #tpu.dot_dimension_numbers<[2], [1], [1], [2], [0, 0, 0, 1, 1, 2], [0], [0]>} : vector<2x8x8xf32>, vector<2x8x16xf32>, vector<2x8x16xf32> -> vector<2x8x16xf32>
    "tpu.trace_stop"() : () -> ()
    %88 = vector.extract_strided_slice %11 {offsets = [0, 0, 64], sizes = [2, 8, 16], strides = [1, 1, 1]} : vector<2x8x128xf32> to vector<2x8x16xf32>
    %89 = vector.extract_strided_slice %13 {offsets = [0, 0, 64], sizes = [2, 8, 16], strides = [1, 1, 1]} : vector<2x8x128xf32> to vector<2x8x16xf32>
    "tpu.trace_start"() <{level = 10 : i32, message = "bqk,bsk->bqs"}> : () -> ()
    %cst_34 = arith.constant dense<0.000000e+00> : vector<2x8x8xf32>
    %90 = tpu.matmul %88, %89, %cst_34 {dimension_numbers = #tpu.dot_dimension_numbers<[2], [2], [1], [1], [0, 0, 0, 1, 1, 1], [0], [0]>} : vector<2x8x16xf32>, vector<2x8x16xf32>, vector<2x8x8xf32> -> vector<2x8x8xf32>
    "tpu.trace_stop"() : () -> ()
    %cst_35 = arith.constant 2.500000e-01 : f32
    %91 = vector.broadcast %cst_35 : f32 to vector<2x8x8xf32>
    %92 = arith.mulf %90, %91 : vector<2x8x8xf32>
    %cst_36 = arith.constant dense<0xFF800000> : vector<2x8xf32>
    %93 = vector.multi_reduction <maximumf>, %92, %cst_36 [2] : vector<2x8x8xf32> to vector<2x8xf32>
    %cst_37 = arith.constant 0xFF800000 : f32
    %94 = vector.broadcast %cst_37 : f32 to vector<2x8xf32>
    %95 = arith.maximumf %94, %93 : vector<2x8xf32>
    %96 = vector.shape_cast %95 : vector<2x8xf32> to vector<2x8x1xf32>
    %97 = vector.broadcast %96 : vector<2x8x1xf32> to vector<2x8x8xf32>
    %98 = arith.subf %92, %97 : vector<2x8x8xf32>
    %99 = math.exp %98 : vector<2x8x8xf32>
    %cst_38 = arith.constant dense<0.000000e+00> : vector<2x8xf32>
    %100 = vector.multi_reduction <add>, %99, %cst_38 [2] : vector<2x8x8xf32> to vector<2x8xf32>
    %101 = vector.shape_cast %100 : vector<2x8xf32> to vector<2x8x1xf32>
    %102 = vector.broadcast %101 : vector<2x8x1xf32> to vector<2x8x8xf32>
    %103 = arith.divf %99, %102 : vector<2x8x8xf32>
    %104 = vector.extract_strided_slice %15 {offsets = [0, 0, 64], sizes = [2, 8, 16], strides = [1, 1, 1]} : vector<2x8x128xf32> to vector<2x8x16xf32>
    "tpu.trace_start"() <{level = 10 : i32, message = "bqs,bsk->bqk"}> : () -> ()
    %cst_39 = arith.constant dense<0.000000e+00> : vector<2x8x16xf32>
    %105 = tpu.matmul %103, %104, %cst_39 {dimension_numbers = #tpu.dot_dimension_numbers<[2], [1], [1], [2], [0, 0, 0, 1, 1, 2], [0], [0]>} : vector<2x8x8xf32>, vector<2x8x16xf32>, vector<2x8x16xf32> -> vector<2x8x16xf32>
    "tpu.trace_stop"() : () -> ()
    %106 = vector.extract_strided_slice %11 {offsets = [0, 0, 80], sizes = [2, 8, 16], strides = [1, 1, 1]} : vector<2x8x128xf32> to vector<2x8x16xf32>
    %107 = vector.extract_strided_slice %13 {offsets = [0, 0, 80], sizes = [2, 8, 16], strides = [1, 1, 1]} : vector<2x8x128xf32> to vector<2x8x16xf32>
    "tpu.trace_start"() <{level = 10 : i32, message = "bqk,bsk->bqs"}> : () -> ()
    %cst_40 = arith.constant dense<0.000000e+00> : vector<2x8x8xf32>
    %108 = tpu.matmul %106, %107, %cst_40 {dimension_numbers = #tpu.dot_dimension_numbers<[2], [2], [1], [1], [0, 0, 0, 1, 1, 1], [0], [0]>} : vector<2x8x16xf32>, vector<2x8x16xf32>, vector<2x8x8xf32> -> vector<2x8x8xf32>
    "tpu.trace_stop"() : () -> ()
    %cst_41 = arith.constant 2.500000e-01 : f32
    %109 = vector.broadcast %cst_41 : f32 to vector<2x8x8xf32>
    %110 = arith.mulf %108, %109 : vector<2x8x8xf32>
    %cst_42 = arith.constant dense<0xFF800000> : vector<2x8xf32>
    %111 = vector.multi_reduction <maximumf>, %110, %cst_42 [2] : vector<2x8x8xf32> to vector<2x8xf32>
    %cst_43 = arith.constant 0xFF800000 : f32
    %112 = vector.broadcast %cst_43 : f32 to vector<2x8xf32>
    %113 = arith.maximumf %112, %111 : vector<2x8xf32>
    %114 = vector.shape_cast %113 : vector<2x8xf32> to vector<2x8x1xf32>
    %115 = vector.broadcast %114 : vector<2x8x1xf32> to vector<2x8x8xf32>
    %116 = arith.subf %110, %115 : vector<2x8x8xf32>
    %117 = math.exp %116 : vector<2x8x8xf32>
    %cst_44 = arith.constant dense<0.000000e+00> : vector<2x8xf32>
    %118 = vector.multi_reduction <add>, %117, %cst_44 [2] : vector<2x8x8xf32> to vector<2x8xf32>
    %119 = vector.shape_cast %118 : vector<2x8xf32> to vector<2x8x1xf32>
    %120 = vector.broadcast %119 : vector<2x8x1xf32> to vector<2x8x8xf32>
    %121 = arith.divf %117, %120 : vector<2x8x8xf32>
    %122 = vector.extract_strided_slice %15 {offsets = [0, 0, 80], sizes = [2, 8, 16], strides = [1, 1, 1]} : vector<2x8x128xf32> to vector<2x8x16xf32>
    "tpu.trace_start"() <{level = 10 : i32, message = "bqs,bsk->bqk"}> : () -> ()
    %cst_45 = arith.constant dense<0.000000e+00> : vector<2x8x16xf32>
    %123 = tpu.matmul %121, %122, %cst_45 {dimension_numbers = #tpu.dot_dimension_numbers<[2], [1], [1], [2], [0, 0, 0, 1, 1, 2], [0], [0]>} : vector<2x8x8xf32>, vector<2x8x16xf32>, vector<2x8x16xf32> -> vector<2x8x16xf32>
    "tpu.trace_stop"() : () -> ()
    %124 = vector.extract_strided_slice %11 {offsets = [0, 0, 96], sizes = [2, 8, 16], strides = [1, 1, 1]} : vector<2x8x128xf32> to vector<2x8x16xf32>
    %125 = vector.extract_strided_slice %13 {offsets = [0, 0, 96], sizes = [2, 8, 16], strides = [1, 1, 1]} : vector<2x8x128xf32> to vector<2x8x16xf32>
    "tpu.trace_start"() <{level = 10 : i32, message = "bqk,bsk->bqs"}> : () -> ()
    %cst_46 = arith.constant dense<0.000000e+00> : vector<2x8x8xf32>
    %126 = tpu.matmul %124, %125, %cst_46 {dimension_numbers = #tpu.dot_dimension_numbers<[2], [2], [1], [1], [0, 0, 0, 1, 1, 1], [0], [0]>} : vector<2x8x16xf32>, vector<2x8x16xf32>, vector<2x8x8xf32> -> vector<2x8x8xf32>
    "tpu.trace_stop"() : () -> ()
    %cst_47 = arith.constant 2.500000e-01 : f32
    %127 = vector.broadcast %cst_47 : f32 to vector<2x8x8xf32>
    %128 = arith.mulf %126, %127 : vector<2x8x8xf32>
    %cst_48 = arith.constant dense<0xFF800000> : vector<2x8xf32>
    %129 = vector.multi_reduction <maximumf>, %128, %cst_48 [2] : vector<2x8x8xf32> to vector<2x8xf32>
    %cst_49 = arith.constant 0xFF800000 : f32
    %130 = vector.broadcast %cst_49 : f32 to vector<2x8xf32>
    %131 = arith.maximumf %130, %129 : vector<2x8xf32>
    %132 = vector.shape_cast %131 : vector<2x8xf32> to vector<2x8x1xf32>
    %133 = vector.broadcast %132 : vector<2x8x1xf32> to vector<2x8x8xf32>
    %134 = arith.subf %128, %133 : vector<2x8x8xf32>
    %135 = math.exp %134 : vector<2x8x8xf32>
    %cst_50 = arith.constant dense<0.000000e+00> : vector<2x8xf32>
    %136 = vector.multi_reduction <add>, %135, %cst_50 [2] : vector<2x8x8xf32> to vector<2x8xf32>
    %137 = vector.shape_cast %136 : vector<2x8xf32> to vector<2x8x1xf32>
    %138 = vector.broadcast %137 : vector<2x8x1xf32> to vector<2x8x8xf32>
    %139 = arith.divf %135, %138 : vector<2x8x8xf32>
    %140 = vector.extract_strided_slice %15 {offsets = [0, 0, 96], sizes = [2, 8, 16], strides = [1, 1, 1]} : vector<2x8x128xf32> to vector<2x8x16xf32>
    "tpu.trace_start"() <{level = 10 : i32, message = "bqs,bsk->bqk"}> : () -> ()
    %cst_51 = arith.constant dense<0.000000e+00> : vector<2x8x16xf32>
    %141 = tpu.matmul %139, %140, %cst_51 {dimension_numbers = #tpu.dot_dimension_numbers<[2], [1], [1], [2], [0, 0, 0, 1, 1, 2], [0], [0]>} : vector<2x8x8xf32>, vector<2x8x16xf32>, vector<2x8x16xf32> -> vector<2x8x16xf32>
    "tpu.trace_stop"() : () -> ()
    %142 = vector.extract_strided_slice %11 {offsets = [0, 0, 112], sizes = [2, 8, 16], strides = [1, 1, 1]} : vector<2x8x128xf32> to vector<2x8x16xf32>
    %143 = vector.extract_strided_slice %13 {offsets = [0, 0, 112], sizes = [2, 8, 16], strides = [1, 1, 1]} : vector<2x8x128xf32> to vector<2x8x16xf32>
    "tpu.trace_start"() <{level = 10 : i32, message = "bqk,bsk->bqs"}> : () -> ()
    %cst_52 = arith.constant dense<0.000000e+00> : vector<2x8x8xf32>
    %144 = tpu.matmul %142, %143, %cst_52 {dimension_numbers = #tpu.dot_dimension_numbers<[2], [2], [1], [1], [0, 0, 0, 1, 1, 1], [0], [0]>} : vector<2x8x16xf32>, vector<2x8x16xf32>, vector<2x8x8xf32> -> vector<2x8x8xf32>
    "tpu.trace_stop"() : () -> ()
    %cst_53 = arith.constant 2.500000e-01 : f32
    %145 = vector.broadcast %cst_53 : f32 to vector<2x8x8xf32>
    %146 = arith.mulf %144, %145 : vector<2x8x8xf32>
    %cst_54 = arith.constant dense<0xFF800000> : vector<2x8xf32>
    %147 = vector.multi_reduction <maximumf>, %146, %cst_54 [2] : vector<2x8x8xf32> to vector<2x8xf32>
    %cst_55 = arith.constant 0xFF800000 : f32
    %148 = vector.broadcast %cst_55 : f32 to vector<2x8xf32>
    %149 = arith.maximumf %148, %147 : vector<2x8xf32>
    %150 = vector.shape_cast %149 : vector<2x8xf32> to vector<2x8x1xf32>
    %151 = vector.broadcast %150 : vector<2x8x1xf32> to vector<2x8x8xf32>
    %152 = arith.subf %146, %151 : vector<2x8x8xf32>
    %153 = math.exp %152 : vector<2x8x8xf32>
    %cst_56 = arith.constant dense<0.000000e+00> : vector<2x8xf32>
    %154 = vector.multi_reduction <add>, %153, %cst_56 [2] : vector<2x8x8xf32> to vector<2x8xf32>
    %155 = vector.shape_cast %154 : vector<2x8xf32> to vector<2x8x1xf32>
    %156 = vector.broadcast %155 : vector<2x8x1xf32> to vector<2x8x8xf32>
    %157 = arith.divf %153, %156 : vector<2x8x8xf32>
    %158 = vector.extract_strided_slice %15 {offsets = [0, 0, 112], sizes = [2, 8, 16], strides = [1, 1, 1]} : vector<2x8x128xf32> to vector<2x8x16xf32>
    "tpu.trace_start"() <{level = 10 : i32, message = "bqs,bsk->bqk"}> : () -> ()
    %cst_57 = arith.constant dense<0.000000e+00> : vector<2x8x16xf32>
    %159 = tpu.matmul %157, %158, %cst_57 {dimension_numbers = #tpu.dot_dimension_numbers<[2], [1], [1], [2], [0, 0, 0, 1, 1, 2], [0], [0]>} : vector<2x8x8xf32>, vector<2x8x16xf32>, vector<2x8x16xf32> -> vector<2x8x16xf32>
    "tpu.trace_stop"() : () -> ()
    %160 = tpu.concatenate %33, %51, %69, %87, %105, %123, %141, %159 in 2 : vector<2x8x16xf32>, vector<2x8x16xf32>, vector<2x8x16xf32>, vector<2x8x16xf32>, vector<2x8x16xf32>, vector<2x8x16xf32>, vector<2x8x16xf32>, vector<2x8x16xf32> -> vector<2x8x128xf32>
    %161 = vector.shape_cast %160 : vector<2x8x128xf32> to vector<16x128xf32>
    %c0_58 = arith.constant 0 : index
    %c0_59 = arith.constant 0 : index
    %c0_60 = arith.constant 0 : index
    %162 = vector.load %arg4[%c0_58, %c0_59, %c0_60] : memref<2x128x128xf32, #tpu.memory_space<vmem>>, vector<1x128x128xf32>
    %163 = vector.shape_cast %162 : vector<1x128x128xf32> to vector<128x128xf32>
    %cst_61 = arith.constant dense<0.000000e+00> : vector<16x128xf32>
    %164 = tpu.matmul %161, %163, %cst_61 {dimension_numbers = #tpu.dot_dimension_numbers<[1], [0], [0], [1], [0, 0, 1, 1], [], []>} : vector<16x128xf32>, vector<128x128xf32>, vector<16x128xf32> -> vector<16x128xf32>
    %165 = arith.addf %6, %164 : vector<16x128xf32>
    %c0_62 = arith.constant 0 : index
    %c0_63 = arith.constant 0 : index
    %c0_64 = arith.constant 0 : index
    %166 = vector.load %arg5[%c0_62, %c0_63, %c0_64] : memref<2x1x128xf32, #tpu.memory_space<vmem>>, vector<1x1x128xf32>
    %167 = vector.shape_cast %166 : vector<1x1x128xf32> to vector<1x128xf32>
    %c0_65 = arith.constant 0 : index
    %c0_66 = arith.constant 0 : index
    %c0_67 = arith.constant 0 : index
    %168 = vector.load %arg6[%c0_65, %c0_66, %c0_67] : memref<2x1x128xf32, #tpu.memory_space<vmem>>, vector<1x1x128xf32>
    %169 = vector.shape_cast %168 : vector<1x1x128xf32> to vector<1x128xf32>
    %cst_68 = arith.constant dense<0.000000e+00> : vector<128xf32>
    %170 = vector.multi_reduction <add>, %165, %cst_68 [0] : vector<16x128xf32> to vector<128xf32>
    %171 = vector.shape_cast %170 : vector<128xf32> to vector<1x128xf32>
    %cst_69 = arith.constant 1.600000e+01 : f32
    %172 = vector.broadcast %cst_69 : f32 to vector<1x128xf32>
    %173 = arith.divf %171, %172 : vector<1x128xf32>
    %174 = vector.broadcast %173 : vector<1x128xf32> to vector<16x128xf32>
    %175 = arith.subf %165, %174 : vector<16x128xf32>
    %176 = arith.mulf %175, %175 : vector<16x128xf32>
    %cst_70 = arith.constant dense<0.000000e+00> : vector<128xf32>
    %177 = vector.multi_reduction <add>, %176, %cst_70 [0] : vector<16x128xf32> to vector<128xf32>
    %178 = vector.shape_cast %177 : vector<128xf32> to vector<1x128xf32>
    %cst_71 = arith.constant 1.600000e+01 : f32
    %179 = vector.broadcast %cst_71 : f32 to vector<1x128xf32>
    %180 = arith.divf %178, %179 : vector<1x128xf32>
    %181 = vector.broadcast %173 : vector<1x128xf32> to vector<16x128xf32>
    %182 = arith.subf %165, %181 : vector<16x128xf32>
    %cst_72 = arith.constant 9.99999974E-6 : f32
    %183 = vector.broadcast %cst_72 : f32 to vector<1x128xf32>
    %184 = arith.addf %180, %183 : vector<1x128xf32>
    %185 = math.rsqrt %184 : vector<1x128xf32>
    %186 = vector.broadcast %185 : vector<1x128xf32> to vector<16x128xf32>
    %187 = arith.mulf %182, %186 : vector<16x128xf32>
    %188 = vector.broadcast %167 : vector<1x128xf32> to vector<16x128xf32>
    %189 = arith.mulf %187, %188 : vector<16x128xf32>
    %190 = vector.broadcast %169 : vector<1x128xf32> to vector<16x128xf32>
    %191 = arith.addf %189, %190 : vector<16x128xf32>
    %c0_73 = arith.constant 0 : index
    %c0_74 = arith.constant 0 : index
    %c0_75 = arith.constant 0 : index
    %192 = vector.load %arg7[%c0_73, %c0_74, %c0_75] : memref<2x128x512xf32, #tpu.memory_space<vmem>>, vector<1x128x512xf32>
    %193 = vector.shape_cast %192 : vector<1x128x512xf32> to vector<128x512xf32>
    %cst_76 = arith.constant dense<0.000000e+00> : vector<16x512xf32>
    %194 = tpu.matmul %191, %193, %cst_76 {dimension_numbers = #tpu.dot_dimension_numbers<[1], [0], [0], [1], [0, 0, 1, 1], [], []>} : vector<16x128xf32>, vector<128x512xf32>, vector<16x512xf32> -> vector<16x512xf32>
    %c0_77 = arith.constant 0 : index
    %c0_78 = arith.constant 0 : index
    %c0_79 = arith.constant 0 : index
    %195 = vector.load %arg8[%c0_77, %c0_78, %c0_79] : memref<2x1x512xf32, #tpu.memory_space<vmem>>, vector<1x1x512xf32>
    %196 = vector.shape_cast %195 : vector<1x1x512xf32> to vector<1x512xf32>
    %197 = vector.broadcast %196 : vector<1x512xf32> to vector<16x512xf32>
    %198 = arith.addf %194, %197 : vector<16x512xf32>
    %cst_80 = arith.constant 0.000000e+00 : f32
    %199 = vector.broadcast %cst_80 : f32 to vector<16x512xf32>
    %200 = arith.maximumf %198, %199 : vector<16x512xf32>
    %c0_81 = arith.constant 0 : index
    %c0_82 = arith.constant 0 : index
    %c0_83 = arith.constant 0 : index
    %201 = vector.load %arg9[%c0_81, %c0_82, %c0_83] : memref<2x512x128xf32, #tpu.memory_space<vmem>>, vector<1x512x128xf32>
    %202 = vector.shape_cast %201 : vector<1x512x128xf32> to vector<512x128xf32>
    %cst_84 = arith.constant dense<0.000000e+00> : vector<16x128xf32>
    %203 = tpu.matmul %200, %202, %cst_84 {dimension_numbers = #tpu.dot_dimension_numbers<[1], [0], [0], [1], [0, 0, 1, 1], [], []>} : vector<16x512xf32>, vector<512x128xf32>, vector<16x128xf32> -> vector<16x128xf32>
    %c0_85 = arith.constant 0 : index
    %c0_86 = arith.constant 0 : index
    %c0_87 = arith.constant 0 : index
    %204 = vector.load %arg10[%c0_85, %c0_86, %c0_87] : memref<2x1x128xf32, #tpu.memory_space<vmem>>, vector<1x1x128xf32>
    %205 = vector.shape_cast %204 : vector<1x1x128xf32> to vector<1x128xf32>
    %206 = vector.broadcast %205 : vector<1x128xf32> to vector<16x128xf32>
    %207 = arith.addf %203, %206 : vector<16x128xf32>
    %208 = arith.addf %191, %207 : vector<16x128xf32>
    %c0_88 = arith.constant 0 : index
    %c0_89 = arith.constant 0 : index
    %c0_90 = arith.constant 0 : index
    %209 = vector.load %arg11[%c0_88, %c0_89, %c0_90] : memref<2x1x128xf32, #tpu.memory_space<vmem>>, vector<1x1x128xf32>
    %210 = vector.shape_cast %209 : vector<1x1x128xf32> to vector<1x128xf32>
    %c0_91 = arith.constant 0 : index
    %c0_92 = arith.constant 0 : index
    %c0_93 = arith.constant 0 : index
    %211 = vector.load %arg12[%c0_91, %c0_92, %c0_93] : memref<2x1x128xf32, #tpu.memory_space<vmem>>, vector<1x1x128xf32>
    %212 = vector.shape_cast %211 : vector<1x1x128xf32> to vector<1x128xf32>
    %cst_94 = arith.constant dense<0.000000e+00> : vector<128xf32>
    %213 = vector.multi_reduction <add>, %208, %cst_94 [0] : vector<16x128xf32> to vector<128xf32>
    %214 = vector.shape_cast %213 : vector<128xf32> to vector<1x128xf32>
    %cst_95 = arith.constant 1.600000e+01 : f32
    %215 = vector.broadcast %cst_95 : f32 to vector<1x128xf32>
    %216 = arith.divf %214, %215 : vector<1x128xf32>
    %217 = vector.broadcast %216 : vector<1x128xf32> to vector<16x128xf32>
    %218 = arith.subf %208, %217 : vector<16x128xf32>
    %219 = arith.mulf %218, %218 : vector<16x128xf32>
    %cst_96 = arith.constant dense<0.000000e+00> : vector<128xf32>
    %220 = vector.multi_reduction <add>, %219, %cst_96 [0] : vector<16x128xf32> to vector<128xf32>
    %221 = vector.shape_cast %220 : vector<128xf32> to vector<1x128xf32>
    %cst_97 = arith.constant 1.600000e+01 : f32
    %222 = vector.broadcast %cst_97 : f32 to vector<1x128xf32>
    %223 = arith.divf %221, %222 : vector<1x128xf32>
    %224 = vector.broadcast %216 : vector<1x128xf32> to vector<16x128xf32>
    %225 = arith.subf %208, %224 : vector<16x128xf32>
    %cst_98 = arith.constant 9.99999974E-6 : f32
    %226 = vector.broadcast %cst_98 : f32 to vector<1x128xf32>
    %227 = arith.addf %223, %226 : vector<1x128xf32>
    %228 = math.rsqrt %227 : vector<1x128xf32>
    %229 = vector.broadcast %228 : vector<1x128xf32> to vector<16x128xf32>
    %230 = arith.mulf %225, %229 : vector<16x128xf32>
    %231 = vector.broadcast %210 : vector<1x128xf32> to vector<16x128xf32>
    %232 = arith.mulf %230, %231 : vector<16x128xf32>
    %233 = vector.broadcast %212 : vector<1x128xf32> to vector<16x128xf32>
    %234 = arith.addf %232, %233 : vector<16x128xf32>
    %c1 = arith.constant 1 : index
    %c0_99 = arith.constant 0 : index
    %c0_100 = arith.constant 0 : index
    %235 = vector.load %arg3[%c1, %c0_99, %c0_100] : memref<2x128x384xf32, #tpu.memory_space<vmem>>, vector<1x128x384xf32>
    %236 = vector.shape_cast %235 : vector<1x128x384xf32> to vector<128x384xf32>
    %cst_101 = arith.constant dense<0.000000e+00> : vector<16x384xf32>
    %237 = tpu.matmul %234, %236, %cst_101 {dimension_numbers = #tpu.dot_dimension_numbers<[1], [0], [0], [1], [0, 0, 1, 1], [], []>} : vector<16x128xf32>, vector<128x384xf32>, vector<16x384xf32> -> vector<16x384xf32>
    %238 = vector.extract_strided_slice %237 {offsets = [0, 0], sizes = [16, 128], strides = [1, 1]} : vector<16x384xf32> to vector<16x128xf32>
    %239 = vector.shape_cast %238 : vector<16x128xf32> to vector<2x8x128xf32>
    %240 = vector.extract_strided_slice %237 {offsets = [0, 128], sizes = [16, 128], strides = [1, 1]} : vector<16x384xf32> to vector<16x128xf32>
    %241 = vector.shape_cast %240 : vector<16x128xf32> to vector<2x8x128xf32>
    %242 = vector.extract_strided_slice %237 {offsets = [0, 256], sizes = [16, 128], strides = [1, 1]} : vector<16x384xf32> to vector<16x128xf32>
    %243 = vector.shape_cast %242 : vector<16x128xf32> to vector<2x8x128xf32>
    %244 = vector.extract_strided_slice %239 {offsets = [0, 0, 0], sizes = [2, 8, 16], strides = [1, 1, 1]} : vector<2x8x128xf32> to vector<2x8x16xf32>
    %245 = vector.extract_strided_slice %241 {offsets = [0, 0, 0], sizes = [2, 8, 16], strides = [1, 1, 1]} : vector<2x8x128xf32> to vector<2x8x16xf32>
    "tpu.trace_start"() <{level = 10 : i32, message = "bqk,bsk->bqs"}> : () -> ()
    %cst_102 = arith.constant dense<0.000000e+00> : vector<2x8x8xf32>
    %246 = tpu.matmul %244, %245, %cst_102 {dimension_numbers = #tpu.dot_dimension_numbers<[2], [2], [1], [1], [0, 0, 0, 1, 1, 1], [0], [0]>} : vector<2x8x16xf32>, vector<2x8x16xf32>, vector<2x8x8xf32> -> vector<2x8x8xf32>
    "tpu.trace_stop"() : () -> ()
    %cst_103 = arith.constant 2.500000e-01 : f32
    %247 = vector.broadcast %cst_103 : f32 to vector<2x8x8xf32>
    %248 = arith.mulf %246, %247 : vector<2x8x8xf32>
    %cst_104 = arith.constant dense<0xFF800000> : vector<2x8xf32>
    %249 = vector.multi_reduction <maximumf>, %248, %cst_104 [2] : vector<2x8x8xf32> to vector<2x8xf32>
    %cst_105 = arith.constant 0xFF800000 : f32
    %250 = vector.broadcast %cst_105 : f32 to vector<2x8xf32>
    %251 = arith.maximumf %250, %249 : vector<2x8xf32>
    %252 = vector.shape_cast %251 : vector<2x8xf32> to vector<2x8x1xf32>
    %253 = vector.broadcast %252 : vector<2x8x1xf32> to vector<2x8x8xf32>
    %254 = arith.subf %248, %253 : vector<2x8x8xf32>
    %255 = math.exp %254 : vector<2x8x8xf32>
    %cst_106 = arith.constant dense<0.000000e+00> : vector<2x8xf32>
    %256 = vector.multi_reduction <add>, %255, %cst_106 [2] : vector<2x8x8xf32> to vector<2x8xf32>
    %257 = vector.shape_cast %256 : vector<2x8xf32> to vector<2x8x1xf32>
    %258 = vector.broadcast %257 : vector<2x8x1xf32> to vector<2x8x8xf32>
    %259 = arith.divf %255, %258 : vector<2x8x8xf32>
    %260 = vector.extract_strided_slice %243 {offsets = [0, 0, 0], sizes = [2, 8, 16], strides = [1, 1, 1]} : vector<2x8x128xf32> to vector<2x8x16xf32>
    "tpu.trace_start"() <{level = 10 : i32, message = "bqs,bsk->bqk"}> : () -> ()
    %cst_107 = arith.constant dense<0.000000e+00> : vector<2x8x16xf32>
    %261 = tpu.matmul %259, %260, %cst_107 {dimension_numbers = #tpu.dot_dimension_numbers<[2], [1], [1], [2], [0, 0, 0, 1, 1, 2], [0], [0]>} : vector<2x8x8xf32>, vector<2x8x16xf32>, vector<2x8x16xf32> -> vector<2x8x16xf32>
    "tpu.trace_stop"() : () -> ()
    %262 = vector.extract_strided_slice %239 {offsets = [0, 0, 16], sizes = [2, 8, 16], strides = [1, 1, 1]} : vector<2x8x128xf32> to vector<2x8x16xf32>
    %263 = vector.extract_strided_slice %241 {offsets = [0, 0, 16], sizes = [2, 8, 16], strides = [1, 1, 1]} : vector<2x8x128xf32> to vector<2x8x16xf32>
    "tpu.trace_start"() <{level = 10 : i32, message = "bqk,bsk->bqs"}> : () -> ()
    %cst_108 = arith.constant dense<0.000000e+00> : vector<2x8x8xf32>
    %264 = tpu.matmul %262, %263, %cst_108 {dimension_numbers = #tpu.dot_dimension_numbers<[2], [2], [1], [1], [0, 0, 0, 1, 1, 1], [0], [0]>} : vector<2x8x16xf32>, vector<2x8x16xf32>, vector<2x8x8xf32> -> vector<2x8x8xf32>
    "tpu.trace_stop"() : () -> ()
    %cst_109 = arith.constant 2.500000e-01 : f32
    %265 = vector.broadcast %cst_109 : f32 to vector<2x8x8xf32>
    %266 = arith.mulf %264, %265 : vector<2x8x8xf32>
    %cst_110 = arith.constant dense<0xFF800000> : vector<2x8xf32>
    %267 = vector.multi_reduction <maximumf>, %266, %cst_110 [2] : vector<2x8x8xf32> to vector<2x8xf32>
    %cst_111 = arith.constant 0xFF800000 : f32
    %268 = vector.broadcast %cst_111 : f32 to vector<2x8xf32>
    %269 = arith.maximumf %268, %267 : vector<2x8xf32>
    %270 = vector.shape_cast %269 : vector<2x8xf32> to vector<2x8x1xf32>
    %271 = vector.broadcast %270 : vector<2x8x1xf32> to vector<2x8x8xf32>
    %272 = arith.subf %266, %271 : vector<2x8x8xf32>
    %273 = math.exp %272 : vector<2x8x8xf32>
    %cst_112 = arith.constant dense<0.000000e+00> : vector<2x8xf32>
    %274 = vector.multi_reduction <add>, %273, %cst_112 [2] : vector<2x8x8xf32> to vector<2x8xf32>
    %275 = vector.shape_cast %274 : vector<2x8xf32> to vector<2x8x1xf32>
    %276 = vector.broadcast %275 : vector<2x8x1xf32> to vector<2x8x8xf32>
    %277 = arith.divf %273, %276 : vector<2x8x8xf32>
    %278 = vector.extract_strided_slice %243 {offsets = [0, 0, 16], sizes = [2, 8, 16], strides = [1, 1, 1]} : vector<2x8x128xf32> to vector<2x8x16xf32>
    "tpu.trace_start"() <{level = 10 : i32, message = "bqs,bsk->bqk"}> : () -> ()
    %cst_113 = arith.constant dense<0.000000e+00> : vector<2x8x16xf32>
    %279 = tpu.matmul %277, %278, %cst_113 {dimension_numbers = #tpu.dot_dimension_numbers<[2], [1], [1], [2], [0, 0, 0, 1, 1, 2], [0], [0]>} : vector<2x8x8xf32>, vector<2x8x16xf32>, vector<2x8x16xf32> -> vector<2x8x16xf32>
    "tpu.trace_stop"() : () -> ()
    %280 = vector.extract_strided_slice %239 {offsets = [0, 0, 32], sizes = [2, 8, 16], strides = [1, 1, 1]} : vector<2x8x128xf32> to vector<2x8x16xf32>
    %281 = vector.extract_strided_slice %241 {offsets = [0, 0, 32], sizes = [2, 8, 16], strides = [1, 1, 1]} : vector<2x8x128xf32> to vector<2x8x16xf32>
    "tpu.trace_start"() <{level = 10 : i32, message = "bqk,bsk->bqs"}> : () -> ()
    %cst_114 = arith.constant dense<0.000000e+00> : vector<2x8x8xf32>
    %282 = tpu.matmul %280, %281, %cst_114 {dimension_numbers = #tpu.dot_dimension_numbers<[2], [2], [1], [1], [0, 0, 0, 1, 1, 1], [0], [0]>} : vector<2x8x16xf32>, vector<2x8x16xf32>, vector<2x8x8xf32> -> vector<2x8x8xf32>
    "tpu.trace_stop"() : () -> ()
    %cst_115 = arith.constant 2.500000e-01 : f32
    %283 = vector.broadcast %cst_115 : f32 to vector<2x8x8xf32>
    %284 = arith.mulf %282, %283 : vector<2x8x8xf32>
    %cst_116 = arith.constant dense<0xFF800000> : vector<2x8xf32>
    %285 = vector.multi_reduction <maximumf>, %284, %cst_116 [2] : vector<2x8x8xf32> to vector<2x8xf32>
    %cst_117 = arith.constant 0xFF800000 : f32
    %286 = vector.broadcast %cst_117 : f32 to vector<2x8xf32>
    %287 = arith.maximumf %286, %285 : vector<2x8xf32>
    %288 = vector.shape_cast %287 : vector<2x8xf32> to vector<2x8x1xf32>
    %289 = vector.broadcast %288 : vector<2x8x1xf32> to vector<2x8x8xf32>
    %290 = arith.subf %284, %289 : vector<2x8x8xf32>
    %291 = math.exp %290 : vector<2x8x8xf32>
    %cst_118 = arith.constant dense<0.000000e+00> : vector<2x8xf32>
    %292 = vector.multi_reduction <add>, %291, %cst_118 [2] : vector<2x8x8xf32> to vector<2x8xf32>
    %293 = vector.shape_cast %292 : vector<2x8xf32> to vector<2x8x1xf32>
    %294 = vector.broadcast %293 : vector<2x8x1xf32> to vector<2x8x8xf32>
    %295 = arith.divf %291, %294 : vector<2x8x8xf32>
    %296 = vector.extract_strided_slice %243 {offsets = [0, 0, 32], sizes = [2, 8, 16], strides = [1, 1, 1]} : vector<2x8x128xf32> to vector<2x8x16xf32>
    "tpu.trace_start"() <{level = 10 : i32, message = "bqs,bsk->bqk"}> : () -> ()
    %cst_119 = arith.constant dense<0.000000e+00> : vector<2x8x16xf32>
    %297 = tpu.matmul %295, %296, %cst_119 {dimension_numbers = #tpu.dot_dimension_numbers<[2], [1], [1], [2], [0, 0, 0, 1, 1, 2], [0], [0]>} : vector<2x8x8xf32>, vector<2x8x16xf32>, vector<2x8x16xf32> -> vector<2x8x16xf32>
    "tpu.trace_stop"() : () -> ()
    %298 = vector.extract_strided_slice %239 {offsets = [0, 0, 48], sizes = [2, 8, 16], strides = [1, 1, 1]} : vector<2x8x128xf32> to vector<2x8x16xf32>
    %299 = vector.extract_strided_slice %241 {offsets = [0, 0, 48], sizes = [2, 8, 16], strides = [1, 1, 1]} : vector<2x8x128xf32> to vector<2x8x16xf32>
    "tpu.trace_start"() <{level = 10 : i32, message = "bqk,bsk->bqs"}> : () -> ()
    %cst_120 = arith.constant dense<0.000000e+00> : vector<2x8x8xf32>
    %300 = tpu.matmul %298, %299, %cst_120 {dimension_numbers = #tpu.dot_dimension_numbers<[2], [2], [1], [1], [0, 0, 0, 1, 1, 1], [0], [0]>} : vector<2x8x16xf32>, vector<2x8x16xf32>, vector<2x8x8xf32> -> vector<2x8x8xf32>
    "tpu.trace_stop"() : () -> ()
    %cst_121 = arith.constant 2.500000e-01 : f32
    %301 = vector.broadcast %cst_121 : f32 to vector<2x8x8xf32>
    %302 = arith.mulf %300, %301 : vector<2x8x8xf32>
    %cst_122 = arith.constant dense<0xFF800000> : vector<2x8xf32>
    %303 = vector.multi_reduction <maximumf>, %302, %cst_122 [2] : vector<2x8x8xf32> to vector<2x8xf32>
    %cst_123 = arith.constant 0xFF800000 : f32
    %304 = vector.broadcast %cst_123 : f32 to vector<2x8xf32>
    %305 = arith.maximumf %304, %303 : vector<2x8xf32>
    %306 = vector.shape_cast %305 : vector<2x8xf32> to vector<2x8x1xf32>
    %307 = vector.broadcast %306 : vector<2x8x1xf32> to vector<2x8x8xf32>
    %308 = arith.subf %302, %307 : vector<2x8x8xf32>
    %309 = math.exp %308 : vector<2x8x8xf32>
    %cst_124 = arith.constant dense<0.000000e+00> : vector<2x8xf32>
    %310 = vector.multi_reduction <add>, %309, %cst_124 [2] : vector<2x8x8xf32> to vector<2x8xf32>
    %311 = vector.shape_cast %310 : vector<2x8xf32> to vector<2x8x1xf32>
    %312 = vector.broadcast %311 : vector<2x8x1xf32> to vector<2x8x8xf32>
    %313 = arith.divf %309, %312 : vector<2x8x8xf32>
    %314 = vector.extract_strided_slice %243 {offsets = [0, 0, 48], sizes = [2, 8, 16], strides = [1, 1, 1]} : vector<2x8x128xf32> to vector<2x8x16xf32>
    "tpu.trace_start"() <{level = 10 : i32, message = "bqs,bsk->bqk"}> : () -> ()
    %cst_125 = arith.constant dense<0.000000e+00> : vector<2x8x16xf32>
    %315 = tpu.matmul %313, %314, %cst_125 {dimension_numbers = #tpu.dot_dimension_numbers<[2], [1], [1], [2], [0, 0, 0, 1, 1, 2], [0], [0]>} : vector<2x8x8xf32>, vector<2x8x16xf32>, vector<2x8x16xf32> -> vector<2x8x16xf32>
    "tpu.trace_stop"() : () -> ()
    %316 = vector.extract_strided_slice %239 {offsets = [0, 0, 64], sizes = [2, 8, 16], strides = [1, 1, 1]} : vector<2x8x128xf32> to vector<2x8x16xf32>
    %317 = vector.extract_strided_slice %241 {offsets = [0, 0, 64], sizes = [2, 8, 16], strides = [1, 1, 1]} : vector<2x8x128xf32> to vector<2x8x16xf32>
    "tpu.trace_start"() <{level = 10 : i32, message = "bqk,bsk->bqs"}> : () -> ()
    %cst_126 = arith.constant dense<0.000000e+00> : vector<2x8x8xf32>
    %318 = tpu.matmul %316, %317, %cst_126 {dimension_numbers = #tpu.dot_dimension_numbers<[2], [2], [1], [1], [0, 0, 0, 1, 1, 1], [0], [0]>} : vector<2x8x16xf32>, vector<2x8x16xf32>, vector<2x8x8xf32> -> vector<2x8x8xf32>
    "tpu.trace_stop"() : () -> ()
    %cst_127 = arith.constant 2.500000e-01 : f32
    %319 = vector.broadcast %cst_127 : f32 to vector<2x8x8xf32>
    %320 = arith.mulf %318, %319 : vector<2x8x8xf32>
    %cst_128 = arith.constant dense<0xFF800000> : vector<2x8xf32>
    %321 = vector.multi_reduction <maximumf>, %320, %cst_128 [2] : vector<2x8x8xf32> to vector<2x8xf32>
    %cst_129 = arith.constant 0xFF800000 : f32
    %322 = vector.broadcast %cst_129 : f32 to vector<2x8xf32>
    %323 = arith.maximumf %322, %321 : vector<2x8xf32>
    %324 = vector.shape_cast %323 : vector<2x8xf32> to vector<2x8x1xf32>
    %325 = vector.broadcast %324 : vector<2x8x1xf32> to vector<2x8x8xf32>
    %326 = arith.subf %320, %325 : vector<2x8x8xf32>
    %327 = math.exp %326 : vector<2x8x8xf32>
    %cst_130 = arith.constant dense<0.000000e+00> : vector<2x8xf32>
    %328 = vector.multi_reduction <add>, %327, %cst_130 [2] : vector<2x8x8xf32> to vector<2x8xf32>
    %329 = vector.shape_cast %328 : vector<2x8xf32> to vector<2x8x1xf32>
    %330 = vector.broadcast %329 : vector<2x8x1xf32> to vector<2x8x8xf32>
    %331 = arith.divf %327, %330 : vector<2x8x8xf32>
    %332 = vector.extract_strided_slice %243 {offsets = [0, 0, 64], sizes = [2, 8, 16], strides = [1, 1, 1]} : vector<2x8x128xf32> to vector<2x8x16xf32>
    "tpu.trace_start"() <{level = 10 : i32, message = "bqs,bsk->bqk"}> : () -> ()
    %cst_131 = arith.constant dense<0.000000e+00> : vector<2x8x16xf32>
    %333 = tpu.matmul %331, %332, %cst_131 {dimension_numbers = #tpu.dot_dimension_numbers<[2], [1], [1], [2], [0, 0, 0, 1, 1, 2], [0], [0]>} : vector<2x8x8xf32>, vector<2x8x16xf32>, vector<2x8x16xf32> -> vector<2x8x16xf32>
    "tpu.trace_stop"() : () -> ()
    %334 = vector.extract_strided_slice %239 {offsets = [0, 0, 80], sizes = [2, 8, 16], strides = [1, 1, 1]} : vector<2x8x128xf32> to vector<2x8x16xf32>
    %335 = vector.extract_strided_slice %241 {offsets = [0, 0, 80], sizes = [2, 8, 16], strides = [1, 1, 1]} : vector<2x8x128xf32> to vector<2x8x16xf32>
    "tpu.trace_start"() <{level = 10 : i32, message = "bqk,bsk->bqs"}> : () -> ()
    %cst_132 = arith.constant dense<0.000000e+00> : vector<2x8x8xf32>
    %336 = tpu.matmul %334, %335, %cst_132 {dimension_numbers = #tpu.dot_dimension_numbers<[2], [2], [1], [1], [0, 0, 0, 1, 1, 1], [0], [0]>} : vector<2x8x16xf32>, vector<2x8x16xf32>, vector<2x8x8xf32> -> vector<2x8x8xf32>
    "tpu.trace_stop"() : () -> ()
    %cst_133 = arith.constant 2.500000e-01 : f32
    %337 = vector.broadcast %cst_133 : f32 to vector<2x8x8xf32>
    %338 = arith.mulf %336, %337 : vector<2x8x8xf32>
    %cst_134 = arith.constant dense<0xFF800000> : vector<2x8xf32>
    %339 = vector.multi_reduction <maximumf>, %338, %cst_134 [2] : vector<2x8x8xf32> to vector<2x8xf32>
    %cst_135 = arith.constant 0xFF800000 : f32
    %340 = vector.broadcast %cst_135 : f32 to vector<2x8xf32>
    %341 = arith.maximumf %340, %339 : vector<2x8xf32>
    %342 = vector.shape_cast %341 : vector<2x8xf32> to vector<2x8x1xf32>
    %343 = vector.broadcast %342 : vector<2x8x1xf32> to vector<2x8x8xf32>
    %344 = arith.subf %338, %343 : vector<2x8x8xf32>
    %345 = math.exp %344 : vector<2x8x8xf32>
    %cst_136 = arith.constant dense<0.000000e+00> : vector<2x8xf32>
    %346 = vector.multi_reduction <add>, %345, %cst_136 [2] : vector<2x8x8xf32> to vector<2x8xf32>
    %347 = vector.shape_cast %346 : vector<2x8xf32> to vector<2x8x1xf32>
    %348 = vector.broadcast %347 : vector<2x8x1xf32> to vector<2x8x8xf32>
    %349 = arith.divf %345, %348 : vector<2x8x8xf32>
    %350 = vector.extract_strided_slice %243 {offsets = [0, 0, 80], sizes = [2, 8, 16], strides = [1, 1, 1]} : vector<2x8x128xf32> to vector<2x8x16xf32>
    "tpu.trace_start"() <{level = 10 : i32, message = "bqs,bsk->bqk"}> : () -> ()
    %cst_137 = arith.constant dense<0.000000e+00> : vector<2x8x16xf32>
    %351 = tpu.matmul %349, %350, %cst_137 {dimension_numbers = #tpu.dot_dimension_numbers<[2], [1], [1], [2], [0, 0, 0, 1, 1, 2], [0], [0]>} : vector<2x8x8xf32>, vector<2x8x16xf32>, vector<2x8x16xf32> -> vector<2x8x16xf32>
    "tpu.trace_stop"() : () -> ()
    %352 = vector.extract_strided_slice %239 {offsets = [0, 0, 96], sizes = [2, 8, 16], strides = [1, 1, 1]} : vector<2x8x128xf32> to vector<2x8x16xf32>
    %353 = vector.extract_strided_slice %241 {offsets = [0, 0, 96], sizes = [2, 8, 16], strides = [1, 1, 1]} : vector<2x8x128xf32> to vector<2x8x16xf32>
    "tpu.trace_start"() <{level = 10 : i32, message = "bqk,bsk->bqs"}> : () -> ()
    %cst_138 = arith.constant dense<0.000000e+00> : vector<2x8x8xf32>
    %354 = tpu.matmul %352, %353, %cst_138 {dimension_numbers = #tpu.dot_dimension_numbers<[2], [2], [1], [1], [0, 0, 0, 1, 1, 1], [0], [0]>} : vector<2x8x16xf32>, vector<2x8x16xf32>, vector<2x8x8xf32> -> vector<2x8x8xf32>
    "tpu.trace_stop"() : () -> ()
    %cst_139 = arith.constant 2.500000e-01 : f32
    %355 = vector.broadcast %cst_139 : f32 to vector<2x8x8xf32>
    %356 = arith.mulf %354, %355 : vector<2x8x8xf32>
    %cst_140 = arith.constant dense<0xFF800000> : vector<2x8xf32>
    %357 = vector.multi_reduction <maximumf>, %356, %cst_140 [2] : vector<2x8x8xf32> to vector<2x8xf32>
    %cst_141 = arith.constant 0xFF800000 : f32
    %358 = vector.broadcast %cst_141 : f32 to vector<2x8xf32>
    %359 = arith.maximumf %358, %357 : vector<2x8xf32>
    %360 = vector.shape_cast %359 : vector<2x8xf32> to vector<2x8x1xf32>
    %361 = vector.broadcast %360 : vector<2x8x1xf32> to vector<2x8x8xf32>
    %362 = arith.subf %356, %361 : vector<2x8x8xf32>
    %363 = math.exp %362 : vector<2x8x8xf32>
    %cst_142 = arith.constant dense<0.000000e+00> : vector<2x8xf32>
    %364 = vector.multi_reduction <add>, %363, %cst_142 [2] : vector<2x8x8xf32> to vector<2x8xf32>
    %365 = vector.shape_cast %364 : vector<2x8xf32> to vector<2x8x1xf32>
    %366 = vector.broadcast %365 : vector<2x8x1xf32> to vector<2x8x8xf32>
    %367 = arith.divf %363, %366 : vector<2x8x8xf32>
    %368 = vector.extract_strided_slice %243 {offsets = [0, 0, 96], sizes = [2, 8, 16], strides = [1, 1, 1]} : vector<2x8x128xf32> to vector<2x8x16xf32>
    "tpu.trace_start"() <{level = 10 : i32, message = "bqs,bsk->bqk"}> : () -> ()
    %cst_143 = arith.constant dense<0.000000e+00> : vector<2x8x16xf32>
    %369 = tpu.matmul %367, %368, %cst_143 {dimension_numbers = #tpu.dot_dimension_numbers<[2], [1], [1], [2], [0, 0, 0, 1, 1, 2], [0], [0]>} : vector<2x8x8xf32>, vector<2x8x16xf32>, vector<2x8x16xf32> -> vector<2x8x16xf32>
    "tpu.trace_stop"() : () -> ()
    %370 = vector.extract_strided_slice %239 {offsets = [0, 0, 112], sizes = [2, 8, 16], strides = [1, 1, 1]} : vector<2x8x128xf32> to vector<2x8x16xf32>
    %371 = vector.extract_strided_slice %241 {offsets = [0, 0, 112], sizes = [2, 8, 16], strides = [1, 1, 1]} : vector<2x8x128xf32> to vector<2x8x16xf32>
    "tpu.trace_start"() <{level = 10 : i32, message = "bqk,bsk->bqs"}> : () -> ()
    %cst_144 = arith.constant dense<0.000000e+00> : vector<2x8x8xf32>
    %372 = tpu.matmul %370, %371, %cst_144 {dimension_numbers = #tpu.dot_dimension_numbers<[2], [2], [1], [1], [0, 0, 0, 1, 1, 1], [0], [0]>} : vector<2x8x16xf32>, vector<2x8x16xf32>, vector<2x8x8xf32> -> vector<2x8x8xf32>
    "tpu.trace_stop"() : () -> ()
    %cst_145 = arith.constant 2.500000e-01 : f32
    %373 = vector.broadcast %cst_145 : f32 to vector<2x8x8xf32>
    %374 = arith.mulf %372, %373 : vector<2x8x8xf32>
    %cst_146 = arith.constant dense<0xFF800000> : vector<2x8xf32>
    %375 = vector.multi_reduction <maximumf>, %374, %cst_146 [2] : vector<2x8x8xf32> to vector<2x8xf32>
    %cst_147 = arith.constant 0xFF800000 : f32
    %376 = vector.broadcast %cst_147 : f32 to vector<2x8xf32>
    %377 = arith.maximumf %376, %375 : vector<2x8xf32>
    %378 = vector.shape_cast %377 : vector<2x8xf32> to vector<2x8x1xf32>
    %379 = vector.broadcast %378 : vector<2x8x1xf32> to vector<2x8x8xf32>
    %380 = arith.subf %374, %379 : vector<2x8x8xf32>
    %381 = math.exp %380 : vector<2x8x8xf32>
    %cst_148 = arith.constant dense<0.000000e+00> : vector<2x8xf32>
    %382 = vector.multi_reduction <add>, %381, %cst_148 [2] : vector<2x8x8xf32> to vector<2x8xf32>
    %383 = vector.shape_cast %382 : vector<2x8xf32> to vector<2x8x1xf32>
    %384 = vector.broadcast %383 : vector<2x8x1xf32> to vector<2x8x8xf32>
    %385 = arith.divf %381, %384 : vector<2x8x8xf32>
    %386 = vector.extract_strided_slice %243 {offsets = [0, 0, 112], sizes = [2, 8, 16], strides = [1, 1, 1]} : vector<2x8x128xf32> to vector<2x8x16xf32>
    "tpu.trace_start"() <{level = 10 : i32, message = "bqs,bsk->bqk"}> : () -> ()
    %cst_149 = arith.constant dense<0.000000e+00> : vector<2x8x16xf32>
    %387 = tpu.matmul %385, %386, %cst_149 {dimension_numbers = #tpu.dot_dimension_numbers<[2], [1], [1], [2], [0, 0, 0, 1, 1, 2], [0], [0]>} : vector<2x8x8xf32>, vector<2x8x16xf32>, vector<2x8x16xf32> -> vector<2x8x16xf32>
    "tpu.trace_stop"() : () -> ()
    %388 = tpu.concatenate %261, %279, %297, %315, %333, %351, %369, %387 in 2 : vector<2x8x16xf32>, vector<2x8x16xf32>, vector<2x8x16xf32>, vector<2x8x16xf32>, vector<2x8x16xf32>, vector<2x8x16xf32>, vector<2x8x16xf32>, vector<2x8x16xf32> -> vector<2x8x128xf32>
    %389 = vector.shape_cast %388 : vector<2x8x128xf32> to vector<16x128xf32>
    %c1_150 = arith.constant 1 : index
    %c0_151 = arith.constant 0 : index
    %c0_152 = arith.constant 0 : index
    %390 = vector.load %arg4[%c1_150, %c0_151, %c0_152] : memref<2x128x128xf32, #tpu.memory_space<vmem>>, vector<1x128x128xf32>
    %391 = vector.shape_cast %390 : vector<1x128x128xf32> to vector<128x128xf32>
    %cst_153 = arith.constant dense<0.000000e+00> : vector<16x128xf32>
    %392 = tpu.matmul %389, %391, %cst_153 {dimension_numbers = #tpu.dot_dimension_numbers<[1], [0], [0], [1], [0, 0, 1, 1], [], []>} : vector<16x128xf32>, vector<128x128xf32>, vector<16x128xf32> -> vector<16x128xf32>
    %393 = arith.addf %234, %392 : vector<16x128xf32>
    %c1_154 = arith.constant 1 : index
    %c0_155 = arith.constant 0 : index
    %c0_156 = arith.constant 0 : index
    %394 = vector.load %arg5[%c1_154, %c0_155, %c0_156] : memref<2x1x128xf32, #tpu.memory_space<vmem>>, vector<1x1x128xf32>
    %395 = vector.shape_cast %394 : vector<1x1x128xf32> to vector<1x128xf32>
    %c1_157 = arith.constant 1 : index
    %c0_158 = arith.constant 0 : index
    %c0_159 = arith.constant 0 : index
    %396 = vector.load %arg6[%c1_157, %c0_158, %c0_159] : memref<2x1x128xf32, #tpu.memory_space<vmem>>, vector<1x1x128xf32>
    %397 = vector.shape_cast %396 : vector<1x1x128xf32> to vector<1x128xf32>
    %cst_160 = arith.constant dense<0.000000e+00> : vector<128xf32>
    %398 = vector.multi_reduction <add>, %393, %cst_160 [0] : vector<16x128xf32> to vector<128xf32>
    %399 = vector.shape_cast %398 : vector<128xf32> to vector<1x128xf32>
    %cst_161 = arith.constant 1.600000e+01 : f32
    %400 = vector.broadcast %cst_161 : f32 to vector<1x128xf32>
    %401 = arith.divf %399, %400 : vector<1x128xf32>
    %402 = vector.broadcast %401 : vector<1x128xf32> to vector<16x128xf32>
    %403 = arith.subf %393, %402 : vector<16x128xf32>
    %404 = arith.mulf %403, %403 : vector<16x128xf32>
    %cst_162 = arith.constant dense<0.000000e+00> : vector<128xf32>
    %405 = vector.multi_reduction <add>, %404, %cst_162 [0] : vector<16x128xf32> to vector<128xf32>
    %406 = vector.shape_cast %405 : vector<128xf32> to vector<1x128xf32>
    %cst_163 = arith.constant 1.600000e+01 : f32
    %407 = vector.broadcast %cst_163 : f32 to vector<1x128xf32>
    %408 = arith.divf %406, %407 : vector<1x128xf32>
    %409 = vector.broadcast %401 : vector<1x128xf32> to vector<16x128xf32>
    %410 = arith.subf %393, %409 : vector<16x128xf32>
    %cst_164 = arith.constant 9.99999974E-6 : f32
    %411 = vector.broadcast %cst_164 : f32 to vector<1x128xf32>
    %412 = arith.addf %408, %411 : vector<1x128xf32>
    %413 = math.rsqrt %412 : vector<1x128xf32>
    %414 = vector.broadcast %413 : vector<1x128xf32> to vector<16x128xf32>
    %415 = arith.mulf %410, %414 : vector<16x128xf32>
    %416 = vector.broadcast %395 : vector<1x128xf32> to vector<16x128xf32>
    %417 = arith.mulf %415, %416 : vector<16x128xf32>
    %418 = vector.broadcast %397 : vector<1x128xf32> to vector<16x128xf32>
    %419 = arith.addf %417, %418 : vector<16x128xf32>
    %c1_165 = arith.constant 1 : index
    %c0_166 = arith.constant 0 : index
    %c0_167 = arith.constant 0 : index
    %420 = vector.load %arg7[%c1_165, %c0_166, %c0_167] : memref<2x128x512xf32, #tpu.memory_space<vmem>>, vector<1x128x512xf32>
    %421 = vector.shape_cast %420 : vector<1x128x512xf32> to vector<128x512xf32>
    %cst_168 = arith.constant dense<0.000000e+00> : vector<16x512xf32>
    %422 = tpu.matmul %419, %421, %cst_168 {dimension_numbers = #tpu.dot_dimension_numbers<[1], [0], [0], [1], [0, 0, 1, 1], [], []>} : vector<16x128xf32>, vector<128x512xf32>, vector<16x512xf32> -> vector<16x512xf32>
    %c1_169 = arith.constant 1 : index
    %c0_170 = arith.constant 0 : index
    %c0_171 = arith.constant 0 : index
    %423 = vector.load %arg8[%c1_169, %c0_170, %c0_171] : memref<2x1x512xf32, #tpu.memory_space<vmem>>, vector<1x1x512xf32>
    %424 = vector.shape_cast %423 : vector<1x1x512xf32> to vector<1x512xf32>
    %425 = vector.broadcast %424 : vector<1x512xf32> to vector<16x512xf32>
    %426 = arith.addf %422, %425 : vector<16x512xf32>
    %cst_172 = arith.constant 0.000000e+00 : f32
    %427 = vector.broadcast %cst_172 : f32 to vector<16x512xf32>
    %428 = arith.maximumf %426, %427 : vector<16x512xf32>
    %c1_173 = arith.constant 1 : index
    %c0_174 = arith.constant 0 : index
    %c0_175 = arith.constant 0 : index
    %429 = vector.load %arg9[%c1_173, %c0_174, %c0_175] : memref<2x512x128xf32, #tpu.memory_space<vmem>>, vector<1x512x128xf32>
    %430 = vector.shape_cast %429 : vector<1x512x128xf32> to vector<512x128xf32>
    %cst_176 = arith.constant dense<0.000000e+00> : vector<16x128xf32>
    %431 = tpu.matmul %428, %430, %cst_176 {dimension_numbers = #tpu.dot_dimension_numbers<[1], [0], [0], [1], [0, 0, 1, 1], [], []>} : vector<16x512xf32>, vector<512x128xf32>, vector<16x128xf32> -> vector<16x128xf32>
    %c1_177 = arith.constant 1 : index
    %c0_178 = arith.constant 0 : index
    %c0_179 = arith.constant 0 : index
    %432 = vector.load %arg10[%c1_177, %c0_178, %c0_179] : memref<2x1x128xf32, #tpu.memory_space<vmem>>, vector<1x1x128xf32>
    %433 = vector.shape_cast %432 : vector<1x1x128xf32> to vector<1x128xf32>
    %434 = vector.broadcast %433 : vector<1x128xf32> to vector<16x128xf32>
    %435 = arith.addf %431, %434 : vector<16x128xf32>
    %436 = arith.addf %419, %435 : vector<16x128xf32>
    %c1_180 = arith.constant 1 : index
    %c0_181 = arith.constant 0 : index
    %c0_182 = arith.constant 0 : index
    %437 = vector.load %arg11[%c1_180, %c0_181, %c0_182] : memref<2x1x128xf32, #tpu.memory_space<vmem>>, vector<1x1x128xf32>
    %438 = vector.shape_cast %437 : vector<1x1x128xf32> to vector<1x128xf32>
    %c1_183 = arith.constant 1 : index
    %c0_184 = arith.constant 0 : index
    %c0_185 = arith.constant 0 : index
    %439 = vector.load %arg12[%c1_183, %c0_184, %c0_185] : memref<2x1x128xf32, #tpu.memory_space<vmem>>, vector<1x1x128xf32>
    %440 = vector.shape_cast %439 : vector<1x1x128xf32> to vector<1x128xf32>
    %cst_186 = arith.constant dense<0.000000e+00> : vector<128xf32>
    %441 = vector.multi_reduction <add>, %436, %cst_186 [0] : vector<16x128xf32> to vector<128xf32>
    %442 = vector.shape_cast %441 : vector<128xf32> to vector<1x128xf32>
    %cst_187 = arith.constant 1.600000e+01 : f32
    %443 = vector.broadcast %cst_187 : f32 to vector<1x128xf32>
    %444 = arith.divf %442, %443 : vector<1x128xf32>
    %445 = vector.broadcast %444 : vector<1x128xf32> to vector<16x128xf32>
    %446 = arith.subf %436, %445 : vector<16x128xf32>
    %447 = arith.mulf %446, %446 : vector<16x128xf32>
    %cst_188 = arith.constant dense<0.000000e+00> : vector<128xf32>
    %448 = vector.multi_reduction <add>, %447, %cst_188 [0] : vector<16x128xf32> to vector<128xf32>
    %449 = vector.shape_cast %448 : vector<128xf32> to vector<1x128xf32>
    %cst_189 = arith.constant 1.600000e+01 : f32
    %450 = vector.broadcast %cst_189 : f32 to vector<1x128xf32>
    %451 = arith.divf %449, %450 : vector<1x128xf32>
    %452 = vector.broadcast %444 : vector<1x128xf32> to vector<16x128xf32>
    %453 = arith.subf %436, %452 : vector<16x128xf32>
    %cst_190 = arith.constant 9.99999974E-6 : f32
    %454 = vector.broadcast %cst_190 : f32 to vector<1x128xf32>
    %455 = arith.addf %451, %454 : vector<1x128xf32>
    %456 = math.rsqrt %455 : vector<1x128xf32>
    %457 = vector.broadcast %456 : vector<1x128xf32> to vector<16x128xf32>
    %458 = arith.mulf %453, %457 : vector<16x128xf32>
    %459 = vector.broadcast %438 : vector<1x128xf32> to vector<16x128xf32>
    %460 = arith.mulf %458, %459 : vector<16x128xf32>
    %461 = vector.broadcast %440 : vector<1x128xf32> to vector<16x128xf32>
    %462 = arith.addf %460, %461 : vector<16x128xf32>
    %463 = vector.shape_cast %462 : vector<16x128xf32> to vector<2x8x128xf32>
    %c0_191 = arith.constant 0 : index
    %c0_192 = arith.constant 0 : index
    %c0_193 = arith.constant 0 : index
    %464 = vector.load %arg15[%c0_191, %c0_192, %c0_193] : memref<2x8x128xf32, #tpu.memory_space<vmem>>, vector<2x8x128xf32>
    tpu.vector_store %arg15[%c0_191, %c0_192, %c0_193], %463 {strides = array<i32>} : memref<2x8x128xf32, #tpu.memory_space<vmem>>, vector<2x8x128xf32>,
    %cst_194 = arith.constant dense<0.000000e+00> : vector<2x128xf32>
    %465 = vector.multi_reduction <add>, %463, %cst_194 [1] : vector<2x8x128xf32> to vector<2x128xf32>
    %cst_195 = arith.constant 8.000000e+00 : f32
    %466 = vector.broadcast %cst_195 : f32 to vector<2x128xf32>
    %467 = arith.divf %465, %466 : vector<2x128xf32>
    %c0_196 = arith.constant 0 : index
    %c0_197 = arith.constant 0 : index
    %468 = vector.load %arg14[%c0_196, %c0_197] : memref<128x128xf32, #tpu.memory_space<vmem>>, vector<128x128xf32>
    %cst_198 = arith.constant dense<0.000000e+00> : vector<2x128xf32>
    %469 = tpu.matmul %467, %468, %cst_198 {dimension_numbers = #tpu.dot_dimension_numbers<[1], [0], [0], [1], [0, 0, 1, 1], [], []>} : vector<2x128xf32>, vector<128x128xf32>, vector<2x128xf32> -> vector<2x128xf32>
    %c0_199 = arith.constant 0 : index
    %c0_200 = arith.constant 0 : index
    %470 = vector.load %arg16[%c0_199, %c0_200] : memref<2x128xf32, #tpu.memory_space<vmem>>, vector<2x128xf32>
    tpu.vector_store %arg16[%c0_199, %c0_200], %469 {strides = array<i32>} : memref<2x128xf32, #tpu.memory_space<vmem>>, vector<2x128xf32>,
    %c0_201 = arith.constant 0 : index
    %c0_202 = arith.constant 0 : index
    %471 = vector.load %arg13[%c0_201, %c0_202] : memref<128x384xf32, #tpu.memory_space<vmem>>, vector<128x384xf32>
    %cst_203 = arith.constant dense<0.000000e+00> : vector<16x384xf32>
    %472 = tpu.matmul %462, %471, %cst_203 {dimension_numbers = #tpu.dot_dimension_numbers<[1], [0], [0], [1], [0, 0, 1, 1], [], []>} : vector<16x128xf32>, vector<128x384xf32>, vector<16x384xf32> -> vector<16x384xf32>
    %473 = vector.shape_cast %472 : vector<16x384xf32> to vector<2x8x384xf32>
    %c0_204 = arith.constant 0 : index
    %c0_205 = arith.constant 0 : index
    %c0_206 = arith.constant 0 : index
    %474 = vector.load %arg17[%c0_204, %c0_205, %c0_206] : memref<2x8x384xf32, #tpu.memory_space<vmem>>, vector<2x8x384xf32>
    tpu.vector_store %arg17[%c0_204, %c0_205, %c0_206], %473 {strides = array<i32>} : memref<2x8x384xf32, #tpu.memory_space<vmem>>, vector<2x8x384xf32>,
    return
  }
}

module attributes {stable_mosaic.version = 11 : i64} {
  func.func @_decoder_rollout_kernel(%arg0: memref<2x8x2xf32, #tpu.memory_space<vmem>>, %arg1: memref<2x8x128xf32, #tpu.memory_space<vmem>>, %arg2: memref<2x128xf32, #tpu.memory_space<vmem>>, %arg3: memref<2x8x384xf32, #tpu.memory_space<vmem>>, %arg4: memref<256x128xf32, #tpu.memory_space<vmem>>, %arg5: memref<128x128xf32, #tpu.memory_space<vmem>>, %arg6: memref<1x256xf32, #tpu.memory_space<vmem>>, %arg7: memref<8x2x1xi32, #tpu.memory_space<vmem>>, %arg8: memref<2x1xf32, #tpu.memory_space<vmem>>, %arg9: memref<2x1xf32, #tpu.memory_space<vmem>>, %arg10: memref<2x8xf32, #tpu.memory_space<vmem>>, %arg11: memref<2x128xf32, #tpu.memory_space<vmem>>, %arg12: memref<2x128xf32, #tpu.memory_space<vmem>>, %arg13: memref<2x2xf32, #tpu.memory_space<vmem>>, %arg14: memref<2x2xf32, #tpu.memory_space<vmem>>) attributes {dimension_semantics = [], scalar_prefetch = 0 : i64, scratch_operands = 5 : i64, tpu.core_type = #tpu.core_type<tc>} {
    %c0 = arith.constant 0 : index
    %c0_0 = arith.constant 0 : index
    %c0_1 = arith.constant 0 : index
    %0 = vector.load %arg1[%c0, %c0_0, %c0_1] : memref<2x8x128xf32, #tpu.memory_space<vmem>>, vector<2x8x128xf32>
    %c0_2 = arith.constant 0 : index
    %c0_3 = arith.constant 0 : index
    %c0_4 = arith.constant 0 : index
    %1 = vector.load %arg0[%c0_2, %c0_3, %c0_4] : memref<2x8x2xf32, #tpu.memory_space<vmem>>, vector<2x8x2xf32>
    %c0_5 = arith.constant 0 : index
    %c0_6 = arith.constant 0 : index
    %2 = vector.load %arg2[%c0_5, %c0_6] : memref<2x128xf32, #tpu.memory_space<vmem>>, vector<2x128xf32>
    %c0_7 = arith.constant 0 : index
    %c0_8 = arith.constant 0 : index
    %c0_9 = arith.constant 0 : index
    %3 = vector.load %arg3[%c0_7, %c0_8, %c0_9] : memref<2x8x384xf32, #tpu.memory_space<vmem>>, vector<2x8x384xf32>
    %4 = vector.extract_strided_slice %3 {offsets = [0, 0, 0], sizes = [2, 8, 16], strides = [1, 1, 1]} : vector<2x8x384xf32> to vector<2x8x16xf32>
    %5 = vector.extract_strided_slice %3 {offsets = [0, 0, 16], sizes = [2, 8, 16], strides = [1, 1, 1]} : vector<2x8x384xf32> to vector<2x8x16xf32>
    %6 = vector.extract_strided_slice %3 {offsets = [0, 0, 32], sizes = [2, 8, 16], strides = [1, 1, 1]} : vector<2x8x384xf32> to vector<2x8x16xf32>
    %7 = vector.extract_strided_slice %3 {offsets = [0, 0, 48], sizes = [2, 8, 16], strides = [1, 1, 1]} : vector<2x8x384xf32> to vector<2x8x16xf32>
    %8 = vector.extract_strided_slice %3 {offsets = [0, 0, 64], sizes = [2, 8, 16], strides = [1, 1, 1]} : vector<2x8x384xf32> to vector<2x8x16xf32>
    %9 = vector.extract_strided_slice %3 {offsets = [0, 0, 80], sizes = [2, 8, 16], strides = [1, 1, 1]} : vector<2x8x384xf32> to vector<2x8x16xf32>
    %10 = vector.extract_strided_slice %3 {offsets = [0, 0, 96], sizes = [2, 8, 16], strides = [1, 1, 1]} : vector<2x8x384xf32> to vector<2x8x16xf32>
    %11 = vector.extract_strided_slice %3 {offsets = [0, 0, 112], sizes = [2, 8, 16], strides = [1, 1, 1]} : vector<2x8x384xf32> to vector<2x8x16xf32>
    %12 = vector.extract_strided_slice %3 {offsets = [0, 0, 128], sizes = [2, 8, 16], strides = [1, 1, 1]} : vector<2x8x384xf32> to vector<2x8x16xf32>
    %13 = vector.extract_strided_slice %3 {offsets = [0, 0, 144], sizes = [2, 8, 16], strides = [1, 1, 1]} : vector<2x8x384xf32> to vector<2x8x16xf32>
    %14 = vector.extract_strided_slice %3 {offsets = [0, 0, 160], sizes = [2, 8, 16], strides = [1, 1, 1]} : vector<2x8x384xf32> to vector<2x8x16xf32>
    %15 = vector.extract_strided_slice %3 {offsets = [0, 0, 176], sizes = [2, 8, 16], strides = [1, 1, 1]} : vector<2x8x384xf32> to vector<2x8x16xf32>
    %16 = vector.extract_strided_slice %3 {offsets = [0, 0, 192], sizes = [2, 8, 16], strides = [1, 1, 1]} : vector<2x8x384xf32> to vector<2x8x16xf32>
    %17 = vector.extract_strided_slice %3 {offsets = [0, 0, 208], sizes = [2, 8, 16], strides = [1, 1, 1]} : vector<2x8x384xf32> to vector<2x8x16xf32>
    %18 = vector.extract_strided_slice %3 {offsets = [0, 0, 224], sizes = [2, 8, 16], strides = [1, 1, 1]} : vector<2x8x384xf32> to vector<2x8x16xf32>
    %19 = vector.extract_strided_slice %3 {offsets = [0, 0, 240], sizes = [2, 8, 16], strides = [1, 1, 1]} : vector<2x8x384xf32> to vector<2x8x16xf32>
    %20 = vector.extract_strided_slice %3 {offsets = [0, 0, 256], sizes = [2, 8, 128], strides = [1, 1, 1]} : vector<2x8x384xf32> to vector<2x8x128xf32>
    %c0_10 = arith.constant 0 : index
    %c0_11 = arith.constant 0 : index
    %21 = vector.load %arg4[%c0_10, %c0_11] : memref<256x128xf32, #tpu.memory_space<vmem>>, vector<256x128xf32>
    %c0_12 = arith.constant 0 : index
    %c0_13 = arith.constant 0 : index
    %22 = vector.load %arg5[%c0_12, %c0_13] : memref<128x128xf32, #tpu.memory_space<vmem>>, vector<128x128xf32>
    %23 = tpu.iota {dimensions = array<i32: 1>} : vector<2x8xi32>
    %c0_14 = arith.constant 0 : index
    %c0_15 = arith.constant 0 : index
    %24 = vector.load %arg6[%c0_14, %c0_15] : memref<1x256xf32, #tpu.memory_space<vmem>>, vector<1x256xf32>
    %25 = vector.shape_cast %24 : vector<1x256xf32> to vector<1x256xf32>
    %26 = vector.broadcast %25 : vector<1x256xf32> to vector<2x256xf32>
    %cst = arith.constant 0.000000e+00 : f32
    %27 = vector.broadcast %cst : f32 to vector<2x8xf32>
    %cst_16 = arith.constant dense<0.000000e+00> : vector<2x128xf32>
    %28 = tpu.matmul %26, %21, %cst_16 {dimension_numbers = #tpu.dot_dimension_numbers<[1], [0], [0], [1], [0, 0, 1, 1], [], []>} : vector<2x256xf32>, vector<256x128xf32>, vector<2x128xf32> -> vector<2x128xf32>
    %29 = arith.addf %2, %28 : vector<2x128xf32>
    %30 = vector.extract_strided_slice %29 {offsets = [0, 0], sizes = [2, 16], strides = [1, 1]} : vector<2x128xf32> to vector<2x16xf32>
    %31 = vector.shape_cast %30 : vector<2x16xf32> to vector<2x1x16xf32>
    "tpu.trace_start"() <{level = 10 : i32, message = "bqk,bnk->bqn"}> : () -> ()
    %cst_17 = arith.constant dense<0.000000e+00> : vector<2x1x8xf32>
    %32 = tpu.matmul %31, %4, %cst_17 {dimension_numbers = #tpu.dot_dimension_numbers<[2], [2], [1], [1], [0, 0, 0, 1, 1, 1], [0], [0]>} : vector<2x1x16xf32>, vector<2x8x16xf32>, vector<2x1x8xf32> -> vector<2x1x8xf32>
    "tpu.trace_stop"() : () -> ()
    %33 = vector.shape_cast %32 : vector<2x1x8xf32> to vector<2x8xf32>
    %cst_18 = arith.constant 2.500000e-01 : f32
    %34 = vector.broadcast %cst_18 : f32 to vector<2x8xf32>
    %35 = arith.mulf %33, %34 : vector<2x8xf32>
    %cst_19 = arith.constant 5.000000e-01 : f32
    %36 = vector.broadcast %cst_19 : f32 to vector<2x8xf32>
    %37 = arith.cmpf ogt, %27, %36 : vector<2x8xf32>
    %cst_20 = arith.constant -1.000000e+09 : f32
    %38 = vector.broadcast %cst_20 : f32 to vector<2x8xf32>
    %39 = arith.select %37, %38, %35 : vector<2x8xi1>, vector<2x8xf32>
    %cst_21 = arith.constant dense<0xFF800000> : vector<2xf32>
    %40 = vector.multi_reduction <maximumf>, %39, %cst_21 [1] : vector<2x8xf32> to vector<2xf32>
    %cst_22 = arith.constant 0xFF800000 : f32
    %41 = vector.broadcast %cst_22 : f32 to vector<2xf32>
    %42 = arith.maximumf %41, %40 : vector<2xf32>
    %43 = vector.shape_cast %42 : vector<2xf32> to vector<2x1xf32>
    %44 = vector.broadcast %43 : vector<2x1xf32> to vector<2x8xf32>
    %45 = arith.subf %39, %44 : vector<2x8xf32>
    %46 = math.exp %45 : vector<2x8xf32>
    %cst_23 = arith.constant dense<0.000000e+00> : vector<2xf32>
    %47 = vector.multi_reduction <add>, %46, %cst_23 [1] : vector<2x8xf32> to vector<2xf32>
    %48 = vector.shape_cast %47 : vector<2xf32> to vector<2x1xf32>
    %49 = vector.broadcast %48 : vector<2x1xf32> to vector<2x8xf32>
    %50 = arith.divf %46, %49 : vector<2x8xf32>
    %51 = vector.shape_cast %50 : vector<2x8xf32> to vector<2x1x8xf32>
    "tpu.trace_start"() <{level = 10 : i32, message = "bqn,bnk->bqk"}> : () -> ()
    %cst_24 = arith.constant dense<0.000000e+00> : vector<2x1x16xf32>
    %52 = tpu.matmul %51, %12, %cst_24 {dimension_numbers = #tpu.dot_dimension_numbers<[2], [1], [1], [2], [0, 0, 0, 1, 1, 2], [0], [0]>} : vector<2x1x8xf32>, vector<2x8x16xf32>, vector<2x1x16xf32> -> vector<2x1x16xf32>
    "tpu.trace_stop"() : () -> ()
    %53 = vector.shape_cast %52 : vector<2x1x16xf32> to vector<2x16xf32>
    %54 = vector.extract_strided_slice %29 {offsets = [0, 16], sizes = [2, 16], strides = [1, 1]} : vector<2x128xf32> to vector<2x16xf32>
    %55 = vector.shape_cast %54 : vector<2x16xf32> to vector<2x1x16xf32>
    "tpu.trace_start"() <{level = 10 : i32, message = "bqk,bnk->bqn"}> : () -> ()
    %cst_25 = arith.constant dense<0.000000e+00> : vector<2x1x8xf32>
    %56 = tpu.matmul %55, %5, %cst_25 {dimension_numbers = #tpu.dot_dimension_numbers<[2], [2], [1], [1], [0, 0, 0, 1, 1, 1], [0], [0]>} : vector<2x1x16xf32>, vector<2x8x16xf32>, vector<2x1x8xf32> -> vector<2x1x8xf32>
    "tpu.trace_stop"() : () -> ()
    %57 = vector.shape_cast %56 : vector<2x1x8xf32> to vector<2x8xf32>
    %cst_26 = arith.constant 2.500000e-01 : f32
    %58 = vector.broadcast %cst_26 : f32 to vector<2x8xf32>
    %59 = arith.mulf %57, %58 : vector<2x8xf32>
    %cst_27 = arith.constant 5.000000e-01 : f32
    %60 = vector.broadcast %cst_27 : f32 to vector<2x8xf32>
    %61 = arith.cmpf ogt, %27, %60 : vector<2x8xf32>
    %cst_28 = arith.constant -1.000000e+09 : f32
    %62 = vector.broadcast %cst_28 : f32 to vector<2x8xf32>
    %63 = arith.select %61, %62, %59 : vector<2x8xi1>, vector<2x8xf32>
    %cst_29 = arith.constant dense<0xFF800000> : vector<2xf32>
    %64 = vector.multi_reduction <maximumf>, %63, %cst_29 [1] : vector<2x8xf32> to vector<2xf32>
    %cst_30 = arith.constant 0xFF800000 : f32
    %65 = vector.broadcast %cst_30 : f32 to vector<2xf32>
    %66 = arith.maximumf %65, %64 : vector<2xf32>
    %67 = vector.shape_cast %66 : vector<2xf32> to vector<2x1xf32>
    %68 = vector.broadcast %67 : vector<2x1xf32> to vector<2x8xf32>
    %69 = arith.subf %63, %68 : vector<2x8xf32>
    %70 = math.exp %69 : vector<2x8xf32>
    %cst_31 = arith.constant dense<0.000000e+00> : vector<2xf32>
    %71 = vector.multi_reduction <add>, %70, %cst_31 [1] : vector<2x8xf32> to vector<2xf32>
    %72 = vector.shape_cast %71 : vector<2xf32> to vector<2x1xf32>
    %73 = vector.broadcast %72 : vector<2x1xf32> to vector<2x8xf32>
    %74 = arith.divf %70, %73 : vector<2x8xf32>
    %75 = vector.shape_cast %74 : vector<2x8xf32> to vector<2x1x8xf32>
    "tpu.trace_start"() <{level = 10 : i32, message = "bqn,bnk->bqk"}> : () -> ()
    %cst_32 = arith.constant dense<0.000000e+00> : vector<2x1x16xf32>
    %76 = tpu.matmul %75, %13, %cst_32 {dimension_numbers = #tpu.dot_dimension_numbers<[2], [1], [1], [2], [0, 0, 0, 1, 1, 2], [0], [0]>} : vector<2x1x8xf32>, vector<2x8x16xf32>, vector<2x1x16xf32> -> vector<2x1x16xf32>
    "tpu.trace_stop"() : () -> ()
    %77 = vector.shape_cast %76 : vector<2x1x16xf32> to vector<2x16xf32>
    %78 = vector.extract_strided_slice %29 {offsets = [0, 32], sizes = [2, 16], strides = [1, 1]} : vector<2x128xf32> to vector<2x16xf32>
    %79 = vector.shape_cast %78 : vector<2x16xf32> to vector<2x1x16xf32>
    "tpu.trace_start"() <{level = 10 : i32, message = "bqk,bnk->bqn"}> : () -> ()
    %cst_33 = arith.constant dense<0.000000e+00> : vector<2x1x8xf32>
    %80 = tpu.matmul %79, %6, %cst_33 {dimension_numbers = #tpu.dot_dimension_numbers<[2], [2], [1], [1], [0, 0, 0, 1, 1, 1], [0], [0]>} : vector<2x1x16xf32>, vector<2x8x16xf32>, vector<2x1x8xf32> -> vector<2x1x8xf32>
    "tpu.trace_stop"() : () -> ()
    %81 = vector.shape_cast %80 : vector<2x1x8xf32> to vector<2x8xf32>
    %cst_34 = arith.constant 2.500000e-01 : f32
    %82 = vector.broadcast %cst_34 : f32 to vector<2x8xf32>
    %83 = arith.mulf %81, %82 : vector<2x8xf32>
    %cst_35 = arith.constant 5.000000e-01 : f32
    %84 = vector.broadcast %cst_35 : f32 to vector<2x8xf32>
    %85 = arith.cmpf ogt, %27, %84 : vector<2x8xf32>
    %cst_36 = arith.constant -1.000000e+09 : f32
    %86 = vector.broadcast %cst_36 : f32 to vector<2x8xf32>
    %87 = arith.select %85, %86, %83 : vector<2x8xi1>, vector<2x8xf32>
    %cst_37 = arith.constant dense<0xFF800000> : vector<2xf32>
    %88 = vector.multi_reduction <maximumf>, %87, %cst_37 [1] : vector<2x8xf32> to vector<2xf32>
    %cst_38 = arith.constant 0xFF800000 : f32
    %89 = vector.broadcast %cst_38 : f32 to vector<2xf32>
    %90 = arith.maximumf %89, %88 : vector<2xf32>
    %91 = vector.shape_cast %90 : vector<2xf32> to vector<2x1xf32>
    %92 = vector.broadcast %91 : vector<2x1xf32> to vector<2x8xf32>
    %93 = arith.subf %87, %92 : vector<2x8xf32>
    %94 = math.exp %93 : vector<2x8xf32>
    %cst_39 = arith.constant dense<0.000000e+00> : vector<2xf32>
    %95 = vector.multi_reduction <add>, %94, %cst_39 [1] : vector<2x8xf32> to vector<2xf32>
    %96 = vector.shape_cast %95 : vector<2xf32> to vector<2x1xf32>
    %97 = vector.broadcast %96 : vector<2x1xf32> to vector<2x8xf32>
    %98 = arith.divf %94, %97 : vector<2x8xf32>
    %99 = vector.shape_cast %98 : vector<2x8xf32> to vector<2x1x8xf32>
    "tpu.trace_start"() <{level = 10 : i32, message = "bqn,bnk->bqk"}> : () -> ()
    %cst_40 = arith.constant dense<0.000000e+00> : vector<2x1x16xf32>
    %100 = tpu.matmul %99, %14, %cst_40 {dimension_numbers = #tpu.dot_dimension_numbers<[2], [1], [1], [2], [0, 0, 0, 1, 1, 2], [0], [0]>} : vector<2x1x8xf32>, vector<2x8x16xf32>, vector<2x1x16xf32> -> vector<2x1x16xf32>
    "tpu.trace_stop"() : () -> ()
    %101 = vector.shape_cast %100 : vector<2x1x16xf32> to vector<2x16xf32>
    %102 = vector.extract_strided_slice %29 {offsets = [0, 48], sizes = [2, 16], strides = [1, 1]} : vector<2x128xf32> to vector<2x16xf32>
    %103 = vector.shape_cast %102 : vector<2x16xf32> to vector<2x1x16xf32>
    "tpu.trace_start"() <{level = 10 : i32, message = "bqk,bnk->bqn"}> : () -> ()
    %cst_41 = arith.constant dense<0.000000e+00> : vector<2x1x8xf32>
    %104 = tpu.matmul %103, %7, %cst_41 {dimension_numbers = #tpu.dot_dimension_numbers<[2], [2], [1], [1], [0, 0, 0, 1, 1, 1], [0], [0]>} : vector<2x1x16xf32>, vector<2x8x16xf32>, vector<2x1x8xf32> -> vector<2x1x8xf32>
    "tpu.trace_stop"() : () -> ()
    %105 = vector.shape_cast %104 : vector<2x1x8xf32> to vector<2x8xf32>
    %cst_42 = arith.constant 2.500000e-01 : f32
    %106 = vector.broadcast %cst_42 : f32 to vector<2x8xf32>
    %107 = arith.mulf %105, %106 : vector<2x8xf32>
    %cst_43 = arith.constant 5.000000e-01 : f32
    %108 = vector.broadcast %cst_43 : f32 to vector<2x8xf32>
    %109 = arith.cmpf ogt, %27, %108 : vector<2x8xf32>
    %cst_44 = arith.constant -1.000000e+09 : f32
    %110 = vector.broadcast %cst_44 : f32 to vector<2x8xf32>
    %111 = arith.select %109, %110, %107 : vector<2x8xi1>, vector<2x8xf32>
    %cst_45 = arith.constant dense<0xFF800000> : vector<2xf32>
    %112 = vector.multi_reduction <maximumf>, %111, %cst_45 [1] : vector<2x8xf32> to vector<2xf32>
    %cst_46 = arith.constant 0xFF800000 : f32
    %113 = vector.broadcast %cst_46 : f32 to vector<2xf32>
    %114 = arith.maximumf %113, %112 : vector<2xf32>
    %115 = vector.shape_cast %114 : vector<2xf32> to vector<2x1xf32>
    %116 = vector.broadcast %115 : vector<2x1xf32> to vector<2x8xf32>
    %117 = arith.subf %111, %116 : vector<2x8xf32>
    %118 = math.exp %117 : vector<2x8xf32>
    %cst_47 = arith.constant dense<0.000000e+00> : vector<2xf32>
    %119 = vector.multi_reduction <add>, %118, %cst_47 [1] : vector<2x8xf32> to vector<2xf32>
    %120 = vector.shape_cast %119 : vector<2xf32> to vector<2x1xf32>
    %121 = vector.broadcast %120 : vector<2x1xf32> to vector<2x8xf32>
    %122 = arith.divf %118, %121 : vector<2x8xf32>
    %123 = vector.shape_cast %122 : vector<2x8xf32> to vector<2x1x8xf32>
    "tpu.trace_start"() <{level = 10 : i32, message = "bqn,bnk->bqk"}> : () -> ()
    %cst_48 = arith.constant dense<0.000000e+00> : vector<2x1x16xf32>
    %124 = tpu.matmul %123, %15, %cst_48 {dimension_numbers = #tpu.dot_dimension_numbers<[2], [1], [1], [2], [0, 0, 0, 1, 1, 2], [0], [0]>} : vector<2x1x8xf32>, vector<2x8x16xf32>, vector<2x1x16xf32> -> vector<2x1x16xf32>
    "tpu.trace_stop"() : () -> ()
    %125 = vector.shape_cast %124 : vector<2x1x16xf32> to vector<2x16xf32>
    %126 = vector.extract_strided_slice %29 {offsets = [0, 64], sizes = [2, 16], strides = [1, 1]} : vector<2x128xf32> to vector<2x16xf32>
    %127 = vector.shape_cast %126 : vector<2x16xf32> to vector<2x1x16xf32>
    "tpu.trace_start"() <{level = 10 : i32, message = "bqk,bnk->bqn"}> : () -> ()
    %cst_49 = arith.constant dense<0.000000e+00> : vector<2x1x8xf32>
    %128 = tpu.matmul %127, %8, %cst_49 {dimension_numbers = #tpu.dot_dimension_numbers<[2], [2], [1], [1], [0, 0, 0, 1, 1, 1], [0], [0]>} : vector<2x1x16xf32>, vector<2x8x16xf32>, vector<2x1x8xf32> -> vector<2x1x8xf32>
    "tpu.trace_stop"() : () -> ()
    %129 = vector.shape_cast %128 : vector<2x1x8xf32> to vector<2x8xf32>
    %cst_50 = arith.constant 2.500000e-01 : f32
    %130 = vector.broadcast %cst_50 : f32 to vector<2x8xf32>
    %131 = arith.mulf %129, %130 : vector<2x8xf32>
    %cst_51 = arith.constant 5.000000e-01 : f32
    %132 = vector.broadcast %cst_51 : f32 to vector<2x8xf32>
    %133 = arith.cmpf ogt, %27, %132 : vector<2x8xf32>
    %cst_52 = arith.constant -1.000000e+09 : f32
    %134 = vector.broadcast %cst_52 : f32 to vector<2x8xf32>
    %135 = arith.select %133, %134, %131 : vector<2x8xi1>, vector<2x8xf32>
    %cst_53 = arith.constant dense<0xFF800000> : vector<2xf32>
    %136 = vector.multi_reduction <maximumf>, %135, %cst_53 [1] : vector<2x8xf32> to vector<2xf32>
    %cst_54 = arith.constant 0xFF800000 : f32
    %137 = vector.broadcast %cst_54 : f32 to vector<2xf32>
    %138 = arith.maximumf %137, %136 : vector<2xf32>
    %139 = vector.shape_cast %138 : vector<2xf32> to vector<2x1xf32>
    %140 = vector.broadcast %139 : vector<2x1xf32> to vector<2x8xf32>
    %141 = arith.subf %135, %140 : vector<2x8xf32>
    %142 = math.exp %141 : vector<2x8xf32>
    %cst_55 = arith.constant dense<0.000000e+00> : vector<2xf32>
    %143 = vector.multi_reduction <add>, %142, %cst_55 [1] : vector<2x8xf32> to vector<2xf32>
    %144 = vector.shape_cast %143 : vector<2xf32> to vector<2x1xf32>
    %145 = vector.broadcast %144 : vector<2x1xf32> to vector<2x8xf32>
    %146 = arith.divf %142, %145 : vector<2x8xf32>
    %147 = vector.shape_cast %146 : vector<2x8xf32> to vector<2x1x8xf32>
    "tpu.trace_start"() <{level = 10 : i32, message = "bqn,bnk->bqk"}> : () -> ()
    %cst_56 = arith.constant dense<0.000000e+00> : vector<2x1x16xf32>
    %148 = tpu.matmul %147, %16, %cst_56 {dimension_numbers = #tpu.dot_dimension_numbers<[2], [1], [1], [2], [0, 0, 0, 1, 1, 2], [0], [0]>} : vector<2x1x8xf32>, vector<2x8x16xf32>, vector<2x1x16xf32> -> vector<2x1x16xf32>
    "tpu.trace_stop"() : () -> ()
    %149 = vector.shape_cast %148 : vector<2x1x16xf32> to vector<2x16xf32>
    %150 = vector.extract_strided_slice %29 {offsets = [0, 80], sizes = [2, 16], strides = [1, 1]} : vector<2x128xf32> to vector<2x16xf32>
    %151 = vector.shape_cast %150 : vector<2x16xf32> to vector<2x1x16xf32>
    "tpu.trace_start"() <{level = 10 : i32, message = "bqk,bnk->bqn"}> : () -> ()
    %cst_57 = arith.constant dense<0.000000e+00> : vector<2x1x8xf32>
    %152 = tpu.matmul %151, %9, %cst_57 {dimension_numbers = #tpu.dot_dimension_numbers<[2], [2], [1], [1], [0, 0, 0, 1, 1, 1], [0], [0]>} : vector<2x1x16xf32>, vector<2x8x16xf32>, vector<2x1x8xf32> -> vector<2x1x8xf32>
    "tpu.trace_stop"() : () -> ()
    %153 = vector.shape_cast %152 : vector<2x1x8xf32> to vector<2x8xf32>
    %cst_58 = arith.constant 2.500000e-01 : f32
    %154 = vector.broadcast %cst_58 : f32 to vector<2x8xf32>
    %155 = arith.mulf %153, %154 : vector<2x8xf32>
    %cst_59 = arith.constant 5.000000e-01 : f32
    %156 = vector.broadcast %cst_59 : f32 to vector<2x8xf32>
    %157 = arith.cmpf ogt, %27, %156 : vector<2x8xf32>
    %cst_60 = arith.constant -1.000000e+09 : f32
    %158 = vector.broadcast %cst_60 : f32 to vector<2x8xf32>
    %159 = arith.select %157, %158, %155 : vector<2x8xi1>, vector<2x8xf32>
    %cst_61 = arith.constant dense<0xFF800000> : vector<2xf32>
    %160 = vector.multi_reduction <maximumf>, %159, %cst_61 [1] : vector<2x8xf32> to vector<2xf32>
    %cst_62 = arith.constant 0xFF800000 : f32
    %161 = vector.broadcast %cst_62 : f32 to vector<2xf32>
    %162 = arith.maximumf %161, %160 : vector<2xf32>
    %163 = vector.shape_cast %162 : vector<2xf32> to vector<2x1xf32>
    %164 = vector.broadcast %163 : vector<2x1xf32> to vector<2x8xf32>
    %165 = arith.subf %159, %164 : vector<2x8xf32>
    %166 = math.exp %165 : vector<2x8xf32>
    %cst_63 = arith.constant dense<0.000000e+00> : vector<2xf32>
    %167 = vector.multi_reduction <add>, %166, %cst_63 [1] : vector<2x8xf32> to vector<2xf32>
    %168 = vector.shape_cast %167 : vector<2xf32> to vector<2x1xf32>
    %169 = vector.broadcast %168 : vector<2x1xf32> to vector<2x8xf32>
    %170 = arith.divf %166, %169 : vector<2x8xf32>
    %171 = vector.shape_cast %170 : vector<2x8xf32> to vector<2x1x8xf32>
    "tpu.trace_start"() <{level = 10 : i32, message = "bqn,bnk->bqk"}> : () -> ()
    %cst_64 = arith.constant dense<0.000000e+00> : vector<2x1x16xf32>
    %172 = tpu.matmul %171, %17, %cst_64 {dimension_numbers = #tpu.dot_dimension_numbers<[2], [1], [1], [2], [0, 0, 0, 1, 1, 2], [0], [0]>} : vector<2x1x8xf32>, vector<2x8x16xf32>, vector<2x1x16xf32> -> vector<2x1x16xf32>
    "tpu.trace_stop"() : () -> ()
    %173 = vector.shape_cast %172 : vector<2x1x16xf32> to vector<2x16xf32>
    %174 = vector.extract_strided_slice %29 {offsets = [0, 96], sizes = [2, 16], strides = [1, 1]} : vector<2x128xf32> to vector<2x16xf32>
    %175 = vector.shape_cast %174 : vector<2x16xf32> to vector<2x1x16xf32>
    "tpu.trace_start"() <{level = 10 : i32, message = "bqk,bnk->bqn"}> : () -> ()
    %cst_65 = arith.constant dense<0.000000e+00> : vector<2x1x8xf32>
    %176 = tpu.matmul %175, %10, %cst_65 {dimension_numbers = #tpu.dot_dimension_numbers<[2], [2], [1], [1], [0, 0, 0, 1, 1, 1], [0], [0]>} : vector<2x1x16xf32>, vector<2x8x16xf32>, vector<2x1x8xf32> -> vector<2x1x8xf32>
    "tpu.trace_stop"() : () -> ()
    %177 = vector.shape_cast %176 : vector<2x1x8xf32> to vector<2x8xf32>
    %cst_66 = arith.constant 2.500000e-01 : f32
    %178 = vector.broadcast %cst_66 : f32 to vector<2x8xf32>
    %179 = arith.mulf %177, %178 : vector<2x8xf32>
    %cst_67 = arith.constant 5.000000e-01 : f32
    %180 = vector.broadcast %cst_67 : f32 to vector<2x8xf32>
    %181 = arith.cmpf ogt, %27, %180 : vector<2x8xf32>
    %cst_68 = arith.constant -1.000000e+09 : f32
    %182 = vector.broadcast %cst_68 : f32 to vector<2x8xf32>
    %183 = arith.select %181, %182, %179 : vector<2x8xi1>, vector<2x8xf32>
    %cst_69 = arith.constant dense<0xFF800000> : vector<2xf32>
    %184 = vector.multi_reduction <maximumf>, %183, %cst_69 [1] : vector<2x8xf32> to vector<2xf32>
    %cst_70 = arith.constant 0xFF800000 : f32
    %185 = vector.broadcast %cst_70 : f32 to vector<2xf32>
    %186 = arith.maximumf %185, %184 : vector<2xf32>
    %187 = vector.shape_cast %186 : vector<2xf32> to vector<2x1xf32>
    %188 = vector.broadcast %187 : vector<2x1xf32> to vector<2x8xf32>
    %189 = arith.subf %183, %188 : vector<2x8xf32>
    %190 = math.exp %189 : vector<2x8xf32>
    %cst_71 = arith.constant dense<0.000000e+00> : vector<2xf32>
    %191 = vector.multi_reduction <add>, %190, %cst_71 [1] : vector<2x8xf32> to vector<2xf32>
    %192 = vector.shape_cast %191 : vector<2xf32> to vector<2x1xf32>
    %193 = vector.broadcast %192 : vector<2x1xf32> to vector<2x8xf32>
    %194 = arith.divf %190, %193 : vector<2x8xf32>
    %195 = vector.shape_cast %194 : vector<2x8xf32> to vector<2x1x8xf32>
    "tpu.trace_start"() <{level = 10 : i32, message = "bqn,bnk->bqk"}> : () -> ()
    %cst_72 = arith.constant dense<0.000000e+00> : vector<2x1x16xf32>
    %196 = tpu.matmul %195, %18, %cst_72 {dimension_numbers = #tpu.dot_dimension_numbers<[2], [1], [1], [2], [0, 0, 0, 1, 1, 2], [0], [0]>} : vector<2x1x8xf32>, vector<2x8x16xf32>, vector<2x1x16xf32> -> vector<2x1x16xf32>
    "tpu.trace_stop"() : () -> ()
    %197 = vector.shape_cast %196 : vector<2x1x16xf32> to vector<2x16xf32>
    %198 = vector.extract_strided_slice %29 {offsets = [0, 112], sizes = [2, 16], strides = [1, 1]} : vector<2x128xf32> to vector<2x16xf32>
    %199 = vector.shape_cast %198 : vector<2x16xf32> to vector<2x1x16xf32>
    "tpu.trace_start"() <{level = 10 : i32, message = "bqk,bnk->bqn"}> : () -> ()
    %cst_73 = arith.constant dense<0.000000e+00> : vector<2x1x8xf32>
    %200 = tpu.matmul %199, %11, %cst_73 {dimension_numbers = #tpu.dot_dimension_numbers<[2], [2], [1], [1], [0, 0, 0, 1, 1, 1], [0], [0]>} : vector<2x1x16xf32>, vector<2x8x16xf32>, vector<2x1x8xf32> -> vector<2x1x8xf32>
    "tpu.trace_stop"() : () -> ()
    %201 = vector.shape_cast %200 : vector<2x1x8xf32> to vector<2x8xf32>
    %cst_74 = arith.constant 2.500000e-01 : f32
    %202 = vector.broadcast %cst_74 : f32 to vector<2x8xf32>
    %203 = arith.mulf %201, %202 : vector<2x8xf32>
    %cst_75 = arith.constant 5.000000e-01 : f32
    %204 = vector.broadcast %cst_75 : f32 to vector<2x8xf32>
    %205 = arith.cmpf ogt, %27, %204 : vector<2x8xf32>
    %cst_76 = arith.constant -1.000000e+09 : f32
    %206 = vector.broadcast %cst_76 : f32 to vector<2x8xf32>
    %207 = arith.select %205, %206, %203 : vector<2x8xi1>, vector<2x8xf32>
    %cst_77 = arith.constant dense<0xFF800000> : vector<2xf32>
    %208 = vector.multi_reduction <maximumf>, %207, %cst_77 [1] : vector<2x8xf32> to vector<2xf32>
    %cst_78 = arith.constant 0xFF800000 : f32
    %209 = vector.broadcast %cst_78 : f32 to vector<2xf32>
    %210 = arith.maximumf %209, %208 : vector<2xf32>
    %211 = vector.shape_cast %210 : vector<2xf32> to vector<2x1xf32>
    %212 = vector.broadcast %211 : vector<2x1xf32> to vector<2x8xf32>
    %213 = arith.subf %207, %212 : vector<2x8xf32>
    %214 = math.exp %213 : vector<2x8xf32>
    %cst_79 = arith.constant dense<0.000000e+00> : vector<2xf32>
    %215 = vector.multi_reduction <add>, %214, %cst_79 [1] : vector<2x8xf32> to vector<2xf32>
    %216 = vector.shape_cast %215 : vector<2xf32> to vector<2x1xf32>
    %217 = vector.broadcast %216 : vector<2x1xf32> to vector<2x8xf32>
    %218 = arith.divf %214, %217 : vector<2x8xf32>
    %219 = vector.shape_cast %218 : vector<2x8xf32> to vector<2x1x8xf32>
    "tpu.trace_start"() <{level = 10 : i32, message = "bqn,bnk->bqk"}> : () -> ()
    %cst_80 = arith.constant dense<0.000000e+00> : vector<2x1x16xf32>
    %220 = tpu.matmul %219, %19, %cst_80 {dimension_numbers = #tpu.dot_dimension_numbers<[2], [1], [1], [2], [0, 0, 0, 1, 1, 2], [0], [0]>} : vector<2x1x8xf32>, vector<2x8x16xf32>, vector<2x1x16xf32> -> vector<2x1x16xf32>
    "tpu.trace_stop"() : () -> ()
    %221 = vector.shape_cast %220 : vector<2x1x16xf32> to vector<2x16xf32>
    %222 = tpu.concatenate %53, %77, %101, %125, %149, %173, %197, %221 in 1 : vector<2x16xf32>, vector<2x16xf32>, vector<2x16xf32>, vector<2x16xf32>, vector<2x16xf32>, vector<2x16xf32>, vector<2x16xf32>, vector<2x16xf32> -> vector<2x128xf32>
    %cst_81 = arith.constant dense<0.000000e+00> : vector<2x128xf32>
    %223 = tpu.matmul %222, %22, %cst_81 {dimension_numbers = #tpu.dot_dimension_numbers<[1], [0], [0], [1], [0, 0, 1, 1], [], []>} : vector<2x128xf32>, vector<128x128xf32>, vector<2x128xf32> -> vector<2x128xf32>
    %224 = vector.shape_cast %223 : vector<2x128xf32> to vector<2x1x128xf32>
    "tpu.trace_start"() <{level = 10 : i32, message = "bqd,bnd->bqn"}> : () -> ()
    %cst_82 = arith.constant dense<0.000000e+00> : vector<2x1x8xf32>
    %225 = tpu.matmul %224, %20, %cst_82 {dimension_numbers = #tpu.dot_dimension_numbers<[2], [2], [1], [1], [0, 0, 0, 1, 1, 1], [0], [0]>} : vector<2x1x128xf32>, vector<2x8x128xf32>, vector<2x1x8xf32> -> vector<2x1x8xf32>
    "tpu.trace_stop"() : () -> ()
    %226 = vector.shape_cast %225 : vector<2x1x8xf32> to vector<2x8xf32>
    %cst_83 = arith.constant 0.0883883461 : f32
    %227 = vector.broadcast %cst_83 : f32 to vector<2x8xf32>
    %228 = arith.mulf %226, %227 : vector<2x8xf32>
    %229 = math.tanh %228 : vector<2x8xf32>
    %cst_84 = arith.constant 1.000000e+01 : f32
    %230 = vector.broadcast %cst_84 : f32 to vector<2x8xf32>
    %231 = arith.mulf %230, %229 : vector<2x8xf32>
    %cst_85 = arith.constant 5.000000e-01 : f32
    %232 = vector.broadcast %cst_85 : f32 to vector<2x8xf32>
    %233 = arith.cmpf ogt, %27, %232 : vector<2x8xf32>
    %cst_86 = arith.constant -1.000000e+09 : f32
    %234 = vector.broadcast %cst_86 : f32 to vector<2x8xf32>
    %235 = arith.select %233, %234, %231 : vector<2x8xi1>, vector<2x8xf32>
    %cst_87 = arith.constant 1.000000e+00 : f32
    %236 = vector.broadcast %cst_87 : f32 to vector<2x8xf32>
    %237 = arith.divf %235, %236 : vector<2x8xf32>
    %cst_88 = arith.constant dense<0xFF800000> : vector<2xf32>
    %238 = vector.multi_reduction <maximumf>, %237, %cst_88 [1] : vector<2x8xf32> to vector<2xf32>
    %cst_89 = arith.constant 0xFF800000 : f32
    %239 = vector.broadcast %cst_89 : f32 to vector<2xf32>
    %240 = arith.maximumf %239, %238 : vector<2xf32>
    %241 = vector.shape_cast %240 : vector<2xf32> to vector<2x1xf32>
    %242 = vector.broadcast %241 : vector<2x1xf32> to vector<2x8xf32>
    %243 = arith.subf %237, %242 : vector<2x8xf32>
    %244 = math.exp %243 : vector<2x8xf32>
    %cst_90 = arith.constant dense<0.000000e+00> : vector<2xf32>
    %245 = vector.multi_reduction <add>, %244, %cst_90 [1] : vector<2x8xf32> to vector<2xf32>
    %246 = vector.shape_cast %245 : vector<2xf32> to vector<2x1xf32>
    %247 = math.log %246 : vector<2x1xf32>
    %248 = vector.broadcast %247 : vector<2x1xf32> to vector<2x8xf32>
    %249 = arith.subf %243, %248 : vector<2x8xf32>
    %cst_91 = arith.constant dense<0xFF800000> : vector<2xf32>
    %250 = vector.multi_reduction <maximumf>, %249, %cst_91 [1] : vector<2x8xf32> to vector<2xf32>
    %251 = vector.shape_cast %250 : vector<2xf32> to vector<2x1xf32>
    %252 = vector.broadcast %251 : vector<2x1xf32> to vector<2x8xf32>
    %253 = arith.cmpf oge, %249, %252 : vector<2x8xf32>
    %c8_i32 = arith.constant 8 : i32
    %254 = vector.broadcast %c8_i32 : i32 to vector<2x8xi32>
    %255 = arith.select %253, %23, %254 : vector<2x8xi1>, vector<2x8xi32>
    %cst_92 = arith.constant dense<2147483647> : vector<2xi32>
    %256 = vector.multi_reduction <minsi>, %255, %cst_92 [1] : vector<2x8xi32> to vector<2xi32>
    %257 = vector.shape_cast %256 : vector<2xi32> to vector<2x1xi32>
    %258 = vector.broadcast %257 : vector<2x1xi32> to vector<2x8xi32>
    %259 = arith.cmpi eq, %23, %258 : vector<2x8xi32>
    %260 = arith.extui %259 : vector<2x8xi1> to vector<2x8xi32>
    %261 = arith.sitofp %260 : vector<2x8xi32> to vector<2x8xf32>
    %262 = arith.mulf %249, %261 : vector<2x8xf32>
    %cst_93 = arith.constant dense<0.000000e+00> : vector<2xf32>
    %263 = vector.multi_reduction <add>, %262, %cst_93 [1] : vector<2x8xf32> to vector<2xf32>
    %264 = vector.shape_cast %263 : vector<2xf32> to vector<2x1xf32>
    %c0_94 = arith.constant 0 : index
    %c0_95 = arith.constant 0 : index
    %c0_96 = arith.constant 0 : index
    %265 = vector.load %arg7[%c0_94, %c0_95, %c0_96] : memref<8x2x1xi32, #tpu.memory_space<vmem>>, vector<1x2x1xi32>
    %266 = vector.shape_cast %265 : vector<1x2x1xi32> to vector<2x1xi32>
    %267 = vector.shape_cast %257 : vector<2x1xi32> to vector<1x2x1xi32>
    tpu.vector_store %arg7[%c0_94, %c0_95, %c0_96], %267 {strides = array<i32>} : memref<8x2x1xi32, #tpu.memory_space<vmem>>, vector<1x2x1xi32>,
    %c0_97 = arith.constant 0 : index
    %c0_98 = arith.constant 0 : index
    %268 = vector.load %arg10[%c0_97, %c0_98] : memref<2x8xf32, #tpu.memory_space<vmem>>, vector<2x8xf32>
    tpu.vector_store %arg10[%c0_97, %c0_98], %261 {strides = array<i32>} : memref<2x8xf32, #tpu.memory_space<vmem>>, vector<2x8xf32>,
    %269 = vector.shape_cast %261 : vector<2x8xf32> to vector<2x8x1xf32>
    %270 = vector.broadcast %269 : vector<2x8x1xf32> to vector<2x8x128xf32>
    %271 = arith.mulf %270, %0 : vector<2x8x128xf32>
    %cst_99 = arith.constant dense<0.000000e+00> : vector<2x128xf32>
    %272 = vector.multi_reduction <add>, %271, %cst_99 [1] : vector<2x8x128xf32> to vector<2x128xf32>
    %c0_100 = arith.constant 0 : index
    %c0_101 = arith.constant 0 : index
    %273 = vector.load %arg11[%c0_100, %c0_101] : memref<2x128xf32, #tpu.memory_space<vmem>>, vector<2x128xf32>
    tpu.vector_store %arg11[%c0_100, %c0_101], %272 {strides = array<i32>} : memref<2x128xf32, #tpu.memory_space<vmem>>, vector<2x128xf32>,
    %c0_102 = arith.constant 0 : index
    %c0_103 = arith.constant 0 : index
    %274 = vector.load %arg12[%c0_102, %c0_103] : memref<2x128xf32, #tpu.memory_space<vmem>>, vector<2x128xf32>
    tpu.vector_store %arg12[%c0_102, %c0_103], %272 {strides = array<i32>} : memref<2x128xf32, #tpu.memory_space<vmem>>, vector<2x128xf32>,
    %275 = vector.shape_cast %261 : vector<2x8xf32> to vector<2x8x1xf32>
    %276 = vector.broadcast %275 : vector<2x8x1xf32> to vector<2x8x2xf32>
    %277 = arith.mulf %276, %1 : vector<2x8x2xf32>
    %cst_104 = arith.constant dense<0.000000e+00> : vector<2x2xf32>
    %278 = vector.multi_reduction <add>, %277, %cst_104 [1] : vector<2x8x2xf32> to vector<2x2xf32>
    %c0_105 = arith.constant 0 : index
    %c0_106 = arith.constant 0 : index
    %279 = vector.load %arg13[%c0_105, %c0_106] : memref<2x2xf32, #tpu.memory_space<vmem>>, vector<2x2xf32>
    tpu.vector_store %arg13[%c0_105, %c0_106], %278 {strides = array<i32>} : memref<2x2xf32, #tpu.memory_space<vmem>>, vector<2x2xf32>,
    %c0_107 = arith.constant 0 : index
    %c0_108 = arith.constant 0 : index
    %280 = vector.load %arg14[%c0_107, %c0_108] : memref<2x2xf32, #tpu.memory_space<vmem>>, vector<2x2xf32>
    tpu.vector_store %arg14[%c0_107, %c0_108], %278 {strides = array<i32>} : memref<2x2xf32, #tpu.memory_space<vmem>>, vector<2x2xf32>,
    %c0_109 = arith.constant 0 : index
    %c0_110 = arith.constant 0 : index
    %281 = vector.load %arg8[%c0_109, %c0_110] : memref<2x1xf32, #tpu.memory_space<vmem>>, vector<2x1xf32>
    tpu.vector_store %arg8[%c0_109, %c0_110], %264 {strides = array<i32>} : memref<2x1xf32, #tpu.memory_space<vmem>>, vector<2x1xf32>,
    %cst_111 = arith.constant 0.000000e+00 : f32
    %282 = vector.broadcast %cst_111 : f32 to vector<2x1xf32>
    %c0_112 = arith.constant 0 : index
    %c0_113 = arith.constant 0 : index
    %283 = vector.load %arg9[%c0_112, %c0_113] : memref<2x1xf32, #tpu.memory_space<vmem>>, vector<2x1xf32>
    tpu.vector_store %arg9[%c0_112, %c0_113], %282 {strides = array<i32>} : memref<2x1xf32, #tpu.memory_space<vmem>>, vector<2x1xf32>,
    %cst_114 = arith.constant -1.000000e+09 : f32
    %c0_i32 = arith.constant 0 : i32
    %c7_i32 = arith.constant 7 : i32
    %284 = arith.addi %c0_i32, %c7_i32 : i32
    %c1_i32 = arith.constant 1 : i32
    scf.for %arg15 = %c0_i32 to %284 step %c1_i32  : i32 {
      %c1_i32_125 = arith.constant 1 : i32
      %295 = arith.muli %arg15, %c1_i32_125 : i32
      %c1_i32_126 = arith.constant 1 : i32
      %296 = arith.addi %c1_i32_126, %295 : i32
      %c0_127 = arith.constant 0 : index
      %c0_128 = arith.constant 0 : index
      %297 = vector.load %arg10[%c0_127, %c0_128] : memref<2x8xf32, #tpu.memory_space<vmem>>, vector<2x8xf32>
      %c0_129 = arith.constant 0 : index
      %c0_130 = arith.constant 0 : index
      %298 = vector.load %arg11[%c0_129, %c0_130] : memref<2x128xf32, #tpu.memory_space<vmem>>, vector<2x128xf32>
      %c0_131 = arith.constant 0 : index
      %c0_132 = arith.constant 0 : index
      %299 = vector.load %arg12[%c0_131, %c0_132] : memref<2x128xf32, #tpu.memory_space<vmem>>, vector<2x128xf32>
      %300 = tpu.concatenate %298, %299 in 1 : vector<2x128xf32>, vector<2x128xf32> -> vector<2x256xf32>
      %cst_133 = arith.constant dense<0.000000e+00> : vector<2x128xf32>
      %301 = tpu.matmul %300, %21, %cst_133 {dimension_numbers = #tpu.dot_dimension_numbers<[1], [0], [0], [1], [0, 0, 1, 1], [], []>} : vector<2x256xf32>, vector<256x128xf32>, vector<2x128xf32> -> vector<2x128xf32>
      %302 = arith.addf %2, %301 : vector<2x128xf32>
      %303 = vector.extract_strided_slice %302 {offsets = [0, 0], sizes = [2, 16], strides = [1, 1]} : vector<2x128xf32> to vector<2x16xf32>
      %304 = vector.shape_cast %303 : vector<2x16xf32> to vector<2x1x16xf32>
      "tpu.trace_start"() <{level = 10 : i32, message = "bqk,bnk->bqn"}> : () -> ()
      %cst_134 = arith.constant dense<0.000000e+00> : vector<2x1x8xf32>
      %305 = tpu.matmul %304, %4, %cst_134 {dimension_numbers = #tpu.dot_dimension_numbers<[2], [2], [1], [1], [0, 0, 0, 1, 1, 1], [0], [0]>} : vector<2x1x16xf32>, vector<2x8x16xf32>, vector<2x1x8xf32> -> vector<2x1x8xf32>
      "tpu.trace_stop"() : () -> ()
      %306 = vector.shape_cast %305 : vector<2x1x8xf32> to vector<2x8xf32>
      %cst_135 = arith.constant 2.500000e-01 : f32
      %307 = vector.broadcast %cst_135 : f32 to vector<2x8xf32>
      %308 = arith.mulf %306, %307 : vector<2x8xf32>
      %cst_136 = arith.constant 5.000000e-01 : f32
      %309 = vector.broadcast %cst_136 : f32 to vector<2x8xf32>
      %310 = arith.cmpf ogt, %297, %309 : vector<2x8xf32>
      %311 = vector.broadcast %cst_114 : f32 to vector<2x8xf32>
      %312 = arith.select %310, %311, %308 : vector<2x8xi1>, vector<2x8xf32>
      %cst_137 = arith.constant dense<0xFF800000> : vector<2xf32>
      %313 = vector.multi_reduction <maximumf>, %312, %cst_137 [1] : vector<2x8xf32> to vector<2xf32>
      %cst_138 = arith.constant 0xFF800000 : f32
      %314 = vector.broadcast %cst_138 : f32 to vector<2xf32>
      %315 = arith.maximumf %314, %313 : vector<2xf32>
      %316 = vector.shape_cast %315 : vector<2xf32> to vector<2x1xf32>
      %317 = vector.broadcast %316 : vector<2x1xf32> to vector<2x8xf32>
      %318 = arith.subf %312, %317 : vector<2x8xf32>
      %319 = math.exp %318 : vector<2x8xf32>
      %cst_139 = arith.constant dense<0.000000e+00> : vector<2xf32>
      %320 = vector.multi_reduction <add>, %319, %cst_139 [1] : vector<2x8xf32> to vector<2xf32>
      %321 = vector.shape_cast %320 : vector<2xf32> to vector<2x1xf32>
      %322 = vector.broadcast %321 : vector<2x1xf32> to vector<2x8xf32>
      %323 = arith.divf %319, %322 : vector<2x8xf32>
      %324 = vector.shape_cast %323 : vector<2x8xf32> to vector<2x1x8xf32>
      "tpu.trace_start"() <{level = 10 : i32, message = "bqn,bnk->bqk"}> : () -> ()
      %cst_140 = arith.constant dense<0.000000e+00> : vector<2x1x16xf32>
      %325 = tpu.matmul %324, %12, %cst_140 {dimension_numbers = #tpu.dot_dimension_numbers<[2], [1], [1], [2], [0, 0, 0, 1, 1, 2], [0], [0]>} : vector<2x1x8xf32>, vector<2x8x16xf32>, vector<2x1x16xf32> -> vector<2x1x16xf32>
      "tpu.trace_stop"() : () -> ()
      %326 = vector.shape_cast %325 : vector<2x1x16xf32> to vector<2x16xf32>
      %327 = vector.extract_strided_slice %302 {offsets = [0, 16], sizes = [2, 16], strides = [1, 1]} : vector<2x128xf32> to vector<2x16xf32>
      %328 = vector.shape_cast %327 : vector<2x16xf32> to vector<2x1x16xf32>
      "tpu.trace_start"() <{level = 10 : i32, message = "bqk,bnk->bqn"}> : () -> ()
      %cst_141 = arith.constant dense<0.000000e+00> : vector<2x1x8xf32>
      %329 = tpu.matmul %328, %5, %cst_141 {dimension_numbers = #tpu.dot_dimension_numbers<[2], [2], [1], [1], [0, 0, 0, 1, 1, 1], [0], [0]>} : vector<2x1x16xf32>, vector<2x8x16xf32>, vector<2x1x8xf32> -> vector<2x1x8xf32>
      "tpu.trace_stop"() : () -> ()
      %330 = vector.shape_cast %329 : vector<2x1x8xf32> to vector<2x8xf32>
      %cst_142 = arith.constant 2.500000e-01 : f32
      %331 = vector.broadcast %cst_142 : f32 to vector<2x8xf32>
      %332 = arith.mulf %330, %331 : vector<2x8xf32>
      %cst_143 = arith.constant 5.000000e-01 : f32
      %333 = vector.broadcast %cst_143 : f32 to vector<2x8xf32>
      %334 = arith.cmpf ogt, %297, %333 : vector<2x8xf32>
      %335 = vector.broadcast %cst_114 : f32 to vector<2x8xf32>
      %336 = arith.select %334, %335, %332 : vector<2x8xi1>, vector<2x8xf32>
      %cst_144 = arith.constant dense<0xFF800000> : vector<2xf32>
      %337 = vector.multi_reduction <maximumf>, %336, %cst_144 [1] : vector<2x8xf32> to vector<2xf32>
      %cst_145 = arith.constant 0xFF800000 : f32
      %338 = vector.broadcast %cst_145 : f32 to vector<2xf32>
      %339 = arith.maximumf %338, %337 : vector<2xf32>
      %340 = vector.shape_cast %339 : vector<2xf32> to vector<2x1xf32>
      %341 = vector.broadcast %340 : vector<2x1xf32> to vector<2x8xf32>
      %342 = arith.subf %336, %341 : vector<2x8xf32>
      %343 = math.exp %342 : vector<2x8xf32>
      %cst_146 = arith.constant dense<0.000000e+00> : vector<2xf32>
      %344 = vector.multi_reduction <add>, %343, %cst_146 [1] : vector<2x8xf32> to vector<2xf32>
      %345 = vector.shape_cast %344 : vector<2xf32> to vector<2x1xf32>
      %346 = vector.broadcast %345 : vector<2x1xf32> to vector<2x8xf32>
      %347 = arith.divf %343, %346 : vector<2x8xf32>
      %348 = vector.shape_cast %347 : vector<2x8xf32> to vector<2x1x8xf32>
      "tpu.trace_start"() <{level = 10 : i32, message = "bqn,bnk->bqk"}> : () -> ()
      %cst_147 = arith.constant dense<0.000000e+00> : vector<2x1x16xf32>
      %349 = tpu.matmul %348, %13, %cst_147 {dimension_numbers = #tpu.dot_dimension_numbers<[2], [1], [1], [2], [0, 0, 0, 1, 1, 2], [0], [0]>} : vector<2x1x8xf32>, vector<2x8x16xf32>, vector<2x1x16xf32> -> vector<2x1x16xf32>
      "tpu.trace_stop"() : () -> ()
      %350 = vector.shape_cast %349 : vector<2x1x16xf32> to vector<2x16xf32>
      %351 = vector.extract_strided_slice %302 {offsets = [0, 32], sizes = [2, 16], strides = [1, 1]} : vector<2x128xf32> to vector<2x16xf32>
      %352 = vector.shape_cast %351 : vector<2x16xf32> to vector<2x1x16xf32>
      "tpu.trace_start"() <{level = 10 : i32, message = "bqk,bnk->bqn"}> : () -> ()
      %cst_148 = arith.constant dense<0.000000e+00> : vector<2x1x8xf32>
      %353 = tpu.matmul %352, %6, %cst_148 {dimension_numbers = #tpu.dot_dimension_numbers<[2], [2], [1], [1], [0, 0, 0, 1, 1, 1], [0], [0]>} : vector<2x1x16xf32>, vector<2x8x16xf32>, vector<2x1x8xf32> -> vector<2x1x8xf32>
      "tpu.trace_stop"() : () -> ()
      %354 = vector.shape_cast %353 : vector<2x1x8xf32> to vector<2x8xf32>
      %cst_149 = arith.constant 2.500000e-01 : f32
      %355 = vector.broadcast %cst_149 : f32 to vector<2x8xf32>
      %356 = arith.mulf %354, %355 : vector<2x8xf32>
      %cst_150 = arith.constant 5.000000e-01 : f32
      %357 = vector.broadcast %cst_150 : f32 to vector<2x8xf32>
      %358 = arith.cmpf ogt, %297, %357 : vector<2x8xf32>
      %359 = vector.broadcast %cst_114 : f32 to vector<2x8xf32>
      %360 = arith.select %358, %359, %356 : vector<2x8xi1>, vector<2x8xf32>
      %cst_151 = arith.constant dense<0xFF800000> : vector<2xf32>
      %361 = vector.multi_reduction <maximumf>, %360, %cst_151 [1] : vector<2x8xf32> to vector<2xf32>
      %cst_152 = arith.constant 0xFF800000 : f32
      %362 = vector.broadcast %cst_152 : f32 to vector<2xf32>
      %363 = arith.maximumf %362, %361 : vector<2xf32>
      %364 = vector.shape_cast %363 : vector<2xf32> to vector<2x1xf32>
      %365 = vector.broadcast %364 : vector<2x1xf32> to vector<2x8xf32>
      %366 = arith.subf %360, %365 : vector<2x8xf32>
      %367 = math.exp %366 : vector<2x8xf32>
      %cst_153 = arith.constant dense<0.000000e+00> : vector<2xf32>
      %368 = vector.multi_reduction <add>, %367, %cst_153 [1] : vector<2x8xf32> to vector<2xf32>
      %369 = vector.shape_cast %368 : vector<2xf32> to vector<2x1xf32>
      %370 = vector.broadcast %369 : vector<2x1xf32> to vector<2x8xf32>
      %371 = arith.divf %367, %370 : vector<2x8xf32>
      %372 = vector.shape_cast %371 : vector<2x8xf32> to vector<2x1x8xf32>
      "tpu.trace_start"() <{level = 10 : i32, message = "bqn,bnk->bqk"}> : () -> ()
      %cst_154 = arith.constant dense<0.000000e+00> : vector<2x1x16xf32>
      %373 = tpu.matmul %372, %14, %cst_154 {dimension_numbers = #tpu.dot_dimension_numbers<[2], [1], [1], [2], [0, 0, 0, 1, 1, 2], [0], [0]>} : vector<2x1x8xf32>, vector<2x8x16xf32>, vector<2x1x16xf32> -> vector<2x1x16xf32>
      "tpu.trace_stop"() : () -> ()
      %374 = vector.shape_cast %373 : vector<2x1x16xf32> to vector<2x16xf32>
      %375 = vector.extract_strided_slice %302 {offsets = [0, 48], sizes = [2, 16], strides = [1, 1]} : vector<2x128xf32> to vector<2x16xf32>
      %376 = vector.shape_cast %375 : vector<2x16xf32> to vector<2x1x16xf32>
      "tpu.trace_start"() <{level = 10 : i32, message = "bqk,bnk->bqn"}> : () -> ()
      %cst_155 = arith.constant dense<0.000000e+00> : vector<2x1x8xf32>
      %377 = tpu.matmul %376, %7, %cst_155 {dimension_numbers = #tpu.dot_dimension_numbers<[2], [2], [1], [1], [0, 0, 0, 1, 1, 1], [0], [0]>} : vector<2x1x16xf32>, vector<2x8x16xf32>, vector<2x1x8xf32> -> vector<2x1x8xf32>
      "tpu.trace_stop"() : () -> ()
      %378 = vector.shape_cast %377 : vector<2x1x8xf32> to vector<2x8xf32>
      %cst_156 = arith.constant 2.500000e-01 : f32
      %379 = vector.broadcast %cst_156 : f32 to vector<2x8xf32>
      %380 = arith.mulf %378, %379 : vector<2x8xf32>
      %cst_157 = arith.constant 5.000000e-01 : f32
      %381 = vector.broadcast %cst_157 : f32 to vector<2x8xf32>
      %382 = arith.cmpf ogt, %297, %381 : vector<2x8xf32>
      %383 = vector.broadcast %cst_114 : f32 to vector<2x8xf32>
      %384 = arith.select %382, %383, %380 : vector<2x8xi1>, vector<2x8xf32>
      %cst_158 = arith.constant dense<0xFF800000> : vector<2xf32>
      %385 = vector.multi_reduction <maximumf>, %384, %cst_158 [1] : vector<2x8xf32> to vector<2xf32>
      %cst_159 = arith.constant 0xFF800000 : f32
      %386 = vector.broadcast %cst_159 : f32 to vector<2xf32>
      %387 = arith.maximumf %386, %385 : vector<2xf32>
      %388 = vector.shape_cast %387 : vector<2xf32> to vector<2x1xf32>
      %389 = vector.broadcast %388 : vector<2x1xf32> to vector<2x8xf32>
      %390 = arith.subf %384, %389 : vector<2x8xf32>
      %391 = math.exp %390 : vector<2x8xf32>
      %cst_160 = arith.constant dense<0.000000e+00> : vector<2xf32>
      %392 = vector.multi_reduction <add>, %391, %cst_160 [1] : vector<2x8xf32> to vector<2xf32>
      %393 = vector.shape_cast %392 : vector<2xf32> to vector<2x1xf32>
      %394 = vector.broadcast %393 : vector<2x1xf32> to vector<2x8xf32>
      %395 = arith.divf %391, %394 : vector<2x8xf32>
      %396 = vector.shape_cast %395 : vector<2x8xf32> to vector<2x1x8xf32>
      "tpu.trace_start"() <{level = 10 : i32, message = "bqn,bnk->bqk"}> : () -> ()
      %cst_161 = arith.constant dense<0.000000e+00> : vector<2x1x16xf32>
      %397 = tpu.matmul %396, %15, %cst_161 {dimension_numbers = #tpu.dot_dimension_numbers<[2], [1], [1], [2], [0, 0, 0, 1, 1, 2], [0], [0]>} : vector<2x1x8xf32>, vector<2x8x16xf32>, vector<2x1x16xf32> -> vector<2x1x16xf32>
      "tpu.trace_stop"() : () -> ()
      %398 = vector.shape_cast %397 : vector<2x1x16xf32> to vector<2x16xf32>
      %399 = vector.extract_strided_slice %302 {offsets = [0, 64], sizes = [2, 16], strides = [1, 1]} : vector<2x128xf32> to vector<2x16xf32>
      %400 = vector.shape_cast %399 : vector<2x16xf32> to vector<2x1x16xf32>
      "tpu.trace_start"() <{level = 10 : i32, message = "bqk,bnk->bqn"}> : () -> ()
      %cst_162 = arith.constant dense<0.000000e+00> : vector<2x1x8xf32>
      %401 = tpu.matmul %400, %8, %cst_162 {dimension_numbers = #tpu.dot_dimension_numbers<[2], [2], [1], [1], [0, 0, 0, 1, 1, 1], [0], [0]>} : vector<2x1x16xf32>, vector<2x8x16xf32>, vector<2x1x8xf32> -> vector<2x1x8xf32>
      "tpu.trace_stop"() : () -> ()
      %402 = vector.shape_cast %401 : vector<2x1x8xf32> to vector<2x8xf32>
      %cst_163 = arith.constant 2.500000e-01 : f32
      %403 = vector.broadcast %cst_163 : f32 to vector<2x8xf32>
      %404 = arith.mulf %402, %403 : vector<2x8xf32>
      %cst_164 = arith.constant 5.000000e-01 : f32
      %405 = vector.broadcast %cst_164 : f32 to vector<2x8xf32>
      %406 = arith.cmpf ogt, %297, %405 : vector<2x8xf32>
      %407 = vector.broadcast %cst_114 : f32 to vector<2x8xf32>
      %408 = arith.select %406, %407, %404 : vector<2x8xi1>, vector<2x8xf32>
      %cst_165 = arith.constant dense<0xFF800000> : vector<2xf32>
      %409 = vector.multi_reduction <maximumf>, %408, %cst_165 [1] : vector<2x8xf32> to vector<2xf32>
      %cst_166 = arith.constant 0xFF800000 : f32
      %410 = vector.broadcast %cst_166 : f32 to vector<2xf32>
      %411 = arith.maximumf %410, %409 : vector<2xf32>
      %412 = vector.shape_cast %411 : vector<2xf32> to vector<2x1xf32>
      %413 = vector.broadcast %412 : vector<2x1xf32> to vector<2x8xf32>
      %414 = arith.subf %408, %413 : vector<2x8xf32>
      %415 = math.exp %414 : vector<2x8xf32>
      %cst_167 = arith.constant dense<0.000000e+00> : vector<2xf32>
      %416 = vector.multi_reduction <add>, %415, %cst_167 [1] : vector<2x8xf32> to vector<2xf32>
      %417 = vector.shape_cast %416 : vector<2xf32> to vector<2x1xf32>
      %418 = vector.broadcast %417 : vector<2x1xf32> to vector<2x8xf32>
      %419 = arith.divf %415, %418 : vector<2x8xf32>
      %420 = vector.shape_cast %419 : vector<2x8xf32> to vector<2x1x8xf32>
      "tpu.trace_start"() <{level = 10 : i32, message = "bqn,bnk->bqk"}> : () -> ()
      %cst_168 = arith.constant dense<0.000000e+00> : vector<2x1x16xf32>
      %421 = tpu.matmul %420, %16, %cst_168 {dimension_numbers = #tpu.dot_dimension_numbers<[2], [1], [1], [2], [0, 0, 0, 1, 1, 2], [0], [0]>} : vector<2x1x8xf32>, vector<2x8x16xf32>, vector<2x1x16xf32> -> vector<2x1x16xf32>
      "tpu.trace_stop"() : () -> ()
      %422 = vector.shape_cast %421 : vector<2x1x16xf32> to vector<2x16xf32>
      %423 = vector.extract_strided_slice %302 {offsets = [0, 80], sizes = [2, 16], strides = [1, 1]} : vector<2x128xf32> to vector<2x16xf32>
      %424 = vector.shape_cast %423 : vector<2x16xf32> to vector<2x1x16xf32>
      "tpu.trace_start"() <{level = 10 : i32, message = "bqk,bnk->bqn"}> : () -> ()
      %cst_169 = arith.constant dense<0.000000e+00> : vector<2x1x8xf32>
      %425 = tpu.matmul %424, %9, %cst_169 {dimension_numbers = #tpu.dot_dimension_numbers<[2], [2], [1], [1], [0, 0, 0, 1, 1, 1], [0], [0]>} : vector<2x1x16xf32>, vector<2x8x16xf32>, vector<2x1x8xf32> -> vector<2x1x8xf32>
      "tpu.trace_stop"() : () -> ()
      %426 = vector.shape_cast %425 : vector<2x1x8xf32> to vector<2x8xf32>
      %cst_170 = arith.constant 2.500000e-01 : f32
      %427 = vector.broadcast %cst_170 : f32 to vector<2x8xf32>
      %428 = arith.mulf %426, %427 : vector<2x8xf32>
      %cst_171 = arith.constant 5.000000e-01 : f32
      %429 = vector.broadcast %cst_171 : f32 to vector<2x8xf32>
      %430 = arith.cmpf ogt, %297, %429 : vector<2x8xf32>
      %431 = vector.broadcast %cst_114 : f32 to vector<2x8xf32>
      %432 = arith.select %430, %431, %428 : vector<2x8xi1>, vector<2x8xf32>
      %cst_172 = arith.constant dense<0xFF800000> : vector<2xf32>
      %433 = vector.multi_reduction <maximumf>, %432, %cst_172 [1] : vector<2x8xf32> to vector<2xf32>
      %cst_173 = arith.constant 0xFF800000 : f32
      %434 = vector.broadcast %cst_173 : f32 to vector<2xf32>
      %435 = arith.maximumf %434, %433 : vector<2xf32>
      %436 = vector.shape_cast %435 : vector<2xf32> to vector<2x1xf32>
      %437 = vector.broadcast %436 : vector<2x1xf32> to vector<2x8xf32>
      %438 = arith.subf %432, %437 : vector<2x8xf32>
      %439 = math.exp %438 : vector<2x8xf32>
      %cst_174 = arith.constant dense<0.000000e+00> : vector<2xf32>
      %440 = vector.multi_reduction <add>, %439, %cst_174 [1] : vector<2x8xf32> to vector<2xf32>
      %441 = vector.shape_cast %440 : vector<2xf32> to vector<2x1xf32>
      %442 = vector.broadcast %441 : vector<2x1xf32> to vector<2x8xf32>
      %443 = arith.divf %439, %442 : vector<2x8xf32>
      %444 = vector.shape_cast %443 : vector<2x8xf32> to vector<2x1x8xf32>
      "tpu.trace_start"() <{level = 10 : i32, message = "bqn,bnk->bqk"}> : () -> ()
      %cst_175 = arith.constant dense<0.000000e+00> : vector<2x1x16xf32>
      %445 = tpu.matmul %444, %17, %cst_175 {dimension_numbers = #tpu.dot_dimension_numbers<[2], [1], [1], [2], [0, 0, 0, 1, 1, 2], [0], [0]>} : vector<2x1x8xf32>, vector<2x8x16xf32>, vector<2x1x16xf32> -> vector<2x1x16xf32>
      "tpu.trace_stop"() : () -> ()
      %446 = vector.shape_cast %445 : vector<2x1x16xf32> to vector<2x16xf32>
      %447 = vector.extract_strided_slice %302 {offsets = [0, 96], sizes = [2, 16], strides = [1, 1]} : vector<2x128xf32> to vector<2x16xf32>
      %448 = vector.shape_cast %447 : vector<2x16xf32> to vector<2x1x16xf32>
      "tpu.trace_start"() <{level = 10 : i32, message = "bqk,bnk->bqn"}> : () -> ()
      %cst_176 = arith.constant dense<0.000000e+00> : vector<2x1x8xf32>
      %449 = tpu.matmul %448, %10, %cst_176 {dimension_numbers = #tpu.dot_dimension_numbers<[2], [2], [1], [1], [0, 0, 0, 1, 1, 1], [0], [0]>} : vector<2x1x16xf32>, vector<2x8x16xf32>, vector<2x1x8xf32> -> vector<2x1x8xf32>
      "tpu.trace_stop"() : () -> ()
      %450 = vector.shape_cast %449 : vector<2x1x8xf32> to vector<2x8xf32>
      %cst_177 = arith.constant 2.500000e-01 : f32
      %451 = vector.broadcast %cst_177 : f32 to vector<2x8xf32>
      %452 = arith.mulf %450, %451 : vector<2x8xf32>
      %cst_178 = arith.constant 5.000000e-01 : f32
      %453 = vector.broadcast %cst_178 : f32 to vector<2x8xf32>
      %454 = arith.cmpf ogt, %297, %453 : vector<2x8xf32>
      %455 = vector.broadcast %cst_114 : f32 to vector<2x8xf32>
      %456 = arith.select %454, %455, %452 : vector<2x8xi1>, vector<2x8xf32>
      %cst_179 = arith.constant dense<0xFF800000> : vector<2xf32>
      %457 = vector.multi_reduction <maximumf>, %456, %cst_179 [1] : vector<2x8xf32> to vector<2xf32>
      %cst_180 = arith.constant 0xFF800000 : f32
      %458 = vector.broadcast %cst_180 : f32 to vector<2xf32>
      %459 = arith.maximumf %458, %457 : vector<2xf32>
      %460 = vector.shape_cast %459 : vector<2xf32> to vector<2x1xf32>
      %461 = vector.broadcast %460 : vector<2x1xf32> to vector<2x8xf32>
      %462 = arith.subf %456, %461 : vector<2x8xf32>
      %463 = math.exp %462 : vector<2x8xf32>
      %cst_181 = arith.constant dense<0.000000e+00> : vector<2xf32>
      %464 = vector.multi_reduction <add>, %463, %cst_181 [1] : vector<2x8xf32> to vector<2xf32>
      %465 = vector.shape_cast %464 : vector<2xf32> to vector<2x1xf32>
      %466 = vector.broadcast %465 : vector<2x1xf32> to vector<2x8xf32>
      %467 = arith.divf %463, %466 : vector<2x8xf32>
      %468 = vector.shape_cast %467 : vector<2x8xf32> to vector<2x1x8xf32>
      "tpu.trace_start"() <{level = 10 : i32, message = "bqn,bnk->bqk"}> : () -> ()
      %cst_182 = arith.constant dense<0.000000e+00> : vector<2x1x16xf32>
      %469 = tpu.matmul %468, %18, %cst_182 {dimension_numbers = #tpu.dot_dimension_numbers<[2], [1], [1], [2], [0, 0, 0, 1, 1, 2], [0], [0]>} : vector<2x1x8xf32>, vector<2x8x16xf32>, vector<2x1x16xf32> -> vector<2x1x16xf32>
      "tpu.trace_stop"() : () -> ()
      %470 = vector.shape_cast %469 : vector<2x1x16xf32> to vector<2x16xf32>
      %471 = vector.extract_strided_slice %302 {offsets = [0, 112], sizes = [2, 16], strides = [1, 1]} : vector<2x128xf32> to vector<2x16xf32>
      %472 = vector.shape_cast %471 : vector<2x16xf32> to vector<2x1x16xf32>
      "tpu.trace_start"() <{level = 10 : i32, message = "bqk,bnk->bqn"}> : () -> ()
      %cst_183 = arith.constant dense<0.000000e+00> : vector<2x1x8xf32>
      %473 = tpu.matmul %472, %11, %cst_183 {dimension_numbers = #tpu.dot_dimension_numbers<[2], [2], [1], [1], [0, 0, 0, 1, 1, 1], [0], [0]>} : vector<2x1x16xf32>, vector<2x8x16xf32>, vector<2x1x8xf32> -> vector<2x1x8xf32>
      "tpu.trace_stop"() : () -> ()
      %474 = vector.shape_cast %473 : vector<2x1x8xf32> to vector<2x8xf32>
      %cst_184 = arith.constant 2.500000e-01 : f32
      %475 = vector.broadcast %cst_184 : f32 to vector<2x8xf32>
      %476 = arith.mulf %474, %475 : vector<2x8xf32>
      %cst_185 = arith.constant 5.000000e-01 : f32
      %477 = vector.broadcast %cst_185 : f32 to vector<2x8xf32>
      %478 = arith.cmpf ogt, %297, %477 : vector<2x8xf32>
      %479 = vector.broadcast %cst_114 : f32 to vector<2x8xf32>
      %480 = arith.select %478, %479, %476 : vector<2x8xi1>, vector<2x8xf32>
      %cst_186 = arith.constant dense<0xFF800000> : vector<2xf32>
      %481 = vector.multi_reduction <maximumf>, %480, %cst_186 [1] : vector<2x8xf32> to vector<2xf32>
      %cst_187 = arith.constant 0xFF800000 : f32
      %482 = vector.broadcast %cst_187 : f32 to vector<2xf32>
      %483 = arith.maximumf %482, %481 : vector<2xf32>
      %484 = vector.shape_cast %483 : vector<2xf32> to vector<2x1xf32>
      %485 = vector.broadcast %484 : vector<2x1xf32> to vector<2x8xf32>
      %486 = arith.subf %480, %485 : vector<2x8xf32>
      %487 = math.exp %486 : vector<2x8xf32>
      %cst_188 = arith.constant dense<0.000000e+00> : vector<2xf32>
      %488 = vector.multi_reduction <add>, %487, %cst_188 [1] : vector<2x8xf32> to vector<2xf32>
      %489 = vector.shape_cast %488 : vector<2xf32> to vector<2x1xf32>
      %490 = vector.broadcast %489 : vector<2x1xf32> to vector<2x8xf32>
      %491 = arith.divf %487, %490 : vector<2x8xf32>
      %492 = vector.shape_cast %491 : vector<2x8xf32> to vector<2x1x8xf32>
      "tpu.trace_start"() <{level = 10 : i32, message = "bqn,bnk->bqk"}> : () -> ()
      %cst_189 = arith.constant dense<0.000000e+00> : vector<2x1x16xf32>
      %493 = tpu.matmul %492, %19, %cst_189 {dimension_numbers = #tpu.dot_dimension_numbers<[2], [1], [1], [2], [0, 0, 0, 1, 1, 2], [0], [0]>} : vector<2x1x8xf32>, vector<2x8x16xf32>, vector<2x1x16xf32> -> vector<2x1x16xf32>
      "tpu.trace_stop"() : () -> ()
      %494 = vector.shape_cast %493 : vector<2x1x16xf32> to vector<2x16xf32>
      %495 = tpu.concatenate %326, %350, %374, %398, %422, %446, %470, %494 in 1 : vector<2x16xf32>, vector<2x16xf32>, vector<2x16xf32>, vector<2x16xf32>, vector<2x16xf32>, vector<2x16xf32>, vector<2x16xf32>, vector<2x16xf32> -> vector<2x128xf32>
      %cst_190 = arith.constant dense<0.000000e+00> : vector<2x128xf32>
      %496 = tpu.matmul %495, %22, %cst_190 {dimension_numbers = #tpu.dot_dimension_numbers<[1], [0], [0], [1], [0, 0, 1, 1], [], []>} : vector<2x128xf32>, vector<128x128xf32>, vector<2x128xf32> -> vector<2x128xf32>
      %497 = vector.shape_cast %496 : vector<2x128xf32> to vector<2x1x128xf32>
      "tpu.trace_start"() <{level = 10 : i32, message = "bqd,bnd->bqn"}> : () -> ()
      %cst_191 = arith.constant dense<0.000000e+00> : vector<2x1x8xf32>
      %498 = tpu.matmul %497, %20, %cst_191 {dimension_numbers = #tpu.dot_dimension_numbers<[2], [2], [1], [1], [0, 0, 0, 1, 1, 1], [0], [0]>} : vector<2x1x128xf32>, vector<2x8x128xf32>, vector<2x1x8xf32> -> vector<2x1x8xf32>
      "tpu.trace_stop"() : () -> ()
      %499 = vector.shape_cast %498 : vector<2x1x8xf32> to vector<2x8xf32>
      %cst_192 = arith.constant 0.0883883461 : f32
      %500 = vector.broadcast %cst_192 : f32 to vector<2x8xf32>
      %501 = arith.mulf %499, %500 : vector<2x8xf32>
      %502 = math.tanh %501 : vector<2x8xf32>
      %cst_193 = arith.constant 1.000000e+01 : f32
      %503 = vector.broadcast %cst_193 : f32 to vector<2x8xf32>
      %504 = arith.mulf %503, %502 : vector<2x8xf32>
      %cst_194 = arith.constant 5.000000e-01 : f32
      %505 = vector.broadcast %cst_194 : f32 to vector<2x8xf32>
      %506 = arith.cmpf ogt, %297, %505 : vector<2x8xf32>
      %507 = vector.broadcast %cst_114 : f32 to vector<2x8xf32>
      %508 = arith.select %506, %507, %504 : vector<2x8xi1>, vector<2x8xf32>
      %cst_195 = arith.constant 1.000000e+00 : f32
      %509 = vector.broadcast %cst_195 : f32 to vector<2x8xf32>
      %510 = arith.divf %508, %509 : vector<2x8xf32>
      %cst_196 = arith.constant dense<0xFF800000> : vector<2xf32>
      %511 = vector.multi_reduction <maximumf>, %510, %cst_196 [1] : vector<2x8xf32> to vector<2xf32>
      %cst_197 = arith.constant 0xFF800000 : f32
      %512 = vector.broadcast %cst_197 : f32 to vector<2xf32>
      %513 = arith.maximumf %512, %511 : vector<2xf32>
      %514 = vector.shape_cast %513 : vector<2xf32> to vector<2x1xf32>
      %515 = vector.broadcast %514 : vector<2x1xf32> to vector<2x8xf32>
      %516 = arith.subf %510, %515 : vector<2x8xf32>
      %517 = math.exp %516 : vector<2x8xf32>
      %cst_198 = arith.constant dense<0.000000e+00> : vector<2xf32>
      %518 = vector.multi_reduction <add>, %517, %cst_198 [1] : vector<2x8xf32> to vector<2xf32>
      %519 = vector.shape_cast %518 : vector<2xf32> to vector<2x1xf32>
      %520 = math.log %519 : vector<2x1xf32>
      %521 = vector.broadcast %520 : vector<2x1xf32> to vector<2x8xf32>
      %522 = arith.subf %516, %521 : vector<2x8xf32>
      %cst_199 = arith.constant dense<0xFF800000> : vector<2xf32>
      %523 = vector.multi_reduction <maximumf>, %522, %cst_199 [1] : vector<2x8xf32> to vector<2xf32>
      %524 = vector.shape_cast %523 : vector<2xf32> to vector<2x1xf32>
      %525 = vector.broadcast %524 : vector<2x1xf32> to vector<2x8xf32>
      %526 = arith.cmpf oge, %522, %525 : vector<2x8xf32>
      %c8_i32_200 = arith.constant 8 : i32
      %527 = vector.broadcast %c8_i32_200 : i32 to vector<2x8xi32>
      %528 = arith.select %526, %23, %527 : vector<2x8xi1>, vector<2x8xi32>
      %cst_201 = arith.constant dense<2147483647> : vector<2xi32>
      %529 = vector.multi_reduction <minsi>, %528, %cst_201 [1] : vector<2x8xi32> to vector<2xi32>
      %530 = vector.shape_cast %529 : vector<2xi32> to vector<2x1xi32>
      %531 = vector.broadcast %530 : vector<2x1xi32> to vector<2x8xi32>
      %532 = arith.cmpi eq, %23, %531 : vector<2x8xi32>
      %533 = arith.extui %532 : vector<2x8xi1> to vector<2x8xi32>
      %534 = arith.sitofp %533 : vector<2x8xi32> to vector<2x8xf32>
      %535 = arith.mulf %522, %534 : vector<2x8xf32>
      %cst_202 = arith.constant dense<0.000000e+00> : vector<2xf32>
      %536 = vector.multi_reduction <add>, %535, %cst_202 [1] : vector<2x8xf32> to vector<2xf32>
      %537 = vector.shape_cast %536 : vector<2xf32> to vector<2x1xf32>
      %538 = arith.index_cast %296 : i32 to index
      %c0_203 = arith.constant 0 : index
      %c0_204 = arith.constant 0 : index
      %539 = vector.load %arg7[%538, %c0_203, %c0_204] : memref<8x2x1xi32, #tpu.memory_space<vmem>>, vector<1x2x1xi32>
      %540 = vector.shape_cast %539 : vector<1x2x1xi32> to vector<2x1xi32>
      %541 = vector.shape_cast %530 : vector<2x1xi32> to vector<1x2x1xi32>
      tpu.vector_store %arg7[%538, %c0_203, %c0_204], %541 {strides = array<i32>} : memref<8x2x1xi32, #tpu.memory_space<vmem>>, vector<1x2x1xi32>,
      %542 = arith.maximumf %297, %534 : vector<2x8xf32>
      %c0_205 = arith.constant 0 : index
      %c0_206 = arith.constant 0 : index
      %543 = vector.load %arg10[%c0_205, %c0_206] : memref<2x8xf32, #tpu.memory_space<vmem>>, vector<2x8xf32>
      tpu.vector_store %arg10[%c0_205, %c0_206], %542 {strides = array<i32>} : memref<2x8xf32, #tpu.memory_space<vmem>>, vector<2x8xf32>,
      %544 = vector.shape_cast %534 : vector<2x8xf32> to vector<2x8x1xf32>
      %545 = vector.broadcast %544 : vector<2x8x1xf32> to vector<2x8x128xf32>
      %546 = arith.mulf %545, %0 : vector<2x8x128xf32>
      %cst_207 = arith.constant dense<0.000000e+00> : vector<2x128xf32>
      %547 = vector.multi_reduction <add>, %546, %cst_207 [1] : vector<2x8x128xf32> to vector<2x128xf32>
      %c0_208 = arith.constant 0 : index
      %c0_209 = arith.constant 0 : index
      %548 = vector.load %arg12[%c0_208, %c0_209] : memref<2x128xf32, #tpu.memory_space<vmem>>, vector<2x128xf32>
      tpu.vector_store %arg12[%c0_208, %c0_209], %547 {strides = array<i32>} : memref<2x128xf32, #tpu.memory_space<vmem>>, vector<2x128xf32>,
      %549 = vector.shape_cast %534 : vector<2x8xf32> to vector<2x8x1xf32>
      %550 = vector.broadcast %549 : vector<2x8x1xf32> to vector<2x8x2xf32>
      %551 = arith.mulf %550, %1 : vector<2x8x2xf32>
      %cst_210 = arith.constant dense<0.000000e+00> : vector<2x2xf32>
      %552 = vector.multi_reduction <add>, %551, %cst_210 [1] : vector<2x8x2xf32> to vector<2x2xf32>
      %c0_211 = arith.constant 0 : index
      %c0_212 = arith.constant 0 : index
      %553 = vector.load %arg14[%c0_211, %c0_212] : memref<2x2xf32, #tpu.memory_space<vmem>>, vector<2x2xf32>
      %554 = arith.subf %552, %553 : vector<2x2xf32>
      %c0_213 = arith.constant 0 : index
      %c0_214 = arith.constant 0 : index
      %555 = vector.load %arg9[%c0_213, %c0_214] : memref<2x1xf32, #tpu.memory_space<vmem>>, vector<2x1xf32>
      %556 = arith.mulf %554, %554 : vector<2x2xf32>
      %cst_215 = arith.constant dense<0.000000e+00> : vector<2xf32>
      %557 = vector.multi_reduction <add>, %556, %cst_215 [1] : vector<2x2xf32> to vector<2xf32>
      %558 = vector.shape_cast %557 : vector<2xf32> to vector<2x1xf32>
      %559 = math.sqrt %558 : vector<2x1xf32>
      %560 = arith.addf %555, %559 : vector<2x1xf32>
      %c0_216 = arith.constant 0 : index
      %c0_217 = arith.constant 0 : index
      %561 = vector.load %arg9[%c0_216, %c0_217] : memref<2x1xf32, #tpu.memory_space<vmem>>, vector<2x1xf32>
      tpu.vector_store %arg9[%c0_216, %c0_217], %560 {strides = array<i32>} : memref<2x1xf32, #tpu.memory_space<vmem>>, vector<2x1xf32>,
      %c0_218 = arith.constant 0 : index
      %c0_219 = arith.constant 0 : index
      %562 = vector.load %arg14[%c0_218, %c0_219] : memref<2x2xf32, #tpu.memory_space<vmem>>, vector<2x2xf32>
      tpu.vector_store %arg14[%c0_218, %c0_219], %552 {strides = array<i32>} : memref<2x2xf32, #tpu.memory_space<vmem>>, vector<2x2xf32>,
      %c0_220 = arith.constant 0 : index
      %c0_221 = arith.constant 0 : index
      %563 = vector.load %arg8[%c0_220, %c0_221] : memref<2x1xf32, #tpu.memory_space<vmem>>, vector<2x1xf32>
      %564 = arith.addf %563, %537 : vector<2x1xf32>
      %c0_222 = arith.constant 0 : index
      %c0_223 = arith.constant 0 : index
      %565 = vector.load %arg8[%c0_222, %c0_223] : memref<2x1xf32, #tpu.memory_space<vmem>>, vector<2x1xf32>
      tpu.vector_store %arg8[%c0_222, %c0_223], %564 {strides = array<i32>} : memref<2x1xf32, #tpu.memory_space<vmem>>, vector<2x1xf32>,
    }
    %c7_i32_115 = arith.constant 7 : i32
    %c0_116 = arith.constant 0 : index
    %c0_117 = arith.constant 0 : index
    %285 = vector.load %arg13[%c0_116, %c0_117] : memref<2x2xf32, #tpu.memory_space<vmem>>, vector<2x2xf32>
    %c0_118 = arith.constant 0 : index
    %c0_119 = arith.constant 0 : index
    %286 = vector.load %arg14[%c0_118, %c0_119] : memref<2x2xf32, #tpu.memory_space<vmem>>, vector<2x2xf32>
    %287 = arith.subf %285, %286 : vector<2x2xf32>
    %c0_120 = arith.constant 0 : index
    %c0_121 = arith.constant 0 : index
    %288 = vector.load %arg9[%c0_120, %c0_121] : memref<2x1xf32, #tpu.memory_space<vmem>>, vector<2x1xf32>
    %289 = arith.mulf %287, %287 : vector<2x2xf32>
    %cst_122 = arith.constant dense<0.000000e+00> : vector<2xf32>
    %290 = vector.multi_reduction <add>, %289, %cst_122 [1] : vector<2x2xf32> to vector<2xf32>
    %291 = vector.shape_cast %290 : vector<2xf32> to vector<2x1xf32>
    %292 = math.sqrt %291 : vector<2x1xf32>
    %293 = arith.addf %288, %292 : vector<2x1xf32>
    %c0_123 = arith.constant 0 : index
    %c0_124 = arith.constant 0 : index
    %294 = vector.load %arg9[%c0_123, %c0_124] : memref<2x1xf32, #tpu.memory_space<vmem>>, vector<2x1xf32>
    tpu.vector_store %arg9[%c0_123, %c0_124], %293 {strides = array<i32>} : memref<2x1xf32, #tpu.memory_space<vmem>>, vector<2x1xf32>,
    return
  }
}

</mosaic_0001>

<bundles_post_ra>
// kernel: attention_tsp_forward.3
= control target key start
LH: loop header
LB: loop body
LE: loop exit
PB: predicated region body
PF: predicated region fallthrough
CT: control target
= control target key end

     0   :  { %v8949_v0 = vlaneseq  ;;  %v8980_v39 = vmov 0.0   ;;  %vm196_vm0 = vcmask 130048   ;;  %vm7584_vm1 = vmmov 0   ;;  %s7586_s19 = smov 96   ;;  %s7587_s20 = smov 80   ;;  %s8939_s4 = inlined_call_operand.vmem [shape: f32[256,128], index: 4, kind: input, shape index: {}]   ;;  %s8940_s6 = inlined_call_operand.vmem [shape: f32[1,256], index: 6, kind: input, shape index: {}]   ;;  %s8941_s3 = inlined_call_operand.vmem [shape: f32[2,8,384], index: 3, kind: input, shape index: {}]   ;;  %s8942_s2 = inlined_call_operand.vmem [shape: f32[2,128], index: 2, kind: input, shape index: {}]   ;;  %s8943_s5 = inlined_call_operand.vmem [shape: f32[128,128], index: 5, kind: input, shape index: {}]   ;;  %s8944_s7 = inlined_call_operand.vmem [shape: s32[8,2,1], index: 7, kind: output, shape index: {0}]   ;;  %s8945_s9 = inlined_call_operand.vmem [shape: f32[2,1], index: 9, kind: output, shape index: {2}]   ;;  %s8946_s1 = inlined_call_operand.vmem [shape: f32[2,8,128], index: 1, kind: input, shape index: {}]   ;;  %s8947_s0 = inlined_call_operand.vmem [shape: f32[2,8,2], index: 0, kind: input, shape index: {}]   ;;  %s8948_s8 = inlined_call_operand.vmem [shape: f32[2,1], index: 8, kind: output, shape index: {1}]  }
   0x1   :  { %v7654_v1 = vld [vmem:[%s8939_s4 + $0xf8] sm:$0xff]  ;;  %v7664_v3 = vld [vmem:[%s8939_s4 + $0xf0] sm:$0xff]  ;;  %v7676_v5 = vld [vmem:[%s8939_s4 + $0xe8] sm:$0xff]  ;;  %7018 = vmatprep.subr.mxu1 %v8980_v39  ;;  %7020 = vmatprep.mubr.msk.f32.mxu1 %vm7584_vm1, %v8980_v39  ;;  %v7585_v41 = vmov 1966171168   ;;  %vm355_vm2 = vcmask 1041409  }
   0x2   :  { %9009 = vst [vmem:[#allocation7_spill] sm:$0xff] %v7654_v1  ;;  %v7659_v2 = vld [vmem:[%s8939_s4 + $0x78] sm:$0xff]  ;;  %6778 = vmatprep.subr.mxu0 %v7654_v1  ;;  %v7670_v4 = vld [vmem:[%s8939_s4 + $0x70] sm:$0xff]  ;;  %v7682_v6 = vld [vmem:[%s8939_s4 + $0x68] sm:$0xff]  ;;  %v7685_v7 = vshrl.u32 %v8949_v0, 7  ;;  %v175_v42 = vunpack.c.l.s4 %v7585_v41  ;;  %vm358_vm3 = vcmask 58368  }
   0x3   :  { %9010 = vst [vmem:[#allocation8_spill] sm:$0xff] %v7659_v2  ;;  %6779 = vmatpush3.msra.mxu0 %v7659_v2  ;;  %v7691_v8 = vld [vmem:[%s8939_s4 + $0xe0] sm:$0xff]  ;;  %v7703_v10 = vld [vmem:[%s8939_s4 + $0xd8] sm:$0xff]  ;;  %v7718_v13 = vld [vmem:[%s8939_s4 + $0xd0] sm:$0xff]  ;;  %vm388_vm4 = vcmask 64512   ;;  %s7589_s21 = smov 48  }
   0x4   :  { %6780 = vmatprep.subr.mxu0 %v7664_v3  ;;  %v7697_v9 = vld [vmem:[%s8939_s4 + $0x60] sm:$0xff]  ;;  %v7709_v11 = vld [vmem:[%s8939_s4 + $0x58] sm:$0xff]  ;;  %v7712_v12 = vsub.s32 1, %v7685_v7  ;;  %v7724_v14 = vld [vmem:[%s8939_s4 + $0x50] sm:$0xff]  ;;  %v7827_v33 = vsub.s32 0, %v7685_v7  ;;  %v176_v43 = vunpack.c.0.s8 %v175_v42  ;;  %s7590_s22 = smov 32  }
   0x5   :  { %6781 = vmatpush3.msra.mxu0 %v7670_v4  ;;  %v7730_v15 = vld [vmem:[%s8939_s4 + $0xc8] sm:$0xff]  ;;  %v90_v16 = vld [vmem:[%s8940_s6] sm:$0x3]  ;;  %v7758_v21 = vld [vmem:[%s8939_s4 + $0xb8] sm:$0xff]  ;;  %s7588_s6 = smov 64   ;;  %s7591_s23 = smov 16  }
   0x6   :  { %6782 = vmatprep.subr.mxu0 %v7676_v5  ;;  %9011 = vst [vmem:[#allocation9_spill] sm:$0xff] %v7712_v12  ;;  %v7739_v17 = vld [vmem:[%s8939_s4 + $0x48] sm:$0xff]  ;;  %v99_v18 = vrot.slane %v90_v16, %v7712_v12  ;;  %v7746_v19 = vld [vmem:[%s8939_s4 + $0xc0] sm:$0xff]  ;;  %v7764_v22 = vld [vmem:[%s8939_s4 + $0x38] sm:$0xff]  ;;  %v95_v38 = vrot.slane %v90_v16, %v7827_v33  ;;  %v7879_v47 = vsub.s32 %v176_v43, %v7685_v7  ;;  %vm3022_vm5 = vcmask 261120  }
   0x7   :  { %6783 = vmatpush3.msra.mxu0 %v7682_v6  ;;  %v7752_v20 = vld [vmem:[%s8939_s4 + $0x40] sm:$0xff]  ;;  %v7770_v23 = vld [vmem:[%s8939_s4 + $0xb0] sm:$0xff]  ;;  %v7782_v25 = vld [vmem:[%s8939_s4 + $0xa8] sm:$0xff]  ;;  %vm3024_vm6 = vcmask 392192   ;;  %vm3026_vm7 = vcmask 523264   ;;  %vm3028_vm8 = vcmask 654336  }
   0x8   :  { %6784 = vmatprep.subr.mxu0 %v7691_v8  ;;  %166 = vmatprep.mubr.f32.mxu0 %v99_v18  ;;  %v7776_v24 = vld [vmem:[%s8939_s4 + $0x30] sm:$0xff]  ;;  %v7788_v26 = vld [vmem:[%s8939_s4 + $0x28] sm:$0xff]  ;;  %v7794_v27 = vld [vmem:[%s8939_s4 + $0xa0] sm:$0xff]  ;;  %vm3030_vm9 = vcmask 785408   ;;  %vm3032_vm10 = vcmask 916480   ;;  %vm3361_vm14 = vcmask 1024  }
   0x9   :  { %6785 = vmatpush3.msra.mxu0 %v7697_v9  ;;  %v7800_v28 = vld [vmem:[%s8939_s4 + $0x20] sm:$0xff]  ;;  %v7806_v29 = vld [vmem:[%s8939_s4 + $0x98] sm:$0xff]  ;;  %v7818_v31 = vld [vmem:[%s8939_s4 + $0x90] sm:$0xff] }
   0xa   :  { %6786 = vmatprep.subr.mxu0 %v7703_v10  ;;  %v7812_v30 = vld [vmem:[%s8939_s4 + $0x18] sm:$0xff]  ;;  %v7824_v32 = vld [vmem:[%s8939_s4 + $0x10] sm:$0xff]  ;;  %v7833_v34 = vld [vmem:[%s8939_s4 + $0x88] sm:$0xff] }
   0xb   :  { %6787 = vmatpush3.msra.mxu0 %v7709_v11  ;;  %v7839_v35 = vld [vmem:[%s8939_s4 + $0x8] sm:$0xff]  ;;  %v7845_v36 = vld [vmem:[%s8939_s4 + $0x80] sm:$0xff]  ;;  %v7887_v53 = vld [vmem:[%s8941_s3 + $0x18] sm:$0xff] }
   0xc   :  { %6788 = vmatprep.subr.mxu0 %v7718_v13  ;;  %v7851_v37 = vld [vmem:[%s8939_s4] sm:$0xff]  ;;  %s7583_s4 = smov 112   ;;  %9012 = vst [vmem:[#allocation10_spill] sm:$0xff] %v7887_v53 }
   0xd   :  { %6789 = vmatpush3.msra.mxu0 %v7724_v14  ;;  %v7861_v40 = vld [vmem:[%s8941_s3] sm:$0xff] }
   0xe   :  { %6790 = vmatprep.subr.mxu0 %v7730_v15  ;;  %7019 = vmatpush3.xpose.msk.msra.mxu1 %vm196_vm0, %v7861_v40  ;;  %v7876_v45 = vld [vmem:[%s8942_s2] sm:$0x3] }
   0xf   :  { %6791 = vmatpush3.msra.mxu0 %v7739_v17  ;;  %541 = vrot.lane.b32.xlu1 %v7861_v40, %s7583_s4 }
  0x10   :  { %6792 = vmatprep.subr.mxu0 %v7746_v19  ;;  %7023 = vmatprep.subr.mxu1 %v8980_v39 }
  0x11   :  { %6793 = vmatpush3.msra.mxu0 %v7752_v20 }
  0x12   :  { %6794 = vmatprep.subr.mxu0 %v7758_v21 }
  0x13   :  { %6795 = vmatpush3.msra.mxu0 %v7764_v22 }
  0x14   :  { %6796 = vmatprep.subr.mxu0 %v7770_v23 }
  0x15   :  { %6797 = vmatpush3.msra.mxu0 %v7776_v24 }
  0x16   :  { %6798 = vmatprep.subr.mxu0 %v7782_v25 }
  0x17   :  { %6799 = vmatpush3.msra.mxu0 %v7788_v26 }
  0x18   :  { %6800 = vmatprep.subr.mxu0 %v7794_v27 }
  0x19   :  { %6801 = vmatpush3.msra.mxu0 %v7800_v28 }
  0x1a   :  { %6802 = vmatprep.subr.mxu0 %v7806_v29 }
  0x1b   :  { %6803 = vmatpush3.msra.mxu0 %v7812_v30 }
  0x1c   :  { %6804 = vmatprep.subr.mxu0 %v7818_v31 }
  0x1d   :  { %6805 = vmatpush3.msra.mxu0 %v7824_v32 }
  0x1e   :  { %6806 = vmatprep.subr.mxu0 %v7833_v34 }
  0x1f   :  { %6807 = vmatpush3.msra.mxu0 %v7839_v35 }
  0x20   :  { %6808 = vmatprep.subr.mxu0 %v7845_v36 }
  0x21   :  { %6809 = vmatpush3.msra.mxu0 %v7851_v37 }
  0x22   :  { %167 = vmatmul.mubr.f32.vlgmr.msra.gmra.mxu0 %v95_v38  ;;  %7088 = vmatprep.subr.mxu0 %v8980_v39 }
  0x23   :  { %7090 = vmatprep.mubr.msk.f32.mxu0 %vm7584_vm1, %v8980_v39 }
  0xe2   :  { %v6810_v44 = vpop.f32.mrf.mxu0 }
  0xe4   :  { %v6811_v46 = vpop.f32.mrf.mxu0 }
  0xe5   :  { %v6812_v48 = vadd.f32 %v6811_v46, %v6810_v44 }
  0xe7   :  { %v172_v49 = vadd.f32 %v6812_v48, %v7876_v45 }
  0xe9   :  { %v180_v50 = vrot.slane %v172_v49, %v7879_v47 }
  0xeb   :  { %v181_v51 = vcombine.high %v180_v50, %v180_v50  ;;  %v188_v52 = vrot.slane %v180_v50, %v7879_v47 }
  0xed   :  { %v195_v54 = vrot.slane %v181_v51, %v7879_v47  ;;  %v7891_v55 = vrot.slane %v188_v52, %v7827_v33  ;;  %7021 = vmatmul.mubr.msk.f32.vlgmr.msra.gmra.mxu1 %vm196_vm0, %v188_v52  ;;  %v7916_v52 = vld [vmem:[%s8941_s3 + $0x8] sm:$0xff] }
  0xee   :  { %7024 = vmatpush3.xpose.msk.msra.mxu1 %vm196_vm0, %v7887_v53  ;;  %7025 = vmatprep.mubr.msk.f32.mxu1 %vm7584_vm1, %v8980_v39  ;;  %9013 = vst [vmem:[#allocation11_spill] sm:$0xff] %v7916_v52 }
  0xef   :  { %539 = vrot.lane.b32.xlu1 %v7891_v55, %s7583_s4  ;;  %7028 = vmatprep.subr.mxu1 %v8980_v39  ;;  %v7902_v56 = vrot.slane %v195_v54, %v7827_v33 }
  0xf1   :  { %7026 = vmatmul.mubr.msk.f32.vlgmr.msra.gmra.mxu1 %vm196_vm0, %v195_v54 }
  0xf2   :  { %7030 = vmatprep.mubr.msk.f32.mxu1 %vm7584_vm1, %v8980_v39  ;;  %7029 = vmatpush3.msra.mxu1 %v7916_v52 }
  0xf3   :  { %621 = vrot.lane.b32.xlu1 %v7902_v56, %s7583_s4  ;;  %7033 = vmatprep.subr.mxu1 %v8980_v39 }
 0x1ad   :  { %v268_v57 = vpop.f32.mrf.mxu1 }
 0x1ae   :  { %v347_v62 = vmul.f32 0.25, %v268_v57 }
 0x1af   :  { %v7022_v58 = vpop.f32.mrf.mxu1 }
 0x1b1   :  { %v343_v59 = vpop.f32.mrf.mxu1 }
 0x1b2   :  { %v348_v60 = vmul.f32 0.25, %v343_v59 }
 0x1b3   :  { %v7027_v61 = vpop.f32.mrf.mxu1 }
 0x1b4   :  { %v354_v63 = vrot.slane %v348_v60, 7 }
 0x1b6   :  { %v356_v7 = vsel %vm355_vm2, %v354_v63, %v347_v62 }
 0x1b7   :  { %v359_v16 = vsel %vm358_vm3, %v356_v7, -inf }
 0x1b8   :  { %360 = vmax.xlane.f32.xlu0 %v359_v16 }
 0x241   :  { %v361_v18 = vpop.xlane.xlu0 %360 }
 0x242   :  { %v363_v38 = vrot.slane %v361_v18, 1  ;;  %v366_v41 = vsub.f32 %v347_v62, %v361_v18  ;;  %v7927_v62 = vpop.permute.xlu1 %541 }
 0x243   :  { %9015 = vst [vmem:[#allocation13_spill] sm:$0xff] %v7927_v62 }
 0x244   :  { %v367_v42 = vsub.f32 %v348_v60, %v363_v38  ;;  %v368_v43 = vmul.f32 1.442695, %v366_v41  ;;  %v7925_v60 = vld [vmem:[%s8941_s3 + $0x20] sm:$0xff] }
 0x245   :  { %9014 = vst [vmem:[#allocation12_spill] sm:$0xff] %v7925_v60 }
 0x246   :  { %v370_v44 = vmul.f32 1.442695, %v367_v42  ;;  %v540_v7 = vpop.permute.xlu1 %539 }
 0x248   :  { %7455 = vpow2.f32 %v370_v44 }
 0x249   :  { %7457 = vpow2.f32 %v368_v43 }
 0x24a   :  { %v622_v18 = vpop.permute.xlu1 %621 }
 0x255   :  { %v7456_v46 = vpop.eup %7455 }
 0x256   :  { %v374_v48 = vrot.slane %v7456_v46, 7  ;;  %v7458_v49 = vpop.eup %7457 }
 0x258   :  { %v375_v50 = vsel %vm355_vm2, %v374_v48, %v7458_v49 }
 0x259   :  { %v377_v51 = vsel %vm358_vm3, %v375_v50, 0.0 }
 0x25a   :  { %378 = vadd.xlane.f32.xlu0 %v377_v51 }
 0x270   :  { %623 = vrot.lane.b32.xlu0 %v7887_v53, %s7583_s4 }
 0x2e3   :  { %v379_v54 = vpop.xlane.xlu0 %378 }
 0x2e4   :  { %v381_v57 = vrot.slane %v379_v54, 1  ;;  %7459 = vrcp.f32 %v379_v54 }
 0x2e6   :  { %7461 = vrcp.f32 %v381_v57 }
 0x2e7   :  { %v7940_v16 = vpop.permute.xlu0 %623 }
 0x2e8   :  { %9016 = vst [vmem:[#allocation14_spill] sm:$0xff] %v7940_v16 }
 0x2f1   :  { %v7460_v58 = vpop.eup %7459 }
 0x2f2   :  { %v385_v59 = vmul.f32 %v7460_v58, %v7458_v49 }
 0x2f3   :  { %v7462_v61 = vpop.eup %7461 }
 0x2f4   :  { %7031 = vmatmul.mubr.msk.f32.vlgmr.msra.gmra.mxu1 %vm388_vm4, %v385_v59  ;;  %v387_v63 = vmul.f32 %v7462_v61, %v7456_v46 }
 0x2f5   :  { %7034 = vmatpush3.msra.mxu1 %v7925_v60  ;;  %7035 = vmatprep.mubr.msk.f32.mxu1 %vm7584_vm1, %v8980_v39 }
 0x2f6   :  { %7038 = vmatprep.subr.mxu1 %v8980_v39 }
 0x2f8   :  { %7036 = vmatmul.mubr.msk.f32.vlgmr.msra.gmra.mxu1 %vm388_vm4, %v387_v63 }
 0x2f9   :  { %7039 = vmatpush3.xpose.msk.msra.mxu1 %vm196_vm0, %v7927_v62  ;;  %7040 = vmatprep.mubr.msk.f32.mxu1 %vm7584_vm1, %v8980_v39 }
 0x2fa   :  { %7043 = vmatprep.subr.mxu1 %v8980_v39 }
 0x2fc   :  { %7041 = vmatmul.mubr.msk.f32.vlgmr.msra.gmra.mxu1 %vm196_vm0, %v540_v7 }
 0x2fd   :  { %7044 = vmatpush3.xpose.msk.msra.mxu1 %vm196_vm0, %v7940_v16  ;;  %7045 = vmatprep.mubr.msk.f32.mxu1 %vm7584_vm1, %v8980_v39 }
 0x2fe   :  { %7048 = vmatprep.subr.mxu1 %v8980_v39 }
 0x300   :  { %7046 = vmatmul.mubr.msk.f32.vlgmr.msra.gmra.mxu1 %vm196_vm0, %v622_v18 }
 0x301   :  { %7050 = vmatprep.mubr.msk.f32.mxu1 %vm7584_vm1, %v8980_v39 }
 0x3b4   :  { %v458_v38 = vpop.f32.mrf.mxu1 }
 0x3b6   :  { %v7032_v41 = vpop.f32.mrf.mxu1 }
 0x3b8   :  { %v531_v42 = vpop.f32.mrf.mxu1 }
 0x3b9   :  { %v2969_v43 = vrot.slane %v531_v42, 7 }
 0x3ba   :  { %v7037_v44 = vpop.f32.mrf.mxu1 }
 0x3bb   :  { %v7952_v46 = vsel %vm355_vm2, %v2969_v43, %v458_v38 }
 0x3bc   :  { %v613_v48 = vpop.f32.mrf.mxu1 }
 0x3bd   :  { %v699_v57 = vmul.f32 0.25, %v613_v48 }
 0x3be   :  { %v7042_v49 = vpop.f32.mrf.mxu1 }
 0x3c0   :  { %v695_v50 = vpop.f32.mrf.mxu1 }
 0x3c1   :  { %v700_v51 = vmul.f32 0.25, %v695_v50 }
 0x3c2   :  { %v7047_v54 = vpop.f32.mrf.mxu1 }
 0x3c3   :  { %v705_v58 = vrot.slane %v700_v51, 7 }
 0x3c5   :  { %v706_v59 = vsel %vm355_vm2, %v705_v58, %v699_v57 }
 0x3c6   :  { %v708_v61 = vsel %vm358_vm3, %v706_v59, -inf }
 0x3c7   :  { %709 = vmax.xlane.f32.xlu1 %v708_v61 }
 0x3d8   :  { %738 = vrot.lane.b32.xlu1 %v7916_v52, %s7583_s4 }
 0x3dc   :  { %893 = vrot.lane.b32.xlu1 %v7861_v40, %s7586_s19 }
 0x3e0   :  { %891 = vrot.lane.b32.xlu1 %v7891_v55, %s7586_s19 }
 0x3e4   :  { %971 = vrot.lane.b32.xlu1 %v7887_v53, %s7586_s19 }
 0x3e8   :  { %969 = vrot.lane.b32.xlu1 %v7902_v56, %s7586_s19 }
 0x450   :  { %v710_v63 = vpop.xlane.xlu1 %709 }
 0x451   :  { %v712_v7 = vrot.slane %v710_v63, 1  ;;  %v715_v18 = vsub.f32 %v699_v57, %v710_v63 }
 0x453   :  { %v716_v38 = vsub.f32 %v700_v51, %v712_v7  ;;  %v717_v42 = vmul.f32 1.442695, %v715_v18 }
 0x454   :  { %v7966_v41 = vpop.permute.xlu1 %738 }
 0x455   :  { %9017 = vst [vmem:[#allocation15_spill] sm:$0xff] %v7966_v41  ;;  %v719_v43 = vmul.f32 1.442695, %v716_v38  ;;  %7049 = vmatpush3.msra.mxu1 %v7966_v41 }
 0x456   :  { %7053 = vmatprep.subr.mxu1 %v8980_v39 }
 0x457   :  { %7463 = vpow2.f32 %v719_v43 }
 0x458   :  { %7465 = vpow2.f32 %v717_v42  ;;  %v7974_v58 = vpop.permute.xlu1 %893 }
 0x459   :  { %9018 = vst [vmem:[#allocation16_spill] sm:$0xff] %v7974_v58 }
 0x45c   :  { %v892_v18 = vpop.permute.xlu1 %891 }
 0x460   :  { %v7984_v42 = vpop.permute.xlu1 %971 }
 0x461   :  { %9020 = vst [vmem:[#allocation18_spill] sm:$0xff] %v7984_v42 }
 0x464   :  { %v7464_v44 = vpop.eup %7463  ;;  %v970_v43 = vpop.permute.xlu1 %969 }
 0x465   :  { %v723_v48 = vrot.slane %v7464_v44, 7  ;;  %v7466_v49 = vpop.eup %7465 }
 0x467   :  { %v724_v50 = vsel %vm355_vm2, %v723_v48, %v7466_v49 }
 0x468   :  { %v726_v54 = vsel %vm358_vm3, %v724_v50, 0.0 }
 0x469   :  { %727 = vadd.xlane.f32.xlu0 %v726_v54 }
 0x47f   :  { %815 = vrot.lane.b32.xlu0 %v7925_v60, %s7583_s4 }
 0x4f2   :  { %v728_v51 = vpop.xlane.xlu0 %727 }
 0x4f3   :  { %v730_v57 = vrot.slane %v728_v51, 1  ;;  %7467 = vrcp.f32 %v728_v51 }
 0x4f5   :  { %7469 = vrcp.f32 %v730_v57 }
 0x4f6   :  { %v7976_v61 = vpop.permute.xlu0 %815 }
 0x4f7   :  { %9019 = vst [vmem:[#allocation17_spill] sm:$0xff] %v7976_v61 }
 0x500   :  { %v7468_v59 = vpop.eup %7467 }
 0x501   :  { %v734_v63 = vmul.f32 %v7468_v59, %v7466_v49 }
 0x502   :  { %v7470_v7 = vpop.eup %7469 }
 0x503   :  { %7051 = vmatmul.mubr.msk.f32.vlgmr.msra.gmra.mxu1 %vm388_vm4, %v734_v63  ;;  %v736_v38 = vmul.f32 %v7470_v7, %v7464_v44 }
 0x504   :  { %7054 = vmatpush3.msra.mxu1 %v7976_v61  ;;  %7055 = vmatprep.mubr.msk.f32.mxu1 %vm7584_vm1, %v8980_v39 }
 0x505   :  { %7058 = vmatprep.subr.mxu1 %v8980_v39 }
 0x507   :  { %7056 = vmatmul.mubr.msk.f32.vlgmr.msra.gmra.mxu1 %vm388_vm4, %v736_v38 }
 0x508   :  { %7059 = vmatpush3.xpose.msk.msra.mxu1 %vm196_vm0, %v7974_v58  ;;  %7060 = vmatprep.mubr.msk.f32.mxu1 %vm7584_vm1, %v8980_v39 }
 0x509   :  { %7063 = vmatprep.subr.mxu1 %v8980_v39 }
 0x50b   :  { %7061 = vmatmul.mubr.msk.f32.vlgmr.msra.gmra.mxu1 %vm196_vm0, %v892_v18 }
 0x50c   :  { %7064 = vmatpush3.xpose.msk.msra.mxu1 %vm196_vm0, %v7984_v42  ;;  %7065 = vmatprep.mubr.msk.f32.mxu1 %vm7584_vm1, %v8980_v39 }
 0x50d   :  { %7068 = vmatprep.subr.mxu1 %v8980_v39 }
 0x50f   :  { %7066 = vmatmul.mubr.msk.f32.vlgmr.msra.gmra.mxu1 %vm196_vm0, %v970_v43 }
 0x510   :  { %7070 = vmatprep.mubr.msk.f32.mxu1 %vm7584_vm1, %v8980_v39 }
 0x5c3   :  { %v810_v44 = vpop.f32.mrf.mxu1 }
 0x5c5   :  { %v7052_v48 = vpop.f32.mrf.mxu1 }
 0x5c7   :  { %v887_v49 = vpop.f32.mrf.mxu1 }
 0x5c8   :  { %v2974_v50 = vrot.slane %v887_v49, 7 }
 0x5c9   :  { %v7057_v54 = vpop.f32.mrf.mxu1 }
 0x5ca   :  { %v8001_v51 = vsel %vm355_vm2, %v2974_v50, %v810_v44 }
 0x5cb   :  { %v965_v57 = vpop.f32.mrf.mxu1 }
 0x5cc   :  { %v1047_v38 = vmul.f32 0.25, %v965_v57 }
 0x5cd   :  { %v7062_v59 = vpop.f32.mrf.mxu1 }
 0x5cf   :  { %v1043_v63 = vpop.f32.mrf.mxu1 }
 0x5d0   :  { %v1048_v7 = vmul.f32 0.25, %v1043_v63 }
 0x5d1   :  { %v7067_v18 = vpop.f32.mrf.mxu1 }
 0x5d2   :  { %v1053_v0 = vrot.slane %v1048_v7, 7 }
 0x5d4   :  { %v1054_v43 = vsel %vm355_vm2, %v1053_v0, %v1047_v38 }
 0x5d5   :  { %v1056_v42 = vsel %vm358_vm3, %v1054_v43, -inf }
 0x5d6   :  { %1057 = vmax.xlane.f32.xlu1 %v1056_v42 }
 0x5e7   :  { %1161 = vrot.lane.b32.xlu1 %v7925_v60, %s7586_s19 }
 0x5eb   :  { %1239 = vrot.lane.b32.xlu1 %v7861_v40, %s7587_s20 }
 0x5ef   :  { %1317 = vrot.lane.b32.xlu1 %v7887_v53, %s7587_s20 }
 0x65f   :  { %v1058_v44 = vpop.xlane.xlu1 %1057 }
 0x660   :  { %v1060_v48 = vrot.slane %v1058_v44, 1  ;;  %v1063_v49 = vsub.f32 %v1047_v38, %v1058_v44 }
 0x662   :  { %v1064_v50 = vsub.f32 %v1048_v7, %v1060_v48  ;;  %v1065_v54 = vmul.f32 1.442695, %v1063_v49 }
 0x663   :  { %v8023_v44 = vpop.permute.xlu1 %1161 }
 0x664   :  { %v1067_v57 = vmul.f32 1.442695, %v1064_v50  ;;  %9022 = vst [vmem:[#allocation20_spill] sm:$0xff] %v8023_v44 }
 0x666   :  { %7471 = vpow2.f32 %v1067_v57 }
 0x667   :  { %7473 = vpow2.f32 %v1065_v54  ;;  %v8026_v54 = vpop.permute.xlu1 %1239 }
 0x668   :  { %9023 = vst [vmem:[#allocation21_spill] sm:$0xff] %v8026_v54 }
 0x673   :  { %v7472_v0 = vpop.eup %7471 }
 0x674   :  { %v1071_v42 = vrot.slane %v7472_v0, 7  ;;  %v7474_v59 = vpop.eup %7473 }
 0x676   :  { %v1072_v63 = vsel %vm355_vm2, %v1071_v42, %v7474_v59 }
 0x677   :  { %v1074_v18 = vsel %vm358_vm3, %v1072_v63, 0.0 }
 0x678   :  { %1075 = vadd.xlane.f32.xlu0 %v1074_v18 }
 0x68e   :  { %1085 = vrot.lane.b32.xlu0 %v7916_v52, %s7586_s19 }
 0x692   :  { %1237 = vrot.lane.b32.xlu0 %v7891_v55, %s7587_s20 }
 0x696   :  { %1315 = vrot.lane.b32.xlu0 %v7902_v56, %s7587_s20 }
 0x701   :  { %v1076_v7 = vpop.xlane.xlu0 %1075 }
 0x702   :  { %v1078_v38 = vrot.slane %v1076_v7, 1  ;;  %7475 = vrcp.f32 %v1076_v7 }
 0x704   :  { %7477 = vrcp.f32 %v1078_v38 }
 0x705   :  { %v8019_v43 = vpop.permute.xlu0 %1085 }
 0x706   :  { %9021 = vst [vmem:[#allocation19_spill] sm:$0xff] %v8019_v43  ;;  %7069 = vmatpush3.msra.mxu1 %v8019_v43 }
 0x707   :  { %7073 = vmatprep.subr.mxu1 %v8980_v39 }
 0x709   :  { %v1238_v42 = vpop.permute.xlu0 %1237 }
 0x70f   :  { %v7476_v48 = vpop.eup %7475 }
 0x710   :  { %v1082_v49 = vmul.f32 %v7476_v48, %v7474_v59  ;;  %v8038_v59 = vpop.permute.xlu1 %1317 }
 0x711   :  { %v7478_v50 = vpop.eup %7477  ;;  %9024 = vst [vmem:[#allocation22_spill] sm:$0xff] %v8038_v59 }
 0x712   :  { %7071 = vmatmul.mubr.msk.f32.vlgmr.msra.gmra.mxu1 %vm388_vm4, %v1082_v49  ;;  %v1084_v57 = vmul.f32 %v7478_v50, %v7472_v0  ;;  %v1316_v0 = vpop.permute.xlu0 %1315 }
 0x713   :  { %7074 = vmatpush3.msra.mxu1 %v8023_v44  ;;  %7075 = vmatprep.mubr.msk.f32.mxu1 %vm7584_vm1, %v8980_v39 }
 0x714   :  { %7078 = vmatprep.subr.mxu1 %v8980_v39 }
 0x716   :  { %7076 = vmatmul.mubr.msk.f32.vlgmr.msra.gmra.mxu1 %vm388_vm4, %v1084_v57 }
 0x717   :  { %7079 = vmatpush3.xpose.msk.msra.mxu1 %vm196_vm0, %v8026_v54  ;;  %7080 = vmatprep.mubr.msk.f32.mxu1 %vm7584_vm1, %v8980_v39 }
 0x718   :  { %7083 = vmatprep.subr.mxu1 %v8980_v39 }
 0x71a   :  { %7081 = vmatmul.mubr.msk.f32.vlgmr.msra.gmra.mxu1 %vm196_vm0, %v1238_v42 }
 0x71b   :  { %7084 = vmatpush3.xpose.msk.msra.mxu1 %vm196_vm0, %v8038_v59  ;;  %7085 = vmatprep.mubr.msk.f32.mxu1 %vm7584_vm1, %v8980_v39 }
 0x71c   :  { %7093 = vmatprep.subr.mxu1 %v8980_v39 }
 0x71e   :  { %7086 = vmatmul.mubr.msk.f32.vlgmr.msra.gmra.mxu1 %vm196_vm0, %v1316_v0 }
 0x71f   :  { %7095 = vmatprep.mubr.msk.f32.mxu1 %vm7584_vm1, %v8980_v39 }
 0x7d2   :  { %v1157_v63 = vpop.f32.mrf.mxu1 }
 0x7d4   :  { %v7072_v18 = vpop.f32.mrf.mxu1 }
 0x7d6   :  { %v1233_v7 = vpop.f32.mrf.mxu1 }
 0x7d7   :  { %v2981_v38 = vrot.slane %v1233_v7, 7 }
 0x7d8   :  { %v7077_v48 = vpop.f32.mrf.mxu1 }
 0x7d9   :  { %v8050_v49 = vsel %vm355_vm2, %v2981_v38, %v1157_v63 }
 0x7da   :  { %v1311_v50 = vpop.f32.mrf.mxu1 }
 0x7db   :  { %v1393_v44 = vmul.f32 0.25, %v1311_v50 }
 0x7dc   :  { %v7082_v57 = vpop.f32.mrf.mxu1 }
 0x7de   :  { %v1389_v42 = vpop.f32.mrf.mxu1 }
 0x7df   :  { %v1394_v59 = vmul.f32 0.25, %v1389_v42 }
 0x7e0   :  { %v7087_v54 = vpop.f32.mrf.mxu1 }
 0x7e1   :  { %v1399_v43 = vrot.slane %v1394_v59, 7 }
 0x7e3   :  { %v1400_v0 = vsel %vm355_vm2, %v1399_v43, %v1393_v44 }
 0x7e4   :  { %v1402_v58 = vsel %vm358_vm3, %v1400_v0, -inf }
 0x7e5   :  { %1403 = vmax.xlane.f32.xlu1 %v1402_v58 }
 0x7f6   :  { %1431 = vrot.lane.b32.xlu1 %v7916_v52, %s7587_s20 }
 0x7fa   :  { %1663 = vrot.lane.b32.xlu1 %v7887_v53, %s7588_s6 }
 0x7fe   :  { %1661 = vrot.lane.b32.xlu1 %v7902_v56, %s7588_s6 }
 0x86e   :  { %v1404_v63 = vpop.xlane.xlu1 %1403 }
 0x86f   :  { %v1406_v18 = vrot.slane %v1404_v63, 1  ;;  %v1409_v54 = vsub.f32 %v1393_v44, %v1404_v63 }
 0x871   :  { %v1410_v7 = vsub.f32 %v1394_v59, %v1406_v18  ;;  %v1411_v43 = vmul.f32 1.442695, %v1409_v54 }
 0x872   :  { %v8060_v38 = vpop.permute.xlu1 %1431 }
 0x873   :  { %v1413_v48 = vmul.f32 1.442695, %v1410_v7  ;;  %7089 = vmatpush3.msra.mxu0 %v8060_v38 }
 0x874   :  { %7098 = vmatprep.subr.mxu0 %v8980_v39 }
 0x875   :  { %7479 = vpow2.f32 %v1413_v48 }
 0x876   :  { %7481 = vpow2.f32 %v1411_v43  ;;  %v8078_v48 = vpop.permute.xlu1 %1663 }
 0x877   :  { %9027 = vst [vmem:[#allocation25_spill] sm:$0xff] %v8078_v48 }
 0x882   :  { %v7480_v58 = vpop.eup %7479 }
 0x883   :  { %v1417_v50 = vrot.slane %v7480_v58, 7  ;;  %v7482_v57 = vpop.eup %7481 }
 0x885   :  { %v1418_v42 = vsel %vm355_vm2, %v1417_v50, %v7482_v57 }
 0x886   :  { %v1420_v0 = vsel %vm358_vm3, %v1418_v42, 0.0 }
 0x887   :  { %1421 = vadd.xlane.f32.xlu0 %v1420_v0 }
 0x89d   :  { %1507 = vrot.lane.b32.xlu0 %v7925_v60, %s7587_s20 }
 0x8a1   :  { %1585 = vrot.lane.b32.xlu0 %v7861_v40, %s7588_s6 }
 0x8a5   :  { %1583 = vrot.lane.b32.xlu0 %v7891_v55, %s7588_s6 }
 0x910   :  { %v1422_v44 = vpop.xlane.xlu0 %1421 }
 0x911   :  { %v1424_v59 = vrot.slane %v1422_v44, 1  ;;  %7483 = vrcp.f32 %v1422_v44 }
 0x913   :  { %7485 = vrcp.f32 %v1424_v59 }
 0x914   :  { %v8072_v63 = vpop.permute.xlu0 %1507 }
 0x915   :  { %9025 = vst [vmem:[#allocation23_spill] sm:$0xff] %v8072_v63  ;;  %7094 = vmatpush3.msra.mxu1 %v8072_v63 }
 0x916   :  { %7103 = vmatprep.subr.mxu1 %v8980_v39 }
 0x918   :  { %v8076_v54 = vpop.permute.xlu0 %1585 }
 0x919   :  { %9026 = vst [vmem:[#allocation24_spill] sm:$0xff] %v8076_v54 }
 0x91c   :  { %v1584_v42 = vpop.permute.xlu0 %1583 }
 0x91e   :  { %v7484_v18 = vpop.eup %7483 }
 0x91f   :  { %v1428_v7 = vmul.f32 %v7484_v18, %v7482_v57 }
 0x920   :  { %v7486_v43 = vpop.eup %7485 }
 0x921   :  { %7091 = vmatmul.mubr.msk.f32.vlgmr.msra.gmra.mxu0 %vm388_vm4, %v1428_v7  ;;  %v1430_v50 = vmul.f32 %v7486_v43, %v7480_v58  ;;  %v1662_v58 = vpop.permute.xlu1 %1661 }
 0x922   :  { %7099 = vmatpush3.xpose.msk.msra.mxu0 %vm196_vm0, %v8076_v54  ;;  %7100 = vmatprep.mubr.msk.f32.mxu0 %vm7584_vm1, %v8980_v39 }
 0x923   :  { %7096 = vmatmul.mubr.msk.f32.vlgmr.msra.gmra.mxu1 %vm388_vm4, %v1430_v50  ;;  %7108 = vmatprep.subr.mxu0 %v8980_v39 }
 0x924   :  { %7104 = vmatpush3.xpose.msk.msra.mxu1 %vm196_vm0, %v8078_v48  ;;  %7105 = vmatprep.mubr.msk.f32.mxu1 %vm7584_vm1, %v8980_v39 }
 0x925   :  { %7101 = vmatmul.mubr.msk.f32.vlgmr.msra.gmra.mxu0 %vm196_vm0, %v1584_v42  ;;  %7113 = vmatprep.subr.mxu1 %v8980_v39 }
 0x926   :  { %7110 = vmatprep.mubr.msk.f32.mxu0 %vm7584_vm1, %v8980_v39 }
 0x927   :  { %7106 = vmatmul.mubr.msk.f32.vlgmr.msra.gmra.mxu1 %vm196_vm0, %v1662_v58 }
 0x928   :  { %7115 = vmatprep.mubr.msk.f32.mxu1 %vm7584_vm1, %v8980_v39 }
 0x9e1   :  { %v1503_v57 = vpop.f32.mrf.mxu0 }
 0x9e3   :  { %v7092_v0 = vpop.f32.mrf.mxu0  ;;  %v1579_v44 = vpop.f32.mrf.mxu1 }
 0x9e4   :  { %v2988_v59 = vrot.slane %v1579_v44, 7 }
 0x9e5   :  { %v7097_v18 = vpop.f32.mrf.mxu1  ;;  %v1657_v7 = vpop.f32.mrf.mxu0 }
 0x9e6   :  { %v8099_v43 = vsel %vm355_vm2, %v2988_v59, %v1503_v57  ;;  %v1739_v63 = vmul.f32 0.25, %v1657_v7 }
 0x9e7   :  { %v7102_v50 = vpop.f32.mrf.mxu0  ;;  %v1735_v42 = vpop.f32.mrf.mxu1 }
 0x9e8   :  { %v1740_v48 = vmul.f32 0.25, %v1735_v42 }
 0x9e9   :  { %v7107_v54 = vpop.f32.mrf.mxu1 }
 0x9ea   :  { %v1745_v61 = vrot.slane %v1740_v48, 7 }
 0x9ec   :  { %v1746_v58 = vsel %vm355_vm2, %v1745_v61, %v1739_v63 }
 0x9ed   :  { %v1748_v41 = vsel %vm358_vm3, %v1746_v58, -inf }
 0x9ee   :  { %1749 = vmax.xlane.f32.xlu1 %v1748_v41 }
 0x9ff   :  { %1777 = vrot.lane.b32.xlu1 %v7916_v52, %s7588_s6 }
 0xa03   :  { %2009 = vrot.lane.b32.xlu1 %v7887_v53, %s7589_s21 }
 0xa07   :  { %2007 = vrot.lane.b32.xlu1 %v7902_v56, %s7589_s21 }
 0xa77   :  { %v1750_v57 = vpop.xlane.xlu1 %1749 }
 0xa78   :  { %v1752_v0 = vrot.slane %v1750_v57, 1  ;;  %v1755_v54 = vsub.f32 %v1739_v63, %v1750_v57 }
 0xa7a   :  { %v1756_v44 = vsub.f32 %v1740_v48, %v1752_v0  ;;  %v1757_v61 = vmul.f32 1.442695, %v1755_v54 }
 0xa7b   :  { %v8109_v59 = vpop.permute.xlu1 %1777 }
 0xa7c   :  { %9028 = vst [vmem:[#allocation26_spill] sm:$0xff] %v8109_v59  ;;  %v1759_v18 = vmul.f32 1.442695, %v1756_v44  ;;  %7109 = vmatpush3.msra.mxu0 %v8109_v59 }
 0xa7d   :  { %7118 = vmatprep.subr.mxu0 %v8980_v39 }
 0xa7e   :  { %7487 = vpow2.f32 %v1759_v18 }
 0xa7f   :  { %7489 = vpow2.f32 %v1757_v61  ;;  %v8127_v18 = vpop.permute.xlu1 %2009 }
 0xa80   :  { %9031 = vst [vmem:[#allocation29_spill] sm:$0xff] %v8127_v18 }
 0xa8b   :  { %v7488_v41 = vpop.eup %7487 }
 0xa8c   :  { %v1763_v7 = vrot.slane %v7488_v41, 7  ;;  %v7490_v50 = vpop.eup %7489 }
 0xa8e   :  { %v1764_v42 = vsel %vm355_vm2, %v1763_v7, %v7490_v50 }
 0xa8f   :  { %v1766_v58 = vsel %vm358_vm3, %v1764_v42, 0.0 }
 0xa90   :  { %1767 = vadd.xlane.f32.xlu0 %v1766_v58 }
 0xaa6   :  { %1853 = vrot.lane.b32.xlu0 %v7925_v60, %s7588_s6 }
 0xaaa   :  { %1931 = vrot.lane.b32.xlu0 %v7861_v40, %s7589_s21 }
 0xaae   :  { %1929 = vrot.lane.b32.xlu0 %v7891_v55, %s7589_s21 }
 0xb19   :  { %v1768_v63 = vpop.xlane.xlu0 %1767 }
 0xb1a   :  { %v1770_v48 = vrot.slane %v1768_v63, 1  ;;  %7491 = vrcp.f32 %v1768_v63 }
 0xb1c   :  { %7493 = vrcp.f32 %v1770_v48 }
 0xb1d   :  { %v8121_v57 = vpop.permute.xlu0 %1853 }
 0xb1e   :  { %9029 = vst [vmem:[#allocation27_spill] sm:$0xff] %v8121_v57  ;;  %7114 = vmatpush3.msra.mxu1 %v8121_v57 }
 0xb1f   :  { %7123 = vmatprep.subr.mxu1 %v8980_v39 }
 0xb21   :  { %v8125_v54 = vpop.permute.xlu0 %1931 }
 0xb22   :  { %9030 = vst [vmem:[#allocation28_spill] sm:$0xff] %v8125_v54 }
 0xb25   :  { %v1930_v42 = vpop.permute.xlu0 %1929 }
 0xb27   :  { %v7492_v0 = vpop.eup %7491 }
 0xb28   :  { %v1774_v44 = vmul.f32 %v7492_v0, %v7490_v50 }
 0xb29   :  { %v7494_v61 = vpop.eup %7493 }
 0xb2a   :  { %7111 = vmatmul.mubr.msk.f32.vlgmr.msra.gmra.mxu0 %vm388_vm4, %v1774_v44  ;;  %v1776_v7 = vmul.f32 %v7494_v61, %v7488_v41  ;;  %v2008_v41 = vpop.permute.xlu1 %2007 }
 0xb2b   :  { %7119 = vmatpush3.xpose.msk.msra.mxu0 %vm196_vm0, %v8125_v54  ;;  %7120 = vmatprep.mubr.msk.f32.mxu0 %vm7584_vm1, %v8980_v39 }
 0xb2c   :  { %7116 = vmatmul.mubr.msk.f32.vlgmr.msra.gmra.mxu1 %vm388_vm4, %v1776_v7  ;;  %7128 = vmatprep.subr.mxu0 %v8980_v39 }
 0xb2d   :  { %7124 = vmatpush3.xpose.msk.msra.mxu1 %vm196_vm0, %v8127_v18  ;;  %7125 = vmatprep.mubr.msk.f32.mxu1 %vm7584_vm1, %v8980_v39 }
 0xb2e   :  { %7121 = vmatmul.mubr.msk.f32.vlgmr.msra.gmra.mxu0 %vm196_vm0, %v1930_v42  ;;  %7133 = vmatprep.subr.mxu1 %v8980_v39 }
 0xb2f   :  { %7130 = vmatprep.mubr.msk.f32.mxu0 %vm7584_vm1, %v8980_v39 }
 0xb30   :  { %7126 = vmatmul.mubr.msk.f32.vlgmr.msra.gmra.mxu1 %vm196_vm0, %v2008_v41 }
 0xb31   :  { %7135 = vmatprep.mubr.msk.f32.mxu1 %vm7584_vm1, %v8980_v39 }
 0xbea   :  { %v1849_v50 = vpop.f32.mrf.mxu0 }
 0xbec   :  { %v7112_v58 = vpop.f32.mrf.mxu0  ;;  %v1925_v63 = vpop.f32.mrf.mxu1 }
 0xbed   :  { %v2995_v48 = vrot.slane %v1925_v63, 7 }
 0xbee   :  { %v7117_v0 = vpop.f32.mrf.mxu1  ;;  %v2003_v44 = vpop.f32.mrf.mxu0 }
 0xbef   :  { %v8148_v61 = vsel %vm355_vm2, %v2995_v48, %v1849_v50  ;;  %v2085_v57 = vmul.f32 0.25, %v2003_v44 }
 0xbf0   :  { %v7122_v7 = vpop.f32.mrf.mxu0  ;;  %v2081_v42 = vpop.f32.mrf.mxu1 }
 0xbf1   :  { %v2086_v18 = vmul.f32 0.25, %v2081_v42 }
 0xbf2   :  { %v7127_v54 = vpop.f32.mrf.mxu1 }
 0xbf3   :  { %v2091_v59 = vrot.slane %v2086_v18, 7 }
 0xbf5   :  { %v2092_v41 = vsel %vm355_vm2, %v2091_v59, %v2085_v57 }
 0xbf6   :  { %v2094_v16 = vsel %vm358_vm3, %v2092_v41, -inf }
 0xbf7   :  { %2095 = vmax.xlane.f32.xlu1 %v2094_v16 }
 0xc08   :  { %2123 = vrot.lane.b32.xlu1 %v7916_v52, %s7589_s21 }
 0xc0c   :  { %2355 = vrot.lane.b32.xlu1 %v7887_v53, %s7590_s22 }
 0xc10   :  { %2353 = vrot.lane.b32.xlu1 %v7902_v56, %s7590_s22 }
 0xc80   :  { %v2096_v50 = vpop.xlane.xlu1 %2095 }
 0xc81   :  { %v2098_v58 = vrot.slane %v2096_v50, 1  ;;  %v2101_v54 = vsub.f32 %v2085_v57, %v2096_v50 }
 0xc83   :  { %v2102_v63 = vsub.f32 %v2086_v18, %v2098_v58  ;;  %v2103_v59 = vmul.f32 1.442695, %v2101_v54 }
 0xc84   :  { %v8158_v48 = vpop.permute.xlu1 %2123 }
 0xc85   :  { %9032 = vst [vmem:[#allocation30_spill] sm:$0xff] %v8158_v48  ;;  %v2105_v0 = vmul.f32 1.442695, %v2102_v63  ;;  %7129 = vmatpush3.msra.mxu0 %v8158_v48 }
 0xc86   :  { %7138 = vmatprep.subr.mxu0 %v8980_v39 }
 0xc87   :  { %7495 = vpow2.f32 %v2105_v0 }
 0xc88   :  { %7497 = vpow2.f32 %v2103_v59  ;;  %v8176_v0 = vpop.permute.xlu1 %2355 }
 0xc89   :  { %9035 = vst [vmem:[#allocation33_spill] sm:$0xff] %v8176_v0 }
 0xc94   :  { %v7496_v16 = vpop.eup %7495 }
 0xc95   :  { %v2109_v44 = vrot.slane %v7496_v16, 7  ;;  %v7498_v7 = vpop.eup %7497 }
 0xc97   :  { %v2110_v42 = vsel %vm355_vm2, %v2109_v44, %v7498_v7 }
 0xc98   :  { %v2112_v41 = vsel %vm358_vm3, %v2110_v42, 0.0 }
 0xc99   :  { %2113 = vadd.xlane.f32.xlu0 %v2112_v41 }
 0xcaf   :  { %2199 = vrot.lane.b32.xlu0 %v7925_v60, %s7589_s21 }
 0xcb3   :  { %2277 = vrot.lane.b32.xlu0 %v7861_v40, %s7590_s22 }
 0xcb7   :  { %2275 = vrot.lane.b32.xlu0 %v7891_v55, %s7590_s22 }
 0xd22   :  { %v2114_v57 = vpop.xlane.xlu0 %2113 }
 0xd23   :  { %v2116_v18 = vrot.slane %v2114_v57, 1  ;;  %7499 = vrcp.f32 %v2114_v57 }
 0xd25   :  { %7501 = vrcp.f32 %v2116_v18 }
 0xd26   :  { %v8170_v50 = vpop.permute.xlu0 %2199 }
 0xd27   :  { %9033 = vst [vmem:[#allocation31_spill] sm:$0xff] %v8170_v50  ;;  %7134 = vmatpush3.msra.mxu1 %v8170_v50 }
 0xd28   :  { %7143 = vmatprep.subr.mxu1 %v8980_v39 }
 0xd2a   :  { %v8174_v54 = vpop.permute.xlu0 %2277 }
 0xd2b   :  { %9034 = vst [vmem:[#allocation32_spill] sm:$0xff] %v8174_v54 }
 0xd2e   :  { %v2276_v42 = vpop.permute.xlu0 %2275 }
 0xd30   :  { %v7500_v58 = vpop.eup %7499 }
 0xd31   :  { %v2120_v63 = vmul.f32 %v7500_v58, %v7498_v7 }
 0xd32   :  { %v7502_v59 = vpop.eup %7501 }
 0xd33   :  { %7131 = vmatmul.mubr.msk.f32.vlgmr.msra.gmra.mxu0 %vm388_vm4, %v2120_v63  ;;  %v2122_v44 = vmul.f32 %v7502_v59, %v7496_v16  ;;  %v2354_v16 = vpop.permute.xlu1 %2353 }
 0xd34   :  { %7139 = vmatpush3.xpose.msk.msra.mxu0 %vm196_vm0, %v8174_v54  ;;  %7140 = vmatprep.mubr.msk.f32.mxu0 %vm7584_vm1, %v8980_v39 }
 0xd35   :  { %7136 = vmatmul.mubr.msk.f32.vlgmr.msra.gmra.mxu1 %vm388_vm4, %v2122_v44  ;;  %7148 = vmatprep.subr.mxu0 %v8980_v39 }
 0xd36   :  { %7144 = vmatpush3.xpose.msk.msra.mxu1 %vm196_vm0, %v8176_v0  ;;  %7145 = vmatprep.mubr.msk.f32.mxu1 %vm7584_vm1, %v8980_v39 }
 0xd37   :  { %7141 = vmatmul.mubr.msk.f32.vlgmr.msra.gmra.mxu0 %vm196_vm0, %v2276_v42  ;;  %7153 = vmatprep.subr.mxu1 %v8980_v39 }
 0xd38   :  { %7150 = vmatprep.mubr.msk.f32.mxu0 %vm7584_vm1, %v8980_v39 }
 0xd39   :  { %7146 = vmatmul.mubr.msk.f32.vlgmr.msra.gmra.mxu1 %vm196_vm0, %v2354_v16 }
 0xd3a   :  { %7155 = vmatprep.mubr.msk.f32.mxu1 %vm7584_vm1, %v8980_v39 }
 0xdf3   :  { %v2195_v7 = vpop.f32.mrf.mxu0 }
 0xdf5   :  { %v7132_v41 = vpop.f32.mrf.mxu0  ;;  %v2271_v57 = vpop.f32.mrf.mxu1 }
 0xdf6   :  { %v3002_v18 = vrot.slane %v2271_v57, 7 }
 0xdf7   :  { %v7137_v58 = vpop.f32.mrf.mxu1  ;;  %v2349_v63 = vpop.f32.mrf.mxu0 }
 0xdf8   :  { %v8197_v59 = vsel %vm355_vm2, %v3002_v18, %v2195_v7  ;;  %v2431_v50 = vmul.f32 0.25, %v2349_v63 }
 0xdf9   :  { %v7142_v44 = vpop.f32.mrf.mxu0  ;;  %v2427_v42 = vpop.f32.mrf.mxu1 }
 0xdfa   :  { %v2432_v0 = vmul.f32 0.25, %v2427_v42 }
 0xdfb   :  { %v7147_v54 = vpop.f32.mrf.mxu1 }
 0xdfc   :  { %v2437_v48 = vrot.slane %v2432_v0, 7 }
 0xdfe   :  { %v2438_v16 = vsel %vm355_vm2, %v2437_v48, %v2431_v50 }
 0xdff   :  { %v2440_v62 = vsel %vm358_vm3, %v2438_v16, -inf }
 0xe00   :  { %2441 = vmax.xlane.f32.xlu1 %v2440_v62 }
 0xe11   :  { %2469 = vrot.lane.b32.xlu1 %v7916_v52, %s7590_s22 }
 0xe15   :  { %2701 = vrot.lane.b32.xlu1 %v7887_v53, %s7591_s23 }
 0xe19   :  { %2699 = vrot.lane.b32.xlu1 %v7902_v56, %s7591_s23 }
 0xe89   :  { %v2442_v7 = vpop.xlane.xlu1 %2441 }
 0xe8a   :  { %v2444_v41 = vrot.slane %v2442_v7, 1  ;;  %v2447_v54 = vsub.f32 %v2431_v50, %v2442_v7 }
 0xe8c   :  { %v2448_v57 = vsub.f32 %v2432_v0, %v2444_v41  ;;  %v2449_v48 = vmul.f32 1.442695, %v2447_v54 }
 0xe8d   :  { %v8207_v18 = vpop.permute.xlu1 %2469 }
 0xe8e   :  { %9036 = vst [vmem:[#allocation34_spill] sm:$0xff] %v8207_v18  ;;  %v2451_v58 = vmul.f32 1.442695, %v2448_v57  ;;  %7149 = vmatpush3.msra.mxu0 %v8207_v18 }
 0xe8f   :  { %7158 = vmatprep.subr.mxu0 %v8980_v39 }
 0xe90   :  { %7503 = vpow2.f32 %v2451_v58 }
 0xe91   :  { %7505 = vpow2.f32 %v2449_v48  ;;  %v8225_v48 = vpop.permute.xlu1 %2701 }
 0xe92   :  { %9039 = vst [vmem:[#allocation37_spill] sm:$0xff] %v8225_v48 }
 0xe9d   :  { %v7504_v62 = vpop.eup %7503 }
 0xe9e   :  { %v2455_v63 = vrot.slane %v7504_v62, 7  ;;  %v7506_v44 = vpop.eup %7505 }
 0xea0   :  { %v2456_v42 = vsel %vm355_vm2, %v2455_v63, %v7506_v44 }
 0xea1   :  { %v2458_v56 = vsel %vm358_vm3, %v2456_v42, 0.0 }
 0xea2   :  { %2459 = vadd.xlane.f32.xlu0 %v2458_v56 }
 0xeb8   :  { %2545 = vrot.lane.b32.xlu0 %v7925_v60, %s7590_s22 }
 0xebc   :  { %2623 = vrot.lane.b32.xlu0 %v7861_v40, %s7591_s23 }
 0xec0   :  { %2621 = vrot.lane.b32.xlu0 %v7891_v55, %s7591_s23 }
 0xf2b   :  { %v2460_v50 = vpop.xlane.xlu0 %2459 }
 0xf2c   :  { %v2462_v0 = vrot.slane %v2460_v50, 1  ;;  %7507 = vrcp.f32 %v2460_v50 }
 0xf2e   :  { %7509 = vrcp.f32 %v2462_v0 }
 0xf2f   :  { %v8219_v16 = vpop.permute.xlu0 %2545 }
 0xf30   :  { %9037 = vst [vmem:[#allocation35_spill] sm:$0xff] %v8219_v16  ;;  %7154 = vmatpush3.msra.mxu1 %v8219_v16 }
 0xf31   :  { %7163 = vmatprep.subr.mxu1 %v8980_v39 }
 0xf33   :  { %v8223_v41 = vpop.permute.xlu0 %2623 }
 0xf34   :  { %9038 = vst [vmem:[#allocation36_spill] sm:$0xff] %v8223_v41 }
 0xf37   :  { %v2622_v58 = vpop.permute.xlu0 %2621 }
 0xf39   :  { %v7508_v7 = vpop.eup %7507 }
 0xf3a   :  { %v2466_v54 = vmul.f32 %v7508_v7, %v7506_v44 }
 0xf3b   :  { %v7510_v57 = vpop.eup %7509 }
 0xf3c   :  { %7151 = vmatmul.mubr.msk.f32.vlgmr.msra.gmra.mxu0 %vm388_vm4, %v2466_v54  ;;  %v2468_v55 = vmul.f32 %v7510_v57, %v7504_v62  ;;  %v2700_v62 = vpop.permute.xlu1 %2699 }
 0xf3d   :  { %7159 = vmatpush3.xpose.msk.msra.mxu0 %vm196_vm0, %v8223_v41  ;;  %7160 = vmatprep.mubr.msk.f32.mxu0 %vm7584_vm1, %v8980_v39 }
 0xf3e   :  { %7156 = vmatmul.mubr.msk.f32.vlgmr.msra.gmra.mxu1 %vm388_vm4, %v2468_v55  ;;  %7168 = vmatprep.subr.mxu0 %v8980_v39 }
 0xf3f   :  { %7164 = vmatpush3.xpose.msk.msra.mxu1 %vm196_vm0, %v8225_v48  ;;  %7165 = vmatprep.mubr.msk.f32.mxu1 %vm7584_vm1, %v8980_v39 }
 0xf40   :  { %7161 = vmatmul.mubr.msk.f32.vlgmr.msra.gmra.mxu0 %vm196_vm0, %v2622_v58  ;;  %7173 = vmatprep.subr.mxu1 %v8980_v39 }
 0xf41   :  { %7170 = vmatprep.mubr.msk.f32.mxu0 %vm7584_vm1, %v8980_v39 }
 0xf42   :  { %7166 = vmatmul.mubr.msk.f32.vlgmr.msra.gmra.mxu1 %vm196_vm0, %v2700_v62 }
 0xf43   :  { %7175 = vmatprep.mubr.msk.f32.mxu1 %vm7584_vm1, %v8980_v39 }
 0xffc   :  { %v2541_v63 = vpop.f32.mrf.mxu0 }
 0xffe   :  { %v7152_v44 = vpop.f32.mrf.mxu0  ;;  %v2617_v42 = vpop.f32.mrf.mxu1 }
 0xfff   :  { %v3009_v56 = vrot.slane %v2617_v42, 7 }
0x1000   :  { %v7157_v50 = vpop.f32.mrf.mxu1  ;;  %v2695_v0 = vpop.f32.mrf.mxu0 }
0x1001   :  { %v3010_v7 = vsel %vm355_vm2, %v3009_v56, %v2541_v63  ;;  %v2777_v48 = vmul.f32 0.25, %v2695_v0 }
0x1002   :  { %v7162_v54 = vpop.f32.mrf.mxu0  ;;  %v2773_v57 = vpop.f32.mrf.mxu1 }
0x1003   :  { %v2778_v55 = vmul.f32 0.25, %v2773_v57 }
0x1004   :  { %v7167_v58 = vpop.f32.mrf.mxu1 }
0x1005   :  { %v2783_v41 = vrot.slane %v2778_v55, 7 }
0x1007   :  { %v2784_v16 = vsel %vm355_vm2, %v2783_v41, %v2777_v48 }
0x1008   :  { %v2786_v62 = vsel %vm358_vm3, %v2784_v16, -inf }
0x1009   :  { %2787 = vmax.xlane.f32.xlu1 %v2786_v62 }
0x101a   :  { %2815 = vrot.lane.b32.xlu1 %v7916_v52, %s7591_s23 }
0x101e   :  { %2976 = vrot.lane.b32.xlu1 %v8001_v51, %s7591_s23 }
0x1022   :  { %2990 = vrot.lane.b32.xlu1 %v8099_v43, %s7589_s21 }
0x1026   :  { %3004 = vrot.lane.b32.xlu1 %v8197_v59, %s7587_s20 }
0x1092   :  { %v2788_v63 = vpop.xlane.xlu1 %2787 }
0x1093   :  { %v2790_v44 = vrot.slane %v2788_v63, 1  ;;  %v2793_v42 = vsub.f32 %v2777_v48, %v2788_v63 }
0x1095   :  { %v2794_v56 = vsub.f32 %v2778_v55, %v2790_v44  ;;  %v2795_v16 = vmul.f32 1.442695, %v2793_v42  ;;  %v8294_v44 = vld [vmem:[%s8943_s5 + $0x68] sm:$0xff]  ;;  %v8301_v42 = vld [vmem:[%s8943_s5 + $0x60] sm:$0xff] }
0x1096   :  { %v8256_v41 = vpop.permute.xlu1 %2815  ;;  %9044 = vst [vmem:[#allocation42_spill] sm:$0xff] %v8294_v44  ;;  %9045 = vst [vmem:[#allocation43_spill] sm:$0xff] %v8301_v42 }
0x1097   :  { %9040 = vst [vmem:[#allocation38_spill] sm:$0xff] %v8256_v41  ;;  %v2797_v50 = vmul.f32 1.442695, %v2794_v56  ;;  %7169 = vmatpush3.msra.mxu0 %v8256_v41  ;;  %v8308_v56 = vld [vmem:[%s8943_s5 + $0x58] sm:$0xff] }
0x1098   :  { %7178 = vmatprep.subr.mxu0 %v8980_v39  ;;  %9046 = vst [vmem:[#allocation44_spill] sm:$0xff] %v8308_v56 }
0x1099   :  { %7511 = vpow2.f32 %v2797_v50  ;;  %v8322_v50 = vld [vmem:[%s8943_s5 + $0x48] sm:$0xff] }
0x109a   :  { %7513 = vpow2.f32 %v2795_v16  ;;  %v8315_v16 = vld [vmem:[%s8943_s5 + $0x50] sm:$0xff]  ;;  %9048 = vst [vmem:[#allocation46_spill] sm:$0xff] %v8322_v50 }
0x109b   :  { %9047 = vst [vmem:[#allocation45_spill] sm:$0xff] %v8315_v16 }
0x10a6   :  { %v7512_v51 = vpop.eup %7511 }
0x10a7   :  { %v2801_v0 = vrot.slane %v7512_v51, 7  ;;  %v7514_v43 = vpop.eup %7513 }
0x10a9   :  { %v2802_v54 = vsel %vm355_vm2, %v2801_v0, %v7514_v43  ;;  %v8336_v0 = vld [vmem:[%s8943_s5 + $0x38] sm:$0xff] }
0x10aa   :  { %v2804_v59 = vsel %vm358_vm3, %v2802_v54, 0.0  ;;  %9050 = vst [vmem:[#allocation48_spill] sm:$0xff] %v8336_v0  ;;  %v8350_v54 = vld [vmem:[%s8943_s5 + $0x28] sm:$0xff] }
0x10ab   :  { %2805 = vadd.xlane.f32.xlu0 %v2804_v59  ;;  %9052 = vst [vmem:[#allocation50_spill] sm:$0xff] %v8350_v54  ;;  %v8357_v59 = vld [vmem:[%s8943_s5 + $0x20] sm:$0xff] }
0x10ac   :  { %9053 = vst [vmem:[#allocation51_spill] sm:$0xff] %v8357_v59 }
0x10c1   :  { %2891 = vrot.lane.b32.xlu0 %v7925_v60, %s7591_s23  ;;  %s8481_s23 = smov 0  }
0x10c5   :  { %2983 = vrot.lane.b32.xlu0 %v8050_v49, %s7590_s22 }
0x10c9   :  { %2997 = vrot.lane.b32.xlu0 %v8148_v61, %s7588_s6  ;;  %v8282_v61 = vld [vmem:[%s8943_s5 + $0x78] sm:$0xff] }
0x10ca   :  { %9042 = vst [vmem:[#allocation40_spill] sm:$0xff] %v8282_v61 }
0x10cd   :  { %3011 = vrot.lane.b32.xlu0 %v3010_v7, %s7586_s19  ;;  %v8287_v7 = vld [vmem:[%s8943_s5 + $0x70] sm:$0xff] }
0x10ce   :  { %9043 = vst [vmem:[#allocation41_spill] sm:$0xff] %v8287_v7 }
0x1134   :  { %v2806_v48 = vpop.xlane.xlu0 %2805 }
0x1135   :  { %v2808_v57 = vrot.slane %v2806_v48, 1  ;;  %7515 = vrcp.f32 %v2806_v48  ;;  %v8364_v48 = vld [vmem:[%s8943_s5 + $0x18] sm:$0xff] }
0x1136   :  { %9054 = vst [vmem:[#allocation52_spill] sm:$0xff] %v8364_v48 }
0x1137   :  { %7517 = vrcp.f32 %v2808_v57  ;;  %v8371_v57 = vld [vmem:[%s8943_s5 + $0x10] sm:$0xff] }
0x1138   :  { %v8269_v55 = vpop.permute.xlu0 %2891  ;;  %9055 = vst [vmem:[#allocation53_spill] sm:$0xff] %v8371_v57 }
0x1139   :  { %9041 = vst [vmem:[#allocation39_spill] sm:$0xff] %v8269_v55  ;;  %7174 = vmatpush3.msra.mxu1 %v8269_v55 }
0x113a   :  { %7213 = vmatprep.subr.mxu1 %v8980_v39 }
0x1142   :  { %v7516_v58 = vpop.eup %7515 }
0x1143   :  { %v2812_v62 = vmul.f32 %v7516_v58, %v7514_v43  ;;  %v8343_v43 = vld [vmem:[%s8943_s5 + $0x30] sm:$0xff]  ;;  %v8378_v58 = vld [vmem:[%s8943_s5 + $0x8] sm:$0xff] }
0x1144   :  { %v7518_v63 = vpop.eup %7517  ;;  %9051 = vst [vmem:[#allocation49_spill] sm:$0xff] %v8343_v43  ;;  %9056 = vst [vmem:[#allocation54_spill] sm:$0xff] %v8378_v58 }
0x1145   :  { %7171 = vmatmul.mubr.msk.f32.vlgmr.msra.gmra.mxu0 %vm388_vm4, %v2812_v62  ;;  %v2814_v49 = vmul.f32 %v7518_v63, %v7512_v51  ;;  %v8329_v51 = vld [vmem:[%s8943_s5 + $0x40] sm:$0xff] }
0x1146   :  { %7210 = vmatprep.mubr.msk.f32.mxu0 %vm7584_vm1, %v8980_v39  ;;  %7179 = vmatpush3.msra.mxu0 %v8282_v61  ;;  %9049 = vst [vmem:[#allocation47_spill] sm:$0xff] %v8329_v51  ;;  %v8387_v62 = vld [vmem:[%s8943_s5] sm:$0xff] }
0x1147   :  { %7176 = vmatmul.mubr.msk.f32.vlgmr.msra.gmra.mxu1 %vm388_vm4, %v2814_v49  ;;  %7180 = vmatprep.subr.mxu0 %v8980_v39  ;;  %9057 = vst [vmem:[#allocation55_spill] sm:$0xff] %v8387_v62 }
0x1148   :  { %7215 = vmatprep.mubr.msk.f32.mxu1 %vm7584_vm1, %v8980_v39  ;;  %7181 = vmatpush3.msra.mxu0 %v8287_v7 }
0x1149   :  { %7182 = vmatprep.subr.mxu0 %v8980_v39 }
0x114a   :  { %7183 = vmatpush3.msra.mxu0 %v8294_v44 }
0x114b   :  { %7184 = vmatprep.subr.mxu0 %v8980_v39 }
0x114c   :  { %7185 = vmatpush3.msra.mxu0 %v8301_v42 }
0x114d   :  { %7186 = vmatprep.subr.mxu0 %v8980_v39 }
0x114e   :  { %7187 = vmatpush3.msra.mxu0 %v8308_v56 }
0x114f   :  { %7188 = vmatprep.subr.mxu0 %v8980_v39 }
0x1150   :  { %7189 = vmatpush3.msra.mxu0 %v8315_v16 }
0x1151   :  { %7190 = vmatprep.subr.mxu0 %v8980_v39 }
0x1152   :  { %7191 = vmatpush3.msra.mxu0 %v8322_v50 }
0x1153   :  { %7192 = vmatprep.subr.mxu0 %v8980_v39 }
0x1154   :  { %7193 = vmatpush3.msra.mxu0 %v8329_v51 }
0x1155   :  { %7194 = vmatprep.subr.mxu0 %v8980_v39 }
0x1156   :  { %7195 = vmatpush3.msra.mxu0 %v8336_v0 }
0x1157   :  { %7196 = vmatprep.subr.mxu0 %v8980_v39 }
0x1158   :  { %7197 = vmatpush3.msra.mxu0 %v8343_v43  ;;  %v2977_v43 = vpop.permute.xlu1 %2976 }
0x1159   :  { %7198 = vmatprep.subr.mxu0 %v8980_v39  ;;  %v3021_v0 = vsel %vm196_vm0, %v7952_v46, %v2977_v43 }
0x115a   :  { %7199 = vmatpush3.msra.mxu0 %v8350_v54 }
0x115b   :  { %7200 = vmatprep.subr.mxu0 %v8980_v39 }
0x115c   :  { %7201 = vmatpush3.msra.mxu0 %v8357_v59 }
0x115d   :  { %7202 = vmatprep.subr.mxu0 %v8980_v39 }
0x115e   :  { %7203 = vmatpush3.msra.mxu0 %v8364_v48 }
0x115f   :  { %7204 = vmatprep.subr.mxu0 %v8980_v39 }
0x1160   :  { %7205 = vmatpush3.msra.mxu0 %v8371_v57 }
0x1161   :  { %7206 = vmatprep.subr.mxu0 %v8980_v39 }
0x1162   :  { %7207 = vmatpush3.msra.mxu0 %v8378_v58  ;;  %v2984_v58 = vpop.permute.xlu0 %2983 }
0x1163   :  { %7208 = vmatprep.subr.mxu0 %v8980_v39  ;;  %v2991_v39 = vpop.permute.xlu1 %2990  ;;  %v3023_v50 = vsel %vm3022_vm5, %v3021_v0, %v2984_v58  ;;  %v8403_v0 = vld [vmem:[%s8941_s3 + $0x10] sm:$0xff] }
0x1164   :  { %7209 = vmatpush3.msra.mxu0 %v8387_v62  ;;  %9058 = vst [vmem:[#allocation56_spill] sm:$0xff] %v8403_v0  ;;  %7214 = vmatpush3.xpose.msra.mxu1 %v8403_v0 }
0x1166   :  { %v2998_v51 = vpop.permute.xlu0 %2997 }
0x1205   :  { %v2887_v63 = vpop.f32.mrf.mxu0 }
0x1207   :  { %v7172_v49 = vpop.f32.mrf.mxu0  ;;  %v2963_v48 = vpop.f32.mrf.mxu1 }
0x1208   :  { %v3016_v59 = vrot.slane %v2963_v48, 7  ;;  %v3025_v49 = vsel %vm3024_vm6, %v3023_v50, %v2991_v39  ;;  %v3005_v48 = vpop.permute.xlu1 %3004  ;;  %v9059_v39 = vmov 0.0  }
0x1209   :  { %v7177_v54 = vpop.f32.mrf.mxu1  ;;  %7218 = vmatprep.subr.mxu1 %v9059_v39  ;;  %3423 = vst.msk [vmem:[%s8945_s9] sm:$0x3] %vm3361_vm14, %v9059_v39 }
0x120a   :  { %v3017_v57 = vsel %vm355_vm2, %v3016_v59, %v2887_v63  ;;  %v3027_v54 = vsel %vm3026_vm7, %v3025_v49, %v2998_v51  ;;  %v3012_v59 = vpop.permute.xlu0 %3011 }
0x120b   :  { %3018 = vrot.lane.b32.xlu1 %v3017_v57, %s7583_s4  ;;  %v3029_v57 = vsel %vm3028_vm8, %v3027_v54, %v3005_v48 }
0x120c   :  { %v3031_v63 = vsel %vm3030_vm9, %v3029_v57, %v3012_v59 }
0x127d   :  { %v3019_v62 = vpop.permute.xlu1 %3018 }
0x127e   :  { %v3033_v46 = vsel %vm3032_vm10, %v3031_v63, %v3019_v62  ;;  %v8412_v62 = vld [vmem:[%s8941_s3 + $0x28] sm:$0xff] }
0x127f   :  { %7211 = vmatmul.mubr.f32.vlgmr.msra.gmra.mxu0 %v3033_v46  ;;  %9060 = vst [vmem:[#allocation57_spill] sm:$0xff] %v8412_v62 }
0x133f   :  { %v3100_v50 = vpop.f32.mrf.mxu0 }
0x1340   :  { %v3111_v51 = vrot.slane %v3100_v50, %v7879_v47 }
0x1341   :  { %v7212_v43 = vpop.f32.mrf.mxu0 }
0x1342   :  { %v3112_v58 = vcombine.high %v3111_v51, %v3111_v51  ;;  %v3119_v49 = vrot.slane %v3111_v51, %v7879_v47 }
0x1344   :  { %7216 = vmatmul.mubr.f32.vlgmr.msra.gmra.mxu1 %v3119_v49  ;;  %v3126_v48 = vrot.slane %v3112_v58, %v7879_v47 }
0x1345   :  { %7219 = vmatpush3.xpose.msra.mxu1 %v8412_v62  ;;  %7220 = vmatprep.mubr.msk.f32.mxu1 %vm7584_vm1, %v9059_v39  ;;  %vm3400_vm1 = vcmask 15360  }
0x1348   :  { %7221 = vmatmul.mubr.f32.vlgmr.msra.gmra.mxu1 %v3126_v48 }
0x1404   :  { %v3195_v54 = vpop.f32.mrf.mxu1 }
0x1405   :  { %v3269_v59 = vmul.f32 0.088388346, %v3195_v54 }
0x1406   :  { %v7217_v57 = vpop.f32.mrf.mxu1 }
0x1407   :  { %7519 = vtanh.f32 %v3269_v59 }
0x1408   :  { %v3265_v63 = vpop.f32.mrf.mxu1 }
0x1409   :  { %v3270_v46 = vmul.f32 0.088388346, %v3265_v63 }
0x140a   :  { %v7222_v50 = vpop.f32.mrf.mxu1 }
0x140b   :  { %7521 = vtanh.f32 %v3270_v46 }
0x1414   :  { %v7520_v51 = vpop.eup %7519 }
0x1415   :  { %v3273_v49 = vmul.f32 10.0, %v7520_v51 }
0x1418   :  { %v7522_v43 = vpop.eup %7521 }
0x1419   :  { %v3274_v16 = vmul.f32 10.0, %v7522_v43 }
0x141b   :  { %v3279_v56 = vrot.slane %v3274_v16, 7 }
0x141d   :  { %v3280_v62 = vsel %vm355_vm2, %v3279_v56, %v3273_v49 }
0x141e   :  { %v3282_v42 = vsel %vm358_vm3, %v3280_v62, -inf }
0x141f   :  { %3283 = vmax.xlane.f32.xlu0 %v3282_v42 }
0x14a8   :  { %v3284_v58 = vpop.xlane.xlu0 %3283 }
0x14a9   :  { %v3286_v48 = vrot.slane %v3284_v58, 1  ;;  %v3289_v44 = vsub.f32 %v3273_v49, %v3284_v58 }
0x14ab   :  { %v3290_v54 = vsub.f32 %v3274_v16, %v3286_v48  ;;  %v3291_v57 = vmul.f32 1.442695, %v3289_v44 }
0x14ad   :  { %v3293_v0 = vmul.f32 1.442695, %v3290_v54 }
0x14af   :  { %7523 = vpow2.f32 %v3293_v0 }
0x14b0   :  { %7525 = vpow2.f32 %v3291_v57 }
0x14bc   :  { %v7524_v59 = vpop.eup %7523 }
0x14bd   :  { %v3297_v63 = vrot.slane %v7524_v59, 7  ;;  %v7526_v46 = vpop.eup %7525  ;;  %v9061_v59 = vlaneseq }
0x14bf   :  { %v3298_v50 = vsel %vm355_vm2, %v3297_v63, %v7526_v46  ;;  %v8425_v63 = vand.u32 127, %v9061_v59 }
0x14c0   :  { %v3300_v51 = vsel %vm358_vm3, %v3298_v50, 0.0 }
0x14c1   :  { %3301 = vadd.xlane.f32.xlu1 %v3300_v51  ;;  %9062 = vst [vmem:[#allocation58_spill] sm:$0xff] %v8425_v63 }
0x154a   :  { %v3302_v56 = vpop.xlane.xlu1 %3301 }
0x154b   :  { %7527 = vlog2.f32 %v3302_v56 }
0x1558   :  { %v7528_v62 = vpop.eup %7527 }
0x1559   :  { %v3304_v42 = vmul.f32 0.6931472, %v7528_v62 }
0x155b   :  { %v3306_v43 = vrot.slane %v3304_v42, 1  ;;  %v3309_v49 = vsub.f32 %v3289_v44, %v3304_v42 }
0x155d   :  { %v3310_v7 = vsub.f32 %v3290_v54, %v3306_v43 }
0x155f   :  { %v3313_v16 = vrot.slane %v3310_v7, 7 }
0x1561   :  { %v3314_v58 = vsel %vm355_vm2, %v3313_v16, %v3309_v49 }
0x1562   :  { %v3316_v0 = vsel %vm358_vm3, %v3314_v58, -inf }
0x1563   :  { %3317 = vmax.xlane.f32.xlu0 %v3316_v0 }
0x15ec   :  { %v3318_v48 = vpop.xlane.xlu0 %3317 }
0x15ed   :  { %v3320_v57 = vrot.slane %v3318_v48, 1  ;;  %vm3323_vm11 = vcmp.ge.f32.partialorder %v3309_v49, %v3318_v48 }
0x15ee   :  { %v3325_v51 = vsel %vm3323_vm11, %v8425_v63, 8  ;;  %vm3419_vm11 = vcmask 9216  }
0x15ef   :  { %vm3324_vm12 = vcmp.ge.f32.partialorder %v3310_v7, %v3320_v57 }
0x15f0   :  { %v3326_v46 = vsel %vm3324_vm12, %v8425_v63, 8 }
0x15f1   :  { %v3327_v50 = vrot.slane %v3326_v46, 7 }
0x15f3   :  { %v3328_v44 = vsel %vm355_vm2, %v3327_v50, %v3325_v51 }
0x15f4   :  { %v3329_v54 = vsel %vm358_vm3, %v3328_v44, 2147483647 }
0x15f5   :  { %v3331_v56 = vshra.s32 %v3329_v54, 16  ;;  %v3330_v42 = vand.u32 65535, %v3329_v54 }
0x15f7   :  { %v3333_v62 = vcvt.s32.f32 %v3331_v56  ;;  %v3332_v16 = vcvt.s32.f32 %v3330_v42 }
0x15f9   :  { %3334 = vmin.xlane.f32.xlu0 %v3333_v62 }
0x1682   :  { %v3335_v43 = vpop.xlane.xlu0 %3334 }
0x1683   :  { %vm3336_vm13 = vcmp.eq.f32.partialorder %v3333_v62, %v3335_v43  ;;  %v3341_v0 = vcvt.f32.s32 %v3335_v43 }
0x1684   :  { %v3337_v58 = vsel %vm3336_vm13, %v3332_v16, inf }
0x1685   :  { %3338 = vmin.xlane.f32.xlu1 %v3337_v58  ;;  %v3342_v57 = vshll.u32 %v3341_v0, 16  ;;  %v8450_v58 = vld [vmem:[%s8946_s1 + $0x8] sm:$0xff] }
0x1686   :  { %9063 = vst [vmem:[#allocation59_spill] sm:$0xff] %v8450_v58  ;;  %v8455_v0 = vld [vmem:[%s8947_s0 + $0x8] sm:$0xff] }
0x1687   :  { %9064 = vst [vmem:[#allocation60_spill] sm:$0xff] %v8455_v0 }
0x170e   :  { %v3339_v48 = vpop.xlane.xlu1 %3338 }
0x170f   :  { %v3340_v59 = vcvt.f32.s32 %v3339_v48 }
0x1711   :  { %v3343_v46 = vadd.s32 %v3342_v57, %v3340_v59 }
0x1713   :  { %vm3344_vm15 = vcmp.eq.s32.totalorder %v8425_v63, %v3343_v46  ;;  %3362 = vst.msk [vmem:[%s8944_s7] sm:$0x3] %vm3361_vm14, %v3343_v46 }
0x1714   :  { %v6726_v50 = vsel %vm3344_vm15, 1.0, %v9059_v39  ;;  %v8465_v39 = vld [vmem:[%s8947_s0] sm:$0xff] }
0x1715   :  { %3363 = vst.msk [vmem:[#allocation2] sm:$0x3] %vm358_vm3, %v6726_v50  ;;  %v3374_v51 = vrot.slane %v6726_v50, %v7712_v12  ;;  %v3367_v44 = vrot.slane %v6726_v50, %v7827_v33  ;;  %v3348_v54 = vrot.slane %v6726_v50, 1  ;;  %v3351_v42 = vmul.f32 %v6726_v50, %v3309_v49  ;;  %9066 = vst [vmem:[#allocation62_spill] sm:$0xff] %v8465_v39 }
0x1717   :  { %3376 = vbcast.lane.b32.xlu1 %v3374_v51, 256  ;;  %3369 = vbcast.lane.b32.xlu0 %v3367_v44, 256  ;;  %v3352_v56 = vmul.f32 %v3348_v54, %v3310_v7  ;;  %v8460_v7 = vld [vmem:[%s8946_s1] sm:$0xff] }
0x1718   :  { %9065 = vst [vmem:[#allocation61_spill] sm:$0xff] %v8460_v7 }
0x1719   :  { %v3355_v62 = vrot.slane %v3352_v56, 7 }
0x171b   :  { %v3356_v43 = vsel %vm355_vm2, %v3355_v62, %v3351_v42 }
0x171c   :  { %v3358_v16 = vsel %vm358_vm3, %v3356_v43, 0.0 }
0x173b   :  { %3359 = vadd.xlane.f32.xlu1 %v3358_v16 }
0x1789   :  { %v3377_v49 = vpop.permute.xlu1 %3376  ;;  %v3370_v48 = vpop.permute.xlu0 %3369 }
0x178a   :  { %v3379_v57 = vmul.f32 %v3377_v49, %v8450_v58  ;;  %v3399_v59 = vmul.f32 %v3377_v49, %v8455_v0  ;;  %v3378_v46 = vmul.f32 %v3370_v48, %v8460_v7  ;;  %v3398_v50 = vmul.f32 %v3370_v48, %v8465_v39 }
0x178c   :  { %v3386_v51 = vrot.slane %v3379_v57, 4  ;;  %v3380_v44 = vrot.slane %v3378_v46, 4  ;;  %v3401_v54 = vsel %vm3400_vm1, %v3398_v50, 0.0  ;;  %v3408_v56 = vsel %vm3400_vm1, %v3399_v59, 0.0 }
0x178d   :  { %v3402_v62 = vrot.slane %v3401_v54, 4  ;;  %v3409_v42 = vrot.slane %v3408_v56, 4 }
0x178e   :  { %v3387_v43 = vadd.f32 %v3386_v51, %v3379_v57  ;;  %v3381_v16 = vadd.f32 %v3380_v44, %v3378_v46 }
0x178f   :  { %v3403_v12 = vadd.f32 %v3402_v62, %v3401_v54  ;;  %v3410_v63 = vadd.f32 %v3409_v42, %v3408_v56 }
0x1790   :  { %v3388_v61 = vrot.slane %v3387_v43, 2  ;;  %v3382_v58 = vrot.slane %v3381_v16, 2 }
0x1791   :  { %v3404_v55 = vrot.slane %v3403_v12, 2  ;;  %v3411_v49 = vrot.slane %v3410_v63, 2 }
0x1792   :  { %v3389_v0 = vadd.f32 %v3388_v61, %v3387_v43  ;;  %v3383_v7 = vadd.f32 %v3382_v58, %v3381_v16 }
0x1793   :  { %v3405_v41 = vadd.f32 %v3404_v55, %v3403_v12  ;;  %v3412_v48 = vadd.f32 %v3411_v49, %v3410_v63 }
0x1794   :  { %v3390_v39 = vrot.slane %v3389_v0, 1  ;;  %v3384_v18 = vrot.slane %v3383_v7, 1 }
0x1795   :  { %v3406_v60 = vrot.slane %v3405_v41, 1  ;;  %v3413_v50 = vrot.slane %v3412_v48, 1 }
0x1796   :  { %v3391_v52 = vadd.f32 %v3390_v39, %v3389_v0  ;;  %v3385_v59 = vadd.f32 %v3384_v18, %v3383_v7 }
0x1797   :  { %v3407_v53 = vadd.f32 %v3406_v60, %v3405_v41  ;;  %v3414_v57 = vadd.f32 %v3413_v50, %v3412_v48 }
0x1798   :  { %v3394_v46 = vsel %vm355_vm2, %v3391_v52, %v3385_v59 }
0x1799   :  { %3396 = vst [vmem:[#allocation3] sm:$0x3] %v3394_v46  ;;  %3397 = vst [vmem:[#allocation4] sm:$0x3] %v3394_v46  ;;  %v3417_v51 = vsel %vm355_vm2, %v3414_v57, %v3407_v53 }
0x179a   :  { %3420 = vst.msk [vmem:[#allocation5] sm:$0x3] %vm3419_vm11, %v3417_v51  ;;  %3421 = vst.msk [vmem:[#allocation6] sm:$0x3] %vm3419_vm11, %v3417_v51 }
0x17c4   :  { %v3360_v12 = vpop.xlane.xlu1 %3359 }
0x17c5   :  { %3422 = vst.msk [vmem:[%s8948_s8] sm:$0x3] %vm3361_vm14, %v3360_v12 }
0x17c6 LB: > { %v9067_v1 = vld [vmem:[#allocation7_spill] sm:$0xff]  ;;  %v3433_v53 = vld [vmem:[#allocation4] sm:$0x3]  ;;  %v9068_v2 = vld [vmem:[#allocation8_spill] sm:$0xff]  ;;  %v7592_v60 = vmov 0.0   ;;  %vm7593_vm12 = vmmov 0   ;;  %s7580_s23 = sphi %s8481_s23, %s3429_s23  }
0x17c7   : > { %6898 = vmatprep.subr.mxu0 %v9067_v1  ;;  %3498 = vmatprep.mubr.f32.mxu0 %v3433_v53  ;;  %v3432_v52 = vld [vmem:[#allocation3] sm:$0x3]  ;;  %s7594_s24 = smov 112   ;;  %v9070_v56 = vld [vmem:[#allocation11_spill] sm:$0xff]  ;;  %v8554_v16 = vld [vmem:[#allocation2] sm:$0x3] }
0x17c8   : > { %6899 = vmatpush3.msra.mxu0 %v9068_v2  ;;  %7223 = vmatprep.subr.mxu1 %v7592_v60  ;;  %v9069_v44 = vld [vmem:[#allocation10_spill] sm:$0xff]  ;;  %vm3674_vm13 = vcmp.gt.f32.partialorder %v8554_v16, 0.5  ;;  %s7595_s25 = smov 96   ;;  %s7596_s26 = smov 80  }
0x17c9   : > { %6900 = vmatprep.subr.mxu0 %v7664_v3  ;;  %7224 = vmatpush3.xpose.msk.msra.mxu1 %vm196_vm0, %v7861_v40  ;;  %s7597_s27 = smov 64   ;;  %s7598_s28 = smov 48  }
0x17ca   : > { %6901 = vmatpush3.msra.mxu0 %v7670_v4  ;;  %7228 = vmatprep.subr.mxu1 %v7592_v60  ;;  %s7599_s29 = smov 32   ;;  %s7600_s30 = smov 16  }
0x17cb   : > { %6902 = vmatprep.subr.mxu0 %v7676_v5  ;;  %7225 = vmatprep.mubr.msk.f32.mxu1 %vm7593_vm12, %v7592_v60  ;;  %s6776_s10 = sshll.u32 %s7580_s23, 1  ;;  %s3429_s23 = sadd.s32 1, %s7580_s23  }
0x17cc   : > { %6903 = vmatpush3.msra.mxu0 %v7682_v6  ;;  %s6671_s4 = scalar_lea.vmem %s8944_s7, %s6776_s10  ;;  %p3426_p0 = scmp.ge.s32.totalorder %s3429_s23, 7  }
0x17cd   : > { %6904 = vmatprep.subr.mxu0 %v7691_v8 }
0x17ce   : > { %6905 = vmatpush3.msra.mxu0 %v7697_v9 }
0x17cf   : > { %6906 = vmatprep.subr.mxu0 %v7703_v10 }
0x17d0   : > { %6907 = vmatpush3.msra.mxu0 %v7709_v11 }
0x17d1   : > { %6908 = vmatprep.subr.mxu0 %v7718_v13 }
0x17d2   : > { %6909 = vmatpush3.msra.mxu0 %v7724_v14 }
0x17d3   : > { %6910 = vmatprep.subr.mxu0 %v7730_v15 }
0x17d4   : > { %6911 = vmatpush3.msra.mxu0 %v7739_v17 }
0x17d5   : > { %6912 = vmatprep.subr.mxu0 %v7746_v19 }
0x17d6   : > { %6913 = vmatpush3.msra.mxu0 %v7752_v20 }
0x17d7   : > { %6914 = vmatprep.subr.mxu0 %v7758_v21 }
0x17d8   : > { %6915 = vmatpush3.msra.mxu0 %v7764_v22 }
0x17d9   : > { %6916 = vmatprep.subr.mxu0 %v7770_v23 }
0x17da   : > { %6917 = vmatpush3.msra.mxu0 %v7776_v24 }
0x17db   : > { %6918 = vmatprep.subr.mxu0 %v7782_v25 }
0x17dc   : > { %6919 = vmatpush3.msra.mxu0 %v7788_v26 }
0x17dd   : > { %6920 = vmatprep.subr.mxu0 %v7794_v27 }
0x17de   : > { %6921 = vmatpush3.msra.mxu0 %v7800_v28 }
0x17df   : > { %6922 = vmatprep.subr.mxu0 %v7806_v29 }
0x17e0   : > { %6923 = vmatpush3.msra.mxu0 %v7812_v30 }
0x17e1   : > { %6924 = vmatprep.subr.mxu0 %v7818_v31 }
0x17e2   : > { %6925 = vmatpush3.msra.mxu0 %v7824_v32 }
0x17e3   : > { %6926 = vmatprep.subr.mxu0 %v7833_v34 }
0x17e4   : > { %6927 = vmatpush3.msra.mxu0 %v7839_v35 }
0x17e5   : > { %6928 = vmatprep.subr.mxu0 %v7845_v36 }
0x17e6   : > { %6929 = vmatpush3.msra.mxu0 %v7851_v37 }
0x17e7   : > { %3499 = vmatmul.mubr.f32.vlgmr.msra.gmra.mxu0 %v3432_v52  ;;  %7293 = vmatprep.subr.mxu0 %v7592_v60 }
0x17e8   : > { %7294 = vmatpush3.msra.mxu0 %v8060_v38  ;;  %7295 = vmatprep.mubr.msk.f32.mxu0 %vm7593_vm12, %v7592_v60 }
0x17e9   : > { %7303 = vmatprep.subr.mxu0 %v7592_v60 }
0x18a7   : > { %v6930_v18 = vpop.f32.mrf.mxu0 }
0x18a9   : > { %v6931_v41 = vpop.f32.mrf.mxu0 }
0x18aa   : > { %v6932_v55 = vadd.f32 %v6931_v41, %v6930_v18 }
0x18ac   : > { %v3504_v61 = vadd.f32 %v6932_v55, %v7876_v45 }
0x18ae   : > { %v3512_v63 = vrot.slane %v3504_v61, %v7879_v47 }
0x18b0   : > { %v3513_v58 = vcombine.high %v3512_v63, %v3512_v63  ;;  %v3520_v0 = vrot.slane %v3512_v63, %v7879_v47 }
0x18b2   : > { %v3527_v7 = vrot.slane %v3513_v58, %v7879_v47  ;;  %v8534_v39 = vrot.slane %v3520_v0, %v7827_v33  ;;  %7226 = vmatmul.mubr.msk.f32.vlgmr.msra.gmra.mxu1 %vm196_vm0, %v3520_v0 }
0x18b3   : > { %7229 = vmatpush3.xpose.msk.msra.mxu1 %vm196_vm0, %v9069_v44  ;;  %7230 = vmatprep.mubr.msk.f32.mxu1 %vm7593_vm12, %v7592_v60  ;;  %v9071_v44 = vld [vmem:[#allocation12_spill] sm:$0xff] }
0x18b4   : > { %3863 = vrot.lane.b32.xlu1 %v8534_v39, %s7594_s24  ;;  %7233 = vmatprep.subr.mxu1 %v7592_v60  ;;  %v8545_v54 = vrot.slane %v3527_v7, %v7827_v33 }
0x18b6   : > { %7231 = vmatmul.mubr.msk.f32.vlgmr.msra.gmra.mxu1 %vm196_vm0, %v3527_v7 }
0x18b7   : > { %7234 = vmatpush3.msra.mxu1 %v9070_v56  ;;  %7235 = vmatprep.mubr.msk.f32.mxu1 %vm7593_vm12, %v7592_v60 }
0x18b8   : > { %3941 = vrot.lane.b32.xlu1 %v8545_v54, %s7594_s24  ;;  %7238 = vmatprep.subr.mxu1 %v7592_v60 }
0x1972   : > { %v3596_v62 = vpop.f32.mrf.mxu1 }
0x1973   : > { %v3672_v50 = vmul.f32 0.25, %v3596_v62  ;;  %v3864_v62 = vpop.permute.xlu1 %3863 }
0x1974   : > { %v7227_v42 = vpop.f32.mrf.mxu1 }
0x1975   : > { %v9072_v42 = vld [vmem:[#allocation13_spill] sm:$0xff] }
0x1976   : > { %v3668_v43 = vpop.f32.mrf.mxu1 }
0x1977   : > { %v3673_v49 = vmul.f32 0.25, %v3668_v43  ;;  %v9073_v43 = vld [vmem:[#allocation14_spill] sm:$0xff] }
0x1978   : > { %v7232_v48 = vpop.f32.mrf.mxu1 }
0x1979   : > { %v3677_v59 = vrot.slane %v3673_v49, 7  ;;  %v3942_v49 = vpop.permute.xlu1 %3941  ;;  %v9074_v48 = vld [vmem:[#allocation15_spill] sm:$0xff] }
0x197b   : > { %v3678_v57 = vsel %vm355_vm2, %v3677_v59, %v3672_v50 }
0x197c   : > { %v3680_v46 = vsel %vm3674_vm13, -1e+09, %v3678_v57 }
0x197d   : > { %v3681_v51 = vsel %vm358_vm3, %v3680_v46, -inf }
0x197e   : > { %3682 = vmax.xlane.f32.xlu0 %v3681_v51 }
0x1a07   : > { %v3683_v12 = vpop.xlane.xlu0 %3682 }
0x1a08   : > { %v3684_v53 = vsub.f32 %v3680_v46, %v3683_v12 }
0x1a0a   : > { %v3685_v52 = vmul.f32 1.442695, %v3684_v53 }
0x1a0c   : > { %7529 = vpow2.f32 %v3685_v52 }
0x1a19   : > { %v7530_v18 = vpop.eup %7529 }
0x1a1a   : > { %v3687_v41 = vsel %vm358_vm3, %v7530_v18, 0.0 }
0x1a1b   : > { %3688 = vadd.xlane.f32.xlu0 %v3687_v41 }
0x1aa4   : > { %v3689_v55 = vpop.xlane.xlu0 %3688 }
0x1aa5   : > { %7531 = vrcp.f32 %v3689_v55 }
0x1ab2   : > { %v7532_v61 = vpop.eup %7531 }
0x1ab3   : > { %v3691_v63 = vmul.f32 %v7532_v61, %v7530_v18 }
0x1ab5   : > { %v3699_v58 = vrot.slane %v3691_v63, %v7879_v47 }
0x1ab7   : > { %v3707_v0 = vrot.slane %v3699_v58, %v7879_v47  ;;  %v3700_v7 = vcombine.high %v3699_v58, %v3699_v58 }
0x1ab9   : > { %7236 = vmatmul.mubr.msk.f32.vlgmr.msra.gmra.mxu1 %vm388_vm4, %v3707_v0  ;;  %v3714_v56 = vrot.slane %v3700_v7, %v7879_v47 }
0x1aba   : > { %7239 = vmatpush3.msra.mxu1 %v9071_v44  ;;  %7240 = vmatprep.mubr.msk.f32.mxu1 %vm7593_vm12, %v7592_v60 }
0x1abb   : > { %7243 = vmatprep.subr.mxu1 %v7592_v60 }
0x1abd   : > { %7241 = vmatmul.mubr.msk.f32.vlgmr.msra.gmra.mxu1 %vm388_vm4, %v3714_v56 }
0x1abe   : > { %7244 = vmatpush3.xpose.msk.msra.mxu1 %vm196_vm0, %v9072_v42  ;;  %7245 = vmatprep.mubr.msk.f32.mxu1 %vm7593_vm12, %v7592_v60 }
0x1abf   : > { %7248 = vmatprep.subr.mxu1 %v7592_v60 }
0x1ac1   : > { %7246 = vmatmul.mubr.msk.f32.vlgmr.msra.gmra.mxu1 %vm196_vm0, %v3864_v62 }
0x1ac2   : > { %7249 = vmatpush3.xpose.msk.msra.mxu1 %vm196_vm0, %v9073_v43  ;;  %7250 = vmatprep.mubr.msk.f32.mxu1 %vm7593_vm12, %v7592_v60 }
0x1ac3   : > { %7253 = vmatprep.subr.mxu1 %v7592_v60 }
0x1ac5   : > { %7251 = vmatmul.mubr.msk.f32.vlgmr.msra.gmra.mxu1 %vm196_vm0, %v3942_v49 }
0x1ac6   : > { %7254 = vmatpush3.msra.mxu1 %v9074_v48  ;;  %7255 = vmatprep.mubr.msk.f32.mxu1 %vm7593_vm12, %v7592_v60 }
0x1ac7   : > { %7258 = vmatprep.subr.mxu1 %v7592_v60 }
0x1b79   : > { %v3783_v50 = vpop.f32.mrf.mxu1 }
0x1b7b   : > { %v7237_v59 = vpop.f32.mrf.mxu1 }
0x1b7d   : > { %v3855_v57 = vpop.f32.mrf.mxu1 }
0x1b7e   : > { %v6207_v46 = vrot.slane %v3855_v57, 7 }
0x1b7f   : > { %v7242_v51 = vpop.f32.mrf.mxu1 }
0x1b80   : > { %v8588_v12 = vsel %vm355_vm2, %v6207_v46, %v3783_v50  ;;  %v9075_v51 = vld [vmem:[#allocation17_spill] sm:$0xff] }
0x1b81   : > { %v3933_v53 = vpop.f32.mrf.mxu1 }
0x1b82   : > { %v4015_v61 = vmul.f32 0.25, %v3933_v53 }
0x1b83   : > { %v7247_v52 = vpop.f32.mrf.mxu1 }
0x1b85   : > { %v4011_v18 = vpop.f32.mrf.mxu1 }
0x1b86   : > { %v4016_v41 = vmul.f32 0.25, %v4011_v18  ;;  %v9076_v18 = vld [vmem:[#allocation16_spill] sm:$0xff] }
0x1b87   : > { %v7252_v55 = vpop.f32.mrf.mxu1 }
0x1b88   : > { %v4019_v63 = vrot.slane %v4016_v41, 7  ;;  %v9077_v41 = vld [vmem:[#allocation18_spill] sm:$0xff] }
0x1b8a   : > { %v4020_v58 = vsel %vm355_vm2, %v4019_v63, %v4015_v61  ;;  %v9078_v61 = vld [vmem:[#allocation19_spill] sm:$0xff] }
0x1b8b   : > { %v4022_v0 = vsel %vm3674_vm13, -1e+09, %v4020_v58 }
0x1b8c   : > { %v4023_v7 = vsel %vm358_vm3, %v4022_v0, -inf }
0x1b8d   : > { %4024 = vmax.xlane.f32.xlu0 %v4023_v7 }
0x1ba3   : > { %4201 = vrot.lane.b32.xlu0 %v8534_v39, %s7595_s25 }
0x1ba7   : > { %4275 = vrot.lane.b32.xlu0 %v8545_v54, %s7595_s25 }
0x1c16   : > { %v4025_v44 = vpop.xlane.xlu0 %4024 }
0x1c17   : > { %v4026_v56 = vsub.f32 %v4022_v0, %v4025_v44 }
0x1c19   : > { %v4027_v62 = vmul.f32 1.442695, %v4026_v56 }
0x1c1a   : > { %v4202_v52 = vpop.permute.xlu0 %4201 }
0x1c1b   : > { %7533 = vpow2.f32 %v4027_v62 }
0x1c1e   : > { %v4276_v55 = vpop.permute.xlu0 %4275 }
0x1c28   : > { %v7534_v42 = vpop.eup %7533 }
0x1c29   : > { %v4029_v43 = vsel %vm358_vm3, %v7534_v42, 0.0 }
0x1c2a   : > { %4030 = vadd.xlane.f32.xlu1 %v4029_v43 }
0x1cb3   : > { %v4031_v49 = vpop.xlane.xlu1 %4030 }
0x1cb4   : > { %7535 = vrcp.f32 %v4031_v49 }
0x1cc1   : > { %v7536_v48 = vpop.eup %7535 }
0x1cc2   : > { %v4033_v50 = vmul.f32 %v7536_v48, %v7534_v42 }
0x1cc4   : > { %v4041_v59 = vrot.slane %v4033_v50, %v7879_v47 }
0x1cc6   : > { %v4049_v57 = vrot.slane %v4041_v59, %v7879_v47  ;;  %v4042_v46 = vcombine.high %v4041_v59, %v4041_v59 }
0x1cc8   : > { %7256 = vmatmul.mubr.msk.f32.vlgmr.msra.gmra.mxu1 %vm388_vm4, %v4049_v57  ;;  %v4056_v53 = vrot.slane %v4042_v46, %v7879_v47 }
0x1cc9   : > { %7259 = vmatpush3.msra.mxu1 %v9075_v51  ;;  %7260 = vmatprep.mubr.msk.f32.mxu1 %vm7593_vm12, %v7592_v60 }
0x1cca   : > { %7263 = vmatprep.subr.mxu1 %v7592_v60 }
0x1ccc   : > { %7261 = vmatmul.mubr.msk.f32.vlgmr.msra.gmra.mxu1 %vm388_vm4, %v4056_v53 }
0x1ccd   : > { %7264 = vmatpush3.xpose.msk.msra.mxu1 %vm196_vm0, %v9076_v18  ;;  %7265 = vmatprep.mubr.msk.f32.mxu1 %vm7593_vm12, %v7592_v60 }
0x1cce   : > { %7268 = vmatprep.subr.mxu1 %v7592_v60 }
0x1cd0   : > { %7266 = vmatmul.mubr.msk.f32.vlgmr.msra.gmra.mxu1 %vm196_vm0, %v4202_v52 }
0x1cd1   : > { %7269 = vmatpush3.xpose.msk.msra.mxu1 %vm196_vm0, %v9077_v41  ;;  %7270 = vmatprep.mubr.msk.f32.mxu1 %vm7593_vm12, %v7592_v60 }
0x1cd2   : > { %7273 = vmatprep.subr.mxu1 %v7592_v60 }
0x1cd4   : > { %7271 = vmatmul.mubr.msk.f32.vlgmr.msra.gmra.mxu1 %vm196_vm0, %v4276_v55 }
0x1cd5   : > { %7274 = vmatpush3.msra.mxu1 %v9078_v61  ;;  %7275 = vmatprep.mubr.msk.f32.mxu1 %vm7593_vm12, %v7592_v60 }
0x1cd6   : > { %7278 = vmatprep.subr.mxu1 %v7592_v60 }
0x1d88   : > { %v4125_v63 = vpop.f32.mrf.mxu1 }
0x1d8a   : > { %v7257_v58 = vpop.f32.mrf.mxu1 }
0x1d8c   : > { %v4197_v0 = vpop.f32.mrf.mxu1 }
0x1d8d   : > { %v6212_v7 = vrot.slane %v4197_v0, 7 }
0x1d8e   : > { %v7262_v44 = vpop.f32.mrf.mxu1 }
0x1d8f   : > { %v8625_v56 = vsel %vm355_vm2, %v6212_v7, %v4125_v63 }
0x1d90   : > { %v4271_v62 = vpop.f32.mrf.mxu1 }
0x1d91   : > { %v4349_v50 = vmul.f32 0.25, %v4271_v62  ;;  %v9079_v62 = vld [vmem:[#allocation20_spill] sm:$0xff] }
0x1d92   : > { %v7267_v42 = vpop.f32.mrf.mxu1 }
0x1d94   : > { %v4345_v43 = vpop.f32.mrf.mxu1 }
0x1d95   : > { %v4350_v49 = vmul.f32 0.25, %v4345_v43 }
0x1d96   : > { %v7272_v48 = vpop.f32.mrf.mxu1 }
0x1d97   : > { %v4353_v59 = vrot.slane %v4350_v49, 7  ;;  %v9080_v49 = vld [vmem:[#allocation21_spill] sm:$0xff]  ;;  %v9081_v48 = vld [vmem:[#allocation22_spill] sm:$0xff] }
0x1d99   : > { %v4354_v57 = vsel %vm355_vm2, %v4353_v59, %v4349_v50  ;;  %v9082_v59 = vld [vmem:[#allocation23_spill] sm:$0xff] }
0x1d9a   : > { %v4356_v46 = vsel %vm3674_vm13, -1e+09, %v4354_v57 }
0x1d9b   : > { %v4357_v51 = vsel %vm358_vm3, %v4356_v46, -inf }
0x1d9c   : > { %4358 = vmax.xlane.f32.xlu0 %v4357_v51 }
0x1e25   : > { %v4359_v53 = vpop.xlane.xlu0 %4358 }
0x1e26   : > { %v4360_v52 = vsub.f32 %v4356_v46, %v4359_v53 }
0x1e28   : > { %v4361_v18 = vmul.f32 1.442695, %v4360_v52 }
0x1e2a   : > { %7537 = vpow2.f32 %v4361_v18 }
0x1e37   : > { %v7538_v41 = vpop.eup %7537 }
0x1e38   : > { %v4363_v55 = vsel %vm358_vm3, %v7538_v41, 0.0 }
0x1e39   : > { %4364 = vadd.xlane.f32.xlu1 %v4363_v55 }
0x1e4a   : > { %4535 = vrot.lane.b32.xlu1 %v8534_v39, %s7596_s26 }
0x1e4e   : > { %4609 = vrot.lane.b32.xlu1 %v8545_v54, %s7596_s26 }
0x1ec2   : > { %v4365_v61 = vpop.xlane.xlu1 %4364 }
0x1ec3   : > { %7539 = vrcp.f32 %v4365_v61 }
0x1ec6   : > { %v4536_v43 = vpop.permute.xlu1 %4535 }
0x1eca   : > { %v4610_v50 = vpop.permute.xlu1 %4609 }
0x1ed0   : > { %v7540_v63 = vpop.eup %7539 }
0x1ed1   : > { %v4367_v58 = vmul.f32 %v7540_v63, %v7538_v41 }
0x1ed3   : > { %v4375_v0 = vrot.slane %v4367_v58, %v7879_v47 }
0x1ed5   : > { %v4383_v7 = vrot.slane %v4375_v0, %v7879_v47  ;;  %v4376_v44 = vcombine.high %v4375_v0, %v4375_v0 }
0x1ed7   : > { %7276 = vmatmul.mubr.msk.f32.vlgmr.msra.gmra.mxu1 %vm388_vm4, %v4383_v7  ;;  %v4390_v42 = vrot.slane %v4376_v44, %v7879_v47 }
0x1ed8   : > { %7279 = vmatpush3.msra.mxu1 %v9079_v62  ;;  %7280 = vmatprep.mubr.msk.f32.mxu1 %vm7593_vm12, %v7592_v60 }
0x1ed9   : > { %7283 = vmatprep.subr.mxu1 %v7592_v60 }
0x1edb   : > { %7281 = vmatmul.mubr.msk.f32.vlgmr.msra.gmra.mxu1 %vm388_vm4, %v4390_v42 }
0x1edc   : > { %7284 = vmatpush3.xpose.msk.msra.mxu1 %vm196_vm0, %v9080_v49  ;;  %7285 = vmatprep.mubr.msk.f32.mxu1 %vm7593_vm12, %v7592_v60 }
0x1edd   : > { %7288 = vmatprep.subr.mxu1 %v7592_v60 }
0x1edf   : > { %7286 = vmatmul.mubr.msk.f32.vlgmr.msra.gmra.mxu1 %vm196_vm0, %v4536_v43 }
0x1ee0   : > { %7289 = vmatpush3.xpose.msk.msra.mxu1 %vm196_vm0, %v9081_v48  ;;  %7290 = vmatprep.mubr.msk.f32.mxu1 %vm7593_vm12, %v7592_v60 }
0x1ee1   : > { %7298 = vmatprep.subr.mxu1 %v7592_v60 }
0x1ee3   : > { %7291 = vmatmul.mubr.msk.f32.vlgmr.msra.gmra.mxu1 %vm196_vm0, %v4610_v50 }
0x1ee4   : > { %7299 = vmatpush3.msra.mxu1 %v9082_v59  ;;  %7300 = vmatprep.mubr.msk.f32.mxu1 %vm7593_vm12, %v7592_v60 }
0x1ee5   : > { %7308 = vmatprep.subr.mxu1 %v7592_v60 }
0x1f97   : > { %v4459_v57 = vpop.f32.mrf.mxu1 }
0x1f99   : > { %v7277_v46 = vpop.f32.mrf.mxu1 }
0x1f9b   : > { %v4531_v51 = vpop.f32.mrf.mxu1 }
0x1f9c   : > { %v6219_v53 = vrot.slane %v4531_v51, 7 }
0x1f9d   : > { %v7282_v52 = vpop.f32.mrf.mxu1 }
0x1f9e   : > { %v8662_v18 = vsel %vm355_vm2, %v6219_v53, %v4459_v57 }
0x1f9f   : > { %v4605_v41 = vpop.f32.mrf.mxu1 }
0x1fa0   : > { %v4683_v0 = vmul.f32 0.25, %v4605_v41 }
0x1fa1   : > { %v7287_v55 = vpop.f32.mrf.mxu1 }
0x1fa3   : > { %v4679_v61 = vpop.f32.mrf.mxu1 }
0x1fa4   : > { %v4684_v63 = vmul.f32 0.25, %v4679_v61 }
0x1fa5   : > { %v7292_v58 = vpop.f32.mrf.mxu1 }
0x1fa6   : > { %v4687_v7 = vrot.slane %v4684_v63, 7  ;;  %v9083_v63 = vld [vmem:[#allocation24_spill] sm:$0xff] }
0x1fa8   : > { %v4688_v44 = vsel %vm355_vm2, %v4687_v7, %v4683_v0  ;;  %v9084_v0 = vld [vmem:[#allocation25_spill] sm:$0xff]  ;;  %v9085_v7 = vld [vmem:[#allocation26_spill] sm:$0xff] }
0x1fa9   : > { %v4690_v62 = vsel %vm3674_vm13, -1e+09, %v4688_v44  ;;  %v9086_v44 = vld [vmem:[#allocation27_spill] sm:$0xff] }
0x1faa   : > { %v4691_v42 = vsel %vm358_vm3, %v4690_v62, -inf }
0x1fab   : > { %4692 = vmax.xlane.f32.xlu0 %v4691_v42 }
0x1fc1   : > { %4943 = vrot.lane.b32.xlu0 %v8545_v54, %s7597_s27 }
0x1fc5   : > { %4869 = vrot.lane.b32.xlu0 %v8534_v39, %s7597_s27 }
0x2034   : > { %v4693_v43 = vpop.xlane.xlu0 %4692 }
0x2035   : > { %v4694_v49 = vsub.f32 %v4690_v62, %v4693_v43 }
0x2037   : > { %v4695_v48 = vmul.f32 1.442695, %v4694_v49 }
0x2038   : > { %v4944_v52 = vpop.permute.xlu0 %4943 }
0x2039   : > { %7541 = vpow2.f32 %v4695_v48 }
0x203c   : > { %v4870_v58 = vpop.permute.xlu0 %4869 }
0x2046   : > { %v7542_v50 = vpop.eup %7541 }
0x2047   : > { %v4697_v59 = vsel %vm358_vm3, %v7542_v50, 0.0 }
0x2048   : > { %4698 = vadd.xlane.f32.xlu1 %v4697_v59 }
0x20d1   : > { %v4699_v57 = vpop.xlane.xlu1 %4698 }
0x20d2   : > { %7543 = vrcp.f32 %v4699_v57 }
0x20df   : > { %v7544_v46 = vpop.eup %7543 }
0x20e0   : > { %v4701_v51 = vmul.f32 %v7544_v46, %v7542_v50 }
0x20e2   : > { %v4709_v53 = vrot.slane %v4701_v51, %v7879_v47 }
0x20e4   : > { %v4717_v41 = vrot.slane %v4709_v53, %v7879_v47  ;;  %v4710_v55 = vcombine.high %v4709_v53, %v4709_v53 }
0x20e6   : > { %7296 = vmatmul.mubr.msk.f32.vlgmr.msra.gmra.mxu0 %vm388_vm4, %v4717_v41  ;;  %v4724_v61 = vrot.slane %v4710_v55, %v7879_v47 }
0x20e7   : > { %7304 = vmatpush3.xpose.msk.msra.mxu0 %vm196_vm0, %v9083_v63  ;;  %7305 = vmatprep.mubr.msk.f32.mxu0 %vm7593_vm12, %v7592_v60 }
0x20e8   : > { %7301 = vmatmul.mubr.msk.f32.vlgmr.msra.gmra.mxu1 %vm388_vm4, %v4724_v61  ;;  %7313 = vmatprep.subr.mxu0 %v7592_v60 }
0x20e9   : > { %7309 = vmatpush3.xpose.msk.msra.mxu1 %vm196_vm0, %v9084_v0  ;;  %7310 = vmatprep.mubr.msk.f32.mxu1 %vm7593_vm12, %v7592_v60 }
0x20ea   : > { %7306 = vmatmul.mubr.msk.f32.vlgmr.msra.gmra.mxu0 %vm196_vm0, %v4870_v58  ;;  %7318 = vmatprep.subr.mxu1 %v7592_v60 }
0x20eb   : > { %7314 = vmatpush3.msra.mxu0 %v9085_v7  ;;  %7315 = vmatprep.mubr.msk.f32.mxu0 %vm7593_vm12, %v7592_v60 }
0x20ec   : > { %7311 = vmatmul.mubr.msk.f32.vlgmr.msra.gmra.mxu1 %vm196_vm0, %v4944_v52  ;;  %7323 = vmatprep.subr.mxu0 %v7592_v60 }
0x20ed   : > { %7319 = vmatpush3.msra.mxu1 %v9086_v44  ;;  %7320 = vmatprep.mubr.msk.f32.mxu1 %vm7593_vm12, %v7592_v60 }
0x20ee   : > { %7328 = vmatprep.subr.mxu1 %v7592_v60 }
0x21a6   : > { %v4793_v62 = vpop.f32.mrf.mxu0 }
0x21a8   : > { %v7297_v42 = vpop.f32.mrf.mxu0  ;;  %v4865_v43 = vpop.f32.mrf.mxu1 }
0x21a9   : > { %v6226_v49 = vrot.slane %v4865_v43, 7 }
0x21aa   : > { %v7302_v48 = vpop.f32.mrf.mxu1  ;;  %v4939_v50 = vpop.f32.mrf.mxu0 }
0x21ab   : > { %v8699_v59 = vsel %vm355_vm2, %v6226_v49, %v4793_v62  ;;  %v5017_v52 = vmul.f32 0.25, %v4939_v50 }
0x21ac   : > { %v7307_v57 = vpop.f32.mrf.mxu0  ;;  %v5013_v46 = vpop.f32.mrf.mxu1 }
0x21ad   : > { %v5018_v51 = vmul.f32 0.25, %v5013_v46 }
0x21ae   : > { %v7312_v53 = vpop.f32.mrf.mxu1 }
0x21af   : > { %v5021_v41 = vrot.slane %v5018_v51, 7  ;;  %v9087_v53 = vld [vmem:[#allocation28_spill] sm:$0xff] }
0x21b1   : > { %v5022_v55 = vsel %vm355_vm2, %v5021_v41, %v5017_v52  ;;  %v9088_v41 = vld [vmem:[#allocation29_spill] sm:$0xff] }
0x21b2   : > { %v5024_v61 = vsel %vm3674_vm13, -1e+09, %v5022_v55  ;;  %v9089_v55 = vld [vmem:[#allocation30_spill] sm:$0xff] }
0x21b3   : > { %v5025_v63 = vsel %vm358_vm3, %v5024_v61, -inf }
0x21b4   : > { %5026 = vmax.xlane.f32.xlu0 %v5025_v63 }
0x223d   : > { %v5027_v58 = vpop.xlane.xlu0 %5026 }
0x223e   : > { %v5028_v0 = vsub.f32 %v5024_v61, %v5027_v58  ;;  %v9090_v61 = vld [vmem:[#allocation31_spill] sm:$0xff] }
0x2240   : > { %v5029_v7 = vmul.f32 1.442695, %v5028_v0 }
0x2242   : > { %7545 = vpow2.f32 %v5029_v7 }
0x224f   : > { %v7546_v44 = vpop.eup %7545 }
0x2250   : > { %v5031_v62 = vsel %vm358_vm3, %v7546_v44, 0.0 }
0x2251   : > { %5032 = vadd.xlane.f32.xlu1 %v5031_v62 }
0x2262   : > { %5277 = vrot.lane.b32.xlu1 %v8545_v54, %s7598_s28 }
0x2266   : > { %5203 = vrot.lane.b32.xlu1 %v8534_v39, %s7598_s28 }
0x22da   : > { %v5033_v42 = vpop.xlane.xlu1 %5032 }
0x22db   : > { %7547 = vrcp.f32 %v5033_v42 }
0x22de   : > { %v5278_v50 = vpop.permute.xlu1 %5277 }
0x22e2   : > { %v5204_v52 = vpop.permute.xlu1 %5203 }
0x22e8   : > { %v7548_v43 = vpop.eup %7547 }
0x22e9   : > { %v5035_v49 = vmul.f32 %v7548_v43, %v7546_v44 }
0x22eb   : > { %v5043_v48 = vrot.slane %v5035_v49, %v7879_v47 }
0x22ed   : > { %v5051_v57 = vrot.slane %v5043_v48, %v7879_v47  ;;  %v5044_v46 = vcombine.high %v5043_v48, %v5043_v48 }
0x22ef   : > { %7316 = vmatmul.mubr.msk.f32.vlgmr.msra.gmra.mxu0 %vm388_vm4, %v5051_v57  ;;  %v5058_v51 = vrot.slane %v5044_v46, %v7879_v47 }
0x22f0   : > { %7324 = vmatpush3.xpose.msk.msra.mxu0 %vm196_vm0, %v9087_v53  ;;  %7325 = vmatprep.mubr.msk.f32.mxu0 %vm7593_vm12, %v7592_v60 }
0x22f1   : > { %7321 = vmatmul.mubr.msk.f32.vlgmr.msra.gmra.mxu1 %vm388_vm4, %v5058_v51  ;;  %7333 = vmatprep.subr.mxu0 %v7592_v60 }
0x22f2   : > { %7329 = vmatpush3.xpose.msk.msra.mxu1 %vm196_vm0, %v9088_v41  ;;  %7330 = vmatprep.mubr.msk.f32.mxu1 %vm7593_vm12, %v7592_v60 }
0x22f3   : > { %7326 = vmatmul.mubr.msk.f32.vlgmr.msra.gmra.mxu0 %vm196_vm0, %v5204_v52  ;;  %7338 = vmatprep.subr.mxu1 %v7592_v60 }
0x22f4   : > { %7334 = vmatpush3.msra.mxu0 %v9089_v55  ;;  %7335 = vmatprep.mubr.msk.f32.mxu0 %vm7593_vm12, %v7592_v60 }
0x22f5   : > { %7331 = vmatmul.mubr.msk.f32.vlgmr.msra.gmra.mxu1 %vm196_vm0, %v5278_v50  ;;  %7343 = vmatprep.subr.mxu0 %v7592_v60 }
0x22f6   : > { %7339 = vmatpush3.msra.mxu1 %v9090_v61  ;;  %7340 = vmatprep.mubr.msk.f32.mxu1 %vm7593_vm12, %v7592_v60 }
0x22f7   : > { %7348 = vmatprep.subr.mxu1 %v7592_v60 }
0x23af   : > { %v5127_v63 = vpop.f32.mrf.mxu0 }
0x23b1   : > { %v7317_v58 = vpop.f32.mrf.mxu0  ;;  %v5199_v0 = vpop.f32.mrf.mxu1 }
0x23b2   : > { %v6233_v7 = vrot.slane %v5199_v0, 7 }
0x23b3   : > { %v7322_v44 = vpop.f32.mrf.mxu1  ;;  %v5273_v62 = vpop.f32.mrf.mxu0 }
0x23b4   : > { %v8736_v42 = vsel %vm355_vm2, %v6233_v7, %v5127_v63  ;;  %v5351_v57 = vmul.f32 0.25, %v5273_v62 }
0x23b5   : > { %v7327_v43 = vpop.f32.mrf.mxu0  ;;  %v5347_v49 = vpop.f32.mrf.mxu1 }
0x23b6   : > { %v5352_v48 = vmul.f32 0.25, %v5347_v49 }
0x23b7   : > { %v7332_v50 = vpop.f32.mrf.mxu1 }
0x23b8   : > { %v5355_v46 = vrot.slane %v5352_v48, 7 }
0x23ba   : > { %v5356_v51 = vsel %vm355_vm2, %v5355_v46, %v5351_v57  ;;  %v9091_v57 = vld [vmem:[#allocation32_spill] sm:$0xff] }
0x23bb   : > { %v5358_v53 = vsel %vm3674_vm13, -1e+09, %v5356_v51  ;;  %v9092_v51 = vld [vmem:[#allocation33_spill] sm:$0xff] }
0x23bc   : > { %v5359_v52 = vsel %vm358_vm3, %v5358_v53, -inf }
0x23bd   : > { %5360 = vmax.xlane.f32.xlu0 %v5359_v52  ;;  %v9094_v52 = vld [vmem:[#allocation35_spill] sm:$0xff] }
0x23d3   : > { %5611 = vrot.lane.b32.xlu0 %v8545_v54, %s7599_s29 }
0x23d7   : > { %5537 = vrot.lane.b32.xlu0 %v8534_v39, %s7599_s29 }
0x2446   : > { %v5361_v41 = vpop.xlane.xlu0 %5360 }
0x2447   : > { %v5362_v55 = vsub.f32 %v5358_v53, %v5361_v41  ;;  %v9093_v53 = vld [vmem:[#allocation34_spill] sm:$0xff] }
0x2449   : > { %v5363_v61 = vmul.f32 1.442695, %v5362_v55 }
0x244a   : > { %v5612_v43 = vpop.permute.xlu0 %5611 }
0x244b   : > { %7549 = vpow2.f32 %v5363_v61 }
0x244e   : > { %v5538_v46 = vpop.permute.xlu0 %5537 }
0x2458   : > { %v7550_v63 = vpop.eup %7549 }
0x2459   : > { %v5365_v58 = vsel %vm358_vm3, %v7550_v63, 0.0 }
0x245a   : > { %5366 = vadd.xlane.f32.xlu1 %v5365_v58 }
0x24e3   : > { %v5367_v0 = vpop.xlane.xlu1 %5366 }
0x24e4   : > { %7551 = vrcp.f32 %v5367_v0 }
0x24f1   : > { %v7552_v7 = vpop.eup %7551 }
0x24f2   : > { %v5369_v44 = vmul.f32 %v7552_v7, %v7550_v63 }
0x24f4   : > { %v5377_v62 = vrot.slane %v5369_v44, %v7879_v47 }
0x24f6   : > { %v5385_v49 = vrot.slane %v5377_v62, %v7879_v47  ;;  %v5378_v48 = vcombine.high %v5377_v62, %v5377_v62 }
0x24f8   : > { %7336 = vmatmul.mubr.msk.f32.vlgmr.msra.gmra.mxu0 %vm388_vm4, %v5385_v49  ;;  %v5392_v50 = vrot.slane %v5378_v48, %v7879_v47 }
0x24f9   : > { %7344 = vmatpush3.xpose.msk.msra.mxu0 %vm196_vm0, %v9091_v57  ;;  %7345 = vmatprep.mubr.msk.f32.mxu0 %vm7593_vm12, %v7592_v60 }
0x24fa   : > { %7341 = vmatmul.mubr.msk.f32.vlgmr.msra.gmra.mxu1 %vm388_vm4, %v5392_v50  ;;  %7353 = vmatprep.subr.mxu0 %v7592_v60 }
0x24fb   : > { %7349 = vmatpush3.xpose.msk.msra.mxu1 %vm196_vm0, %v9092_v51  ;;  %7350 = vmatprep.mubr.msk.f32.mxu1 %vm7593_vm12, %v7592_v60 }
0x24fc   : > { %7346 = vmatmul.mubr.msk.f32.vlgmr.msra.gmra.mxu0 %vm196_vm0, %v5538_v46  ;;  %7358 = vmatprep.subr.mxu1 %v7592_v60 }
0x24fd   : > { %7354 = vmatpush3.msra.mxu0 %v9093_v53  ;;  %7355 = vmatprep.mubr.msk.f32.mxu0 %vm7593_vm12, %v7592_v60 }
0x24fe   : > { %7351 = vmatmul.mubr.msk.f32.vlgmr.msra.gmra.mxu1 %vm196_vm0, %v5612_v43  ;;  %7363 = vmatprep.subr.mxu0 %v7592_v60 }
0x24ff   : > { %7359 = vmatpush3.msra.mxu1 %v9094_v52  ;;  %7360 = vmatprep.mubr.msk.f32.mxu1 %vm7593_vm12, %v7592_v60 }
0x2500   : > { %7368 = vmatprep.subr.mxu1 %v7592_v60 }
0x25b8   : > { %v5461_v41 = vpop.f32.mrf.mxu0 }
0x25ba   : > { %v7337_v55 = vpop.f32.mrf.mxu0  ;;  %v5533_v61 = vpop.f32.mrf.mxu1 }
0x25bb   : > { %v6240_v63 = vrot.slane %v5533_v61, 7 }
0x25bc   : > { %v7342_v58 = vpop.f32.mrf.mxu1  ;;  %v5607_v0 = vpop.f32.mrf.mxu0 }
0x25bd   : > { %v8773_v7 = vsel %vm355_vm2, %v6240_v63, %v5461_v41  ;;  %v5685_v48 = vmul.f32 0.25, %v5607_v0 }
0x25be   : > { %v7347_v44 = vpop.f32.mrf.mxu0  ;;  %v5681_v62 = vpop.f32.mrf.mxu1 }
0x25bf   : > { %v5686_v43 = vmul.f32 0.25, %v5681_v62 }
0x25c0   : > { %v7352_v49 = vpop.f32.mrf.mxu1 }
0x25c1   : > { %v5689_v50 = vrot.slane %v5686_v43, 7 }
0x25c3   : > { %v5690_v57 = vsel %vm355_vm2, %v5689_v50, %v5685_v48  ;;  %v9095_v50 = vld [vmem:[#allocation36_spill] sm:$0xff] }
0x25c4   : > { %v5692_v46 = vsel %vm3674_vm13, -1e+09, %v5690_v57  ;;  %v9097_v57 = vld [vmem:[#allocation38_spill] sm:$0xff] }
0x25c5   : > { %v5693_v51 = vsel %vm358_vm3, %v5692_v46, -inf }
0x25c6   : > { %5694 = vmax.xlane.f32.xlu0 %v5693_v51 }
0x264f   : > { %v5695_v53 = vpop.xlane.xlu0 %5694 }
0x2650   : > { %v5696_v52 = vsub.f32 %v5692_v46, %v5695_v53  ;;  %v9098_v46 = vld [vmem:[#allocation39_spill] sm:$0xff] }
0x2652   : > { %v5697_v55 = vmul.f32 1.442695, %v5696_v52 }
0x2654   : > { %7553 = vpow2.f32 %v5697_v55 }
0x2661   : > { %v7554_v41 = vpop.eup %7553 }
0x2662   : > { %v5699_v61 = vsel %vm358_vm3, %v7554_v41, 0.0 }
0x2663   : > { %5700 = vadd.xlane.f32.xlu1 %v5699_v61 }
0x2674   : > { %5945 = vrot.lane.b32.xlu1 %v8545_v54, %s7600_s30  ;;  %v9096_v54 = vld [vmem:[#allocation37_spill] sm:$0xff] }
0x2678   : > { %5871 = vrot.lane.b32.xlu1 %v8534_v39, %s7600_s30 }
0x26ec   : > { %v5701_v63 = vpop.xlane.xlu1 %5700 }
0x26ed   : > { %7555 = vrcp.f32 %v5701_v63 }
0x26f0   : > { %v5946_v62 = vpop.permute.xlu1 %5945 }
0x26f4   : > { %v5872_v39 = vpop.permute.xlu1 %5871 }
0x26fa   : > { %v7556_v58 = vpop.eup %7555 }
0x26fb   : > { %v5703_v0 = vmul.f32 %v7556_v58, %v7554_v41 }
0x26fd   : > { %v5711_v44 = vrot.slane %v5703_v0, %v7879_v47 }
0x26ff   : > { %v5719_v43 = vrot.slane %v5711_v44, %v7879_v47  ;;  %v5712_v49 = vcombine.high %v5711_v44, %v5711_v44 }
0x2701   : > { %7356 = vmatmul.mubr.msk.f32.vlgmr.msra.gmra.mxu0 %vm388_vm4, %v5719_v43  ;;  %v5726_v48 = vrot.slane %v5712_v49, %v7879_v47 }
0x2702   : > { %7364 = vmatpush3.xpose.msk.msra.mxu0 %vm196_vm0, %v9095_v50  ;;  %7365 = vmatprep.mubr.msk.f32.mxu0 %vm7593_vm12, %v7592_v60 }
0x2703   : > { %7361 = vmatmul.mubr.msk.f32.vlgmr.msra.gmra.mxu1 %vm388_vm4, %v5726_v48  ;;  %7373 = vmatprep.subr.mxu0 %v7592_v60 }
0x2704   : > { %7369 = vmatpush3.xpose.msk.msra.mxu1 %vm196_vm0, %v9096_v54  ;;  %7370 = vmatprep.mubr.msk.f32.mxu1 %vm7593_vm12, %v7592_v60 }
0x2705   : > { %7366 = vmatmul.mubr.msk.f32.vlgmr.msra.gmra.mxu0 %vm196_vm0, %v5872_v39  ;;  %7378 = vmatprep.subr.mxu1 %v7592_v60 }
0x2706   : > { %7374 = vmatpush3.msra.mxu0 %v9097_v57  ;;  %7375 = vmatprep.mubr.msk.f32.mxu0 %vm7593_vm12, %v7592_v60 }
0x2707   : > { %7371 = vmatmul.mubr.msk.f32.vlgmr.msra.gmra.mxu1 %vm196_vm0, %v5946_v62  ;;  %7383 = vmatprep.subr.mxu0 %v7592_v60 }
0x2708   : > { %7379 = vmatpush3.msra.mxu1 %v9098_v46  ;;  %7380 = vmatprep.mubr.msk.f32.mxu1 %vm7593_vm12, %v7592_v60 }
0x2709   : > { %7418 = vmatprep.subr.mxu1 %v7592_v60 }
0x27c1   : > { %v5795_v51 = vpop.f32.mrf.mxu0 }
0x27c3   : > { %v7357_v53 = vpop.f32.mrf.mxu0  ;;  %v5867_v52 = vpop.f32.mrf.mxu1 }
0x27c4   : > { %v6247_v50 = vrot.slane %v5867_v52, 7 }
0x27c5   : > { %v7362_v55 = vpop.f32.mrf.mxu1  ;;  %v5941_v41 = vpop.f32.mrf.mxu0 }
0x27c6   : > { %v6019_v44 = vmul.f32 0.25, %v5941_v41  ;;  %v6248_v39 = vsel %vm355_vm2, %v6247_v50, %v5795_v51  ;;  %v9109_v50 = vld [vmem:[#allocation49_spill] sm:$0xff] }
0x27c7   : > { %v7367_v61 = vpop.f32.mrf.mxu0  ;;  %v6015_v63 = vpop.f32.mrf.mxu1 }
0x27c8   : > { %v6020_v58 = vmul.f32 0.25, %v6015_v63  ;;  %v9099_v61 = vld [vmem:[#allocation40_spill] sm:$0xff] }
0x27c9   : > { %v7372_v0 = vpop.f32.mrf.mxu1  ;;  %v9101_v63 = vld [vmem:[#allocation56_spill] sm:$0xff] }
0x27ca   : > { %v6023_v62 = vrot.slane %v6020_v58, 7  ;;  %v9102_v58 = vld [vmem:[#allocation42_spill] sm:$0xff]  ;;  %v9103_v0 = vld [vmem:[#allocation43_spill] sm:$0xff] }
0x27cc   : > { %v6024_v43 = vsel %vm355_vm2, %v6023_v62, %v6019_v44  ;;  %v9104_v44 = vld [vmem:[#allocation44_spill] sm:$0xff]  ;;  %v9105_v62 = vld [vmem:[#allocation45_spill] sm:$0xff] }
0x27cd   : > { %v6026_v49 = vsel %vm3674_vm13, -1e+09, %v6024_v43  ;;  %v9106_v43 = vld [vmem:[#allocation46_spill] sm:$0xff] }
0x27ce   : > { %v6027_v48 = vsel %vm358_vm3, %v6026_v49, -inf }
0x27cf   : > { %6028 = vmax.xlane.f32.xlu0 %v6027_v48  ;;  %v9108_v48 = vld [vmem:[#allocation48_spill] sm:$0xff] }
0x27e5   : > { %6214 = vrot.lane.b32.xlu0 %v8625_v56, %s7600_s30 }
0x27e9   : > { %6221 = vrot.lane.b32.xlu0 %v8662_v18, %s7599_s29 }
0x27ed   : > { %6228 = vrot.lane.b32.xlu0 %v8699_v59, %s7598_s28 }
0x27f1   : > { %6235 = vrot.lane.b32.xlu0 %v8736_v42, %s7597_s27 }
0x27f5   : > { %6249 = vrot.lane.b32.xlu0 %v6248_v39, %s7595_s25  ;;  %v9110_v39 = vld [vmem:[#allocation50_spill] sm:$0xff] }
0x2858   : > { %v6029_v54 = vpop.xlane.xlu0 %6028 }
0x2859   : > { %v6030_v57 = vsub.f32 %v6026_v49, %v6029_v54  ;;  %v9107_v49 = vld [vmem:[#allocation47_spill] sm:$0xff] }
0x285a   : > { %v9111_v54 = vld [vmem:[#allocation51_spill] sm:$0xff] }
0x285b   : > { %v6031_v46 = vmul.f32 1.442695, %v6030_v57  ;;  %v9112_v57 = vld [vmem:[#allocation52_spill] sm:$0xff] }
0x285d   : > { %7557 = vpow2.f32 %v6031_v46  ;;  %v9113_v46 = vld [vmem:[#allocation53_spill] sm:$0xff] }
0x286a   : > { %v7558_v53 = vpop.eup %7557 }
0x286b   : > { %v6033_v56 = vsel %vm358_vm3, %v7558_v53, 0.0 }
0x286c   : > { %6034 = vadd.xlane.f32.xlu1 %v6033_v56  ;;  %v9115_v56 = vld [vmem:[#allocation55_spill] sm:$0xff] }
0x287d   : > { %6242 = vrot.lane.b32.xlu1 %v8773_v7, %s7596_s26  ;;  %v9100_v7 = vld [vmem:[#allocation41_spill] sm:$0xff] }
0x28f5   : > { %v6035_v18 = vpop.xlane.xlu1 %6034 }
0x28f6   : > { %7559 = vrcp.f32 %v6035_v18 }
0x2903   : > { %v7560_v59 = vpop.eup %7559 }
0x2904   : > { %v6037_v52 = vmul.f32 %v7560_v59, %v7558_v53  ;;  %v9114_v53 = vld [vmem:[#allocation54_spill] sm:$0xff] }
0x2906   : > { %v6045_v42 = vrot.slane %v6037_v52, %v7879_v47 }
0x2908   : > { %v6053_v51 = vrot.slane %v6045_v42, %v7879_v47  ;;  %v6046_v55 = vcombine.high %v6045_v42, %v6045_v42 }
0x290a   : > { %7376 = vmatmul.mubr.msk.f32.vlgmr.msra.gmra.mxu0 %vm388_vm4, %v6053_v51  ;;  %v6060_v41 = vrot.slane %v6046_v55, %v7879_v47 }
0x290b   : > { %7384 = vmatpush3.msra.mxu0 %v9099_v61  ;;  %7415 = vmatprep.mubr.msk.f32.mxu0 %vm7593_vm12, %v7592_v60 }
0x290c   : > { %7381 = vmatmul.mubr.msk.f32.vlgmr.msra.gmra.mxu1 %vm388_vm4, %v6060_v41  ;;  %7385 = vmatprep.subr.mxu0 %v7592_v60  ;;  %v6215_v41 = vpop.permute.xlu0 %6214 }
0x290d   : > { %7386 = vmatpush3.msra.mxu0 %v9100_v7  ;;  %7419 = vmatpush3.xpose.msra.mxu1 %v9101_v63 }
0x290e   : > { %7387 = vmatprep.subr.mxu0 %v7592_v60  ;;  %7420 = vmatprep.mubr.msk.f32.mxu1 %vm7593_vm12, %v7592_v60 }
0x290f   : > { %7388 = vmatpush3.msra.mxu0 %v9102_v58  ;;  %7423 = vmatprep.subr.mxu1 %v7592_v60  ;;  %v6259_v58 = vsel %vm196_vm0, %v8588_v12, %v6215_v41 }
0x2910   : > { %7389 = vmatprep.subr.mxu0 %v7592_v60  ;;  %v6222_v61 = vpop.permute.xlu0 %6221 }
0x2911   : > { %7390 = vmatpush3.msra.mxu0 %v9103_v0  ;;  %v6260_v0 = vsel %vm3022_vm5, %v6259_v58, %v6222_v61 }
0x2912   : > { %7391 = vmatprep.subr.mxu0 %v7592_v60 }
0x2913   : > { %7392 = vmatpush3.msra.mxu0 %v9104_v44  ;;  %v6243_v44 = vpop.permute.xlu1 %6242 }
0x2914   : > { %7393 = vmatprep.subr.mxu0 %v7592_v60  ;;  %v6229_v7 = vpop.permute.xlu0 %6228 }
0x2915   : > { %7394 = vmatpush3.msra.mxu0 %v9105_v62  ;;  %v6261_v62 = vsel %vm3024_vm6, %v6260_v0, %v6229_v7 }
0x2916   : > { %7395 = vmatprep.subr.mxu0 %v7592_v60 }
0x2917   : > { %7396 = vmatpush3.msra.mxu0 %v9106_v43 }
0x2918   : > { %7397 = vmatprep.subr.mxu0 %v7592_v60  ;;  %v6236_v63 = vpop.permute.xlu0 %6235 }
0x2919   : > { %7398 = vmatpush3.msra.mxu0 %v9107_v49  ;;  %v6262_v43 = vsel %vm3026_vm7, %v6261_v62, %v6236_v63 }
0x291a   : > { %7399 = vmatprep.subr.mxu0 %v7592_v60 }
0x291b   : > { %7400 = vmatpush3.msra.mxu0 %v9108_v48  ;;  %v6263_v48 = vsel %vm3028_vm8, %v6262_v43, %v6243_v44 }
0x291c   : > { %7401 = vmatprep.subr.mxu0 %v7592_v60  ;;  %v6250_v49 = vpop.permute.xlu0 %6249 }
0x291d   : > { %7402 = vmatpush3.msra.mxu0 %v9109_v50  ;;  %v6264_v50 = vsel %vm3030_vm9, %v6263_v48, %v6250_v49 }
0x291e   : > { %7403 = vmatprep.subr.mxu0 %v7592_v60 }
0x291f   : > { %7404 = vmatpush3.msra.mxu0 %v9110_v39 }
0x2920   : > { %7405 = vmatprep.subr.mxu0 %v7592_v60 }
0x2921   : > { %7406 = vmatpush3.msra.mxu0 %v9111_v54 }
0x2922   : > { %7407 = vmatprep.subr.mxu0 %v7592_v60 }
0x2923   : > { %7408 = vmatpush3.msra.mxu0 %v9112_v57 }
0x2924   : > { %7409 = vmatprep.subr.mxu0 %v7592_v60 }
0x2925   : > { %7410 = vmatpush3.msra.mxu0 %v9113_v46 }
0x2926   : > { %7411 = vmatprep.subr.mxu0 %v7592_v60 }
0x2927   : > { %7412 = vmatpush3.msra.mxu0 %v9114_v53 }
0x2928   : > { %7413 = vmatprep.subr.mxu0 %v7592_v60 }
0x2929   : > { %7414 = vmatpush3.msra.mxu0 %v9115_v56 }
0x29ca   : > { %v6129_v18 = vpop.f32.mrf.mxu0 }
0x29cc   : > { %v7377_v59 = vpop.f32.mrf.mxu0  ;;  %v6201_v52 = vpop.f32.mrf.mxu1 }
0x29cd   : > { %v6254_v42 = vrot.slane %v6201_v52, 7 }
0x29ce   : > { %v7382_v51 = vpop.f32.mrf.mxu1 }
0x29cf   : > { %v6255_v55 = vsel %vm355_vm2, %v6254_v42, %v6129_v18  ;;  %v9116_v18 = vld [vmem:[#allocation57_spill] sm:$0xff] }
0x29d0   : > { %6256 = vrot.lane.b32.xlu0 %v6255_v55, %s7594_s24 }
0x2a42   : > { %v6257_v39 = vpop.permute.xlu0 %6256 }
0x2a43   : > { %v6265_v54 = vsel %vm3032_vm10, %v6264_v50, %v6257_v39 }
0x2a44   : > { %7416 = vmatmul.mubr.f32.vlgmr.msra.gmra.mxu0 %v6265_v54 }
0x2b04   : > { %v6332_v57 = vpop.f32.mrf.mxu0 }
0x2b05   : > { %v6343_v46 = vrot.slane %v6332_v57, %v7879_v47 }
0x2b06   : > { %v7417_v12 = vpop.f32.mrf.mxu0 }
0x2b07   : > { %v6344_v53 = vcombine.high %v6343_v46, %v6343_v46  ;;  %v6351_v56 = vrot.slane %v6343_v46, %v7879_v47 }
0x2b09   : > { %7421 = vmatmul.mubr.f32.vlgmr.msra.gmra.mxu1 %v6351_v56  ;;  %v6358_v59 = vrot.slane %v6344_v53, %v7879_v47 }
0x2b0a   : > { %7424 = vmatpush3.xpose.msra.mxu1 %v9116_v18  ;;  %7425 = vmatprep.mubr.msk.f32.mxu1 %vm7593_vm12, %v7592_v60 }
0x2b0d   : > { %7426 = vmatmul.mubr.f32.vlgmr.msra.gmra.mxu1 %v6358_v59  ;;  %v9117_v59 = vld [vmem:[#allocation58_spill] sm:$0xff] }
0x2bc9   : > { %v6427_v52 = vpop.f32.mrf.mxu1 }
0x2bca   : > { %v6501_v42 = vmul.f32 0.088388346, %v6427_v52 }
0x2bcb   : > { %v7422_v51 = vpop.f32.mrf.mxu1 }
0x2bcc   : > { %7561 = vtanh.f32 %v6501_v42 }
0x2bcd   : > { %v6497_v55 = vpop.f32.mrf.mxu1 }
0x2bce   : > { %v6502_v41 = vmul.f32 0.088388346, %v6497_v55 }
0x2bcf   : > { %v7427_v61 = vpop.f32.mrf.mxu1 }
0x2bd0   : > { %7563 = vtanh.f32 %v6502_v41 }
0x2bd9   : > { %v7562_v7 = vpop.eup %7561 }
0x2bda   : > { %v6505_v0 = vmul.f32 10.0, %v7562_v7 }
0x2bdd   : > { %v7564_v63 = vpop.eup %7563 }
0x2bde   : > { %v6506_v58 = vmul.f32 10.0, %v7564_v63 }
0x2be0   : > { %v6509_v44 = vrot.slane %v6506_v58, 7 }
0x2be2   : > { %v6510_v62 = vsel %vm355_vm2, %v6509_v44, %v6505_v0 }
0x2be3   : > { %v6512_v43 = vsel %vm3674_vm13, -1e+09, %v6510_v62 }
0x2be4   : > { %v6513_v49 = vsel %vm358_vm3, %v6512_v43, -inf }
0x2be5   : > { %6514 = vmax.xlane.f32.xlu0 %v6513_v49 }
0x2c6e   : > { %v6515_v48 = vpop.xlane.xlu0 %6514 }
0x2c6f   : > { %v6516_v50 = vsub.f32 %v6512_v43, %v6515_v48  ;;  %v9118_v48 = vld [vmem:[#allocation9_spill] sm:$0xff] }
0x2c71   : > { %v6517_v39 = vmul.f32 1.442695, %v6516_v50 }
0x2c73   : > { %7565 = vpow2.f32 %v6517_v39  ;;  %v7571_v39 = vld [vmem:[#allocation2] sm:$0x3] }
0x2c80   : > { %v7566_v54 = vpop.eup %7565 }
0x2c81   : > { %v6519_v57 = vsel %vm358_vm3, %v7566_v54, 0.0 }
0x2c82   : > { %6520 = vadd.xlane.f32.xlu1 %v6519_v57 }
0x2d0b   : > { %v6521_v46 = vpop.xlane.xlu1 %6520 }
0x2d0c   : > { %7567 = vlog2.f32 %v6521_v46 }
0x2d19   : > { %v7568_v12 = vpop.eup %7567 }
0x2d1a   : > { %v6523_v53 = vmul.f32 0.6931472, %v7568_v12 }
0x2d1c   : > { %v6524_v56 = vsub.f32 %v6516_v50, %v6523_v53 }
0x2d1e   : > { %v6525_v18 = vsel %vm358_vm3, %v6524_v56, -inf }
0x2d1f   : > { %6526 = vmax.xlane.f32.xlu0 %v6525_v18 }
0x2da8   : > { %v6527_v16 = vpop.xlane.xlu0 %6526 }
0x2da9   : > { %vm6528_vm15 = vcmp.ge.f32.partialorder %v6524_v56, %v6527_v16  ;;  %v9119_v16 = vld [vmem:[#allocation59_spill] sm:$0xff] }
0x2daa   : > { %v6529_v52 = vsel %vm6528_vm15, %v9117_v59, 8 }
0x2dab   : > { %v6530_v42 = vsel %vm358_vm3, %v6529_v52, 2147483647 }
0x2dac   : > { %v6532_v51 = vshra.s32 %v6530_v42, 16  ;;  %v6531_v41 = vand.u32 65535, %v6530_v42  ;;  %v9120_v42 = vld [vmem:[#allocation60_spill] sm:$0xff] }
0x2dae   : > { %v6534_v55 = vcvt.s32.f32 %v6532_v51  ;;  %v6533_v7 = vcvt.s32.f32 %v6531_v41  ;;  %v9121_v51 = vld [vmem:[#allocation61_spill] sm:$0xff]  ;;  %v9122_v41 = vld [vmem:[#allocation62_spill] sm:$0xff] }
0x2db0   : > { %6535 = vmin.xlane.f32.xlu0 %v6534_v55 }
0x2e39   : > { %v6536_v61 = vpop.xlane.xlu0 %6535 }
0x2e3a   : > { %vm6537_vm12 = vcmp.eq.f32.partialorder %v6534_v55, %v6536_v61  ;;  %v6542_v58 = vcvt.f32.s32 %v6536_v61 }
0x2e3b   : > { %v6538_v63 = vsel %vm6537_vm12, %v6533_v7, inf }
0x2e3c   : > { %6539 = vmin.xlane.f32.xlu0 %v6538_v63  ;;  %v6543_v44 = vshll.u32 %v6542_v58, 16 }
0x2ec5   : > { %v6540_v0 = vpop.xlane.xlu0 %6539 }
0x2ec6   : > { %v6541_v62 = vcvt.f32.s32 %v6540_v0 }
0x2ec8   : > { %v6544_v43 = vadd.s32 %v6543_v44, %v6541_v62 }
0x2eca   : > { %vm6545_vm13 = vcmp.eq.s32.totalorder %v9117_v59, %v6544_v43  ;;  %6777 = vst.msk [vmem:[%s6671_s4 + $0x2] sm:$0x3] %vm3361_vm14, %v6544_v43 }
0x2ecb   : > { %v6775_v49 = vsel %vm6545_vm13, 1.0, %v7592_v60 }
0x2ecc   : > { %v6567_v50 = vrot.slane %v6775_v49, %v9118_v48  ;;  %v6555_v54 = vmax.f32 %v7571_v39, %v6775_v49  ;;  %v6560_v57 = vrot.slane %v6775_v49, %v7827_v33  ;;  %v6548_v46 = vmul.f32 %v6775_v49, %v6524_v56 }
0x2ece   : > { %6569 = vbcast.lane.b32.xlu0 %v6567_v50, 256  ;;  %6556 = vst.msk [vmem:[#allocation2] sm:$0x3] %vm358_vm3, %v6555_v54  ;;  %6562 = vbcast.lane.b32.xlu1 %v6560_v57, 256  ;;  %v6549_v12 = vsel %vm358_vm3, %v6548_v46, 0.0 }
0x2eed   : > { %6550 = vadd.xlane.f32.xlu0 %v6549_v12 }
0x2f40   : > { %v6570_v53 = vpop.permute.xlu0 %6569  ;;  %v6563_v18 = vpop.permute.xlu1 %6562 }
0x2f41   : > { %v6572_v52 = vmul.f32 %v6570_v53, %v9119_v16  ;;  %v6591_v60 = vmul.f32 %v6570_v53, %v9120_v42  ;;  %v6571_v55 = vmul.f32 %v6563_v18, %v9121_v51  ;;  %v6590_v61 = vmul.f32 %v6563_v18, %v9122_v41  ;;  %v6606_v53 = vld [vmem:[#allocation6] sm:$0x3] }
0x2f43   : > { %v6579_v7 = vrot.slane %v6572_v52, 4  ;;  %v6599_v63 = vsel %vm3400_vm1, %v6591_v60, 0.0  ;;  %v6573_v58 = vrot.slane %v6571_v55, 4  ;;  %v6592_v0 = vsel %vm3400_vm1, %v6590_v61, 0.0 }
0x2f44   : > { %v6600_v56 = vrot.slane %v6599_v63, 4  ;;  %v6593_v44 = vrot.slane %v6592_v0, 4  ;;  %v6608_v61 = vrot.slane %v6606_v53, 1 }
0x2f45   : > { %v6580_v62 = vadd.f32 %v6579_v7, %v6572_v52  ;;  %v6574_v43 = vadd.f32 %v6573_v58, %v6571_v55 }
0x2f46   : > { %v6601_v49 = vadd.f32 %v6600_v56, %v6599_v63  ;;  %v6594_v48 = vadd.f32 %v6593_v44, %v6592_v0 }
0x2f47   : > { %v6581_v50 = vrot.slane %v6580_v62, 2  ;;  %v6575_v39 = vrot.slane %v6574_v43, 2 }
0x2f48   : > { %v6602_v54 = vrot.slane %v6601_v49, 2  ;;  %v6595_v57 = vrot.slane %v6594_v48, 2 }
0x2f49   : > { %v6582_v46 = vadd.f32 %v6581_v50, %v6580_v62  ;;  %v6576_v12 = vadd.f32 %v6575_v39, %v6574_v43 }
0x2f4a   : > { %v6603_v18 = vadd.f32 %v6602_v54, %v6601_v49  ;;  %v6596_v16 = vadd.f32 %v6595_v57, %v6594_v48  ;;  %v6638_v48 = vld [vmem:[%s8948_s8] sm:$0x3] }
0x2f4b   : > { %v6583_v42 = vrot.slane %v6582_v46, 1  ;;  %v6577_v60 = vrot.slane %v6576_v12, 1  ;;  %v6613_v57 = vld [vmem:[%s8945_s9] sm:$0x3] }
0x2f4c   : > { %v6604_v51 = vrot.slane %v6603_v18, 1  ;;  %v6597_v41 = vrot.slane %v6596_v16, 1 }
0x2f4d   : > { %v6584_v1 = vadd.f32 %v6583_v42, %v6582_v46  ;;  %v6578_v2 = vadd.f32 %v6577_v60, %v6576_v12 }
0x2f4e   : > { %v6598_v52 = vadd.f32 %v6597_v41, %v6596_v16  ;;  %v6605_v55 = vadd.f32 %v6604_v51, %v6603_v18  ;;  %v6641_v16 = vld [vmem:[#allocation5] sm:$0x3] (%p3426_p0) }
0x2f4f   : > { %v6587_v7 = vsel %vm355_vm2, %v6584_v1, %v6578_v2 }
0x2f50   : > { %6589 = vst [vmem:[#allocation4] sm:$0x3] %v6587_v7  ;;  %v6611_v63 = vsub.f32 %v6598_v52, %v6606_v53  ;;  %v6612_v58 = vsub.f32 %v6605_v55, %v6608_v61  ;;  %v6635_v0 = vsel %vm355_vm2, %v6605_v55, %v6598_v52 }
0x2f51   : > { %6637 = vst.msk [vmem:[#allocation6] sm:$0x3] %vm3419_vm11, %v6635_v0 }
0x2f52   : > { %v6615_v56 = vmul.f32 %v6612_v58, %v6612_v58  ;;  %v6614_v44 = vmul.f32 %v6611_v63, %v6611_v63 }
0x2f54   : > { %v6618_v62 = vrot.slane %v6615_v56, 7 }
0x2f56   : > { %v6619_v43 = vsel %vm355_vm2, %v6618_v62, %v6614_v44 }
0x2f57   : > { %v6621_v49 = vsel %vm3419_vm11, %v6619_v43, 0.0 }
0x2f58   : > { %6622 = vadd.xlane.f32.xlu1 %v6621_v49  ;;  %v6642_v42 = vld [vmem:[#allocation6] sm:$0x3] (%p3426_p0) }
0x2f59   :  { %v6643_v60 = vsub.f32 (%p3426_p0), %v6641_v16, %v6642_v42 }
0x2f5b   :  { %v6645_v51 = vmul.f32 (%p3426_p0), %v6643_v60, %v6643_v60 }
0x2f5d   :  { %v6646_v41 = vsel (%p3426_p0), %vm3419_vm11, %v6645_v51, 0.0 }
0x2f5e   :  { %6647 = vadd.xlane.f32.xlu0 (%p3426_p0), %v6646_v41 }
0x2f76   : > { %v6551_v1 = vpop.xlane.xlu0 %6550 }
0x2f77   : > { %v6639_v2 = vadd.f32 %v6638_v48, %v6551_v1 }
0x2f79   : > { %6640 = vst.msk [vmem:[%s8948_s8] sm:$0x3] %vm3361_vm14, %v6639_v2 }
0x2fe1   : > { %v6623_v50 = vpop.xlane.xlu1 %6622 }
0x2fe2   : > { %7569 = vrsqrt.f32 %v6623_v50  ;;  %vm6626_vm15 = vcmp.eq.f32.partialorder %v6623_v50, inf  ;;  %v6629_v46 = vand.u32 2147483648, %v6623_v50  ;;  %vm6628_vm12 = vcmp.eq.f32.partialorder %v6623_v50, 0.0 }
0x2fe7   :  { %v6648_v61 = vpop.xlane.xlu0 (%p3426_p0), %6647 }
0x2fe8   :  { %7572 = vrsqrt.f32 (%p3426_p0), %v6648_v61  ;;  %vm6651_vm13 = vcmp.eq.f32.partialorder (%p3426_p0), %v6648_v61, inf  ;;  %v6654_v63 = vand.u32 (%p3426_p0), 2147483648, %v6648_v61 }
0x2fef   : > { %v7570_v39 = vpop.eup %7569 }
0x2ff0   : > { %v6625_v54 = vmul.f32 %v7570_v39, %v6623_v50 }
0x2ff2   : > { %v6627_v12 = vsel %vm6626_vm15, %v6623_v50, %v6625_v54  ;;  %3428 = sbr.rel (!%p3426_p0) target bundleno = 6086 (0x17c6), region = 72  ;;  %vm6653_vm15 = vcmp.eq.f32.partialorder (%p3426_p0), %v6648_v61, 0.0 }
0x2ff3   : > { %v6630_v53 = vsel %vm6628_vm12, %v6629_v46, %v6627_v12 }
0x2ff4   : > { %v6631_v18 = vadd.f32 %v6630_v53, %v6613_v57 }
0x2ff5   :  { %v7573_v52 = vpop.eup (%p3426_p0), %7572 }
0x2ff6   : > { %6632 = vst.msk [vmem:[%s8945_s9] sm:$0x3] %vm3361_vm14, %v6631_v18  ;;  %v6650_v55 = vmul.f32 (%p3426_p0), %v7573_v52, %v6648_v61 }
0x2ff8   :  { %v6652_v58 = vsel %vm6651_vm13, %v6648_v61, %v6650_v55 }
0x2ff9   :  { %v6655_v0 = vsel %vm6653_vm15, %v6654_v63, %v6652_v58 }
0x2ffd   :  { %v6644_v7 = vld [vmem:[%s8945_s9] sm:$0x3] }
0x2ffe   :  { %v6656_v3 = vadd.f32 %v6655_v0, %v6644_v7 }
0x3000   :  { %6657 = vst.msk [vmem:[%s8945_s9] sm:$0x3] %vm3361_vm14, %v6656_v3 }

// kernel: attention_tsp_forward.2
= control target key start
LH: loop header
LB: loop body
LE: loop exit
PB: predicated region body
PF: predicated region fallthrough
CT: control target
= control target key end

     0   :  { %s10132_s0 = inlined_call_operand.vmem [shape: f32[2,8,2], index: 0, kind: input, shape index: {}]   ;;  %s10133_s1 = inlined_call_operand.vmem [shape: f32[2,128], index: 1, kind: input, shape index: {}]   ;;  %s10134_s2 = inlined_call_operand.vmem [shape: f32[1,128], index: 2, kind: input, shape index: {}]   ;;  %s10135_s3 = inlined_call_operand.hbm [shape: f32[2,128,384], index: 3, kind: input, shape index: {}]   ;;  %s10136_s4 = inlined_call_operand.hbm [shape: f32[2,128,128], index: 4, kind: input, shape index: {}]   ;;  %s10137_s5 = inlined_call_operand.vmem [shape: f32[2,1,128], index: 5, kind: input, shape index: {}]   ;;  %s10138_s6 = inlined_call_operand.vmem [shape: f32[2,1,128], index: 6, kind: input, shape index: {}]   ;;  %s10139_s7 = inlined_call_operand.hbm [shape: f32[2,128,512], index: 7, kind: input, shape index: {}]   ;;  %s10140_s8 = inlined_call_operand.vmem [shape: f32[2,1,512], index: 8, kind: input, shape index: {}]   ;;  %s10141_s9 = inlined_call_operand.hbm [shape: f32[2,512,128], index: 9, kind: input, shape index: {}]   ;;  %s10142_s10 = inlined_call_operand.vmem [shape: f32[2,1,128], index: 10, kind: input, shape index: {}]   ;;  %s10143_s11 = inlined_call_operand.vmem [shape: f32[2,1,128], index: 11, kind: input, shape index: {}]   ;;  %s10144_s12 = inlined_call_operand.vmem [shape: f32[2,1,128], index: 12, kind: input, shape index: {}]   ;;  %s10145_s13 = inlined_call_operand.hbm [shape: f32[128,384], index: 13, kind: input, shape index: {}]   ;;  %s10146_s14 = inlined_call_operand.hbm [shape: f32[128,128], index: 14, kind: input, shape index: {}]   ;;  %s10147_s15 = inlined_call_operand.vmem [shape: f32[2,8,128], index: 15, kind: output, shape index: {0}]   ;;  %s10148_s16 = inlined_call_operand.vmem [shape: f32[2,128], index: 16, kind: output, shape index: {1}]   ;;  %s10149_s17 = inlined_call_operand.vmem [shape: f32[2,8,384], index: 17, kind: output, shape index: {2}]  }
   0x1   :  { %10151 = sst [smem:[#allocation16_spill]] %s10132_s0 }
   0x2   :  { %10152 = sst [smem:[#allocation17_spill]] %s10133_s1 }
   0x3   :  { %23 = vsyncpa [#allocation3], 0 }
   0x4   :  { %24 = vsyncpa [#allocation5], 0 }
   0x5   :  { %25 = vsyncpa [#allocation8], 0 }
   0x6   :  { %26 = vsyncpa [#allocation11], 0  ;;  %s9108_s24 = smov [#allocation4]  }
   0x7   :  { %s50_s25 = sshll.u32 %s9108_s24, 4  ;;  %s51_s25 = int_to_ptr.vmem [resolvable:$true] %s50_s25 }
   0x8   :  { %s8988_s26 = scalar_lea.vmem %s51_s25, 4096  ;;  %p8993_p1 = scmp.lt.s32.totalorder %s51_s25, %s51_s25 }
   0x9   :  { %p8989_p0 = scmp.ne.s32.totalorder %s51_s25, %s8988_s26  ;;  %p8994_p2 = scmp.lt.s32.totalorder %s8988_s26, %s8988_s26 }
   0xb   :  { %p8995_p3 = por %p8994_p2, %p8993_p1 }
   0xd   :  { %p8996_p4 = pnand %p8995_p3, %p8989_p0 }
   0xf   :  { %8999 = shalt.err (!%p8996_p4)
}
  0x10   :  { %s9109_s27 = smov 128   ;;  %s9110_s28 = smov 8  }
  0x11   :  { %56 = dma.hbm_to_vmem [thread:$0]  %s10136_s4, 4096, %s51_s25, [#allocation5], %s9109_s27, %s9109_s27, %s9110_s28  }
  0x12   :  { %s9111_s30 = smov [#allocation7]   ;;  %s9112_s19 = smov [#allocation2]  }
  0x13   :  { %s80_s18 = sshll.u32 %s9111_s30, 4  ;;  %s38_s1 = sshll.u32 %s9112_s19, 4  ;;  %s81_s18 = int_to_ptr.vmem [resolvable:$true] %s80_s18  ;;  %s39_s1 = int_to_ptr.vmem [resolvable:$true] %s38_s1 }
  0x14   :  { %s9008_s20 = scalar_lea.vmem %s81_s18, 16384  ;;  %p9013_p6 = scmp.lt.s32.totalorder %s81_s18, %s81_s18 }
  0x15   :  { %p9009_p5 = scmp.ne.s32.totalorder %s81_s18, %s9008_s20  ;;  %p9014_p7 = scmp.lt.s32.totalorder %s9008_s20, %s9008_s20 }
  0x17   :  { %p9015_p8 = por %p9014_p7, %p9013_p6 }
  0x19   :  { %p9016_p9 = pnand %p9015_p8, %p9009_p5 }
  0x1b   :  { %9019 = shalt.err (!%p9016_p9)
}
  0x1c   :  { %86 = dma.hbm_to_vmem [thread:$0]  %s10141_s9, 16384, %s81_s18, [#allocation8], %s9109_s27, %s9109_s27, %s9110_s28  }
  0x1d   :  { %s9028_s4 = scalar_lea.vmem %s39_s1, 12288  ;;  %p9033_p11 = scmp.lt.s32.totalorder %s39_s1, %s39_s1 }
  0x1e   :  { %p9029_p10 = scmp.ne.s32.totalorder %s39_s1, %s9028_s4  ;;  %p9034_p12 = scmp.lt.s32.totalorder %s9028_s4, %s9028_s4 }
  0x20   :  { %p9035_p13 = por %p9034_p12, %p9033_p11 }
  0x22   :  { %p9036_p0 = pnand %p9035_p13, %p9029_p10 }
  0x24   :  { %9039 = shalt.err (!%p9036_p0)
}
  0x25   :  { %s9113_s23 = smov 384   ;;  %s9114_s24 = smov 24  }
  0x26   :  { %44 = dma.hbm_to_vmem [thread:$0]  %s10135_s3, 12288, %s39_s1, [#allocation3], %s9113_s23, %s9113_s23, %s9114_s24  }
  0x27   :  { %s9115_s29 = smov [#allocation6]  }
  0x28   :  { %s66_s0 = sshll.u32 %s9115_s29, 4  ;;  %s67_s0 = int_to_ptr.vmem [resolvable:$true] %s66_s0 }
  0x29   :  { %s9048_s9 = scalar_lea.vmem %s67_s0, 16384  ;;  %p9053_p2 = scmp.lt.s32.totalorder %s67_s0, %s67_s0 }
  0x2a   :  { %p9049_p1 = scmp.ne.s32.totalorder %s67_s0, %s9048_s9  ;;  %p9054_p3 = scmp.lt.s32.totalorder %s9048_s9, %s9048_s9 }
  0x2c   :  { %p9055_p4 = por %p9054_p3, %p9053_p2 }
  0x2e   :  { %p9056_p5 = pnand %p9055_p4, %p9049_p1 }
  0x30   :  { %9059 = shalt.err (!%p9056_p5)
}
  0x31   :  { %s9116_s30 = smov 512   ;;  %s9117_s18 = smov 32  }
  0x32   :  { %72 = dma.hbm_to_vmem [thread:$0]  %s10139_s7, 16384, %s67_s0, [#allocation5], %s9116_s30, %s9116_s30, %s9117_s18  }
  0x33   :  { %s9118_s21 = smov [#allocation9]   ;;  %s9119_s3 = smov [#allocation10]  }
  0x34   :  { %s98_s22 = sshll.u32 %s9118_s21, 4  ;;  %s110_s1 = sshll.u32 %s9119_s3, 4  ;;  %s99_s22 = int_to_ptr.vmem [resolvable:$true] %s98_s22  ;;  %s111_s1 = int_to_ptr.vmem [resolvable:$true] %s110_s1 }
  0x35   :  { %s9068_s4 = scalar_lea.vmem %s99_s22, 6144  ;;  %p9073_p7 = scmp.lt.s32.totalorder %s99_s22, %s99_s22 }
  0x36   :  { %p9069_p6 = scmp.ne.s32.totalorder %s99_s22, %s9068_s4  ;;  %p9074_p8 = scmp.lt.s32.totalorder %s9068_s4, %s9068_s4 }
  0x38   :  { %p9075_p9 = por %p9074_p8, %p9073_p7 }
  0x3a   :  { %p9076_p10 = pnand %p9075_p9, %p9069_p6 }
  0x3c   :  { %9079 = shalt.err (!%p9076_p10)
}
  0x3d   :  { %104 = dma.hbm_to_vmem [thread:$0]  %s10145_s13, 6144, %s99_s22, [#allocation8], %s9113_s23, %s9113_s23, %s9114_s24  }
  0x3e   :  { %s9088_s7 = scalar_lea.vmem %s111_s1, 2048  ;;  %p9093_p12 = scmp.lt.s32.totalorder %s111_s1, %s111_s1 }
  0x3f   :  { %p9089_p11 = scmp.ne.s32.totalorder %s111_s1, %s9088_s7  ;;  %p9094_p13 = scmp.lt.s32.totalorder %s9088_s7, %s9088_s7 }
  0x41   :  { %p9095_p0 = por %p9094_p13, %p9093_p12 }
  0x43   :  { %p9096_p1 = pnand %p9095_p0, %p9089_p11 }
  0x45   :  { %9099 = shalt.err (!%p9096_p1)
}
  0x46   :  { %116 = dma.hbm_to_vmem [thread:$0]  %s10146_s14, 2048, %s111_s1, [#allocation11], %s9109_s27, %s9109_s27, %s9110_s28  }
  0x47   :  { %9100 = dma.done.wait [#allocation3], 12288  }
  0x48   :  { %9101 = vsyncadd [#allocation3], 4294955008 }
  0x49   :  { %9102 = dma.done.wait [#allocation5], 20480  }
  0x4a   :  { %9103 = vsyncadd [#allocation5], 4294946816 }
  0x4b   :  { %9104 = dma.done.wait [#allocation8], 22528  }
  0x4c   :  { %9105 = vsyncadd [#allocation8], 4294944768 }
  0x4d   :  { %9106 = dma.done.wait [#allocation11], 2048  }
  0x4e   :  { %9107 = vsyncadd [#allocation11], 4294965248  ;;  %vm152_vm0 = vcmask 1041408   ;;  %vm145_vm1 = vcmask 15360   ;;  %s10153_s24 = sld [smem:[#allocation17_spill]]  ;;  %v277_v3 = vld [vmem:[#allocation2 + $0x170] sm:$0xff] }
  0x4f   :  { %s10154_s19 = sld [smem:[#allocation16_spill]]  ;;  %v276_v4 = vld [vmem:[#allocation2 + $0x168] sm:$0xff]  ;;  %v278_v5 = vld [vmem:[#allocation2 + $0x178] sm:$0xff]  ;;  %279 = vmatprep.subr.mxu1 %v277_v3  ;;  %v273_v7 = vld [vmem:[#allocation2 + $0x150] sm:$0xff]  ;;  %v9120_v51 = vmov 0.0   ;;  %vm9121_vm2 = vmmov 0  }
  0x50   :  { %v274_v6 = vld [vmem:[#allocation2 + $0x158] sm:$0xff]  ;;  %280 = vmatpush1.msra.mxu1 %v276_v4  ;;  %v275_v8 = vld [vmem:[#allocation2 + $0x160] sm:$0xff]  ;;  %v272_v11 = vld [vmem:[#allocation2 + $0x148] sm:$0xff]  ;;  %343 = vmatprep.mubr.f32.mxu1 %v9120_v51  ;;  %vm431_vm3 = vcmask 130048   ;;  %vm586_vm4 = vcmask 64512   ;;  %s9123_s21 = smov 96  }
  0x51   :  { %v271_v9 = vld [vmem:[#allocation2 + $0x140] sm:$0xff]  ;;  %281 = vmatprep.subr.mxu1 %v274_v6  ;;  %v270_v10 = vld [vmem:[#allocation2 + $0x138] sm:$0xff]  ;;  %v268_v12 = vld [vmem:[#allocation2 + $0x128] sm:$0xff]  ;;  %s9124_s22 = smov 80   ;;  %s9125_s3 = smov 64   ;;  %vm3139_vm5 = vcmask 261120  }
  0x52   :  { %282 = vmatpush1.msra.mxu1 %v273_v7  ;;  %v267_v13 = vld [vmem:[#allocation2 + $0x120] sm:$0xff]  ;;  %v269_v14 = vld [vmem:[#allocation2 + $0x130] sm:$0xff]  ;;  %v264_v16 = vld [vmem:[#allocation2 + $0x108] sm:$0xff]  ;;  %s9126_s1 = smov 48   ;;  %s9127_s4 = smov 16   ;;  %vm3142_vm6 = vcmask 392192  }
  0x53   :  { %283 = vmatprep.subr.mxu1 %v271_v9  ;;  %v265_v15 = vld [vmem:[#allocation2 + $0x110] sm:$0xff]  ;;  %v266_v17 = vld [vmem:[#allocation2 + $0x118] sm:$0xff]  ;;  %v263_v20 = vld [vmem:[#allocation2 + $0x100] sm:$0xff]  ;;  %vm3145_vm7 = vcmask 523264   ;;  %vm3148_vm8 = vcmask 654336   ;;  %vm3151_vm9 = vcmask 785408  }
  0x54   :  { %v137_v0 = vld [vmem:[%s10153_s24] sm:$0x3]  ;;  %284 = vmatpush1.msra.mxu1 %v270_v10  ;;  %v262_v18 = vld [vmem:[#allocation2 + $0xf8] sm:$0xff]  ;;  %v261_v19 = vld [vmem:[#allocation2 + $0xf0] sm:$0xff]  ;;  %vm3154_vm10 = vcmask 916480   ;;  %vm7417_vm11 = vcmask 1041409  }
  0x55   :  { %v135_v1 = vld [vmem:[%s10154_s19] sm:$0xff]  ;;  %v136_v2 = vld [vmem:[%s10154_s19 + $0x8] sm:$0xff]  ;;  %8219 = vmatprep.subr.msk.mxu0 %vm152_vm0, %v137_v0  ;;  %285 = vmatprep.subr.mxu1 %v268_v12  ;;  %v258_v22 = vld [vmem:[#allocation2 + $0xd8] sm:$0xff] }
  0x56   :  { %8221 = vmatprep.mubr.msk.f32.mxu0 %vm145_vm1, %v135_v1  ;;  %8220 = vmatpush3.msk.msra.mxu0 %vm152_vm0, %v137_v0  ;;  %v259_v21 = vld [vmem:[#allocation2 + $0xe0] sm:$0xff]  ;;  %v260_v23 = vld [vmem:[#allocation2 + $0xe8] sm:$0xff]  ;;  %v257_v26 = vld [vmem:[#allocation2 + $0xd0] sm:$0xff] }
  0x57   :  { %8222 = vmatmul.mubr.msk.f32.vlgmr.msra.gmra.mxu0 %vm145_vm1, %v136_v2  ;;  %8224 = vmatprep.subr.mxu0 %v278_v5  ;;  %v256_v24 = vld [vmem:[#allocation2 + $0xc8] sm:$0xff]  ;;  %v255_v25 = vld [vmem:[#allocation2 + $0xc0] sm:$0xff]  ;;  %v253_v27 = vld [vmem:[#allocation2 + $0xb0] sm:$0xff] }
  0x58   :  { %8225 = vmatpush3.msra.mxu0 %v278_v5  ;;  %286 = vmatpush1.msra.mxu1 %v267_v13  ;;  %v252_v28 = vld [vmem:[#allocation2 + $0xa8] sm:$0xff]  ;;  %v254_v29 = vld [vmem:[#allocation2 + $0xb8] sm:$0xff]  ;;  %v249_v31 = vld [vmem:[#allocation2 + $0x90] sm:$0xff] }
  0x59   :  { %8226 = vmatprep.subr.mxu0 %v275_v8  ;;  %287 = vmatprep.subr.mxu1 %v265_v15  ;;  %v250_v30 = vld [vmem:[#allocation2 + $0x98] sm:$0xff]  ;;  %v251_v32 = vld [vmem:[#allocation2 + $0xa0] sm:$0xff]  ;;  %v248_v35 = vld [vmem:[#allocation2 + $0x88] sm:$0xff] }
  0x5a   :  { %8227 = vmatpush3.msra.mxu0 %v275_v8  ;;  %288 = vmatpush1.msra.mxu1 %v264_v16  ;;  %v247_v33 = vld [vmem:[#allocation2 + $0x80] sm:$0xff]  ;;  %v246_v34 = vld [vmem:[#allocation2 + $0x78] sm:$0xff]  ;;  %v244_v36 = vld [vmem:[#allocation2 + $0x68] sm:$0xff] }
  0x5b   :  { %8228 = vmatprep.subr.mxu0 %v272_v11  ;;  %289 = vmatprep.subr.mxu1 %v262_v18  ;;  %v243_v37 = vld [vmem:[#allocation2 + $0x60] sm:$0xff]  ;;  %v245_v38 = vld [vmem:[#allocation2 + $0x70] sm:$0xff]  ;;  %v240_v40 = vld [vmem:[#allocation2 + $0x48] sm:$0xff] }
  0x5c   :  { %8229 = vmatpush3.msra.mxu0 %v272_v11  ;;  %290 = vmatpush1.msra.mxu1 %v261_v19  ;;  %v241_v39 = vld [vmem:[#allocation2 + $0x50] sm:$0xff]  ;;  %v242_v41 = vld [vmem:[#allocation2 + $0x58] sm:$0xff]  ;;  %v239_v44 = vld [vmem:[#allocation2 + $0x40] sm:$0xff] }
  0x5d   :  { %8230 = vmatprep.subr.mxu0 %v269_v14  ;;  %291 = vmatprep.subr.mxu1 %v259_v21  ;;  %v238_v42 = vld [vmem:[#allocation2 + $0x38] sm:$0xff]  ;;  %v237_v43 = vld [vmem:[#allocation2 + $0x30] sm:$0xff]  ;;  %v235_v45 = vld [vmem:[#allocation2 + $0x20] sm:$0xff] }
  0x5e   :  { %8231 = vmatpush3.msra.mxu0 %v269_v14  ;;  %292 = vmatpush1.msra.mxu1 %v258_v22  ;;  %v234_v46 = vld [vmem:[#allocation2 + $0x18] sm:$0xff]  ;;  %v236_v47 = vld [vmem:[#allocation2 + $0x28] sm:$0xff]  ;;  %v231_v49 = vld [vmem:[#allocation2] sm:$0xff] }
  0x5f   :  { %8232 = vmatprep.subr.mxu0 %v266_v17  ;;  %293 = vmatprep.subr.mxu1 %v256_v24  ;;  %v232_v48 = vld [vmem:[#allocation2 + $0x8] sm:$0xff]  ;;  %v233_v50 = vld [vmem:[#allocation2 + $0x10] sm:$0xff]  ;;  %v7713_v53 = vld [vmem:[%s10134_s2] ss:$0 sm:$0xff]  ;;  %s9122_s2 = smov 112  }
  0x60   :  { %8233 = vmatpush3.msra.mxu0 %v266_v17  ;;  %294 = vmatpush1.msra.mxu1 %v255_v25 }
  0x61   :  { %8234 = vmatprep.subr.mxu0 %v263_v20  ;;  %295 = vmatprep.subr.mxu1 %v253_v27 }
  0x62   :  { %8235 = vmatpush3.msra.mxu0 %v263_v20  ;;  %296 = vmatpush1.msra.mxu1 %v252_v28 }
  0x63   :  { %8236 = vmatprep.subr.mxu0 %v260_v23  ;;  %297 = vmatprep.subr.mxu1 %v250_v30 }
  0x64   :  { %8237 = vmatpush3.msra.mxu0 %v260_v23  ;;  %298 = vmatpush1.msra.mxu1 %v249_v31 }
  0x65   :  { %8238 = vmatprep.subr.mxu0 %v257_v26  ;;  %299 = vmatprep.subr.mxu1 %v247_v33 }
  0x66   :  { %8239 = vmatpush3.msra.mxu0 %v257_v26  ;;  %300 = vmatpush1.msra.mxu1 %v246_v34 }
  0x67   :  { %8240 = vmatprep.subr.mxu0 %v254_v29  ;;  %301 = vmatprep.subr.mxu1 %v244_v36 }
  0x68   :  { %8241 = vmatpush3.msra.mxu0 %v254_v29  ;;  %302 = vmatpush1.msra.mxu1 %v243_v37 }
  0x69   :  { %8242 = vmatprep.subr.mxu0 %v251_v32  ;;  %303 = vmatprep.subr.mxu1 %v241_v39 }
  0x6a   :  { %8243 = vmatpush3.msra.mxu0 %v251_v32  ;;  %304 = vmatpush1.msra.mxu1 %v240_v40 }
  0x6b   :  { %8244 = vmatprep.subr.mxu0 %v248_v35  ;;  %305 = vmatprep.subr.mxu1 %v238_v42 }
  0x6c   :  { %8245 = vmatpush3.msra.mxu0 %v248_v35  ;;  %306 = vmatpush1.msra.mxu1 %v237_v43 }
  0x6d   :  { %8246 = vmatprep.subr.mxu0 %v245_v38  ;;  %307 = vmatprep.subr.mxu1 %v235_v45 }
  0x6e   :  { %8247 = vmatpush3.msra.mxu0 %v245_v38  ;;  %308 = vmatpush1.msra.mxu1 %v234_v46 }
  0x6f   :  { %8248 = vmatprep.subr.mxu0 %v242_v41  ;;  %309 = vmatprep.subr.mxu1 %v232_v48 }
  0x70   :  { %8249 = vmatpush3.msra.mxu0 %v242_v41  ;;  %310 = vmatpush1.msra.mxu1 %v231_v49 }
  0x71   :  { %8250 = vmatprep.subr.mxu0 %v239_v44  ;;  %8264 = vmatprep.subr.mxu1 %v9120_v51 }
  0x72   :  { %8251 = vmatpush3.msra.mxu0 %v239_v44 }
  0x73   :  { %8252 = vmatprep.subr.mxu0 %v236_v47 }
  0x74   :  { %8253 = vmatpush3.msra.mxu0 %v236_v47 }
  0x75   :  { %8254 = vmatprep.subr.mxu0 %v233_v50 }
  0x76   :  { %8255 = vmatpush3.msra.mxu0 %v233_v50 }
  0x77   :  { %8259 = vmatprep.subr.mxu0 %v9120_v51 }
 0x117   :  { %v8223_v52 = vpop.f32.mrf.mxu0 }
 0x118   :  { %v9269_v56 = vadd.f32 %v8223_v52, %v7713_v53 }
 0x119   :  { %v222_v54 = vpop.f32.mrf.mxu0 }
 0x11a   :  { %v9267_v55 = vadd.f32 %v7713_v53, %v222_v54 }
 0x11c   :  { %344 = vmatmul.mubr.f32.vlgmr.msra.gmra.mxu1 %v9267_v55  ;;  %8256 = vmatprep.mubr.f32.mxu0 %v9267_v55 }
 0x11d   :  { %8257 = vmatmul.mubr.f32.vlgmr.msra.gmra.mxu0 %v9269_v56  ;;  %349 = vmatprep.mubr.f32.mxu1 %v9120_v51 }
 0x11e   :  { %8261 = vmatprep.mubr.msk.f32.mxu0 %vm9121_vm2, %v9120_v51 }
 0x120   :  { %350 = vmatmul.mubr.f32.gmra.mxu1 %v9269_v56 }
 0x121   :  { %8266 = vmatprep.mubr.msk.f32.mxu1 %vm9121_vm2, %v9120_v51 }
 0x1dc   :  { %v9280_v57 = vpop.f32.mrf.mxu1 }
 0x1dd   :  { %v9282_v58 = vpop.f32.mrf.mxu0 }
 0x1de   :  { %v9284_v59 = vpop.f32.mrf.mxu1 }
 0x1df   :  { %8260 = vmatpush3.xpose.msk.msra.mxu0 %vm431_vm3, %v9284_v59  ;;  %v9291_v61 = vpop.f32.mrf.mxu0 }
 0x1e0   :  { %v9288_v60 = vpop.f32.mrf.mxu1  ;;  %8269 = vmatprep.subr.mxu0 %v9120_v51 }
 0x1e2   :  { %v9293_v62 = vpop.f32.mrf.mxu1  ;;  %8262 = vmatmul.mubr.msk.f32.vlgmr.msra.gmra.mxu0 %vm431_vm3, %v9280_v57 }
 0x1e3   :  { %8270 = vmatpush3.msra.mxu0 %v9291_v61  ;;  %835 = vrot.lane.b32.xlu1 %v9293_v62, %s9122_s2 }
 0x1e4   :  { %8265 = vmatpush3.xpose.msk.msra.mxu1 %vm431_vm3, %v9293_v62  ;;  %8271 = vmatprep.mubr.msk.f32.mxu0 %vm9121_vm2, %v9120_v51 }
 0x1e5   :  { %8274 = vmatprep.subr.mxu1 %v9120_v51  ;;  %8279 = vmatprep.subr.mxu0 %v9120_v51 }
 0x1e7   :  { %8267 = vmatmul.mubr.msk.f32.vlgmr.msra.gmra.mxu1 %vm431_vm3, %v9288_v60  ;;  %755 = vrot.lane.b32.xlu1 %v9280_v57, %s9122_s2 }
 0x1e8   :  { %8275 = vmatpush3.msra.mxu1 %v9282_v58  ;;  %8276 = vmatprep.mubr.msk.f32.mxu1 %vm9121_vm2, %v9120_v51 }
 0x1e9   :  { %8284 = vmatprep.subr.mxu1 %v9120_v51 }
 0x255   :  { %v836_v17 = vpop.permute.xlu1 %835 }
 0x259   :  { %v756_v18 = vpop.permute.xlu1 %755 }
 0x2a2   :  { %v504_v63 = vpop.f32.mrf.mxu0 }
 0x2a3   :  { %v584_v0 = vmul.f32 0.25, %v504_v63 }
 0x2a4   :  { %v8263_v1 = vpop.f32.mrf.mxu0 }
 0x2a5   :  { %v587_v2 = vsel %vm586_vm4, %v584_v0, -inf }
 0x2a6   :  { %588 = vmax.xlane.f32.xlu0 %v587_v2 }
 0x2a7   :  { %v580_v3 = vpop.f32.mrf.mxu1 }
 0x2a8   :  { %v585_v4 = vmul.f32 0.25, %v580_v3 }
 0x2a9   :  { %v8268_v5 = vpop.f32.mrf.mxu1 }
 0x2aa   :  { %v590_v6 = vsel %vm586_vm4, %v585_v4, -inf }
 0x2ab   :  { %591 = vmax.xlane.f32.xlu0 %v590_v6 }
 0x2c1   :  { %757 = vrot.lane.b32.xlu0 %v9284_v59, %s9122_s2 }
 0x32f   :  { %v589_v7 = vpop.xlane.xlu0 %588 }
 0x330   :  { %v593_v8 = vsub.f32 %v584_v0, %v589_v7 }
 0x332   :  { %v595_v9 = vmul.f32 1.442695, %v593_v8 }
 0x334   :  { %8844 = vpow2.f32 %v595_v9  ;;  %v592_v10 = vpop.xlane.xlu0 %591 }
 0x335   :  { %v594_v11 = vsub.f32 %v585_v4, %v592_v10 }
 0x337   :  { %v597_v12 = vmul.f32 1.442695, %v594_v11 }
 0x338   :  { %v758_v23 = vpop.permute.xlu0 %757 }
 0x339   :  { %8846 = vpow2.f32 %v597_v12 }
 0x341   :  { %v8845_v13 = vpop.eup %8844 }
 0x342   :  { %v599_v14 = vsel %vm586_vm4, %v8845_v13, 0.0 }
 0x343   :  { %600 = vadd.xlane.f32.xlu1 %v599_v14 }
 0x346   :  { %v8847_v15 = vpop.eup %8846 }
 0x347   :  { %v602_v16 = vsel %vm586_vm4, %v8847_v15, 0.0 }
 0x348   :  { %603 = vadd.xlane.f32.xlu1 %v602_v16 }
 0x359   :  { %833 = vrot.lane.b32.xlu1 %v9288_v60, %s9122_s2 }
 0x3cc   :  { %v601_v19 = vpop.xlane.xlu1 %600 }
 0x3cd   :  { %8848 = vrcp.f32 %v601_v19 }
 0x3d1   :  { %v604_v20 = vpop.xlane.xlu1 %603 }
 0x3d2   :  { %8850 = vrcp.f32 %v604_v20 }
 0x3d5   :  { %v834_v26 = vpop.permute.xlu1 %833 }
 0x3da   :  { %v8849_v21 = vpop.eup %8848 }
 0x3db   :  { %v606_v22 = vmul.f32 %v8849_v21, %v8845_v13 }
 0x3dd   :  { %8272 = vmatmul.mubr.msk.f32.vlgmr.msra.gmra.mxu0 %vm586_vm4, %v606_v22 }
 0x3de   :  { %8280 = vmatpush3.xpose.msk.msra.mxu0 %vm431_vm3, %v758_v23  ;;  %8281 = vmatprep.mubr.msk.f32.mxu0 %vm9121_vm2, %v9120_v51 }
 0x3df   :  { %v8851_v24 = vpop.eup %8850  ;;  %8289 = vmatprep.subr.mxu0 %v9120_v51 }
 0x3e0   :  { %v608_v25 = vmul.f32 %v8851_v24, %v8847_v15 }
 0x3e1   :  { %8282 = vmatmul.mubr.msk.f32.vlgmr.msra.gmra.mxu0 %vm431_vm3, %v756_v18 }
 0x3e2   :  { %8277 = vmatmul.mubr.msk.f32.vlgmr.msra.gmra.mxu1 %vm586_vm4, %v608_v25  ;;  %8291 = vmatprep.mubr.msk.f32.mxu0 %vm9121_vm2, %v9120_v51 }
 0x3e3   :  { %8285 = vmatpush3.xpose.msk.msra.mxu1 %vm431_vm3, %v836_v17  ;;  %8286 = vmatprep.mubr.msk.f32.mxu1 %vm9121_vm2, %v9120_v51 }
 0x3e4   :  { %8294 = vmatprep.subr.mxu1 %v9120_v51 }
 0x3e6   :  { %8287 = vmatmul.mubr.msk.f32.vlgmr.msra.gmra.mxu1 %vm431_vm3, %v834_v26 }
 0x3e7   :  { %8296 = vmatprep.mubr.msk.f32.mxu1 %vm9121_vm2, %v9120_v51 }
 0x49d   :  { %v9338_v27 = vpop.f32.mrf.mxu0 }
 0x49f   :  { %v8273_v28 = vpop.f32.mrf.mxu0 }
 0x4a1   :  { %v829_v29 = vpop.f32.mrf.mxu0 }
 0x4a2   :  { %v9340_v30 = vpop.f32.mrf.mxu1  ;;  %v911_v31 = vmul.f32 0.25, %v829_v29 }
 0x4a3   :  { %v8283_v32 = vpop.f32.mrf.mxu0 }
 0x4a4   :  { %v8278_v33 = vpop.f32.mrf.mxu1  ;;  %v913_v34 = vsel %vm586_vm4, %v911_v31, -inf }
 0x4a5   :  { %914 = vmax.xlane.f32.xlu0 %v913_v34 }
 0x4a6   :  { %v907_v35 = vpop.f32.mrf.mxu1 }
 0x4a7   :  { %v912_v36 = vmul.f32 0.25, %v907_v35 }
 0x4a8   :  { %v8288_v37 = vpop.f32.mrf.mxu1 }
 0x4a9   :  { %v916_v38 = vsel %vm586_vm4, %v912_v36, -inf }
 0x4aa   :  { %917 = vmax.xlane.f32.xlu1 %v916_v38 }
 0x4bb   :  { %1013 = vrot.lane.b32.xlu1 %v9282_v58, %s9122_s2  ;;  %936 = vrot.lane.b32.xlu0 %v9291_v61, %s9122_s2 }
 0x4bf   :  { %1091 = vrot.lane.b32.xlu1 %v9284_v59, %s9123_s21 }
 0x4c3   :  { %1169 = vrot.lane.b32.xlu1 %v9293_v62, %s9123_s21 }
 0x4c7   :  { %1167 = vrot.lane.b32.xlu1 %v9288_v60, %s9123_s21 }
 0x52e   :  { %v915_v39 = vpop.xlane.xlu0 %914 }
 0x52f   :  { %v919_v40 = vsub.f32 %v911_v31, %v915_v39 }
 0x531   :  { %v921_v41 = vmul.f32 1.442695, %v919_v40 }
 0x532   :  { %v937_v42 = vpop.permute.xlu0 %936 }
 0x533   :  { %8852 = vpow2.f32 %v921_v41  ;;  %v918_v43 = vpop.xlane.xlu1 %917  ;;  %8290 = vmatpush3.msra.mxu0 %v937_v42 }
 0x534   :  { %v920_v44 = vsub.f32 %v912_v36, %v918_v43  ;;  %8299 = vmatprep.subr.mxu0 %v9120_v51 }
 0x536   :  { %v923_v45 = vmul.f32 1.442695, %v920_v44 }
 0x537   :  { %v1014_v46 = vpop.permute.xlu1 %1013 }
 0x538   :  { %8854 = vpow2.f32 %v923_v45  ;;  %8295 = vmatpush3.msra.mxu1 %v1014_v46 }
 0x539   :  { %8304 = vmatprep.subr.mxu1 %v9120_v51 }
 0x53b   :  { %v1092_v54 = vpop.permute.xlu1 %1091 }
 0x53f   :  { %v1170_v2 = vpop.permute.xlu1 %1169 }
 0x540   :  { %v8853_v47 = vpop.eup %8852 }
 0x541   :  { %v925_v48 = vsel %vm586_vm4, %v8853_v47, 0.0 }
 0x542   :  { %926 = vadd.xlane.f32.xlu0 %v925_v48 }
 0x543   :  { %v1168_v5 = vpop.permute.xlu1 %1167 }
 0x545   :  { %v8855_v49 = vpop.eup %8854 }
 0x546   :  { %v928_v50 = vsel %vm586_vm4, %v8855_v49, 0.0 }
 0x547   :  { %929 = vadd.xlane.f32.xlu0 %v928_v50 }
 0x55d   :  { %1089 = vrot.lane.b32.xlu0 %v9280_v57, %s9123_s21 }
 0x5cb   :  { %v927_v52 = vpop.xlane.xlu0 %926 }
 0x5cc   :  { %8856 = vrcp.f32 %v927_v52 }
 0x5d0   :  { %v930_v53 = vpop.xlane.xlu0 %929 }
 0x5d1   :  { %8858 = vrcp.f32 %v930_v53 }
 0x5d4   :  { %v1090_v3 = vpop.permute.xlu0 %1089 }
 0x5d9   :  { %v8857_v63 = vpop.eup %8856 }
 0x5da   :  { %v932_v0 = vmul.f32 %v8857_v63, %v8853_v47 }
 0x5dc   :  { %8292 = vmatmul.mubr.msk.f32.vlgmr.msra.gmra.mxu0 %vm586_vm4, %v932_v0 }
 0x5dd   :  { %8300 = vmatpush3.xpose.msk.msra.mxu0 %vm431_vm3, %v1092_v54  ;;  %8301 = vmatprep.mubr.msk.f32.mxu0 %vm9121_vm2, %v9120_v51 }
 0x5de   :  { %v8859_v1 = vpop.eup %8858  ;;  %8309 = vmatprep.subr.mxu0 %v9120_v51 }
 0x5df   :  { %v934_v4 = vmul.f32 %v8859_v1, %v8855_v49 }
 0x5e0   :  { %8302 = vmatmul.mubr.msk.f32.vlgmr.msra.gmra.mxu0 %vm431_vm3, %v1090_v3 }
 0x5e1   :  { %8297 = vmatmul.mubr.msk.f32.vlgmr.msra.gmra.mxu1 %vm586_vm4, %v934_v4  ;;  %8311 = vmatprep.mubr.msk.f32.mxu0 %vm9121_vm2, %v9120_v51 }
 0x5e2   :  { %8305 = vmatpush3.xpose.msk.msra.mxu1 %vm431_vm3, %v1170_v2  ;;  %8306 = vmatprep.mubr.msk.f32.mxu1 %vm9121_vm2, %v9120_v51 }
 0x5e3   :  { %8314 = vmatprep.subr.mxu1 %v9120_v51 }
 0x5e5   :  { %8307 = vmatmul.mubr.msk.f32.vlgmr.msra.gmra.mxu1 %vm431_vm3, %v1168_v5 }
 0x5e6   :  { %8316 = vmatprep.mubr.msk.f32.mxu1 %vm9121_vm2, %v9120_v51 }
 0x69c   :  { %v9376_v6 = vpop.f32.mrf.mxu0 }
 0x69e   :  { %v8293_v7 = vpop.f32.mrf.mxu0 }
 0x6a0   :  { %v1163_v8 = vpop.f32.mrf.mxu0 }
 0x6a1   :  { %v9378_v9 = vpop.f32.mrf.mxu1  ;;  %v1245_v10 = vmul.f32 0.25, %v1163_v8 }
 0x6a2   :  { %v8774_v11 = vpack.i.bf16 %v9378_v9, %v9376_v6  ;;  %v8303_v12 = vpop.f32.mrf.mxu0 }
 0x6a3   :  { %v8298_v13 = vpop.f32.mrf.mxu1  ;;  %v1247_v14 = vsel %vm586_vm4, %v1245_v10, -inf }
 0x6a4   :  { %1248 = vmax.xlane.f32.xlu0 %v1247_v14 }
 0x6a5   :  { %v1241_v15 = vpop.f32.mrf.mxu1 }
 0x6a6   :  { %v1246_v16 = vmul.f32 0.25, %v1241_v15 }
 0x6a7   :  { %v8308_v17 = vpop.f32.mrf.mxu1 }
 0x6a8   :  { %v1250_v18 = vsel %vm586_vm4, %v1246_v16, -inf }
 0x6a9   :  { %1251 = vmax.xlane.f32.xlu1 %v1250_v18 }
 0x6ba   :  { %1345 = vrot.lane.b32.xlu1 %v9282_v58, %s9123_s21  ;;  %1269 = vrot.lane.b32.xlu0 %v9291_v61, %s9123_s21 }
 0x6be   :  { %1423 = vrot.lane.b32.xlu1 %v9284_v59, %s9124_s22 }
 0x6c2   :  { %1501 = vrot.lane.b32.xlu1 %v9293_v62, %s9124_s22 }
 0x6c6   :  { %1499 = vrot.lane.b32.xlu1 %v9288_v60, %s9124_s22 }
 0x72d   :  { %v1249_v19 = vpop.xlane.xlu0 %1248 }
 0x72e   :  { %v1253_v20 = vsub.f32 %v1245_v10, %v1249_v19 }
 0x730   :  { %v1255_v21 = vmul.f32 1.442695, %v1253_v20 }
 0x731   :  { %v1270_v22 = vpop.permute.xlu0 %1269 }
 0x732   :  { %8860 = vpow2.f32 %v1255_v21  ;;  %v1252_v23 = vpop.xlane.xlu1 %1251  ;;  %8310 = vmatpush3.msra.mxu0 %v1270_v22 }
 0x733   :  { %v1254_v24 = vsub.f32 %v1246_v16, %v1252_v23  ;;  %8319 = vmatprep.subr.mxu0 %v9120_v51 }
 0x735   :  { %v1257_v25 = vmul.f32 1.442695, %v1254_v24 }
 0x736   :  { %v1346_v26 = vpop.permute.xlu1 %1345 }
 0x737   :  { %8862 = vpow2.f32 %v1257_v25  ;;  %8315 = vmatpush3.msra.mxu1 %v1346_v26 }
 0x738   :  { %8324 = vmatprep.subr.mxu1 %v9120_v51 }
 0x73a   :  { %v1424_v35 = vpop.permute.xlu1 %1423 }
 0x73e   :  { %v1502_v39 = vpop.permute.xlu1 %1501 }
 0x73f   :  { %v8861_v28 = vpop.eup %8860 }
 0x740   :  { %v1259_v29 = vsel %vm586_vm4, %v8861_v28, 0.0 }
 0x741   :  { %1260 = vadd.xlane.f32.xlu0 %v1259_v29 }
 0x742   :  { %v1500_v42 = vpop.permute.xlu1 %1499 }
 0x744   :  { %v8863_v31 = vpop.eup %8862 }
 0x745   :  { %v1262_v32 = vsel %vm586_vm4, %v8863_v31, 0.0 }
 0x746   :  { %1263 = vadd.xlane.f32.xlu0 %v1262_v32 }
 0x75c   :  { %1421 = vrot.lane.b32.xlu0 %v9280_v57, %s9124_s22 }
 0x7ca   :  { %v1261_v33 = vpop.xlane.xlu0 %1260 }
 0x7cb   :  { %8864 = vrcp.f32 %v1261_v33 }
 0x7cf   :  { %v1264_v34 = vpop.xlane.xlu0 %1263 }
 0x7d0   :  { %8866 = vrcp.f32 %v1264_v34 }
 0x7d3   :  { %v1422_v40 = vpop.permute.xlu0 %1421 }
 0x7d8   :  { %v8865_v36 = vpop.eup %8864 }
 0x7d9   :  { %v1266_v37 = vmul.f32 %v8865_v36, %v8861_v28 }
 0x7db   :  { %8312 = vmatmul.mubr.msk.f32.vlgmr.msra.gmra.mxu0 %vm586_vm4, %v1266_v37 }
 0x7dc   :  { %8320 = vmatpush3.xpose.msk.msra.mxu0 %vm431_vm3, %v1424_v35  ;;  %8321 = vmatprep.mubr.msk.f32.mxu0 %vm9121_vm2, %v9120_v51 }
 0x7dd   :  { %v8867_v38 = vpop.eup %8866  ;;  %8329 = vmatprep.subr.mxu0 %v9120_v51 }
 0x7de   :  { %v1268_v41 = vmul.f32 %v8867_v38, %v8863_v31 }
 0x7df   :  { %8322 = vmatmul.mubr.msk.f32.vlgmr.msra.gmra.mxu0 %vm431_vm3, %v1422_v40 }
 0x7e0   :  { %8317 = vmatmul.mubr.msk.f32.vlgmr.msra.gmra.mxu1 %vm586_vm4, %v1268_v41  ;;  %8331 = vmatprep.mubr.msk.f32.mxu0 %vm9121_vm2, %v9120_v51 }
 0x7e1   :  { %8325 = vmatpush3.xpose.msk.msra.mxu1 %vm431_vm3, %v1502_v39  ;;  %8326 = vmatprep.mubr.msk.f32.mxu1 %vm9121_vm2, %v9120_v51 }
 0x7e2   :  { %8334 = vmatprep.subr.mxu1 %v9120_v51 }
 0x7e4   :  { %8327 = vmatmul.mubr.msk.f32.vlgmr.msra.gmra.mxu1 %vm431_vm3, %v1500_v42 }
 0x7e5   :  { %8336 = vmatprep.mubr.msk.f32.mxu1 %vm9121_vm2, %v9120_v51 }
 0x89b   :  { %v9416_v43 = vpop.f32.mrf.mxu0 }
 0x89d   :  { %v8313_v44 = vpop.f32.mrf.mxu0 }
 0x89f   :  { %v1495_v45 = vpop.f32.mrf.mxu0 }
 0x8a0   :  { %v9418_v46 = vpop.f32.mrf.mxu1  ;;  %v1577_v47 = vmul.f32 0.25, %v1495_v45 }
 0x8a1   :  { %v8779_v48 = vpack.i.bf16 %v9418_v46, %v9416_v43  ;;  %v8323_v49 = vpop.f32.mrf.mxu0 }
 0x8a2   :  { %v8318_v50 = vpop.f32.mrf.mxu1  ;;  %v1579_v52 = vsel %vm586_vm4, %v1577_v47, -inf }
 0x8a3   :  { %1580 = vmax.xlane.f32.xlu0 %v1579_v52 }
 0x8a4   :  { %v1573_v53 = vpop.f32.mrf.mxu1 }
 0x8a5   :  { %v1578_v54 = vmul.f32 0.25, %v1573_v53 }
 0x8a6   :  { %v8328_v63 = vpop.f32.mrf.mxu1 }
 0x8a7   :  { %v1582_v0 = vsel %vm586_vm4, %v1578_v54, -inf }
 0x8a8   :  { %1583 = vmax.xlane.f32.xlu1 %v1582_v0 }
 0x8b9   :  { %1677 = vrot.lane.b32.xlu1 %v9282_v58, %s9124_s22  ;;  %1601 = vrot.lane.b32.xlu0 %v9291_v61, %s9124_s22 }
 0x8bd   :  { %1755 = vrot.lane.b32.xlu1 %v9284_v59, %s9125_s3 }
 0x8c1   :  { %1833 = vrot.lane.b32.xlu1 %v9293_v62, %s9125_s3 }
 0x8c5   :  { %1831 = vrot.lane.b32.xlu1 %v9288_v60, %s9125_s3 }
 0x92c   :  { %v1581_v1 = vpop.xlane.xlu0 %1580 }
 0x92d   :  { %v1585_v2 = vsub.f32 %v1577_v47, %v1581_v1 }
 0x92f   :  { %v1587_v3 = vmul.f32 1.442695, %v1585_v2 }
 0x930   :  { %v1602_v4 = vpop.permute.xlu0 %1601 }
 0x931   :  { %8868 = vpow2.f32 %v1587_v3  ;;  %v1584_v5 = vpop.xlane.xlu1 %1583  ;;  %8330 = vmatpush3.msra.mxu0 %v1602_v4 }
 0x932   :  { %v1586_v7 = vsub.f32 %v1578_v54, %v1584_v5  ;;  %8339 = vmatprep.subr.mxu0 %v9120_v51 }
 0x934   :  { %v1589_v8 = vmul.f32 1.442695, %v1586_v7 }
 0x935   :  { %v1678_v10 = vpop.permute.xlu1 %1677 }
 0x936   :  { %8870 = vpow2.f32 %v1589_v8  ;;  %8335 = vmatpush3.msra.mxu1 %v1678_v10 }
 0x937   :  { %8344 = vmatprep.subr.mxu1 %v9120_v51 }
 0x939   :  { %v1756_v18 = vpop.permute.xlu1 %1755 }
 0x93d   :  { %v1834_v22 = vpop.permute.xlu1 %1833 }
 0x93e   :  { %v8869_v12 = vpop.eup %8868 }
 0x93f   :  { %v1591_v13 = vsel %vm586_vm4, %v8869_v12, 0.0 }
 0x940   :  { %1592 = vadd.xlane.f32.xlu0 %v1591_v13 }
 0x941   :  { %v1832_v25 = vpop.permute.xlu1 %1831 }
 0x943   :  { %v8871_v14 = vpop.eup %8870 }
 0x944   :  { %v1594_v15 = vsel %vm586_vm4, %v8871_v14, 0.0 }
 0x945   :  { %1595 = vadd.xlane.f32.xlu0 %v1594_v15 }
 0x95b   :  { %1753 = vrot.lane.b32.xlu0 %v9280_v57, %s9125_s3 }
 0x9c9   :  { %v1593_v16 = vpop.xlane.xlu0 %1592 }
 0x9ca   :  { %8872 = vrcp.f32 %v1593_v16 }
 0x9ce   :  { %v1596_v17 = vpop.xlane.xlu0 %1595 }
 0x9cf   :  { %8874 = vrcp.f32 %v1596_v17 }
 0x9d2   :  { %v1754_v23 = vpop.permute.xlu0 %1753 }
 0x9d7   :  { %v8873_v19 = vpop.eup %8872 }
 0x9d8   :  { %v1598_v20 = vmul.f32 %v8873_v19, %v8869_v12 }
 0x9da   :  { %8332 = vmatmul.mubr.msk.f32.vlgmr.msra.gmra.mxu0 %vm586_vm4, %v1598_v20 }
 0x9db   :  { %8340 = vmatpush3.xpose.msk.msra.mxu0 %vm431_vm3, %v1756_v18  ;;  %8341 = vmatprep.mubr.msk.f32.mxu0 %vm9121_vm2, %v9120_v51 }
 0x9dc   :  { %v8875_v21 = vpop.eup %8874  ;;  %8349 = vmatprep.subr.mxu0 %v9120_v51 }
 0x9dd   :  { %v1600_v24 = vmul.f32 %v8875_v21, %v8871_v14 }
 0x9de   :  { %8342 = vmatmul.mubr.msk.f32.vlgmr.msra.gmra.mxu0 %vm431_vm3, %v1754_v23 }
 0x9df   :  { %8337 = vmatmul.mubr.msk.f32.vlgmr.msra.gmra.mxu1 %vm586_vm4, %v1600_v24  ;;  %8351 = vmatprep.mubr.msk.f32.mxu0 %vm9121_vm2, %v9120_v51 }
 0x9e0   :  { %8345 = vmatpush3.xpose.msk.msra.mxu1 %vm431_vm3, %v1834_v22  ;;  %8346 = vmatprep.mubr.msk.f32.mxu1 %vm9121_vm2, %v9120_v51 }
 0x9e1   :  { %8354 = vmatprep.subr.mxu1 %v9120_v51 }
 0x9e3   :  { %8347 = vmatmul.mubr.msk.f32.vlgmr.msra.gmra.mxu1 %vm431_vm3, %v1832_v25 }
 0x9e4   :  { %8356 = vmatprep.mubr.msk.f32.mxu1 %vm9121_vm2, %v9120_v51 }
 0xa9a   :  { %v9456_v26 = vpop.f32.mrf.mxu0 }
 0xa9c   :  { %v8333_v28 = vpop.f32.mrf.mxu0 }
 0xa9e   :  { %v1827_v29 = vpop.f32.mrf.mxu0 }
 0xa9f   :  { %v9458_v31 = vpop.f32.mrf.mxu1  ;;  %v1909_v32 = vmul.f32 0.25, %v1827_v29 }
 0xaa0   :  { %v8784_v33 = vpack.i.bf16 %v9458_v31, %v9456_v26  ;;  %v8343_v34 = vpop.f32.mrf.mxu0  ;;  %v3172_v26 = vld [vmem:[#allocation4 + $0x78] sm:$0xff]  ;;  %v3171_v31 = vld [vmem:[#allocation4 + $0x70] sm:$0xff] }
 0xaa1   :  { %v8338_v35 = vpop.f32.mrf.mxu1  ;;  %v1911_v36 = vsel %vm586_vm4, %v1909_v32, -inf }
 0xaa2   :  { %1912 = vmax.xlane.f32.xlu0 %v1911_v36 }
 0xaa3   :  { %v1905_v37 = vpop.f32.mrf.mxu1 }
 0xaa4   :  { %v1910_v38 = vmul.f32 0.25, %v1905_v37 }
 0xaa5   :  { %v8348_v39 = vpop.f32.mrf.mxu1 }
 0xaa6   :  { %v1914_v40 = vsel %vm586_vm4, %v1910_v38, -inf }
 0xaa7   :  { %1915 = vmax.xlane.f32.xlu1 %v1914_v40 }
 0xab8   :  { %2009 = vrot.lane.b32.xlu1 %v9282_v58, %s9125_s3  ;;  %1933 = vrot.lane.b32.xlu0 %v9291_v61, %s9125_s3 }
 0xabc   :  { %2087 = vrot.lane.b32.xlu1 %v9284_v59, %s9126_s1 }
 0xac0   :  { %2165 = vrot.lane.b32.xlu1 %v9293_v62, %s9126_s1 }
 0xac4   :  { %2163 = vrot.lane.b32.xlu1 %v9288_v60, %s9126_s1 }
 0xb2b   :  { %v1913_v41 = vpop.xlane.xlu0 %1912 }
 0xb2c   :  { %v1917_v42 = vsub.f32 %v1909_v32, %v1913_v41 }
 0xb2e   :  { %v1919_v44 = vmul.f32 1.442695, %v1917_v42 }
 0xb2f   :  { %v1934_v45 = vpop.permute.xlu0 %1933 }
 0xb30   :  { %8876 = vpow2.f32 %v1919_v44  ;;  %v1916_v47 = vpop.xlane.xlu1 %1915  ;;  %8350 = vmatpush3.msra.mxu0 %v1934_v45 }
 0xb31   :  { %v1918_v49 = vsub.f32 %v1910_v38, %v1916_v47  ;;  %8359 = vmatprep.subr.mxu0 %v9120_v51 }
 0xb33   :  { %v1921_v50 = vmul.f32 1.442695, %v1918_v49 }
 0xb34   :  { %v2010_v52 = vpop.permute.xlu1 %2009 }
 0xb35   :  { %8878 = vpow2.f32 %v1921_v50  ;;  %8355 = vmatpush3.msra.mxu1 %v2010_v52 }
 0xb36   :  { %8364 = vmatprep.subr.mxu1 %v9120_v51 }
 0xb38   :  { %v2088_v3 = vpop.permute.xlu1 %2087 }
 0xb3c   :  { %v2166_v8 = vpop.permute.xlu1 %2165 }
 0xb3d   :  { %v8877_v53 = vpop.eup %8876 }
 0xb3e   :  { %v1923_v54 = vsel %vm586_vm4, %v8877_v53, 0.0 }
 0xb3f   :  { %1924 = vadd.xlane.f32.xlu0 %v1923_v54 }
 0xb40   :  { %v2164_v13 = vpop.permute.xlu1 %2163 }
 0xb42   :  { %v8879_v63 = vpop.eup %8878 }
 0xb43   :  { %v1926_v0 = vsel %vm586_vm4, %v8879_v63, 0.0 }
 0xb44   :  { %1927 = vadd.xlane.f32.xlu0 %v1926_v0 }
 0xb5a   :  { %2085 = vrot.lane.b32.xlu0 %v9280_v57, %s9126_s1 }
 0xbc8   :  { %v1925_v1 = vpop.xlane.xlu0 %1924 }
 0xbc9   :  { %8880 = vrcp.f32 %v1925_v1 }
 0xbcd   :  { %v1928_v2 = vpop.xlane.xlu0 %1927 }
 0xbce   :  { %8882 = vrcp.f32 %v1928_v2 }
 0xbd1   :  { %v2086_v10 = vpop.permute.xlu0 %2085 }
 0xbd6   :  { %v8881_v4 = vpop.eup %8880 }
 0xbd7   :  { %v1930_v5 = vmul.f32 %v8881_v4, %v8877_v53 }
 0xbd9   :  { %8352 = vmatmul.mubr.msk.f32.vlgmr.msra.gmra.mxu0 %vm586_vm4, %v1930_v5 }
 0xbda   :  { %8360 = vmatpush3.xpose.msk.msra.mxu0 %vm431_vm3, %v2088_v3  ;;  %8361 = vmatprep.mubr.msk.f32.mxu0 %vm9121_vm2, %v9120_v51 }
 0xbdb   :  { %v8883_v7 = vpop.eup %8882  ;;  %8369 = vmatprep.subr.mxu0 %v9120_v51 }
 0xbdc   :  { %v1932_v12 = vmul.f32 %v8883_v7, %v8879_v63 }
 0xbdd   :  { %8362 = vmatmul.mubr.msk.f32.vlgmr.msra.gmra.mxu0 %vm431_vm3, %v2086_v10 }
 0xbde   :  { %8357 = vmatmul.mubr.msk.f32.vlgmr.msra.gmra.mxu1 %vm586_vm4, %v1932_v12  ;;  %8371 = vmatprep.mubr.msk.f32.mxu0 %vm9121_vm2, %v9120_v51 }
 0xbdf   :  { %8365 = vmatpush3.xpose.msk.msra.mxu1 %vm431_vm3, %v2166_v8  ;;  %8366 = vmatprep.mubr.msk.f32.mxu1 %vm9121_vm2, %v9120_v51 }
 0xbe0   :  { %8374 = vmatprep.subr.mxu1 %v9120_v51 }
 0xbe2   :  { %8367 = vmatmul.mubr.msk.f32.vlgmr.msra.gmra.mxu1 %vm431_vm3, %v2164_v13 }
 0xbe3   :  { %8376 = vmatprep.mubr.msk.f32.mxu1 %vm9121_vm2, %v9120_v51 }
 0xc99   :  { %v9496_v14 = vpop.f32.mrf.mxu0 }
 0xc9b   :  { %v8353_v15 = vpop.f32.mrf.mxu0 }
 0xc9d   :  { %v2159_v16 = vpop.f32.mrf.mxu0 }
 0xc9e   :  { %v9498_v17 = vpop.f32.mrf.mxu1  ;;  %v2241_v18 = vmul.f32 0.25, %v2159_v16 }
 0xc9f   :  { %v8789_v19 = vpack.i.bf16 %v9498_v17, %v9496_v14  ;;  %v8363_v20 = vpop.f32.mrf.mxu0 }
 0xca0   :  { %v8358_v21 = vpop.f32.mrf.mxu1  ;;  %v2243_v22 = vsel %vm586_vm4, %v2241_v18, -inf }
 0xca1   :  { %2244 = vmax.xlane.f32.xlu0 %v2243_v22 }
 0xca2   :  { %v2237_v23 = vpop.f32.mrf.mxu1 }
 0xca3   :  { %v2242_v24 = vmul.f32 0.25, %v2237_v23 }
 0xca4   :  { %v8368_v25 = vpop.f32.mrf.mxu1 }
 0xca5   :  { %v2246_v28 = vsel %vm586_vm4, %v2242_v24, -inf }
 0xca6   :  { %2247 = vmax.xlane.f32.xlu1 %v2246_v28 }
 0xcb7   :  { %2341 = vrot.lane.b32.xlu1 %v9282_v58, %s9126_s1  ;;  %2265 = vrot.lane.b32.xlu0 %v9291_v61, %s9126_s1 }
 0xcbb   :  { %2419 = vrot.lane.b32.xlu1 %v9284_v59, %s9117_s18 }
 0xcbf   :  { %2497 = vrot.lane.b32.xlu1 %v9293_v62, %s9117_s18 }
 0xcc3   :  { %2495 = vrot.lane.b32.xlu1 %v9288_v60, %s9117_s18 }
 0xd2a   :  { %v2245_v29 = vpop.xlane.xlu0 %2244 }
 0xd2b   :  { %v2249_v32 = vsub.f32 %v2241_v18, %v2245_v29 }
 0xd2d   :  { %v2251_v34 = vmul.f32 1.442695, %v2249_v32 }
 0xd2e   :  { %v2266_v35 = vpop.permute.xlu0 %2265 }
 0xd2f   :  { %8884 = vpow2.f32 %v2251_v34  ;;  %v2248_v36 = vpop.xlane.xlu1 %2247  ;;  %8370 = vmatpush3.msra.mxu0 %v2266_v35 }
 0xd30   :  { %v2250_v37 = vsub.f32 %v2242_v24, %v2248_v36  ;;  %8379 = vmatprep.subr.mxu0 %v9120_v51 }
 0xd32   :  { %v2253_v38 = vmul.f32 1.442695, %v2250_v37 }
 0xd33   :  { %v2342_v39 = vpop.permute.xlu1 %2341 }
 0xd34   :  { %8886 = vpow2.f32 %v2253_v38  ;;  %8375 = vmatpush3.msra.mxu1 %v2342_v39 }
 0xd35   :  { %8384 = vmatprep.subr.mxu1 %v9120_v51 }
 0xd37   :  { %v2420_v49 = vpop.permute.xlu1 %2419 }
 0xd3b   :  { %v2498_v54 = vpop.permute.xlu1 %2497 }
 0xd3c   :  { %v8885_v40 = vpop.eup %8884 }
 0xd3d   :  { %v2255_v41 = vsel %vm586_vm4, %v8885_v40, 0.0 }
 0xd3e   :  { %2256 = vadd.xlane.f32.xlu0 %v2255_v41 }
 0xd3f   :  { %v2496_v1 = vpop.permute.xlu1 %2495 }
 0xd41   :  { %v8887_v42 = vpop.eup %8886 }
 0xd42   :  { %v2258_v44 = vsel %vm586_vm4, %v8887_v42, 0.0 }
 0xd43   :  { %2259 = vadd.xlane.f32.xlu0 %v2258_v44 }
 0xd59   :  { %2417 = vrot.lane.b32.xlu0 %v9280_v57, %s9117_s18 }
 0xdc7   :  { %v2257_v45 = vpop.xlane.xlu0 %2256 }
 0xdc8   :  { %8888 = vrcp.f32 %v2257_v45 }
 0xdcc   :  { %v2260_v47 = vpop.xlane.xlu0 %2259 }
 0xdcd   :  { %8890 = vrcp.f32 %v2260_v47 }
 0xdd0   :  { %v2418_v63 = vpop.permute.xlu0 %2417 }
 0xdd5   :  { %v8889_v50 = vpop.eup %8888 }
 0xdd6   :  { %v2262_v52 = vmul.f32 %v8889_v50, %v8885_v40 }
 0xdd8   :  { %8372 = vmatmul.mubr.msk.f32.vlgmr.msra.gmra.mxu0 %vm586_vm4, %v2262_v52 }
 0xdd9   :  { %8380 = vmatpush3.xpose.msk.msra.mxu0 %vm431_vm3, %v2420_v49  ;;  %8381 = vmatprep.mubr.msk.f32.mxu0 %vm9121_vm2, %v9120_v51 }
 0xdda   :  { %v8891_v53 = vpop.eup %8890  ;;  %8389 = vmatprep.subr.mxu0 %v9120_v51 }
 0xddb   :  { %v2264_v0 = vmul.f32 %v8891_v53, %v8887_v42 }
 0xddc   :  { %8382 = vmatmul.mubr.msk.f32.vlgmr.msra.gmra.mxu0 %vm431_vm3, %v2418_v63 }
 0xddd   :  { %8377 = vmatmul.mubr.msk.f32.vlgmr.msra.gmra.mxu1 %vm586_vm4, %v2264_v0  ;;  %8391 = vmatprep.mubr.msk.f32.mxu0 %vm9121_vm2, %v9120_v51 }
 0xdde   :  { %8385 = vmatpush3.xpose.msk.msra.mxu1 %vm431_vm3, %v2498_v54  ;;  %8386 = vmatprep.mubr.msk.f32.mxu1 %vm9121_vm2, %v9120_v51 }
 0xddf   :  { %8394 = vmatprep.subr.mxu1 %v9120_v51 }
 0xde1   :  { %8387 = vmatmul.mubr.msk.f32.vlgmr.msra.gmra.mxu1 %vm431_vm3, %v2496_v1 }
 0xde2   :  { %8396 = vmatprep.mubr.msk.f32.mxu1 %vm9121_vm2, %v9120_v51 }
 0xe98   :  { %v9536_v2 = vpop.f32.mrf.mxu0 }
 0xe9a   :  { %v8373_v3 = vpop.f32.mrf.mxu0 }
 0xe9c   :  { %v2491_v4 = vpop.f32.mrf.mxu0 }
 0xe9d   :  { %v9538_v5 = vpop.f32.mrf.mxu1  ;;  %v2573_v7 = vmul.f32 0.25, %v2491_v4 }
 0xe9e   :  { %v8794_v8 = vpack.i.bf16 %v9538_v5, %v9536_v2  ;;  %v8383_v10 = vpop.f32.mrf.mxu0  ;;  %v3169_v2 = vld [vmem:[#allocation4 + $0x60] sm:$0xff]  ;;  %v3168_v5 = vld [vmem:[#allocation4 + $0x58] sm:$0xff] }
 0xe9f   :  { %v8378_v12 = vpop.f32.mrf.mxu1  ;;  %v2575_v13 = vsel %vm586_vm4, %v2573_v7, -inf }
 0xea0   :  { %2576 = vmax.xlane.f32.xlu0 %v2575_v13 }
 0xea1   :  { %v2569_v15 = vpop.f32.mrf.mxu1 }
 0xea2   :  { %v2574_v16 = vmul.f32 0.25, %v2569_v15 }
 0xea3   :  { %v8388_v18 = vpop.f32.mrf.mxu1 }
 0xea4   :  { %v2578_v20 = vsel %vm586_vm4, %v2574_v16, -inf }
 0xea5   :  { %2579 = vmax.xlane.f32.xlu1 %v2578_v20 }
 0xeb6   :  { %2673 = vrot.lane.b32.xlu1 %v9282_v58, %s9117_s18  ;;  %2597 = vrot.lane.b32.xlu0 %v9291_v61, %s9117_s18 }
 0xeba   :  { %2751 = vrot.lane.b32.xlu1 %v9284_v59, %s9127_s4 }
 0xebe   :  { %2829 = vrot.lane.b32.xlu1 %v9293_v62, %s9127_s4 }
 0xec2   :  { %2827 = vrot.lane.b32.xlu1 %v9288_v60, %s9127_s4 }
 0xf29   :  { %v2577_v21 = vpop.xlane.xlu0 %2576 }
 0xf2a   :  { %v2581_v22 = vsub.f32 %v2573_v7, %v2577_v21  ;;  %v3166_v21 = vld [vmem:[#allocation4 + $0x48] sm:$0xff] }
 0xf2c   :  { %v2583_v23 = vmul.f32 1.442695, %v2581_v22  ;;  %v3165_v22 = vld [vmem:[#allocation4 + $0x40] sm:$0xff] }
 0xf2d   :  { %v2598_v24 = vpop.permute.xlu0 %2597 }
 0xf2e   :  { %8892 = vpow2.f32 %v2583_v23  ;;  %v2580_v25 = vpop.xlane.xlu1 %2579  ;;  %8390 = vmatpush3.msra.mxu0 %v2598_v24  ;;  %v3164_v23 = vld [vmem:[#allocation4 + $0x38] sm:$0xff]  ;;  %v3163_v24 = vld [vmem:[#allocation4 + $0x30] sm:$0xff] }
 0xf2f   :  { %v2582_v28 = vsub.f32 %v2574_v16, %v2580_v25  ;;  %8399 = vmatprep.subr.mxu0 %v9120_v51  ;;  %v3162_v25 = vld [vmem:[#allocation4 + $0x28] sm:$0xff] }
 0xf31   :  { %v2585_v29 = vmul.f32 1.442695, %v2582_v28  ;;  %v3161_v28 = vld [vmem:[#allocation4 + $0x20] sm:$0xff] }
 0xf32   :  { %v2674_v32 = vpop.permute.xlu1 %2673 }
 0xf33   :  { %8894 = vpow2.f32 %v2585_v29  ;;  %8395 = vmatpush3.msra.mxu1 %v2674_v32  ;;  %v3160_v29 = vld [vmem:[#allocation4 + $0x18] sm:$0xff]  ;;  %v3159_v32 = vld [vmem:[#allocation4 + $0x10] sm:$0xff] }
 0xf34   :  { %8404 = vmatprep.subr.mxu1 %v9120_v51 }
 0xf36   :  { %v2752_v37 = vpop.permute.xlu1 %2751 }
 0xf3a   :  { %v2830_v41 = vpop.permute.xlu1 %2829 }
 0xf3b   :  { %v8893_v59 = vpop.eup %8892 }
 0xf3c   :  { %v2587_v62 = vsel %vm586_vm4, %v8893_v59, 0.0 }
 0xf3d   :  { %2588 = vadd.xlane.f32.xlu0 %v2587_v62  ;;  %v3157_v62 = vld [vmem:[#allocation4] sm:$0xff] }
 0xf3e   :  { %v2828_v44 = vpop.permute.xlu1 %2827 }
 0xf40   :  { %v8895_v60 = vpop.eup %8894 }
 0xf41   :  { %v2590_v34 = vsel %vm586_vm4, %v8895_v60, 0.0 }
 0xf42   :  { %2591 = vadd.xlane.f32.xlu0 %v2590_v34 }
 0xf58   :  { %2749 = vrot.lane.b32.xlu0 %v9280_v57, %s9127_s4 }
 0xfc6   :  { %v2589_v35 = vpop.xlane.xlu0 %2588 }
 0xfc7   :  { %8896 = vrcp.f32 %v2589_v35 }
 0xfcb   :  { %v2592_v36 = vpop.xlane.xlu0 %2591 }
 0xfcc   :  { %8898 = vrcp.f32 %v2592_v36 }
 0xfcf   :  { %v2750_v42 = vpop.permute.xlu0 %2749 }
 0xfd4   :  { %v8897_v38 = vpop.eup %8896 }
 0xfd5   :  { %v2594_v39 = vmul.f32 %v8897_v38, %v8893_v59  ;;  %v3158_v59 = vld [vmem:[#allocation4 + $0x8] sm:$0xff] }
 0xfd7   :  { %8392 = vmatmul.mubr.msk.f32.vlgmr.msra.gmra.mxu0 %vm586_vm4, %v2594_v39 }
 0xfd8   :  { %8400 = vmatpush3.xpose.msk.msra.mxu0 %vm431_vm3, %v2752_v37  ;;  %8401 = vmatprep.mubr.msk.f32.mxu0 %vm9121_vm2, %v9120_v51 }
 0xfd9   :  { %v8899_v40 = vpop.eup %8898  ;;  %8409 = vmatprep.subr.mxu0 %v9120_v51 }
 0xfda   :  { %v2596_v57 = vmul.f32 %v8899_v40, %v8895_v60 }
 0xfdb   :  { %8402 = vmatmul.mubr.msk.f32.vlgmr.msra.gmra.mxu0 %vm431_vm3, %v2750_v42 }
 0xfdc   :  { %8397 = vmatmul.mubr.msk.f32.vlgmr.msra.gmra.mxu1 %vm586_vm4, %v2596_v57  ;;  %8411 = vmatprep.mubr.msk.f32.mxu0 %vm9121_vm2, %v9120_v51 }
 0xfdd   :  { %8405 = vmatpush3.xpose.msk.msra.mxu1 %vm431_vm3, %v2830_v41  ;;  %8406 = vmatprep.mubr.msk.f32.mxu1 %vm9121_vm2, %v9120_v51 }
 0xfde   :  { %8414 = vmatprep.subr.mxu1 %v9120_v51 }
 0xfe0   :  { %8407 = vmatmul.mubr.msk.f32.vlgmr.msra.gmra.mxu1 %vm431_vm3, %v2828_v44 }
 0xfe1   :  { %8416 = vmatprep.mubr.msk.f32.mxu1 %vm9121_vm2, %v9120_v51 }
0x1097   :  { %v2669_v45 = vpop.f32.mrf.mxu0 }
0x1099   :  { %v8393_v47 = vpop.f32.mrf.mxu0 }
0x109b   :  { %v2823_v49 = vpop.f32.mrf.mxu0 }
0x109c   :  { %v2745_v50 = vpop.f32.mrf.mxu1  ;;  %v2905_v52 = vmul.f32 0.25, %v2823_v49 }
0x109d   :  { %v8403_v53 = vpop.f32.mrf.mxu0  ;;  %v8799_v7 = vpack.i.bf16 %v2745_v50, %v2669_v45 }
0x109e   :  { %v8398_v54 = vpop.f32.mrf.mxu1  ;;  %v2907_v63 = vsel %vm586_vm4, %v2905_v52, -inf }
0x109f   :  { %2908 = vmax.xlane.f32.xlu0 %v2907_v63 }
0x10a0   :  { %v2901_v0 = vpop.f32.mrf.mxu1 }
0x10a1   :  { %v2906_v1 = vmul.f32 0.25, %v2901_v0 }
0x10a2   :  { %v8408_v3 = vpop.f32.mrf.mxu1 }
0x10a3   :  { %v2910_v4 = vsel %vm586_vm4, %v2906_v1, -inf }
0x10a4   :  { %2911 = vmax.xlane.f32.xlu1 %v2910_v4 }
0x10b5   :  { %3005 = vrot.lane.b32.xlu1 %v9282_v58, %s9127_s4 }
0x10b9   :  { %8775 = vrot.lane.b32.xlu1 %v8774_v11, %s9127_s4 }
0x10bd   :  { %8780 = vrot.lane.b32.xlu1 %v8779_v48, %s9117_s18 }
0x10c1   :  { %8790 = vrot.lane.b32.xlu1 %v8789_v19, %s9125_s3 }
0x10c5   :  { %8800 = vrot.lane.b32.xlu1 %v8799_v7, %s9123_s21 }
0x1128   :  { %v2909_v10 = vpop.xlane.xlu0 %2908 }
0x1129   :  { %v2913_v58 = vsub.f32 %v2905_v52, %v2909_v10 }
0x112b   :  { %v2915_v12 = vmul.f32 1.442695, %v2913_v58 }
0x112d   :  { %8900 = vpow2.f32 %v2915_v12  ;;  %v2912_v13 = vpop.xlane.xlu1 %2911 }
0x112e   :  { %v2914_v6 = vsub.f32 %v2906_v1, %v2912_v13 }
0x1130   :  { %v2917_v9 = vmul.f32 1.442695, %v2914_v6 }
0x1131   :  { %v3006_v11 = vpop.permute.xlu1 %3005 }
0x1132   :  { %8902 = vpow2.f32 %v2917_v9  ;;  %8415 = vmatpush3.msra.mxu1 %v3006_v11 }
0x1135   :  { %v8776_v38 = vpop.permute.xlu1 %8775 }
0x1136   :  { %v8778_v41 = vunpack.i.h.bf16 %v8776_v38  ;;  %v8777_v42 = vunpack.i.l.bf16 %v8776_v38  ;;  %v3329_v38 = vld [vmem:[#allocation6 + $0x120] sm:$0xff] }
0x1138   :  { %v3138_v52 = vsel %vm431_vm3, %v9340_v30, %v8778_v41  ;;  %v3137_v53 = vsel %vm431_vm3, %v9338_v27, %v8777_v42  ;;  %v3328_v41 = vld [vmem:[#allocation6 + $0x118] sm:$0xff]  ;;  %v3325_v42 = vld [vmem:[#allocation6 + $0x100] sm:$0xff] }
0x1139   :  { %v8781_v39 = vpop.permute.xlu1 %8780 }
0x113a   :  { %v8901_v43 = vpop.eup %8900  ;;  %v8783_v57 = vunpack.i.h.bf16 %v8781_v39  ;;  %v8782_v44 = vunpack.i.l.bf16 %v8781_v39  ;;  %v3331_v39 = vld [vmem:[#allocation6 + $0x130] sm:$0xff] }
0x113b   :  { %v2919_v46 = vsel %vm586_vm4, %v8901_v43, 0.0 }
0x113c   :  { %2920 = vadd.xlane.f32.xlu0 %v2919_v46  ;;  %v3140_v54 = vsel %vm3139_vm5, %v3137_v53, %v8782_v44  ;;  %v3141_v63 = vsel %vm3139_vm5, %v3138_v52, %v8783_v57  ;;  %v3327_v57 = vld [vmem:[#allocation6 + $0x110] sm:$0xff]  ;;  %v3322_v44 = vld [vmem:[#allocation6 + $0xe8] sm:$0xff]  ;;  %v3320_v52 = vld [vmem:[#allocation6 + $0xd8] sm:$0xff] }
0x113d   :  { %v8791_v45 = vpop.permute.xlu1 %8790  ;;  %v3317_v53 = vld [vmem:[#allocation6 + $0xc0] sm:$0xff] }
0x113e   :  { %v8793_v7 = vunpack.i.h.bf16 %v8791_v45  ;;  %v8792_v10 = vunpack.i.l.bf16 %v8791_v45  ;;  %v3324_v45 = vld [vmem:[#allocation6 + $0xf8] sm:$0xff] }
0x113f   :  { %v8903_v48 = vpop.eup %8902 }
0x1140   :  { %v2922_v14 = vsel %vm586_vm4, %v8903_v48, 0.0 }
0x1141   :  { %2923 = vadd.xlane.f32.xlu0 %v2922_v14  ;;  %v8801_v58 = vpop.permute.xlu1 %8800 }
0x1142   :  { %v8803_v6 = vunpack.i.h.bf16 %v8801_v58  ;;  %v8802_v9 = vunpack.i.l.bf16 %v8801_v58  ;;  %v3311_v58 = vld [vmem:[#allocation6 + $0x90] sm:$0xff] }
0x1157   :  { %2929 = vrot.lane.b32.xlu0 %v9291_v61, %s9127_s4 }
0x115b   :  { %8785 = vrot.lane.b32.xlu0 %v8784_v33, %s9126_s1  ;;  %v3170_v33 = vld [vmem:[#allocation4 + $0x68] sm:$0xff] }
0x115f   :  { %8795 = vrot.lane.b32.xlu0 %v8794_v8, %s9124_s22  ;;  %v3167_v8 = vld [vmem:[#allocation4 + $0x50] sm:$0xff] }
0x11c5   :  { %v2921_v17 = vpop.xlane.xlu0 %2920 }
0x11c6   :  { %8904 = vrcp.f32 %v2921_v17 }
0x11ca   :  { %v2924_v19 = vpop.xlane.xlu0 %2923 }
0x11cb   :  { %8906 = vrcp.f32 %v2924_v19 }
0x11ce   :  { %v2930_v15 = vpop.permute.xlu0 %2929 }
0x11cf   :  { %8410 = vmatpush3.msra.mxu0 %v2930_v15  ;;  %v3354_v15 = vld [vmem:[#allocation6 + $0x1e8] sm:$0xff] }
0x11d0   :  { %8419 = vmatprep.subr.mxu0 %v3172_v26  ;;  %3379 = vmatprep.subr.mxu1 %v3354_v15  ;;  %v3296_v15 = vld [vmem:[#allocation6 + $0x18] sm:$0xff] }
0x11d2   :  { %v8786_v40 = vpop.permute.xlu0 %8785 }
0x11d3   :  { %v8905_v16 = vpop.eup %8904  ;;  %v8788_v47 = vunpack.i.h.bf16 %v8786_v40  ;;  %v8787_v49 = vunpack.i.l.bf16 %v8786_v40  ;;  %v3326_v40 = vld [vmem:[#allocation6 + $0x108] sm:$0xff] }
0x11d4   :  { %v2926_v18 = vmul.f32 %v8905_v16, %v8901_v43  ;;  %v3356_v16 = vld [vmem:[#allocation6 + $0x1f8] sm:$0xff] }
0x11d5   :  { %v3143_v0 = vsel %vm3142_vm6, %v3140_v54, %v8787_v49  ;;  %v3144_v1 = vsel %vm3142_vm6, %v3141_v63, %v8788_v47  ;;  %v3321_v47 = vld [vmem:[#allocation6 + $0xe0] sm:$0xff]  ;;  %v3323_v49 = vld [vmem:[#allocation6 + $0xf0] sm:$0xff]  ;;  %v3314_v63 = vld [vmem:[#allocation6 + $0xa8] sm:$0xff] }
0x11d6   :  { %8412 = vmatmul.mubr.msk.f32.vlgmr.msra.gmra.mxu0 %vm586_vm4, %v2926_v18  ;;  %v8796_v50 = vpop.permute.xlu0 %8795  ;;  %v3147_v30 = vsel %vm3145_vm7, %v3144_v1, %v8793_v7  ;;  %v3146_v12 = vsel %vm3145_vm7, %v3143_v0, %v8792_v10  ;;  %v3353_v18 = vld [vmem:[#allocation6 + $0x1e0] sm:$0xff]  ;;  %v3319_v54 = vld [vmem:[#allocation6 + $0xd0] sm:$0xff]  ;;  %v3316_v0 = vld [vmem:[#allocation6 + $0xb8] sm:$0xff] }
0x11d7   :  { %8420 = vmatpush3.msra.mxu0 %v3172_v26  ;;  %v8798_v3 = vunpack.i.h.bf16 %v8796_v50  ;;  %v8797_v4 = vunpack.i.l.bf16 %v8796_v50  ;;  %v3352_v26 = vld [vmem:[#allocation6 + $0x1d8] sm:$0xff]  ;;  %v3318_v50 = vld [vmem:[#allocation6 + $0xc8] sm:$0xff]  ;;  %v3313_v1 = vld [vmem:[#allocation6 + $0xa0] sm:$0xff] }
0x11d8   :  { %v8907_v61 = vpop.eup %8906  ;;  %8421 = vmatprep.subr.mxu0 %v3171_v31  ;;  %v3312_v7 = vld [vmem:[#allocation6 + $0x98] sm:$0xff]  ;;  %v3309_v10 = vld [vmem:[#allocation6 + $0x80] sm:$0xff] }
0x11d9   :  { %v2928_v20 = vmul.f32 %v8907_v61, %v8903_v48  ;;  %8422 = vmatpush3.msra.mxu0 %v3171_v31  ;;  %v3150_v27 = vsel %vm3148_vm8, %v3147_v30, %v8798_v3  ;;  %v3149_v13 = vsel %vm3148_vm8, %v3146_v12, %v8797_v4  ;;  %v3355_v61 = vld [vmem:[#allocation6 + $0x1f0] sm:$0xff]  ;;  %v3349_v31 = vld [vmem:[#allocation6 + $0x1c0] sm:$0xff]  ;;  %v3310_v4 = vld [vmem:[#allocation6 + $0x88] sm:$0xff] }
0x11da   :  { %8423 = vmatprep.subr.mxu0 %v3170_v33  ;;  %v3152_v48 = vsel %vm3151_vm9, %v3149_v13, %v8802_v9  ;;  %v3153_v14 = vsel %vm3151_vm9, %v3150_v27, %v8803_v6  ;;  %v3315_v3 = vld [vmem:[#allocation6 + $0xb0] sm:$0xff]  ;;  %v3306_v30 = vld [vmem:[#allocation6 + $0x68] sm:$0xff]  ;;  %v3308_v12 = vld [vmem:[#allocation6 + $0x78] sm:$0xff] }
0x11db   :  { %8417 = vmatmul.mubr.msk.f32.vlgmr.msra.gmra.mxu1 %vm586_vm4, %v2928_v20  ;;  %8424 = vmatpush3.msra.mxu0 %v3170_v33  ;;  %v3350_v20 = vld [vmem:[#allocation6 + $0x1c8] sm:$0xff]  ;;  %v3351_v33 = vld [vmem:[#allocation6 + $0x1d0] sm:$0xff]  ;;  %v3305_v27 = vld [vmem:[#allocation6 + $0x60] sm:$0xff] }
0x11dc   :  { %3443 = vmatprep.mubr.f32.mxu1 %v9120_v51  ;;  %8425 = vmatprep.subr.mxu0 %v3169_v2  ;;  %v3307_v13 = vld [vmem:[#allocation6 + $0x70] sm:$0xff]  ;;  %v3302_v6 = vld [vmem:[#allocation6 + $0x48] sm:$0xff]  ;;  %v3304_v9 = vld [vmem:[#allocation6 + $0x58] sm:$0xff] }
0x11dd   :  { %8426 = vmatpush3.msra.mxu0 %v3169_v2  ;;  %3380 = vmatpush1.msra.mxu1 %v3353_v18  ;;  %v3346_v2 = vld [vmem:[#allocation6 + $0x1a8] sm:$0xff]  ;;  %v3295_v18 = vld [vmem:[#allocation6 + $0x10] sm:$0xff] }
0x11de   :  { %8427 = vmatprep.subr.mxu0 %v3168_v5  ;;  %3381 = vmatprep.subr.mxu1 %v3350_v20  ;;  %v3604_v20 = vld [vmem:[#allocation7 + $0x1f8] sm:$0xff] }
0x11df   :  { %8428 = vmatpush3.msra.mxu0 %v3168_v5  ;;  %3382 = vmatpush1.msra.mxu1 %v3349_v31  ;;  %v3348_v5 = vld [vmem:[#allocation6 + $0x1b8] sm:$0xff] }
0x11e0   :  { %8429 = vmatprep.subr.mxu0 %v3167_v8  ;;  %3383 = vmatprep.subr.mxu1 %v3346_v2 }
0x11e1   :  { %8430 = vmatpush3.msra.mxu0 %v3167_v8  ;;  %v3345_v8 = vld [vmem:[#allocation6 + $0x1a0] sm:$0xff] }
0x11e2   :  { %8431 = vmatprep.subr.mxu0 %v3166_v21  ;;  %3384 = vmatpush1.msra.mxu1 %v3345_v8 }
0x11e3   :  { %8432 = vmatpush3.msra.mxu0 %v3166_v21  ;;  %v3347_v21 = vld [vmem:[#allocation6 + $0x1b0] sm:$0xff] }
0x11e4   :  { %8433 = vmatprep.subr.mxu0 %v3165_v22 }
0x11e5   :  { %8434 = vmatpush3.msra.mxu0 %v3165_v22  ;;  %v3342_v22 = vld [vmem:[#allocation6 + $0x188] sm:$0xff] }
0x11e6   :  { %8435 = vmatprep.subr.mxu0 %v3164_v23  ;;  %3385 = vmatprep.subr.mxu1 %v3342_v22 }
0x11e7   :  { %8436 = vmatpush3.msra.mxu0 %v3164_v23  ;;  %v3344_v23 = vld [vmem:[#allocation6 + $0x198] sm:$0xff] }
0x11e8   :  { %8437 = vmatprep.subr.mxu0 %v3163_v24 }
0x11e9   :  { %8438 = vmatpush3.msra.mxu0 %v3163_v24  ;;  %v3341_v24 = vld [vmem:[#allocation6 + $0x180] sm:$0xff] }
0x11ea   :  { %8439 = vmatprep.subr.mxu0 %v3162_v25  ;;  %3386 = vmatpush1.msra.mxu1 %v3341_v24 }
0x11eb   :  { %8440 = vmatpush3.msra.mxu0 %v3162_v25  ;;  %v3343_v25 = vld [vmem:[#allocation6 + $0x190] sm:$0xff] }
0x11ec   :  { %8441 = vmatprep.subr.mxu0 %v3161_v28 }
0x11ed   :  { %8442 = vmatpush3.msra.mxu0 %v3161_v28  ;;  %v3338_v28 = vld [vmem:[#allocation6 + $0x168] sm:$0xff] }
0x11ee   :  { %8443 = vmatprep.subr.mxu0 %v3160_v29  ;;  %3387 = vmatprep.subr.mxu1 %v3338_v28 }
0x11ef   :  { %8444 = vmatpush3.msra.mxu0 %v3160_v29  ;;  %v3340_v29 = vld [vmem:[#allocation6 + $0x178] sm:$0xff] }
0x11f0   :  { %8445 = vmatprep.subr.mxu0 %v3159_v32 }
0x11f1   :  { %8446 = vmatpush3.msra.mxu0 %v3159_v32  ;;  %v3337_v32 = vld [vmem:[#allocation6 + $0x160] sm:$0xff] }
0x11f2   :  { %8447 = vmatprep.subr.mxu0 %v3158_v59  ;;  %3388 = vmatpush1.msra.mxu1 %v3337_v32 }
0x11f3   :  { %8448 = vmatpush3.msra.mxu0 %v3158_v59  ;;  %v3339_v59 = vld [vmem:[#allocation6 + $0x170] sm:$0xff] }
0x11f4   :  { %8449 = vmatprep.subr.mxu0 %v3157_v62 }
0x11f5   :  { %8450 = vmatpush3.msra.mxu0 %v3157_v62  ;;  %v3334_v62 = vld [vmem:[#allocation6 + $0x148] sm:$0xff] }
0x11f6   :  { %3456 = vmatprep.subr.mxu0 %v3356_v16  ;;  %3389 = vmatprep.subr.mxu1 %v3334_v62  ;;  %v3293_v16 = vld [vmem:[#allocation6] sm:$0xff] }
0x1296   :  { %v3001_v60 = vpop.f32.mrf.mxu0 }
0x1298   :  { %v8413_v34 = vpop.f32.mrf.mxu0 }
0x1299   :  { %v3333_v34 = vld [vmem:[#allocation6 + $0x140] sm:$0xff] }
0x129a   :  { %3390 = vmatpush1.msra.mxu1 %v3333_v34 }
0x129b   :  { %v3077_v35 = vpop.f32.mrf.mxu1 }
0x129c   :  { %v8804_v36 = vpack.i.bf16 %v3077_v35, %v3001_v60  ;;  %v3336_v60 = vld [vmem:[#allocation6 + $0x158] sm:$0xff]  ;;  %v3335_v35 = vld [vmem:[#allocation6 + $0x150] sm:$0xff] }
0x129d   :  { %v8418_v37 = vpop.f32.mrf.mxu1 }
0x129e   :  { %8805 = vrot.lane.b32.xlu0 %v8804_v36, %s9122_s2  ;;  %v3330_v36 = vld [vmem:[#allocation6 + $0x128] sm:$0xff]  ;;  %v3332_v37 = vld [vmem:[#allocation6 + $0x138] sm:$0xff] }
0x129f   :  { %3391 = vmatprep.subr.mxu1 %v3330_v36 }
0x12a0   :  { %3392 = vmatpush1.msra.mxu1 %v3329_v38 }
0x12a1   :  { %3393 = vmatprep.subr.mxu1 %v3326_v40 }
0x12a2   :  { %3394 = vmatpush1.msra.mxu1 %v3325_v42 }
0x12a3   :  { %3395 = vmatprep.subr.mxu1 %v3322_v44  ;;  %v7766_v44 = vld [vmem:[%s10138_s6] ss:$0 sm:$0xff] }
0x12a4   :  { %3396 = vmatpush1.msra.mxu1 %v3321_v47 }
0x12a5   :  { %3397 = vmatprep.subr.mxu1 %v3318_v50  ;;  %v3556_v50 = vld [vmem:[#allocation7 + $0x78] sm:$0xff] }
0x12a6   :  { %3398 = vmatpush1.msra.mxu1 %v3317_v53  ;;  %v3571_v53 = vld [vmem:[#allocation7 + $0xf0] sm:$0xff] }
0x12a7   :  { %3399 = vmatprep.subr.mxu1 %v3314_v63 }
0x12a8   :  { %3400 = vmatpush1.msra.mxu1 %v3313_v1  ;;  %v3587_v1 = vld [vmem:[#allocation7 + $0x170] sm:$0xff] }
0x12a9   :  { %3401 = vmatprep.subr.mxu1 %v3310_v4  ;;  %v3602_v4 = vld [vmem:[#allocation7 + $0x1e8] sm:$0xff] }
0x12aa   :  { %3402 = vmatpush1.msra.mxu1 %v3309_v10  ;;  %v3586_v10 = vld [vmem:[#allocation7 + $0x168] sm:$0xff] }
0x12ab   :  { %3403 = vmatprep.subr.mxu1 %v3306_v30  ;;  %v3601_v30 = vld [vmem:[#allocation7 + $0x1e0] sm:$0xff] }
0x12ac   :  { %3404 = vmatpush1.msra.mxu1 %v3305_v27  ;;  %v3585_v27 = vld [vmem:[#allocation7 + $0x160] sm:$0xff] }
0x12ad   :  { %3405 = vmatprep.subr.mxu1 %v3302_v6  ;;  %v3600_v6 = vld [vmem:[#allocation7 + $0x1d8] sm:$0xff] }
0x1310   :  { %v8806_v11 = vpop.permute.xlu0 %8805 }
0x1311   :  { %v8808_v43 = vunpack.i.h.bf16 %v8806_v11  ;;  %v8807_v46 = vunpack.i.l.bf16 %v8806_v11  ;;  %v3301_v11 = vld [vmem:[#allocation6 + $0x40] sm:$0xff] }
0x1312   :  { %3406 = vmatpush1.msra.mxu1 %v3301_v11  ;;  %v3584_v11 = vld [vmem:[#allocation7 + $0x158] sm:$0xff] }
0x1313   :  { %v3155_v17 = vsel %vm3154_vm10, %v3152_v48, %v8807_v46  ;;  %v3156_v19 = vsel %vm3154_vm10, %v3153_v14, %v8808_v43  ;;  %v3303_v43 = vld [vmem:[#allocation6 + $0x50] sm:$0xff]  ;;  %v3298_v46 = vld [vmem:[#allocation6 + $0x28] sm:$0xff]  ;;  %v3300_v48 = vld [vmem:[#allocation6 + $0x38] sm:$0xff] }
0x1314   :  { %8451 = vmatprep.mubr.f32.mxu0 %v3155_v17  ;;  %v3297_v14 = vld [vmem:[#allocation6 + $0x20] sm:$0xff]  ;;  %3407 = vmatprep.subr.mxu1 %v3298_v46  ;;  %v3299_v17 = vld [vmem:[#allocation6 + $0x30] sm:$0xff] }
0x1315   :  { %8452 = vmatmul.mubr.f32.vlgmr.msra.gmra.mxu0 %v3156_v19  ;;  %v3294_v19 = vld [vmem:[#allocation6 + $0x8] sm:$0xff]  ;;  %3408 = vmatpush1.msra.mxu1 %v3297_v14  ;;  %v3599_v46 = vld [vmem:[#allocation7 + $0x1d0] sm:$0xff] }
0x1316   :  { %3520 = vmatprep.mubr.f32.mxu0 %v9120_v51  ;;  %3457 = vmatpush1.msra.mxu0 %v3355_v61  ;;  %v3572_v61 = vld [vmem:[#allocation7 + $0xf8] sm:$0xff]  ;;  %v3583_v14 = vld [vmem:[#allocation7 + $0x150] sm:$0xff] }
0x1317   :  { %3458 = vmatprep.subr.mxu0 %v3352_v26  ;;  %3409 = vmatprep.subr.mxu1 %v3294_v19  ;;  %v3598_v19 = vld [vmem:[#allocation7 + $0x1c8] sm:$0xff] }
0x1318   :  { %3459 = vmatpush1.msra.mxu0 %v3351_v33  ;;  %3410 = vmatpush1.msra.mxu1 %v3293_v16  ;;  %v3582_v16 = vld [vmem:[#allocation7 + $0x148] sm:$0xff] }
0x1319   :  { %3460 = vmatprep.subr.mxu0 %v3348_v5  ;;  %7932 = vmatprep.subr.mxu1 %v3572_v61  ;;  %v3597_v61 = vld [vmem:[#allocation7 + $0x1c0] sm:$0xff] }
0x131a   :  { %3461 = vmatpush1.msra.mxu0 %v3347_v21 }
0x131b   :  { %3462 = vmatprep.subr.mxu0 %v3344_v23 }
0x131c   :  { %3463 = vmatpush1.msra.mxu0 %v3343_v25 }
0x131d   :  { %3464 = vmatprep.subr.mxu0 %v3340_v29 }
0x131e   :  { %3465 = vmatpush1.msra.mxu0 %v3339_v59 }
0x131f   :  { %3466 = vmatprep.subr.mxu0 %v3336_v60 }
0x1320   :  { %3467 = vmatpush1.msra.mxu0 %v3335_v35 }
0x1321   :  { %3468 = vmatprep.subr.mxu0 %v3332_v37 }
0x1322   :  { %3469 = vmatpush1.msra.mxu0 %v3331_v39 }
0x1323   :  { %3470 = vmatprep.subr.mxu0 %v3328_v41  ;;  %v7765_v41 = vld [vmem:[%s10137_s5] ss:$0 sm:$0xff] }
0x1324   :  { %3471 = vmatpush1.msra.mxu0 %v3327_v57 }
0x1325   :  { %3472 = vmatprep.subr.mxu0 %v3324_v45 }
0x1326   :  { %3473 = vmatpush1.msra.mxu0 %v3323_v49 }
0x1327   :  { %3474 = vmatprep.subr.mxu0 %v3320_v52  ;;  %v3588_v52 = vld [vmem:[#allocation7 + $0x178] sm:$0xff] }
0x1328   :  { %3475 = vmatpush1.msra.mxu0 %v3319_v54  ;;  %v3603_v54 = vld [vmem:[#allocation7 + $0x1f0] sm:$0xff] }
0x1329   :  { %3476 = vmatprep.subr.mxu0 %v3316_v0  ;;  %v3555_v0 = vld [vmem:[#allocation7 + $0x70] sm:$0xff] }
0x132a   :  { %3477 = vmatpush1.msra.mxu0 %v3315_v3  ;;  %v3570_v3 = vld [vmem:[#allocation7 + $0xe8] sm:$0xff] }
0x132b   :  { %3478 = vmatprep.subr.mxu0 %v3312_v7  ;;  %v3554_v7 = vld [vmem:[#allocation7 + $0x68] sm:$0xff] }
0x132c   :  { %3479 = vmatpush1.msra.mxu0 %v3311_v58  ;;  %v3569_v58 = vld [vmem:[#allocation7 + $0xe0] sm:$0xff] }
0x132d   :  { %3480 = vmatprep.subr.mxu0 %v3308_v12  ;;  %v3553_v12 = vld [vmem:[#allocation7 + $0x60] sm:$0xff] }
0x132e   :  { %3481 = vmatpush1.msra.mxu0 %v3307_v13  ;;  %v3568_v13 = vld [vmem:[#allocation7 + $0xd8] sm:$0xff] }
0x132f   :  { %3482 = vmatprep.subr.mxu0 %v3304_v9  ;;  %v3552_v9 = vld [vmem:[#allocation7 + $0x58] sm:$0xff] }
0x1330   :  { %3483 = vmatpush1.msra.mxu0 %v3303_v43  ;;  %v3567_v43 = vld [vmem:[#allocation7 + $0xd0] sm:$0xff] }
0x1331   :  { %3484 = vmatprep.subr.mxu0 %v3300_v48  ;;  %v3551_v48 = vld [vmem:[#allocation7 + $0x50] sm:$0xff] }
0x1332   :  { %3485 = vmatpush1.msra.mxu0 %v3299_v17  ;;  %v3566_v17 = vld [vmem:[#allocation7 + $0xc8] sm:$0xff] }
0x1333   :  { %3486 = vmatprep.subr.mxu0 %v3296_v15  ;;  %v3550_v15 = vld [vmem:[#allocation7 + $0x48] sm:$0xff] }
0x1334   :  { %3487 = vmatpush1.msra.mxu0 %v3295_v18  ;;  %v3565_v18 = vld [vmem:[#allocation7 + $0xc0] sm:$0xff] }
0x1335   :  { %7970 = vmatprep.subr.mxu0 %v3604_v20  ;;  %v3549_v20 = vld [vmem:[#allocation7 + $0x40] sm:$0xff] }
0x13d5   :  { %v8453_v26 = vpop.f32.mrf.mxu0 }
0x13d6   :  { %v3249_v33 = vadd.f32 %v8453_v26, %v9269_v56  ;;  %v3581_v26 = vld [vmem:[#allocation7 + $0x140] sm:$0xff] }
0x13d7   :  { %v3239_v31 = vpop.f32.mrf.mxu0 }
0x13d8   :  { %v3248_v2 = vadd.f32 %v3239_v31, %v9267_v55  ;;  %v3564_v31 = vld [vmem:[#allocation7 + $0xb8] sm:$0xff] }
0x13da   :  { %v3252_v5 = vadd.f32 %v3249_v33, %v3248_v2 }
0x13dc   :  { %v3253_v8 = vrot.slane %v3252_v5, 4 }
0x13de   :  { %v3254_v21 = vadd.f32 %v3253_v8, %v3252_v5  ;;  %v3580_v5 = vld [vmem:[#allocation7 + $0x138] sm:$0xff]  ;;  %v3563_v8 = vld [vmem:[#allocation7 + $0xb0] sm:$0xff] }
0x13e0   :  { %v3255_v22 = vrot.slane %v3254_v21, 2 }
0x13e2   :  { %v3256_v23 = vadd.f32 %v3255_v22, %v3254_v21  ;;  %v3595_v21 = vld [vmem:[#allocation7 + $0x1b0] sm:$0xff] }
0x13e3   :  { %v3547_v22 = vld [vmem:[#allocation7 + $0x30] sm:$0xff] }
0x13e4   :  { %v3257_v24 = vrot.slane %v3256_v23, 1 }
0x13e6   :  { %v3258_v25 = vadd.f32 %v3257_v24, %v3256_v23  ;;  %v3579_v23 = vld [vmem:[#allocation7 + $0x130] sm:$0xff]  ;;  %v3562_v24 = vld [vmem:[#allocation7 + $0xa8] sm:$0xff] }
0x13e8   :  { %v3260_v28 = vmul.f32 0.0625, %v3258_v25  ;;  %v3594_v25 = vld [vmem:[#allocation7 + $0x1a8] sm:$0xff] }
0x13ea   :  { %v3261_v29 = vsub.f32 %v3248_v2, %v3260_v28  ;;  %v3262_v32 = vsub.f32 %v3249_v33, %v3260_v28  ;;  %v3596_v33 = vld [vmem:[#allocation7 + $0x1b8] sm:$0xff]  ;;  %v3546_v28 = vld [vmem:[#allocation7 + $0x28] sm:$0xff] }
0x13eb   :  { %v3548_v2 = vld [vmem:[#allocation7 + $0x38] sm:$0xff] }
0x13ec   :  { %v3263_v59 = vmul.f32 %v3261_v29, %v3261_v29  ;;  %v3264_v62 = vmul.f32 %v3262_v32, %v3262_v32 }
0x13ee   :  { %v3265_v60 = vadd.f32 %v3264_v62, %v3263_v59  ;;  %v3593_v59 = vld [vmem:[#allocation7 + $0x1a0] sm:$0xff] }
0x13ef   :  { %v3545_v62 = vld [vmem:[#allocation7 + $0x20] sm:$0xff] }
0x13f0   :  { %v3266_v34 = vrot.slane %v3265_v60, 4 }
0x13f2   :  { %v3267_v35 = vadd.f32 %v3266_v34, %v3265_v60  ;;  %v3577_v60 = vld [vmem:[#allocation7 + $0x120] sm:$0xff]  ;;  %v3560_v34 = vld [vmem:[#allocation7 + $0x98] sm:$0xff] }
0x13f4   :  { %v3268_v36 = vrot.slane %v3267_v35, 2 }
0x13f6   :  { %v3269_v37 = vadd.f32 %v3268_v36, %v3267_v35  ;;  %v3592_v35 = vld [vmem:[#allocation7 + $0x198] sm:$0xff] }
0x13f7   :  { %v3544_v36 = vld [vmem:[#allocation7 + $0x18] sm:$0xff] }
0x13f8   :  { %v3270_v56 = vrot.slane %v3269_v37, 1 }
0x13fa   :  { %v3271_v38 = vadd.f32 %v3270_v56, %v3269_v37  ;;  %v3576_v37 = vld [vmem:[#allocation7 + $0x118] sm:$0xff]  ;;  %v3559_v56 = vld [vmem:[#allocation7 + $0x90] sm:$0xff] }
0x13fc   :  { %v3272_v55 = vmul.f32 0.0625, %v3271_v38  ;;  %v3591_v38 = vld [vmem:[#allocation7 + $0x190] sm:$0xff] }
0x13fe   :  { %v3273_v39 = vadd.f32 1e-05, %v3272_v55  ;;  %v3543_v55 = vld [vmem:[#allocation7 + $0x10] sm:$0xff] }
0x1400   :  { %8908 = vrsqrt.f32 %v3273_v39  ;;  %v3575_v39 = vld [vmem:[#allocation7 + $0x110] sm:$0xff] }
0x140d   :  { %v8909_v40 = vpop.eup %8908 }
0x140e   :  { %v3275_v42 = vmul.f32 %v8909_v40, %v3261_v29  ;;  %v3276_v57 = vmul.f32 %v8909_v40, %v3262_v32  ;;  %v3578_v29 = vld [vmem:[#allocation7 + $0x128] sm:$0xff]  ;;  %v3561_v32 = vld [vmem:[#allocation7 + $0xa0] sm:$0xff] }
0x140f   :  { %v3558_v40 = vld [vmem:[#allocation7 + $0x88] sm:$0xff] }
0x1410   :  { %v3283_v45 = vmul.f32 %v7765_v41, %v3275_v42  ;;  %v3284_v49 = vmul.f32 %v7765_v41, %v3276_v57  ;;  %v3590_v41 = vld [vmem:[#allocation7 + $0x188] sm:$0xff] }
0x1411   :  { %v3542_v42 = vld [vmem:[#allocation7 + $0x8] sm:$0xff] }
0x1412   :  { %v9634_v47 = vadd.f32 %v7766_v44, %v3283_v45  ;;  %v9640_v63 = vadd.f32 %v7766_v44, %v3284_v49  ;;  %v3574_v57 = vld [vmem:[#allocation7 + $0x108] sm:$0xff]  ;;  %v3557_v44 = vld [vmem:[#allocation7 + $0x80] sm:$0xff] }
0x1413   :  { %v3589_v45 = vld [vmem:[#allocation7 + $0x180] sm:$0xff] }
0x1414   :  { %3444 = vmatmul.mubr.f32.vlgmr.msra.gmra.mxu1 %v9634_v47  ;;  %3521 = vmatmul.mubr.f32.vlgmr.msra.gmra.mxu0 %v9634_v47  ;;  %v3541_v49 = vld [vmem:[#allocation7] sm:$0xff] }
0x1415   :  { %3449 = vmatprep.mubr.f32.mxu1 %v9120_v51  ;;  %3526 = vmatprep.mubr.f32.mxu0 %v9120_v51 }
0x1416   :  { %7933 = vmatpush3.msra.mxu1 %v3556_v50  ;;  %7971 = vmatpush3.msra.mxu0 %v3588_v52  ;;  %v3573_v50 = vld [vmem:[#allocation7 + $0x100] sm:$0xff]  ;;  %v3359_v52 = vlaneseq }
0x1417   :  { %7934 = vmatprep.subr.mxu1 %v3571_v53  ;;  %7972 = vmatprep.subr.mxu0 %v3603_v54 }
0x1418   :  { %3450 = vmatmul.mubr.f32.gmra.mxu1 %v9640_v63  ;;  %3527 = vmatmul.mubr.f32.gmra.mxu0 %v9640_v63  ;;  %v9644_v53 = vshrl.u32 %v3359_v52, 7  ;;  %v3830_v52 = vld [vmem:[#allocation2 + $0x238] sm:$0xff] }
0x1419   :  { %7935 = vmatpush3.msra.mxu1 %v3555_v0  ;;  %7973 = vmatpush3.msra.mxu0 %v3587_v1  ;;  %v3357_v1 = vld [vmem:[%s10140_s8] sm:$0xf] }
0x141a   :  { %7936 = vmatprep.subr.mxu1 %v3570_v3  ;;  %7974 = vmatprep.subr.mxu0 %v3602_v4  ;;  %v3361_v54 = vsub.s32 0, %v9644_v53  ;;  %v3369_v0 = vsub.s32 2, %v9644_v53  ;;  %v3365_v3 = vsub.s32 1, %v9644_v53  ;;  %v3373_v4 = vsub.s32 3, %v9644_v53 }
0x141b   :  { %7937 = vmatpush3.msra.mxu1 %v3554_v7  ;;  %7975 = vmatpush3.msra.mxu0 %v3586_v10 }
0x141c   :  { %7938 = vmatprep.subr.mxu1 %v3569_v58  ;;  %7976 = vmatprep.subr.mxu0 %v3601_v30  ;;  %v3362_v7 = vrot.slane %v3357_v1, %v3361_v54  ;;  %v3370_v10 = vrot.slane %v3357_v1, %v3369_v0  ;;  %v3366_v58 = vrot.slane %v3357_v1, %v3365_v3 }
0x141d   :  { %7939 = vmatpush3.msra.mxu1 %v3553_v12  ;;  %7977 = vmatpush3.msra.mxu0 %v3585_v27  ;;  %v3374_v30 = vrot.slane %v3357_v1, %v3373_v4  ;;  %v3826_v1 = vld [vmem:[#allocation2 + $0x218] sm:$0xff] }
0x141e   :  { %7940 = vmatprep.subr.mxu1 %v3568_v13  ;;  %7978 = vmatprep.subr.mxu0 %v3600_v6 }
0x141f   :  { %7941 = vmatpush3.msra.mxu1 %v3552_v9  ;;  %7979 = vmatpush3.msra.mxu0 %v3584_v11 }
0x1420   :  { %7942 = vmatprep.subr.mxu1 %v3567_v43  ;;  %7980 = vmatprep.subr.mxu0 %v3599_v46 }
0x1421   :  { %7943 = vmatpush3.msra.mxu1 %v3551_v48  ;;  %7981 = vmatpush3.msra.mxu0 %v3583_v14 }
0x1422   :  { %7944 = vmatprep.subr.mxu1 %v3566_v17  ;;  %7982 = vmatprep.subr.mxu0 %v3598_v19 }
0x1423   :  { %7945 = vmatpush3.msra.mxu1 %v3550_v15  ;;  %7983 = vmatpush3.msra.mxu0 %v3582_v16 }
0x1424   :  { %7946 = vmatprep.subr.mxu1 %v3565_v18  ;;  %7984 = vmatprep.subr.mxu0 %v3597_v61 }
0x1425   :  { %7947 = vmatpush3.msra.mxu1 %v3549_v20  ;;  %7985 = vmatpush3.msra.mxu0 %v3581_v26 }
0x1426   :  { %7948 = vmatprep.subr.mxu1 %v3564_v31  ;;  %7986 = vmatprep.subr.mxu0 %v3596_v33 }
0x1427   :  { %7949 = vmatpush3.msra.mxu1 %v3548_v2  ;;  %7987 = vmatpush3.msra.mxu0 %v3580_v5 }
0x1428   :  { %7950 = vmatprep.subr.mxu1 %v3563_v8  ;;  %7988 = vmatprep.subr.mxu0 %v3595_v21 }
0x1429   :  { %7951 = vmatpush3.msra.mxu1 %v3547_v22  ;;  %7989 = vmatpush3.msra.mxu0 %v3579_v23  ;;  %v3853_v22 = vld [vmem:[#allocation2 + $0x2f0] sm:$0xff]  ;;  %v3852_v23 = vld [vmem:[#allocation2 + $0x2e8] sm:$0xff] }
0x142a   :  { %7952 = vmatprep.subr.mxu1 %v3562_v24  ;;  %7990 = vmatprep.subr.mxu0 %v3594_v25  ;;  %v3854_v24 = vld [vmem:[#allocation2 + $0x2f8] sm:$0xff] }
0x142b   :  { %7953 = vmatpush3.msra.mxu1 %v3546_v28  ;;  %7991 = vmatpush3.msra.mxu0 %v3578_v29  ;;  %v3850_v25 = vld [vmem:[#allocation2 + $0x2d8] sm:$0xff]  ;;  %v3849_v28 = vld [vmem:[#allocation2 + $0x2d0] sm:$0xff]  ;;  %v3851_v29 = vld [vmem:[#allocation2 + $0x2e0] sm:$0xff] }
0x142c   :  { %7954 = vmatprep.subr.mxu1 %v3561_v32  ;;  %7992 = vmatprep.subr.mxu0 %v3593_v59  ;;  %v3847_v32 = vld [vmem:[#allocation2 + $0x2c0] sm:$0xff]  ;;  %v3846_v59 = vld [vmem:[#allocation2 + $0x2b8] sm:$0xff] }
0x142d   :  { %7955 = vmatpush3.msra.mxu1 %v3545_v62  ;;  %7993 = vmatpush3.msra.mxu0 %v3577_v60  ;;  %v3848_v62 = vld [vmem:[#allocation2 + $0x2c8] sm:$0xff] }
0x142e   :  { %7956 = vmatprep.subr.mxu1 %v3560_v34  ;;  %7994 = vmatprep.subr.mxu0 %v3592_v35  ;;  %v3844_v60 = vld [vmem:[#allocation2 + $0x2a8] sm:$0xff]  ;;  %v3843_v34 = vld [vmem:[#allocation2 + $0x2a0] sm:$0xff]  ;;  %v3845_v35 = vld [vmem:[#allocation2 + $0x2b0] sm:$0xff] }
0x142f   :  { %7957 = vmatpush3.msra.mxu1 %v3544_v36  ;;  %7995 = vmatpush3.msra.mxu0 %v3576_v37  ;;  %v3841_v36 = vld [vmem:[#allocation2 + $0x290] sm:$0xff]  ;;  %v3840_v37 = vld [vmem:[#allocation2 + $0x288] sm:$0xff] }
0x1430   :  { %7958 = vmatprep.subr.mxu1 %v3559_v56  ;;  %7996 = vmatprep.subr.mxu0 %v3591_v38  ;;  %v3842_v56 = vld [vmem:[#allocation2 + $0x298] sm:$0xff] }
0x1431   :  { %7959 = vmatpush3.msra.mxu1 %v3543_v55  ;;  %7997 = vmatpush3.msra.mxu0 %v3575_v39  ;;  %v3838_v38 = vld [vmem:[#allocation2 + $0x278] sm:$0xff]  ;;  %v3837_v55 = vld [vmem:[#allocation2 + $0x270] sm:$0xff]  ;;  %v3839_v39 = vld [vmem:[#allocation2 + $0x280] sm:$0xff] }
0x1432   :  { %7960 = vmatprep.subr.mxu1 %v3558_v40  ;;  %7998 = vmatprep.subr.mxu0 %v3590_v41  ;;  %v3835_v40 = vld [vmem:[#allocation2 + $0x260] sm:$0xff]  ;;  %v3834_v41 = vld [vmem:[#allocation2 + $0x258] sm:$0xff] }
0x1433   :  { %7961 = vmatpush3.msra.mxu1 %v3542_v42  ;;  %7999 = vmatpush3.msra.mxu0 %v3574_v57  ;;  %v3836_v42 = vld [vmem:[#allocation2 + $0x268] sm:$0xff] }
0x1434   :  { %7962 = vmatprep.subr.mxu1 %v3557_v44  ;;  %8000 = vmatprep.subr.mxu0 %v3589_v45  ;;  %v3832_v57 = vld [vmem:[#allocation2 + $0x248] sm:$0xff]  ;;  %v3831_v44 = vld [vmem:[#allocation2 + $0x240] sm:$0xff]  ;;  %v3833_v45 = vld [vmem:[#allocation2 + $0x250] sm:$0xff] }
0x1435   :  { %7963 = vmatpush3.msra.mxu1 %v3541_v49  ;;  %8001 = vmatpush3.msra.mxu0 %v3573_v50  ;;  %v3829_v49 = vld [vmem:[#allocation2 + $0x230] sm:$0xff]  ;;  %v3828_v50 = vld [vmem:[#allocation2 + $0x228] sm:$0xff] }
0x1436   :  { %3855 = vmatprep.subr.mxu1 %v3853_v22  ;;  %8454 = vmatprep.subr.mxu0 %v3854_v24 }
0x14d4   :  { %v3445_v12 = vpop.f32.mrf.mxu1  ;;  %v3522_v27 = vpop.f32.mrf.mxu0 }
0x14d5   :  { %v3446_v13 = vadd.f32 %v3445_v12, %v3362_v7  ;;  %v3523_v6 = vadd.f32 %v3522_v27, %v3370_v10  ;;  %v3824_v12 = vld [vmem:[#allocation2 + $0x208] sm:$0xff] }
0x14d6   :  { %v3447_v9 = vpop.f32.mrf.mxu1  ;;  %v3524_v11 = vpop.f32.mrf.mxu0  ;;  %v3820_v27 = vld [vmem:[#allocation2 + $0x1e8] sm:$0xff] }
0x14d7   :  { %v3448_v43 = vadd.f32 %v3447_v9, %v3366_v58  ;;  %v3525_v46 = vadd.f32 %v3524_v11, %v3374_v30  ;;  %v3533_v15 = vmax.f32 %v3446_v13, 0.0  ;;  %v3535_v16 = vmax.f32 %v3523_v6, 0.0  ;;  %v3819_v13 = vld [vmem:[#allocation2 + $0x1e0] sm:$0xff]  ;;  %v3821_v6 = vld [vmem:[#allocation2 + $0x1f0] sm:$0xff]  ;;  %v3816_v11 = vld [vmem:[#allocation2 + $0x1c8] sm:$0xff] }
0x14d8   :  { %v3451_v48 = vpop.f32.mrf.mxu1  ;;  %v3528_v14 = vpop.f32.mrf.mxu0  ;;  %v3817_v9 = vld [vmem:[#allocation2 + $0x1d0] sm:$0xff] }
0x14d9   :  { %v3534_v17 = vmax.f32 %v3448_v43, 0.0  ;;  %v3536_v19 = vmax.f32 %v3525_v46, 0.0  ;;  %v3452_v18 = vadd.f32 %v3451_v48, %v3362_v7  ;;  %v3529_v61 = vadd.f32 %v3528_v14, %v3370_v10  ;;  %v3825_v7 = vld [vmem:[#allocation2 + $0x210] sm:$0xff]  ;;  %v3827_v10 = vld [vmem:[#allocation2 + $0x220] sm:$0xff]  ;;  %v3818_v43 = vld [vmem:[#allocation2 + $0x1d8] sm:$0xff] }
0x14da   :  { %v3453_v20 = vpop.f32.mrf.mxu1  ;;  %v3530_v26 = vpop.f32.mrf.mxu0  ;;  %v3814_v46 = vld [vmem:[#allocation2 + $0x1b8] sm:$0xff]  ;;  %v3813_v48 = vld [vmem:[#allocation2 + $0x1b0] sm:$0xff]  ;;  %v3815_v14 = vld [vmem:[#allocation2 + $0x1c0] sm:$0xff] }
0x14db   :  { %v3454_v31 = vadd.f32 %v3453_v20, %v3366_v58  ;;  %v3531_v33 = vadd.f32 %v3530_v26, %v3374_v30  ;;  %3676 = vmatprep.mubr.f32.mxu1 %v3534_v17  ;;  %3751 = vmatprep.mubr.f32.mxu0 %v3536_v19  ;;  %v3537_v8 = vmax.f32 %v3452_v18, 0.0  ;;  %v3539_v21 = vmax.f32 %v3529_v61, 0.0  ;;  %v3823_v58 = vld [vmem:[#allocation2 + $0x200] sm:$0xff]  ;;  %v3822_v30 = vld [vmem:[#allocation2 + $0x1f8] sm:$0xff]  ;;  %v3809_v61 = vld [vmem:[#allocation2 + $0x190] sm:$0xff] }
0x14dc   :  { %3677 = vmatmul.mubr.f32.vlgmr.msra.gmra.mxu1 %v3533_v15  ;;  %3752 = vmatmul.mubr.f32.vlgmr.msra.gmra.mxu0 %v3535_v16  ;;  %v3811_v17 = vld [vmem:[#allocation2 + $0x1a0] sm:$0xff]  ;;  %v3810_v19 = vld [vmem:[#allocation2 + $0x198] sm:$0xff]  ;;  %v3812_v15 = vld [vmem:[#allocation2 + $0x1a8] sm:$0xff] }
0x14dd   :  { %v3538_v2 = vmax.f32 %v3454_v31, 0.0  ;;  %v3540_v5 = vmax.f32 %v3531_v33, 0.0  ;;  %3856 = vmatpush1.msra.mxu1 %v3852_v23  ;;  %8455 = vmatpush3.msra.mxu0 %v3854_v24  ;;  %v3808_v16 = vld [vmem:[#allocation2 + $0x188] sm:$0xff]  ;;  %v3807_v18 = vld [vmem:[#allocation2 + $0x180] sm:$0xff] }
0x14de   :  { %3857 = vmatprep.subr.mxu1 %v3850_v25  ;;  %8456 = vmatprep.subr.mxu0 %v3851_v29  ;;  %v7767_v31 = vld [vmem:[%s10142_s10] ss:$0 sm:$0xff] }
0x14df   :  { %3681 = vmatprep.mubr.f32.mxu1 %v3538_v2  ;;  %3756 = vmatprep.mubr.f32.mxu0 %v3540_v5 }
0x14e0   :  { %3682 = vmatmul.mubr.f32.gmra.mxu1 %v3537_v8  ;;  %3757 = vmatmul.mubr.f32.gmra.mxu0 %v3539_v21 }
0x14e1   :  { %3919 = vmatprep.mubr.f32.mxu1 %v9120_v51  ;;  %3858 = vmatpush1.msra.mxu1 %v3849_v28 }
0x14e2   :  { %3859 = vmatprep.subr.mxu1 %v3847_v32  ;;  %8457 = vmatpush3.msra.mxu0 %v3851_v29 }
0x14e3   :  { %3860 = vmatpush1.msra.mxu1 %v3846_v59  ;;  %8458 = vmatprep.subr.mxu0 %v3848_v62 }
0x14e4   :  { %3861 = vmatprep.subr.mxu1 %v3844_v60  ;;  %8459 = vmatpush3.msra.mxu0 %v3848_v62 }
0x14e5   :  { %3862 = vmatpush1.msra.mxu1 %v3843_v34  ;;  %8460 = vmatprep.subr.mxu0 %v3845_v35 }
0x14e6   :  { %3863 = vmatprep.subr.mxu1 %v3841_v36  ;;  %8461 = vmatpush3.msra.mxu0 %v3845_v35 }
0x14e7   :  { %3864 = vmatpush1.msra.mxu1 %v3840_v37  ;;  %8462 = vmatprep.subr.mxu0 %v3842_v56 }
0x14e8   :  { %3865 = vmatprep.subr.mxu1 %v3838_v38  ;;  %8463 = vmatpush3.msra.mxu0 %v3842_v56 }
0x14e9   :  { %3866 = vmatpush1.msra.mxu1 %v3837_v55  ;;  %8464 = vmatprep.subr.mxu0 %v3839_v39 }
0x14ea   :  { %3867 = vmatprep.subr.mxu1 %v3835_v40  ;;  %8465 = vmatpush3.msra.mxu0 %v3839_v39 }
0x14eb   :  { %3868 = vmatpush1.msra.mxu1 %v3834_v41  ;;  %8466 = vmatprep.subr.mxu0 %v3836_v42 }
0x14ec   :  { %3869 = vmatprep.subr.mxu1 %v3832_v57  ;;  %8467 = vmatpush3.msra.mxu0 %v3836_v42 }
0x14ed   :  { %3870 = vmatpush1.msra.mxu1 %v3831_v44  ;;  %8468 = vmatprep.subr.mxu0 %v3833_v45 }
0x14ee   :  { %3871 = vmatprep.subr.mxu1 %v3829_v49  ;;  %8469 = vmatpush3.msra.mxu0 %v3833_v45 }
0x14ef   :  { %3872 = vmatpush1.msra.mxu1 %v3828_v50  ;;  %8470 = vmatprep.subr.mxu0 %v3830_v52 }
0x14f0   :  { %3873 = vmatprep.subr.mxu1 %v3826_v1  ;;  %8471 = vmatpush3.msra.mxu0 %v3830_v52 }
0x14f1   :  { %3874 = vmatpush1.msra.mxu1 %v3825_v7  ;;  %8472 = vmatprep.subr.mxu0 %v3827_v10 }
0x14f2   :  { %3875 = vmatprep.subr.mxu1 %v3823_v58  ;;  %8473 = vmatpush3.msra.mxu0 %v3827_v10 }
0x14f3   :  { %3876 = vmatpush1.msra.mxu1 %v3822_v30  ;;  %8474 = vmatprep.subr.mxu0 %v3824_v12  ;;  %v7768_v30 = vld [vmem:[%s10143_s11] ss:$0 sm:$0xff] }
0x14f4   :  { %3877 = vmatprep.subr.mxu1 %v3820_v27  ;;  %8475 = vmatpush3.msra.mxu0 %v3824_v12 }
0x14f5   :  { %3878 = vmatpush1.msra.mxu1 %v3819_v13  ;;  %8476 = vmatprep.subr.mxu0 %v3821_v6  ;;  %v7769_v13 = vld [vmem:[%s10144_s12] ss:$0 sm:$0xff] }
0x14f6   :  { %3879 = vmatprep.subr.mxu1 %v3817_v9  ;;  %8477 = vmatpush3.msra.mxu0 %v3821_v6 }
0x14f7   :  { %3880 = vmatpush1.msra.mxu1 %v3816_v11  ;;  %8478 = vmatprep.subr.mxu0 %v3818_v43 }
0x14f8   :  { %3881 = vmatprep.subr.mxu1 %v3814_v46  ;;  %8479 = vmatpush3.msra.mxu0 %v3818_v43 }
0x14f9   :  { %3882 = vmatpush1.msra.mxu1 %v3813_v48  ;;  %8480 = vmatprep.subr.mxu0 %v3815_v14 }
0x14fa   :  { %3883 = vmatprep.subr.mxu1 %v3811_v17  ;;  %8481 = vmatpush3.msra.mxu0 %v3815_v14 }
0x14fb   :  { %3884 = vmatpush1.msra.mxu1 %v3810_v19  ;;  %8482 = vmatprep.subr.mxu0 %v3812_v15 }
0x14fc   :  { %3885 = vmatprep.subr.mxu1 %v3808_v16  ;;  %8483 = vmatpush3.msra.mxu0 %v3812_v15 }
0x14fd   :  { %3886 = vmatpush1.msra.mxu1 %v3807_v18  ;;  %8484 = vmatprep.subr.mxu0 %v3809_v61 }
0x14fe   :  { %8485 = vmatpush3.msra.mxu0 %v3809_v61  ;;  %8489 = vmatprep.subr.mxu1 %v9120_v51 }
0x14ff   :  { %8524 = vmatprep.subr.mxu0 %v9120_v51 }
0x159c   :  { %v7964_v20 = vpop.f32.mrf.mxu1  ;;  %v8002_v26 = vpop.f32.mrf.mxu0 }
0x159e   :  { %v7965_v33 = vpop.f32.mrf.mxu1  ;;  %v8003_v2 = vpop.f32.mrf.mxu0 }
0x159f   :  { %v7966_v5 = vadd.f32 %v7965_v33, %v7964_v20  ;;  %v8004_v25 = vadd.f32 %v8003_v2, %v8002_v26 }
0x15a0   :  { %v7967_v8 = vpop.f32.mrf.mxu1  ;;  %v8005_v21 = vpop.f32.mrf.mxu0 }
0x15a1   :  { %v3679_v22 = vadd.f32 %v7966_v5, %v7767_v31 }
0x15a2   :  { %v7968_v23 = vpop.f32.mrf.mxu1  ;;  %v8006_v24 = vpop.f32.mrf.mxu0 }
0x15a3   :  { %v7969_v28 = vadd.f32 %v7968_v23, %v7967_v8  ;;  %v3754_v29 = vadd.f32 %v8004_v25, %v3679_v22  ;;  %v8007_v59 = vadd.f32 %v8006_v24, %v8005_v21 }
0x15a5   :  { %v3684_v32 = vadd.f32 %v7969_v28, %v7767_v31  ;;  %v3762_v60 = vadd.f32 %v3754_v29, %v9634_v47 }
0x15a7   :  { %v3759_v62 = vadd.f32 %v8007_v59, %v3684_v32 }
0x15a9   :  { %v3763_v34 = vadd.f32 %v3759_v62, %v9640_v63 }
0x15ab   :  { %v3766_v35 = vadd.f32 %v3763_v34, %v3762_v60 }
0x15ad   :  { %v3767_v36 = vrot.slane %v3766_v35, 4 }
0x15af   :  { %v3768_v37 = vadd.f32 %v3767_v36, %v3766_v35 }
0x15b1   :  { %v3769_v56 = vrot.slane %v3768_v37, 2 }
0x15b3   :  { %v3770_v38 = vadd.f32 %v3769_v56, %v3768_v37 }
0x15b5   :  { %v3771_v55 = vrot.slane %v3770_v38, 1 }
0x15b7   :  { %v3772_v39 = vadd.f32 %v3771_v55, %v3770_v38 }
0x15b9   :  { %v3773_v40 = vmul.f32 0.0625, %v3772_v39 }
0x15bb   :  { %v3774_v41 = vsub.f32 %v3762_v60, %v3773_v40  ;;  %v3775_v42 = vsub.f32 %v3763_v34, %v3773_v40 }
0x15bd   :  { %v3776_v57 = vmul.f32 %v3774_v41, %v3774_v41  ;;  %v3777_v44 = vmul.f32 %v3775_v42, %v3775_v42 }
0x15bf   :  { %v3778_v45 = vadd.f32 %v3777_v44, %v3776_v57 }
0x15c1   :  { %v3779_v49 = vrot.slane %v3778_v45, 4 }
0x15c3   :  { %v3780_v50 = vadd.f32 %v3779_v49, %v3778_v45 }
0x15c5   :  { %v3781_v52 = vrot.slane %v3780_v50, 2 }
0x15c7   :  { %v3782_v1 = vadd.f32 %v3781_v52, %v3780_v50 }
0x15c9   :  { %v3783_v47 = vrot.slane %v3782_v1, 1 }
0x15cb   :  { %v3784_v7 = vadd.f32 %v3783_v47, %v3782_v1 }
0x15cd   :  { %v3785_v63 = vmul.f32 0.0625, %v3784_v7 }
0x15cf   :  { %v3786_v10 = vadd.f32 1e-05, %v3785_v63 }
0x15d1   :  { %8910 = vrsqrt.f32 %v3786_v10 }
0x15de   :  { %v8911_v58 = vpop.eup %8910 }
0x15df   :  { %v3788_v12 = vmul.f32 %v8911_v58, %v3774_v41  ;;  %v3789_v27 = vmul.f32 %v8911_v58, %v3775_v42 }
0x15e1   :  { %v3796_v6 = vmul.f32 %v7768_v30, %v3788_v12  ;;  %v3797_v9 = vmul.f32 %v7768_v30, %v3789_v27 }
0x15e3   :  { %v9675_v11 = vadd.f32 %v7769_v13, %v3796_v6  ;;  %v9677_v43 = vadd.f32 %v7769_v13, %v3797_v9 }
0x15e5   :  { %3920 = vmatmul.mubr.f32.vlgmr.msra.gmra.mxu1 %v9675_v11  ;;  %8486 = vmatprep.mubr.f32.mxu0 %v9675_v11 }
0x15e6   :  { %8487 = vmatmul.mubr.f32.vlgmr.msra.gmra.mxu0 %v9677_v43  ;;  %3925 = vmatprep.mubr.f32.mxu1 %v9120_v51 }
0x15e7   :  { %8526 = vmatprep.mubr.msk.f32.mxu0 %vm9121_vm2, %v9120_v51 }
0x15e9   :  { %3926 = vmatmul.mubr.f32.gmra.mxu1 %v9677_v43 }
0x15ea   :  { %8491 = vmatprep.mubr.msk.f32.mxu1 %vm9121_vm2, %v9120_v51 }
0x16a5   :  { %v9688_v46 = vpop.f32.mrf.mxu1 }
0x16a6   :  { %v9697_v17 = vpop.f32.mrf.mxu0 }
0x16a7   :  { %v9690_v48 = vpop.f32.mrf.mxu1 }
0x16a8   :  { %8490 = vmatpush3.xpose.msk.msra.mxu1 %vm431_vm3, %v9690_v48  ;;  %v9708_v15 = vpop.f32.mrf.mxu0 }
0x16a9   :  { %v9694_v14 = vpop.f32.mrf.mxu1  ;;  %8494 = vmatprep.subr.mxu1 %v9120_v51 }
0x16ab   :  { %v9699_v19 = vpop.f32.mrf.mxu1  ;;  %8492 = vmatmul.mubr.msk.f32.vlgmr.msra.gmra.mxu1 %vm431_vm3, %v9688_v46 }
0x16ac   :  { %8495 = vmatpush3.xpose.msk.msra.mxu1 %vm431_vm3, %v9699_v19  ;;  %8496 = vmatprep.mubr.msk.f32.mxu1 %vm9121_vm2, %v9120_v51 }
0x16ad   :  { %8499 = vmatprep.subr.mxu1 %v9120_v51 }
0x16af   :  { %8497 = vmatmul.mubr.msk.f32.vlgmr.msra.gmra.mxu1 %vm431_vm3, %v9694_v14 }
0x16b0   :  { %8500 = vmatpush3.msra.mxu1 %v9708_v15  ;;  %8501 = vmatprep.mubr.msk.f32.mxu1 %vm9121_vm2, %v9120_v51 }
0x16b1   :  { %8504 = vmatprep.subr.mxu1 %v9120_v51 }
0x176b   :  { %v4079_v16 = vpop.f32.mrf.mxu1 }
0x176c   :  { %v4159_v18 = vmul.f32 0.25, %v4079_v16 }
0x176d   :  { %v8493_v61 = vpop.f32.mrf.mxu1 }
0x176e   :  { %v4161_v20 = vsel %vm586_vm4, %v4159_v18, -inf }
0x176f   :  { %4162 = vmax.xlane.f32.xlu1 %v4161_v20  ;;  %v4155_v26 = vpop.f32.mrf.mxu1 }
0x1770   :  { %v4160_v31 = vmul.f32 0.25, %v4155_v26 }
0x1771   :  { %v8498_v33 = vpop.f32.mrf.mxu1 }
0x1772   :  { %v4164_v2 = vsel %vm586_vm4, %v4160_v31, -inf }
0x1773   :  { %4165 = vmax.xlane.f32.xlu0 %v4164_v2 }
0x1780   :  { %4331 = vrot.lane.b32.xlu1 %v9690_v48, %s9122_s2 }
0x1784   :  { %4409 = vrot.lane.b32.xlu1 %v9699_v19, %s9122_s2 }
0x1788   :  { %4407 = vrot.lane.b32.xlu1 %v9694_v14, %s9122_s2 }
0x17f8   :  { %v4163_v5 = vpop.xlane.xlu1 %4162 }
0x17f9   :  { %v4167_v8 = vsub.f32 %v4159_v18, %v4163_v5 }
0x17fb   :  { %v4169_v21 = vmul.f32 1.442695, %v4167_v8 }
0x17fc   :  { %v4166_v22 = vpop.xlane.xlu0 %4165  ;;  %v4332_v35 = vpop.permute.xlu1 %4331 }
0x17fd   :  { %8912 = vpow2.f32 %v4169_v21  ;;  %v4168_v23 = vsub.f32 %v4160_v31, %v4166_v22 }
0x17ff   :  { %v4171_v24 = vmul.f32 1.442695, %v4168_v23 }
0x1800   :  { %v4410_v56 = vpop.permute.xlu1 %4409 }
0x1801   :  { %8914 = vpow2.f32 %v4171_v24 }
0x1804   :  { %v4408_v55 = vpop.permute.xlu1 %4407 }
0x180a   :  { %v8913_v25 = vpop.eup %8912 }
0x180b   :  { %v4173_v28 = vsel %vm586_vm4, %v8913_v25, 0.0 }
0x180c   :  { %4174 = vadd.xlane.f32.xlu0 %v4173_v28 }
0x180e   :  { %v8915_v29 = vpop.eup %8914 }
0x180f   :  { %v4176_v32 = vsel %vm586_vm4, %v8915_v29, 0.0 }
0x1810   :  { %4177 = vadd.xlane.f32.xlu0 %v4176_v32 }
0x1826   :  { %4329 = vrot.lane.b32.xlu0 %v9688_v46, %s9122_s2 }
0x1895   :  { %v4175_v59 = vpop.xlane.xlu0 %4174 }
0x1896   :  { %8916 = vrcp.f32 %v4175_v59 }
0x1899   :  { %v4178_v62 = vpop.xlane.xlu0 %4177 }
0x189a   :  { %8918 = vrcp.f32 %v4178_v62 }
0x189d   :  { %v4330_v38 = vpop.permute.xlu0 %4329 }
0x18a3   :  { %v8917_v60 = vpop.eup %8916 }
0x18a4   :  { %v4180_v34 = vmul.f32 %v8917_v60, %v8913_v25 }
0x18a6   :  { %8502 = vmatmul.mubr.msk.f32.vlgmr.msra.gmra.mxu1 %vm586_vm4, %v4180_v34 }
0x18a7   :  { %v8919_v36 = vpop.eup %8918  ;;  %8505 = vmatpush3.msra.mxu1 %v9697_v17  ;;  %8506 = vmatprep.mubr.msk.f32.mxu1 %vm9121_vm2, %v9120_v51 }
0x18a8   :  { %8509 = vmatprep.subr.mxu1 %v9120_v51  ;;  %v4182_v37 = vmul.f32 %v8919_v36, %v8915_v29 }
0x18aa   :  { %8507 = vmatmul.mubr.msk.f32.vlgmr.msra.gmra.mxu1 %vm586_vm4, %v4182_v37 }
0x18ab   :  { %8510 = vmatpush3.xpose.msk.msra.mxu1 %vm431_vm3, %v4332_v35  ;;  %8511 = vmatprep.mubr.msk.f32.mxu1 %vm9121_vm2, %v9120_v51 }
0x18ac   :  { %8514 = vmatprep.subr.mxu1 %v9120_v51 }
0x18ae   :  { %8512 = vmatmul.mubr.msk.f32.vlgmr.msra.gmra.mxu1 %vm431_vm3, %v4330_v38 }
0x18af   :  { %8515 = vmatpush3.xpose.msk.msra.mxu1 %vm431_vm3, %v4410_v56  ;;  %8516 = vmatprep.mubr.msk.f32.mxu1 %vm9121_vm2, %v9120_v51 }
0x18b0   :  { %8519 = vmatprep.subr.mxu1 %v9120_v51 }
0x18b2   :  { %8517 = vmatmul.mubr.msk.f32.vlgmr.msra.gmra.mxu1 %vm431_vm3, %v4408_v55 }
0x18b3   :  { %8521 = vmatprep.mubr.msk.f32.mxu1 %vm9121_vm2, %v9120_v51 }
0x1966   :  { %v9746_v39 = vpop.f32.mrf.mxu1 }
0x1968   :  { %v8503_v40 = vpop.f32.mrf.mxu1 }
0x196a   :  { %v9748_v41 = vpop.f32.mrf.mxu1 }
0x196c   :  { %v8508_v42 = vpop.f32.mrf.mxu1 }
0x196e   :  { %v4403_v57 = vpop.f32.mrf.mxu1 }
0x196f   :  { %v4485_v44 = vmul.f32 0.25, %v4403_v57 }
0x1970   :  { %v8513_v45 = vpop.f32.mrf.mxu1 }
0x1971   :  { %v4487_v49 = vsel %vm586_vm4, %v4485_v44, -inf }
0x1972   :  { %4488 = vmax.xlane.f32.xlu1 %v4487_v49  ;;  %v4481_v50 = vpop.f32.mrf.mxu1 }
0x1973   :  { %v4486_v52 = vmul.f32 0.25, %v4481_v50 }
0x1974   :  { %v8518_v1 = vpop.f32.mrf.mxu1 }
0x1975   :  { %v4490_v47 = vsel %vm586_vm4, %v4486_v52, -inf }
0x1976   :  { %4491 = vmax.xlane.f32.xlu0 %v4490_v47 }
0x1983   :  { %4510 = vrot.lane.b32.xlu1 %v9708_v15, %s9122_s2 }
0x1987   :  { %4665 = vrot.lane.b32.xlu1 %v9690_v48, %s9123_s21 }
0x198b   :  { %4743 = vrot.lane.b32.xlu1 %v9699_v19, %s9123_s21 }
0x198f   :  { %4663 = vrot.lane.b32.xlu1 %v9688_v46, %s9123_s21 }
0x19fb   :  { %v4489_v7 = vpop.xlane.xlu1 %4488 }
0x19fc   :  { %v4493_v63 = vsub.f32 %v4485_v44, %v4489_v7 }
0x19fe   :  { %v4495_v10 = vmul.f32 1.442695, %v4493_v63 }
0x19ff   :  { %v4511_v58 = vpop.permute.xlu1 %4510  ;;  %v4492_v30 = vpop.xlane.xlu0 %4491 }
0x1a00   :  { %8920 = vpow2.f32 %v4495_v10  ;;  %v4494_v12 = vsub.f32 %v4486_v52, %v4492_v30  ;;  %8520 = vmatpush3.msra.mxu1 %v4511_v58 }
0x1a01   :  { %8529 = vmatprep.subr.mxu1 %v9120_v51 }
0x1a02   :  { %v4497_v27 = vmul.f32 1.442695, %v4494_v12 }
0x1a03   :  { %v4666_v20 = vpop.permute.xlu1 %4665 }
0x1a04   :  { %8922 = vpow2.f32 %v4497_v27 }
0x1a07   :  { %v4744_v33 = vpop.permute.xlu1 %4743 }
0x1a0b   :  { %v4664_v21 = vpop.permute.xlu1 %4663 }
0x1a0d   :  { %v8921_v13 = vpop.eup %8920 }
0x1a0e   :  { %v4499_v6 = vsel %vm586_vm4, %v8921_v13, 0.0 }
0x1a0f   :  { %4500 = vadd.xlane.f32.xlu0 %v4499_v6 }
0x1a11   :  { %v8923_v9 = vpop.eup %8922 }
0x1a12   :  { %v4502_v16 = vsel %vm586_vm4, %v8923_v9, 0.0 }
0x1a13   :  { %4503 = vadd.xlane.f32.xlu0 %v4502_v16 }
0x1a29   :  { %4587 = vrot.lane.b32.xlu0 %v9697_v17, %s9122_s2 }
0x1a2d   :  { %4741 = vrot.lane.b32.xlu0 %v9694_v14, %s9123_s21 }
0x1a98   :  { %v4501_v18 = vpop.xlane.xlu0 %4500 }
0x1a99   :  { %8924 = vrcp.f32 %v4501_v18 }
0x1a9c   :  { %v4504_v61 = vpop.xlane.xlu0 %4503 }
0x1a9d   :  { %8926 = vrcp.f32 %v4504_v61 }
0x1aa0   :  { %v4588_v26 = vpop.permute.xlu0 %4587 }
0x1aa1   :  { %8525 = vmatpush3.msra.mxu0 %v4588_v26 }
0x1aa2   :  { %8534 = vmatprep.subr.mxu0 %v9120_v51 }
0x1aa4   :  { %v4742_v22 = vpop.permute.xlu0 %4741 }
0x1aa6   :  { %v8925_v31 = vpop.eup %8924 }
0x1aa7   :  { %v4506_v2 = vmul.f32 %v8925_v31, %v8921_v13 }
0x1aa9   :  { %8522 = vmatmul.mubr.msk.f32.vlgmr.msra.gmra.mxu1 %vm586_vm4, %v4506_v2 }
0x1aaa   :  { %v8927_v5 = vpop.eup %8926  ;;  %8530 = vmatpush3.xpose.msk.msra.mxu1 %vm431_vm3, %v4666_v20  ;;  %8531 = vmatprep.mubr.msk.f32.mxu1 %vm9121_vm2, %v9120_v51 }
0x1aab   :  { %v4508_v8 = vmul.f32 %v8927_v5, %v8923_v9  ;;  %8539 = vmatprep.subr.mxu1 %v9120_v51 }
0x1aad   :  { %8527 = vmatmul.mubr.msk.f32.vlgmr.msra.gmra.mxu0 %vm586_vm4, %v4508_v8  ;;  %8532 = vmatmul.mubr.msk.f32.vlgmr.msra.gmra.mxu1 %vm431_vm3, %v4664_v21 }
0x1aae   :  { %8535 = vmatpush3.xpose.msk.msra.mxu0 %vm431_vm3, %v4744_v33  ;;  %8536 = vmatprep.mubr.msk.f32.mxu0 %vm9121_vm2, %v9120_v51 }
0x1aaf   :  { %8544 = vmatprep.subr.mxu0 %v9120_v51  ;;  %8541 = vmatprep.mubr.msk.f32.mxu1 %vm9121_vm2, %v9120_v51 }
0x1ab1   :  { %8537 = vmatmul.mubr.msk.f32.vlgmr.msra.gmra.mxu0 %vm431_vm3, %v4742_v22 }
0x1ab2   :  { %8546 = vmatprep.mubr.msk.f32.mxu0 %vm9121_vm2, %v9120_v51 }
0x1b69   :  { %v9784_v23 = vpop.f32.mrf.mxu1 }
0x1b6b   :  { %v8523_v24 = vpop.f32.mrf.mxu1 }
0x1b6d   :  { %v9786_v25 = vpop.f32.mrf.mxu0  ;;  %v4737_v28 = vpop.f32.mrf.mxu1 }
0x1b6e   :  { %v8809_v29 = vpack.i.bf16 %v9786_v25, %v9784_v23  ;;  %v4819_v32 = vmul.f32 0.25, %v4737_v28 }
0x1b6f   :  { %v8528_v59 = vpop.f32.mrf.mxu0  ;;  %v8533_v62 = vpop.f32.mrf.mxu1 }
0x1b70   :  { %v4821_v60 = vsel %vm586_vm4, %v4819_v32, -inf }
0x1b71   :  { %v4815_v34 = vpop.f32.mrf.mxu0  ;;  %4822 = vmax.xlane.f32.xlu1 %v4821_v60 }
0x1b72   :  { %v4820_v35 = vmul.f32 0.25, %v4815_v34 }
0x1b73   :  { %v8538_v36 = vpop.f32.mrf.mxu0 }
0x1b74   :  { %v4824_v37 = vsel %vm586_vm4, %v4820_v35, -inf }
0x1b75   :  { %4825 = vmax.xlane.f32.xlu0 %v4824_v37 }
0x1b82   :  { %4843 = vrot.lane.b32.xlu1 %v9708_v15, %s9123_s21 }
0x1b86   :  { %4997 = vrot.lane.b32.xlu1 %v9690_v48, %s9124_s22 }
0x1b8a   :  { %5075 = vrot.lane.b32.xlu1 %v9699_v19, %s9124_s22 }
0x1b8e   :  { %4995 = vrot.lane.b32.xlu1 %v9688_v46, %s9124_s22 }
0x1bfa   :  { %v4823_v56 = vpop.xlane.xlu1 %4822 }
0x1bfb   :  { %v4827_v38 = vsub.f32 %v4819_v32, %v4823_v56 }
0x1bfd   :  { %v4829_v55 = vmul.f32 1.442695, %v4827_v38 }
0x1bfe   :  { %v4826_v40 = vpop.xlane.xlu0 %4825  ;;  %v4844_v42 = vpop.permute.xlu1 %4843 }
0x1bff   :  { %8928 = vpow2.f32 %v4829_v55  ;;  %v4828_v57 = vsub.f32 %v4820_v35, %v4826_v40  ;;  %8540 = vmatpush3.msra.mxu1 %v4844_v42 }
0x1c00   :  { %8549 = vmatprep.subr.mxu1 %v9120_v51 }
0x1c01   :  { %v4831_v44 = vmul.f32 1.442695, %v4828_v57 }
0x1c02   :  { %v4998_v7 = vpop.permute.xlu1 %4997 }
0x1c03   :  { %8930 = vpow2.f32 %v4831_v44 }
0x1c06   :  { %v5076_v58 = vpop.permute.xlu1 %5075 }
0x1c0a   :  { %v4996_v13 = vpop.permute.xlu1 %4995 }
0x1c0c   :  { %v8929_v45 = vpop.eup %8928 }
0x1c0d   :  { %v4833_v49 = vsel %vm586_vm4, %v8929_v45, 0.0 }
0x1c0e   :  { %4834 = vadd.xlane.f32.xlu0 %v4833_v49 }
0x1c10   :  { %v8931_v50 = vpop.eup %8930 }
0x1c11   :  { %v4836_v52 = vsel %vm586_vm4, %v8931_v50, 0.0 }
0x1c12   :  { %4837 = vadd.xlane.f32.xlu0 %v4836_v52 }
0x1c28   :  { %4919 = vrot.lane.b32.xlu0 %v9697_v17, %s9123_s21 }
0x1c2c   :  { %5073 = vrot.lane.b32.xlu0 %v9694_v14, %s9124_s22 }
0x1c97   :  { %v4835_v1 = vpop.xlane.xlu0 %4834 }
0x1c98   :  { %8932 = vrcp.f32 %v4835_v1 }
0x1c9b   :  { %v4838_v47 = vpop.xlane.xlu0 %4837 }
0x1c9c   :  { %8934 = vrcp.f32 %v4838_v47 }
0x1c9f   :  { %v4920_v63 = vpop.permute.xlu0 %4919 }
0x1ca0   :  { %8545 = vmatpush3.msra.mxu0 %v4920_v63 }
0x1ca1   :  { %8554 = vmatprep.subr.mxu0 %v9120_v51 }
0x1ca3   :  { %v5074_v6 = vpop.permute.xlu0 %5073 }
0x1ca5   :  { %v8933_v10 = vpop.eup %8932 }
0x1ca6   :  { %v4840_v30 = vmul.f32 %v8933_v10, %v8929_v45 }
0x1ca8   :  { %8542 = vmatmul.mubr.msk.f32.vlgmr.msra.gmra.mxu1 %vm586_vm4, %v4840_v30 }
0x1ca9   :  { %v8935_v12 = vpop.eup %8934  ;;  %8550 = vmatpush3.xpose.msk.msra.mxu1 %vm431_vm3, %v4998_v7  ;;  %8551 = vmatprep.mubr.msk.f32.mxu1 %vm9121_vm2, %v9120_v51 }
0x1caa   :  { %v4842_v27 = vmul.f32 %v8935_v12, %v8931_v50  ;;  %8559 = vmatprep.subr.mxu1 %v9120_v51 }
0x1cac   :  { %8547 = vmatmul.mubr.msk.f32.vlgmr.msra.gmra.mxu0 %vm586_vm4, %v4842_v27  ;;  %8552 = vmatmul.mubr.msk.f32.vlgmr.msra.gmra.mxu1 %vm431_vm3, %v4996_v13 }
0x1cad   :  { %8555 = vmatpush3.xpose.msk.msra.mxu0 %vm431_vm3, %v5076_v58  ;;  %8556 = vmatprep.mubr.msk.f32.mxu0 %vm9121_vm2, %v9120_v51 }
0x1cae   :  { %8564 = vmatprep.subr.mxu0 %v9120_v51  ;;  %8561 = vmatprep.mubr.msk.f32.mxu1 %vm9121_vm2, %v9120_v51 }
0x1cb0   :  { %8557 = vmatmul.mubr.msk.f32.vlgmr.msra.gmra.mxu0 %vm431_vm3, %v5074_v6 }
0x1cb1   :  { %8566 = vmatprep.mubr.msk.f32.mxu0 %vm9121_vm2, %v9120_v51 }
0x1d68   :  { %v9824_v9 = vpop.f32.mrf.mxu1 }
0x1d6a   :  { %v8543_v16 = vpop.f32.mrf.mxu1 }
0x1d6c   :  { %v9826_v18 = vpop.f32.mrf.mxu0  ;;  %v5069_v61 = vpop.f32.mrf.mxu1 }
0x1d6d   :  { %v8814_v20 = vpack.i.bf16 %v9826_v18, %v9824_v9  ;;  %v5151_v26 = vmul.f32 0.25, %v5069_v61 }
0x1d6e   :  { %v8548_v31 = vpop.f32.mrf.mxu0  ;;  %v8553_v33 = vpop.f32.mrf.mxu1 }
0x1d6f   :  { %v5153_v2 = vsel %vm586_vm4, %v5151_v26, -inf }
0x1d70   :  { %v5147_v5 = vpop.f32.mrf.mxu0  ;;  %5154 = vmax.xlane.f32.xlu1 %v5153_v2 }
0x1d71   :  { %v5152_v8 = vmul.f32 0.25, %v5147_v5 }
0x1d72   :  { %v8558_v21 = vpop.f32.mrf.mxu0 }
0x1d73   :  { %v5156_v22 = vsel %vm586_vm4, %v5152_v8, -inf }
0x1d74   :  { %5157 = vmax.xlane.f32.xlu0 %v5156_v22 }
0x1d81   :  { %5175 = vrot.lane.b32.xlu1 %v9708_v15, %s9124_s22 }
0x1d85   :  { %5329 = vrot.lane.b32.xlu1 %v9690_v48, %s9125_s3 }
0x1d89   :  { %5407 = vrot.lane.b32.xlu1 %v9699_v19, %s9125_s3 }
0x1d8d   :  { %5327 = vrot.lane.b32.xlu1 %v9688_v46, %s9125_s3 }
0x1df9   :  { %v5155_v24 = vpop.xlane.xlu1 %5154 }
0x1dfa   :  { %v5159_v28 = vsub.f32 %v5151_v26, %v5155_v24 }
0x1dfc   :  { %v5161_v32 = vmul.f32 1.442695, %v5159_v28 }
0x1dfd   :  { %v5158_v59 = vpop.xlane.xlu0 %5157  ;;  %v5176_v62 = vpop.permute.xlu1 %5175 }
0x1dfe   :  { %8936 = vpow2.f32 %v5161_v32  ;;  %v5160_v60 = vsub.f32 %v5152_v8, %v5158_v59  ;;  %8560 = vmatpush3.msra.mxu1 %v5176_v62 }
0x1dff   :  { %8569 = vmatprep.subr.mxu1 %v9120_v51 }
0x1e00   :  { %v5163_v34 = vmul.f32 1.442695, %v5160_v60 }
0x1e01   :  { %v5330_v40 = vpop.permute.xlu1 %5329 }
0x1e02   :  { %8938 = vpow2.f32 %v5163_v34 }
0x1e05   :  { %v5408_v44 = vpop.permute.xlu1 %5407 }
0x1e09   :  { %v5328_v52 = vpop.permute.xlu1 %5327 }
0x1e0b   :  { %v8937_v35 = vpop.eup %8936 }
0x1e0c   :  { %v5165_v36 = vsel %vm586_vm4, %v8937_v35, 0.0 }
0x1e0d   :  { %5166 = vadd.xlane.f32.xlu0 %v5165_v36 }
0x1e0f   :  { %v8939_v37 = vpop.eup %8938 }
0x1e10   :  { %v5168_v56 = vsel %vm586_vm4, %v8939_v37, 0.0 }
0x1e11   :  { %5169 = vadd.xlane.f32.xlu0 %v5168_v56 }
0x1e27   :  { %5251 = vrot.lane.b32.xlu0 %v9697_v17, %s9124_s22 }
0x1e2b   :  { %5405 = vrot.lane.b32.xlu0 %v9694_v14, %s9125_s3 }
0x1e96   :  { %v5167_v38 = vpop.xlane.xlu0 %5166 }
0x1e97   :  { %8940 = vrcp.f32 %v5167_v38 }
0x1e9a   :  { %v5170_v55 = vpop.xlane.xlu0 %5169 }
0x1e9b   :  { %8942 = vrcp.f32 %v5170_v55 }
0x1e9e   :  { %v5252_v42 = vpop.permute.xlu0 %5251 }
0x1e9f   :  { %8565 = vmatpush3.msra.mxu0 %v5252_v42 }
0x1ea0   :  { %8574 = vmatprep.subr.mxu0 %v9120_v51 }
0x1ea2   :  { %v5406_v1 = vpop.permute.xlu0 %5405 }
0x1ea4   :  { %v8941_v57 = vpop.eup %8940 }
0x1ea5   :  { %v5172_v45 = vmul.f32 %v8941_v57, %v8937_v35 }
0x1ea7   :  { %8562 = vmatmul.mubr.msk.f32.vlgmr.msra.gmra.mxu1 %vm586_vm4, %v5172_v45 }
0x1ea8   :  { %v8943_v49 = vpop.eup %8942  ;;  %8570 = vmatpush3.xpose.msk.msra.mxu1 %vm431_vm3, %v5330_v40  ;;  %8571 = vmatprep.mubr.msk.f32.mxu1 %vm9121_vm2, %v9120_v51 }
0x1ea9   :  { %v5174_v50 = vmul.f32 %v8943_v49, %v8939_v37  ;;  %8579 = vmatprep.subr.mxu1 %v9120_v51 }
0x1eab   :  { %8567 = vmatmul.mubr.msk.f32.vlgmr.msra.gmra.mxu0 %vm586_vm4, %v5174_v50  ;;  %8572 = vmatmul.mubr.msk.f32.vlgmr.msra.gmra.mxu1 %vm431_vm3, %v5328_v52 }
0x1eac   :  { %8575 = vmatpush3.xpose.msk.msra.mxu0 %vm431_vm3, %v5408_v44  ;;  %8576 = vmatprep.mubr.msk.f32.mxu0 %vm9121_vm2, %v9120_v51 }
0x1ead   :  { %8584 = vmatprep.subr.mxu0 %v9120_v51  ;;  %8581 = vmatprep.mubr.msk.f32.mxu1 %vm9121_vm2, %v9120_v51 }
0x1eaf   :  { %8577 = vmatmul.mubr.msk.f32.vlgmr.msra.gmra.mxu0 %vm431_vm3, %v5406_v1 }
0x1eb0   :  { %8586 = vmatprep.mubr.msk.f32.mxu0 %vm9121_vm2, %v9120_v51 }
0x1f67   :  { %v9864_v47 = vpop.f32.mrf.mxu1 }
0x1f69   :  { %v8563_v7 = vpop.f32.mrf.mxu1 }
0x1f6b   :  { %v9866_v63 = vpop.f32.mrf.mxu0  ;;  %v5401_v10 = vpop.f32.mrf.mxu1 }
0x1f6c   :  { %v8819_v58 = vpack.i.bf16 %v9866_v63, %v9864_v47  ;;  %v5483_v30 = vmul.f32 0.25, %v5401_v10 }
0x1f6d   :  { %v8568_v12 = vpop.f32.mrf.mxu0  ;;  %v8573_v27 = vpop.f32.mrf.mxu1 }
0x1f6e   :  { %v5485_v13 = vsel %vm586_vm4, %v5483_v30, -inf }
0x1f6f   :  { %v5479_v6 = vpop.f32.mrf.mxu0  ;;  %5486 = vmax.xlane.f32.xlu1 %v5485_v13 }
0x1f70   :  { %v5484_v16 = vmul.f32 0.25, %v5479_v6 }
0x1f71   :  { %v8578_v61 = vpop.f32.mrf.mxu0 }
0x1f72   :  { %v5488_v26 = vsel %vm586_vm4, %v5484_v16, -inf }
0x1f73   :  { %5489 = vmax.xlane.f32.xlu0 %v5488_v26 }
0x1f80   :  { %5507 = vrot.lane.b32.xlu1 %v9708_v15, %s9125_s3 }
0x1f84   :  { %5661 = vrot.lane.b32.xlu1 %v9690_v48, %s9126_s1 }
0x1f88   :  { %5739 = vrot.lane.b32.xlu1 %v9699_v19, %s9126_s1 }
0x1f8c   :  { %5659 = vrot.lane.b32.xlu1 %v9688_v46, %s9126_s1 }
0x1ff8   :  { %v5487_v31 = vpop.xlane.xlu1 %5486 }
0x1ff9   :  { %v5491_v33 = vsub.f32 %v5483_v30, %v5487_v31 }
0x1ffb   :  { %v5493_v2 = vmul.f32 1.442695, %v5491_v33 }
0x1ffc   :  { %v5490_v5 = vpop.xlane.xlu0 %5489  ;;  %v5508_v8 = vpop.permute.xlu1 %5507 }
0x1ffd   :  { %8944 = vpow2.f32 %v5493_v2  ;;  %v5492_v21 = vsub.f32 %v5484_v16, %v5490_v5  ;;  %8580 = vmatpush3.msra.mxu1 %v5508_v8 }
0x1ffe   :  { %8589 = vmatprep.subr.mxu1 %v9120_v51 }
0x1fff   :  { %v5495_v22 = vmul.f32 1.442695, %v5492_v21 }
0x2000   :  { %v5662_v34 = vpop.permute.xlu1 %5661 }
0x2001   :  { %8946 = vpow2.f32 %v5495_v22 }
0x2004   :  { %v5740_v37 = vpop.permute.xlu1 %5739 }
0x2008   :  { %v5660_v40 = vpop.permute.xlu1 %5659 }
0x200a   :  { %v8945_v24 = vpop.eup %8944 }
0x200b   :  { %v5497_v28 = vsel %vm586_vm4, %v8945_v24, 0.0 }
0x200c   :  { %5498 = vadd.xlane.f32.xlu0 %v5497_v28 }
0x200e   :  { %v8947_v32 = vpop.eup %8946 }
0x200f   :  { %v5500_v59 = vsel %vm586_vm4, %v8947_v32, 0.0 }
0x2010   :  { %5501 = vadd.xlane.f32.xlu0 %v5500_v59 }
0x2026   :  { %5583 = vrot.lane.b32.xlu0 %v9697_v17, %s9125_s3 }
0x202a   :  { %5737 = vrot.lane.b32.xlu0 %v9694_v14, %s9126_s1 }
0x2095   :  { %v5499_v62 = vpop.xlane.xlu0 %5498 }
0x2096   :  { %8948 = vrcp.f32 %v5499_v62 }
0x2099   :  { %v5502_v60 = vpop.xlane.xlu0 %5501 }
0x209a   :  { %8950 = vrcp.f32 %v5502_v60 }
0x209d   :  { %v5584_v35 = vpop.permute.xlu0 %5583 }
0x209e   :  { %8585 = vmatpush3.msra.mxu0 %v5584_v35 }
0x209f   :  { %8594 = vmatprep.subr.mxu0 %v9120_v51 }
0x20a1   :  { %v5738_v42 = vpop.permute.xlu0 %5737 }
0x20a3   :  { %v8949_v36 = vpop.eup %8948 }
0x20a4   :  { %v5504_v56 = vmul.f32 %v8949_v36, %v8945_v24 }
0x20a6   :  { %8582 = vmatmul.mubr.msk.f32.vlgmr.msra.gmra.mxu1 %vm586_vm4, %v5504_v56 }
0x20a7   :  { %v8951_v38 = vpop.eup %8950  ;;  %8590 = vmatpush3.xpose.msk.msra.mxu1 %vm431_vm3, %v5662_v34  ;;  %8591 = vmatprep.mubr.msk.f32.mxu1 %vm9121_vm2, %v9120_v51 }
0x20a8   :  { %v5506_v55 = vmul.f32 %v8951_v38, %v8947_v32  ;;  %8599 = vmatprep.subr.mxu1 %v9120_v51 }
0x20aa   :  { %8587 = vmatmul.mubr.msk.f32.vlgmr.msra.gmra.mxu0 %vm586_vm4, %v5506_v55  ;;  %8592 = vmatmul.mubr.msk.f32.vlgmr.msra.gmra.mxu1 %vm431_vm3, %v5660_v40 }
0x20ab   :  { %8595 = vmatpush3.xpose.msk.msra.mxu0 %vm431_vm3, %v5740_v37  ;;  %8596 = vmatprep.mubr.msk.f32.mxu0 %vm9121_vm2, %v9120_v51 }
0x20ac   :  { %8604 = vmatprep.subr.mxu0 %v9120_v51  ;;  %8601 = vmatprep.mubr.msk.f32.mxu1 %vm9121_vm2, %v9120_v51 }
0x20ae   :  { %8597 = vmatmul.mubr.msk.f32.vlgmr.msra.gmra.mxu0 %vm431_vm3, %v5738_v42 }
0x20af   :  { %8606 = vmatprep.mubr.msk.f32.mxu0 %vm9121_vm2, %v9120_v51 }
0x2166   :  { %v9904_v57 = vpop.f32.mrf.mxu1 }
0x2168   :  { %v8583_v44 = vpop.f32.mrf.mxu1 }
0x216a   :  { %v9906_v45 = vpop.f32.mrf.mxu0  ;;  %v5733_v49 = vpop.f32.mrf.mxu1 }
0x216b   :  { %v8824_v50 = vpack.i.bf16 %v9906_v45, %v9904_v57  ;;  %v5815_v52 = vmul.f32 0.25, %v5733_v49  ;;  %v6740_v57 = vld [vmem:[#allocation4 + $0xf0] sm:$0xff]  ;;  %v6739_v45 = vld [vmem:[#allocation4 + $0xe8] sm:$0xff] }
0x216c   :  { %v8588_v1 = vpop.f32.mrf.mxu0  ;;  %v8593_v7 = vpop.f32.mrf.mxu1 }
0x216d   :  { %v5817_v10 = vsel %vm586_vm4, %v5815_v52, -inf }
0x216e   :  { %v5811_v30 = vpop.f32.mrf.mxu0  ;;  %5818 = vmax.xlane.f32.xlu1 %v5817_v10 }
0x216f   :  { %v5816_v12 = vmul.f32 0.25, %v5811_v30 }
0x2170   :  { %v8598_v27 = vpop.f32.mrf.mxu0 }
0x2171   :  { %v5820_v13 = vsel %vm586_vm4, %v5816_v12, -inf }
0x2172   :  { %5821 = vmax.xlane.f32.xlu0 %v5820_v13 }
0x217f   :  { %5839 = vrot.lane.b32.xlu1 %v9708_v15, %s9126_s1 }
0x2183   :  { %5993 = vrot.lane.b32.xlu1 %v9690_v48, %s9117_s18 }
0x2187   :  { %6071 = vrot.lane.b32.xlu1 %v9699_v19, %s9117_s18 }
0x218b   :  { %5991 = vrot.lane.b32.xlu1 %v9688_v46, %s9117_s18 }
0x21f7   :  { %v5819_v6 = vpop.xlane.xlu1 %5818 }
0x21f8   :  { %v5823_v16 = vsub.f32 %v5815_v52, %v5819_v6 }
0x21fa   :  { %v5825_v61 = vmul.f32 1.442695, %v5823_v16 }
0x21fb   :  { %v5822_v26 = vpop.xlane.xlu0 %5821  ;;  %v5840_v31 = vpop.permute.xlu1 %5839 }
0x21fc   :  { %8952 = vpow2.f32 %v5825_v61  ;;  %v5824_v33 = vsub.f32 %v5816_v12, %v5822_v26  ;;  %8600 = vmatpush3.msra.mxu1 %v5840_v31 }
0x21fd   :  { %8609 = vmatprep.subr.mxu1 %v9120_v51 }
0x21fe   :  { %v5827_v2 = vmul.f32 1.442695, %v5824_v33 }
0x21ff   :  { %v5994_v32 = vpop.permute.xlu1 %5993 }
0x2200   :  { %8954 = vpow2.f32 %v5827_v2 }
0x2203   :  { %v6072_v60 = vpop.permute.xlu1 %6071 }
0x2207   :  { %v5992_v37 = vpop.permute.xlu1 %5991 }
0x2209   :  { %v8953_v5 = vpop.eup %8952 }
0x220a   :  { %v5829_v8 = vsel %vm586_vm4, %v8953_v5, 0.0 }
0x220b   :  { %5830 = vadd.xlane.f32.xlu0 %v5829_v8 }
0x220d   :  { %v8955_v21 = vpop.eup %8954 }
0x220e   :  { %v5832_v22 = vsel %vm586_vm4, %v8955_v21, 0.0 }
0x220f   :  { %5833 = vadd.xlane.f32.xlu0 %v5832_v22 }
0x2225   :  { %5915 = vrot.lane.b32.xlu0 %v9697_v17, %s9126_s1 }
0x2229   :  { %6069 = vrot.lane.b32.xlu0 %v9694_v14, %s9117_s18 }
0x2294   :  { %v5831_v24 = vpop.xlane.xlu0 %5830 }
0x2295   :  { %8956 = vrcp.f32 %v5831_v24 }
0x2298   :  { %v5834_v28 = vpop.xlane.xlu0 %5833 }
0x2299   :  { %8958 = vrcp.f32 %v5834_v28 }
0x229c   :  { %v5916_v59 = vpop.permute.xlu0 %5915 }
0x229d   :  { %8605 = vmatpush3.msra.mxu0 %v5916_v59 }
0x229e   :  { %8614 = vmatprep.subr.mxu0 %v9120_v51 }
0x22a0   :  { %v6070_v56 = vpop.permute.xlu0 %6069 }
0x22a2   :  { %v8957_v62 = vpop.eup %8956 }
0x22a3   :  { %v5836_v34 = vmul.f32 %v8957_v62, %v8953_v5 }
0x22a5   :  { %8602 = vmatmul.mubr.msk.f32.vlgmr.msra.gmra.mxu1 %vm586_vm4, %v5836_v34 }
0x22a6   :  { %v8959_v35 = vpop.eup %8958  ;;  %8610 = vmatpush3.xpose.msk.msra.mxu1 %vm431_vm3, %v5994_v32  ;;  %8611 = vmatprep.mubr.msk.f32.mxu1 %vm9121_vm2, %v9120_v51 }
0x22a7   :  { %v5838_v36 = vmul.f32 %v8959_v35, %v8955_v21  ;;  %8619 = vmatprep.subr.mxu1 %v9120_v51 }
0x22a9   :  { %8607 = vmatmul.mubr.msk.f32.vlgmr.msra.gmra.mxu0 %vm586_vm4, %v5838_v36  ;;  %8612 = vmatmul.mubr.msk.f32.vlgmr.msra.gmra.mxu1 %vm431_vm3, %v5992_v37 }
0x22aa   :  { %8615 = vmatpush3.xpose.msk.msra.mxu0 %vm431_vm3, %v6072_v60  ;;  %8616 = vmatprep.mubr.msk.f32.mxu0 %vm9121_vm2, %v9120_v51 }
0x22ab   :  { %8624 = vmatprep.subr.mxu0 %v9120_v51  ;;  %8621 = vmatprep.mubr.msk.f32.mxu1 %vm9121_vm2, %v9120_v51 }
0x22ad   :  { %8617 = vmatmul.mubr.msk.f32.vlgmr.msra.gmra.mxu0 %vm431_vm3, %v6070_v56 }
0x22ae   :  { %8626 = vmatprep.mubr.msk.f32.mxu0 %vm9121_vm2, %v9120_v51 }
0x2365   :  { %v9944_v38 = vpop.f32.mrf.mxu1 }
0x2367   :  { %v8603_v55 = vpop.f32.mrf.mxu1 }
0x2369   :  { %v9946_v40 = vpop.f32.mrf.mxu0  ;;  %v6065_v42 = vpop.f32.mrf.mxu1 }
0x236a   :  { %v8829_v44 = vpack.i.bf16 %v9946_v40, %v9944_v38  ;;  %v6147_v49 = vmul.f32 0.25, %v6065_v42 }
0x236b   :  { %v8608_v52 = vpop.f32.mrf.mxu0  ;;  %v8613_v1 = vpop.f32.mrf.mxu1 }
0x236c   :  { %v6149_v7 = vsel %vm586_vm4, %v6147_v49, -inf }
0x236d   :  { %v6143_v10 = vpop.f32.mrf.mxu0  ;;  %6150 = vmax.xlane.f32.xlu1 %v6149_v7 }
0x236e   :  { %v6148_v30 = vmul.f32 0.25, %v6143_v10 }
0x236f   :  { %v8618_v12 = vpop.f32.mrf.mxu0 }
0x2370   :  { %v6152_v27 = vsel %vm586_vm4, %v6148_v30, -inf }
0x2371   :  { %6153 = vmax.xlane.f32.xlu0 %v6152_v27 }
0x237e   :  { %6171 = vrot.lane.b32.xlu1 %v9708_v15, %s9117_s18 }
0x2382   :  { %6325 = vrot.lane.b32.xlu1 %v9690_v48, %s9127_s4 }
0x2386   :  { %6403 = vrot.lane.b32.xlu1 %v9699_v19, %s9127_s4 }
0x238a   :  { %6323 = vrot.lane.b32.xlu1 %v9688_v46, %s9127_s4 }
0x23f6   :  { %v6151_v13 = vpop.xlane.xlu1 %6150 }
0x23f7   :  { %v6155_v6 = vsub.f32 %v6147_v49, %v6151_v13 }
0x23f9   :  { %v6157_v16 = vmul.f32 1.442695, %v6155_v6 }
0x23fa   :  { %v6154_v61 = vpop.xlane.xlu0 %6153  ;;  %v6172_v26 = vpop.permute.xlu1 %6171 }
0x23fb   :  { %8960 = vpow2.f32 %v6157_v16  ;;  %v6156_v31 = vsub.f32 %v6148_v30, %v6154_v61  ;;  %8620 = vmatpush3.msra.mxu1 %v6172_v26  ;;  %v6737_v61 = vld [vmem:[#allocation4 + $0xd8] sm:$0xff]  ;;  %v6736_v26 = vld [vmem:[#allocation4 + $0xd0] sm:$0xff] }
0x23fc   :  { %8629 = vmatprep.subr.mxu1 %v9120_v51 }
0x23fd   :  { %v6159_v33 = vmul.f32 1.442695, %v6156_v31  ;;  %v6735_v31 = vld [vmem:[#allocation4 + $0xc8] sm:$0xff] }
0x23fe   :  { %v6326_v21 = vpop.permute.xlu1 %6325 }
0x23ff   :  { %8962 = vpow2.f32 %v6159_v33  ;;  %v6734_v33 = vld [vmem:[#allocation4 + $0xc0] sm:$0xff] }
0x2402   :  { %v6404_v28 = vpop.permute.xlu1 %6403 }
0x2406   :  { %v6324_v62 = vpop.permute.xlu1 %6323 }
0x2408   :  { %v8961_v2 = vpop.eup %8960 }
0x2409   :  { %v6161_v48 = vsel %vm586_vm4, %v8961_v2, 0.0 }
0x240a   :  { %6162 = vadd.xlane.f32.xlu0 %v6161_v48  ;;  %v6732_v48 = vld [vmem:[#allocation4 + $0xb0] sm:$0xff] }
0x240c   :  { %v8963_v19 = vpop.eup %8962 }
0x240d   :  { %v6164_v5 = vsel %vm586_vm4, %v8963_v19, 0.0 }
0x240e   :  { %6165 = vadd.xlane.f32.xlu0 %v6164_v5  ;;  %v6730_v5 = vld [vmem:[#allocation4 + $0xa0] sm:$0xff] }
0x2424   :  { %6247 = vrot.lane.b32.xlu0 %v9697_v17, %s9117_s18 }
0x2428   :  { %6401 = vrot.lane.b32.xlu0 %v9694_v14, %s9127_s4 }
0x2493   :  { %v6163_v46 = vpop.xlane.xlu0 %6162 }
0x2494   :  { %8964 = vrcp.f32 %v6163_v46  ;;  %v6729_v46 = vld [vmem:[#allocation4 + $0x98] sm:$0xff] }
0x2497   :  { %v6166_v8 = vpop.xlane.xlu0 %6165 }
0x2498   :  { %8966 = vrcp.f32 %v6166_v8  ;;  %v6728_v8 = vld [vmem:[#allocation4 + $0x90] sm:$0xff] }
0x249b   :  { %v6248_v22 = vpop.permute.xlu0 %6247 }
0x249c   :  { %8625 = vmatpush3.msra.mxu0 %v6248_v22  ;;  %v6726_v22 = vld [vmem:[#allocation4 + $0x80] sm:$0xff] }
0x249d   :  { %8634 = vmatprep.subr.mxu0 %v9120_v51 }
0x249f   :  { %v6402_v60 = vpop.permute.xlu0 %6401 }
0x24a1   :  { %v8965_v24 = vpop.eup %8964 }
0x24a2   :  { %v6168_v32 = vmul.f32 %v8965_v24, %v8961_v2  ;;  %v6733_v2 = vld [vmem:[#allocation4 + $0xb8] sm:$0xff] }
0x24a4   :  { %8622 = vmatmul.mubr.msk.f32.vlgmr.msra.gmra.mxu1 %vm586_vm4, %v6168_v32 }
0x24a5   :  { %v8967_v59 = vpop.eup %8966  ;;  %8630 = vmatpush3.xpose.msk.msra.mxu1 %vm431_vm3, %v6326_v21  ;;  %8631 = vmatprep.mubr.msk.f32.mxu1 %vm9121_vm2, %v9120_v51  ;;  %v6727_v21 = vld [vmem:[#allocation4 + $0x88] sm:$0xff] }
0x24a6   :  { %v6170_v14 = vmul.f32 %v8967_v59, %v8963_v19  ;;  %8639 = vmatprep.subr.mxu1 %v9120_v51  ;;  %v6731_v19 = vld [vmem:[#allocation4 + $0xa8] sm:$0xff] }
0x24a8   :  { %8627 = vmatmul.mubr.msk.f32.vlgmr.msra.gmra.mxu0 %vm586_vm4, %v6170_v14  ;;  %8632 = vmatmul.mubr.msk.f32.vlgmr.msra.gmra.mxu1 %vm431_vm3, %v6324_v62 }
0x24a9   :  { %8635 = vmatpush3.xpose.msk.msra.mxu0 %vm431_vm3, %v6404_v28  ;;  %8636 = vmatprep.mubr.msk.f32.mxu0 %vm9121_vm2, %v9120_v51 }
0x24aa   :  { %8644 = vmatprep.subr.mxu0 %v9120_v51  ;;  %8641 = vmatprep.mubr.msk.f32.mxu1 %vm9121_vm2, %v9120_v51 }
0x24ac   :  { %8637 = vmatmul.mubr.msk.f32.vlgmr.msra.gmra.mxu0 %vm431_vm3, %v6402_v60 }
0x24ad   :  { %8646 = vmatprep.mubr.msk.f32.mxu0 %vm9121_vm2, %v9120_v51 }
0x2564   :  { %v6243_v34 = vpop.f32.mrf.mxu1 }
0x2566   :  { %v8623_v35 = vpop.f32.mrf.mxu1 }
0x2568   :  { %v6319_v36 = vpop.f32.mrf.mxu0  ;;  %v6397_v37 = vpop.f32.mrf.mxu1 }
0x2569   :  { %v8834_v56 = vpack.i.bf16 %v6319_v36, %v6243_v34  ;;  %v6479_v55 = vmul.f32 0.25, %v6397_v37 }
0x256a   :  { %v8628_v42 = vpop.f32.mrf.mxu0  ;;  %v8633_v49 = vpop.f32.mrf.mxu1 }
0x256b   :  { %v6481_v52 = vsel %vm586_vm4, %v6479_v55, -inf }
0x256c   :  { %v6475_v1 = vpop.f32.mrf.mxu0  ;;  %6482 = vmax.xlane.f32.xlu1 %v6481_v52 }
0x256d   :  { %v6480_v7 = vmul.f32 0.25, %v6475_v1 }
0x256e   :  { %v8638_v10 = vpop.f32.mrf.mxu0 }
0x256f   :  { %v6484_v30 = vsel %vm586_vm4, %v6480_v7, -inf }
0x2570   :  { %6485 = vmax.xlane.f32.xlu0 %v6484_v30 }
0x257d   :  { %6503 = vrot.lane.b32.xlu1 %v9708_v15, %s9127_s4 }
0x2581   :  { %8810 = vrot.lane.b32.xlu1 %v8809_v29, %s9127_s4 }
0x2585   :  { %8815 = vrot.lane.b32.xlu1 %v8814_v20, %s9117_s18 }
0x2589   :  { %8820 = vrot.lane.b32.xlu1 %v8819_v58, %s9126_s1 }
0x258d   :  { %8830 = vrot.lane.b32.xlu1 %v8829_v44, %s9124_s22 }
0x25f5   :  { %v6483_v15 = vpop.xlane.xlu1 %6482 }
0x25f6   :  { %v6487_v12 = vsub.f32 %v6479_v55, %v6483_v15 }
0x25f8   :  { %v6489_v27 = vmul.f32 1.442695, %v6487_v12 }
0x25f9   :  { %v6486_v23 = vpop.xlane.xlu0 %6485  ;;  %v6504_v25 = vpop.permute.xlu1 %6503 }
0x25fa   :  { %8968 = vpow2.f32 %v6489_v27  ;;  %v6488_v29 = vsub.f32 %v6480_v7, %v6486_v23  ;;  %8640 = vmatpush3.msra.mxu1 %v6504_v25 }
0x25fc   :  { %v6491_v9 = vmul.f32 1.442695, %v6488_v29 }
0x25fd   :  { %v8811_v62 = vpop.permute.xlu1 %8810 }
0x25fe   :  { %8970 = vpow2.f32 %v6491_v9  ;;  %v8813_v36 = vunpack.i.h.bf16 %v8811_v62  ;;  %v8812_v37 = vunpack.i.l.bf16 %v8811_v62  ;;  %v6907_v62 = vld [vmem:[#allocation6 + $0x358] sm:$0xff] }
0x2600   :  { %v6712_v7 = vsel %vm431_vm3, %v9748_v41, %v8813_v36  ;;  %v6711_v10 = vsel %vm431_vm3, %v9746_v39, %v8812_v37  ;;  %v6903_v36 = vld [vmem:[#allocation6 + $0x338] sm:$0xff]  ;;  %v6900_v37 = vld [vmem:[#allocation6 + $0x320] sm:$0xff] }
0x2601   :  { %v8816_v60 = vpop.permute.xlu1 %8815 }
0x2602   :  { %v8817_v55 = vunpack.i.l.bf16 %v8816_v60 }
0x2604   :  { %v6713_v15 = vsel %vm3139_vm5, %v6711_v10, %v8817_v55  ;;  %v6897_v55 = vld [vmem:[#allocation6 + $0x308] sm:$0xff]  ;;  %v6892_v10 = vld [vmem:[#allocation6 + $0x2e0] sm:$0xff] }
0x2605   :  { %v8821_v35 = vpop.permute.xlu1 %8820 }
0x2606   :  { %v8823_v42 = vunpack.i.h.bf16 %v8821_v35  ;;  %v8822_v49 = vunpack.i.l.bf16 %v8821_v35  ;;  %v6901_v35 = vld [vmem:[#allocation6 + $0x328] sm:$0xff] }
0x2607   :  { %v8969_v18 = vpop.eup %8968 }
0x2608   :  { %v6493_v20 = vsel %vm586_vm4, %v8969_v18, 0.0  ;;  %v6715_v23 = vsel %vm3142_vm6, %v6713_v15, %v8822_v49  ;;  %v6896_v49 = vld [vmem:[#allocation6 + $0x300] sm:$0xff]  ;;  %v6889_v15 = vld [vmem:[#allocation6 + $0x2c8] sm:$0xff] }
0x2609   :  { %6494 = vadd.xlane.f32.xlu0 %v6493_v20  ;;  %v8831_v27 = vpop.permute.xlu1 %8830 }
0x260a   :  { %v8833_v41 = vunpack.i.h.bf16 %v8831_v27 }
0x260b   :  { %v8971_v47 = vpop.eup %8970 }
0x260c   :  { %v6496_v63 = vsel %vm586_vm4, %v8971_v47, 0.0 }
0x260d   :  { %6497 = vadd.xlane.f32.xlu0 %v6496_v63 }
0x2623   :  { %6579 = vrot.lane.b32.xlu0 %v9697_v17, %s9127_s4  ;;  %v6741_v17 = vld [vmem:[#allocation4 + $0xf8] sm:$0xff] }
0x2624   :  { %8649 = vmatprep.subr.mxu1 %v6741_v17 }
0x2627   :  { %8825 = vrot.lane.b32.xlu0 %v8824_v50, %s9125_s3  ;;  %v6738_v50 = vld [vmem:[#allocation4 + $0xe0] sm:$0xff] }
0x262b   :  { %8835 = vrot.lane.b32.xlu0 %v8834_v56, %s9123_s21  ;;  %v8818_v56 = vunpack.i.h.bf16 %v8816_v60  ;;  %v6904_v60 = vld [vmem:[#allocation6 + $0x340] sm:$0xff] }
0x262d   :  { %v6714_v12 = vsel %vm3139_vm5, %v6712_v7, %v8818_v56  ;;  %v6902_v56 = vld [vmem:[#allocation6 + $0x330] sm:$0xff]  ;;  %v6895_v7 = vld [vmem:[#allocation6 + $0x2f8] sm:$0xff] }
0x262e   :  { %v6716_v25 = vsel %vm3142_vm6, %v6714_v12, %v8823_v42  ;;  %v6899_v42 = vld [vmem:[#allocation6 + $0x318] sm:$0xff] }
0x262f   :  { %v6891_v12 = vld [vmem:[#allocation6 + $0x2d8] sm:$0xff] }
0x2692   :  { %v6495_v58 = vpop.xlane.xlu0 %6494 }
0x2693   :  { %8972 = vrcp.f32 %v6495_v58 }
0x2696   :  { %v6498_v38 = vpop.xlane.xlu0 %6497 }
0x2697   :  { %8974 = vrcp.f32 %v6498_v38 }
0x269a   :  { %v6580_v40 = vpop.permute.xlu0 %6579 }
0x269b   :  { %8645 = vmatpush3.msra.mxu0 %v6580_v40 }
0x269e   :  { %v8826_v34 = vpop.permute.xlu0 %8825 }
0x269f   :  { %v8828_v52 = vunpack.i.h.bf16 %v8826_v34  ;;  %v8827_v1 = vunpack.i.l.bf16 %v8826_v34  ;;  %v6906_v34 = vld [vmem:[#allocation6 + $0x350] sm:$0xff] }
0x26a0   :  { %v8973_v44 = vpop.eup %8972 }
0x26a1   :  { %v6500_v13 = vmul.f32 %v8973_v44, %v8969_v18  ;;  %v6717_v29 = vsel %vm3145_vm7, %v6715_v23, %v8827_v1  ;;  %v6718_v9 = vsel %vm3145_vm7, %v6716_v25, %v8828_v52  ;;  %v6898_v52 = vld [vmem:[#allocation6 + $0x310] sm:$0xff]  ;;  %v6893_v1 = vld [vmem:[#allocation6 + $0x2e8] sm:$0xff] }
0x26a2   :  { %v8836_v30 = vpop.permute.xlu0 %8835  ;;  %v6720_v39 = vsel %vm3148_vm8, %v6718_v9, %v8833_v41  ;;  %v6890_v23 = vld [vmem:[#allocation6 + $0x2d0] sm:$0xff]  ;;  %v6885_v25 = vld [vmem:[#allocation6 + $0x2a8] sm:$0xff]  ;;  %v6884_v9 = vld [vmem:[#allocation6 + $0x2a0] sm:$0xff] }
0x26a3   :  { %8642 = vmatmul.mubr.msk.f32.vlgmr.msra.gmra.mxu1 %vm586_vm4, %v6500_v13  ;;  %v8838_v18 = vunpack.i.h.bf16 %v8836_v30  ;;  %v8837_v20 = vunpack.i.l.bf16 %v8836_v30  ;;  %v6894_v30 = vld [vmem:[#allocation6 + $0x2f0] sm:$0xff]  ;;  %v6883_v41 = vld [vmem:[#allocation6 + $0x298] sm:$0xff] }
0x26a4   :  { %v8975_v6 = vpop.eup %8974  ;;  %8650 = vmatpush3.msra.mxu1 %v6741_v17  ;;  %v6925_v17 = vld [vmem:[#allocation6 + $0x3e8] sm:$0xff] }
0x26a5   :  { %v6502_v16 = vmul.f32 %v8975_v6, %v8971_v47  ;;  %8651 = vmatprep.subr.mxu1 %v6740_v57  ;;  %v8832_v47 = vunpack.i.l.bf16 %v8831_v27  ;;  %v6722_v44 = vsel %vm3151_vm9, %v6720_v39, %v8838_v18  ;;  %6951 = vmatprep.subr.mxu0 %v6925_v17  ;;  %v6888_v27 = vld [vmem:[#allocation6 + $0x2c0] sm:$0xff]  ;;  %v6886_v18 = vld [vmem:[#allocation6 + $0x2b0] sm:$0xff]  ;;  %v6877_v39 = vld [vmem:[#allocation6 + $0x268] sm:$0xff] }
0x26a6   :  { %8652 = vmatpush3.msra.mxu1 %v6740_v57  ;;  %v6927_v57 = vld [vmem:[#allocation6 + $0x3f8] sm:$0xff]  ;;  %v6869_v17 = vld [vmem:[#allocation6 + $0x228] sm:$0xff] }
0x26a7   :  { %8647 = vmatmul.mubr.msk.f32.vlgmr.msra.gmra.mxu0 %vm586_vm4, %v6502_v16  ;;  %8653 = vmatprep.subr.mxu1 %v6739_v45  ;;  %v6719_v40 = vsel %vm3148_vm8, %v6717_v29, %v8832_v47  ;;  %v6887_v29 = vld [vmem:[#allocation6 + $0x2b8] sm:$0xff]  ;;  %v6880_v47 = vld [vmem:[#allocation6 + $0x280] sm:$0xff] }
0x26a8   :  { %7015 = vmatprep.mubr.f32.mxu0 %v9120_v51  ;;  %8654 = vmatpush3.msra.mxu1 %v6739_v45  ;;  %v6721_v13 = vsel %vm3151_vm9, %v6719_v40, %v8837_v20  ;;  %v6924_v45 = vld [vmem:[#allocation6 + $0x3e0] sm:$0xff]  ;;  %v6881_v20 = vld [vmem:[#allocation6 + $0x288] sm:$0xff]  ;;  %v6878_v40 = vld [vmem:[#allocation6 + $0x270] sm:$0xff] }
0x26a9   :  { %8655 = vmatprep.subr.mxu1 %v6738_v50  ;;  %6952 = vmatpush1.msra.mxu0 %v6924_v45  ;;  %v6868_v45 = vld [vmem:[#allocation6 + $0x220] sm:$0xff] }
0x26aa   :  { %8656 = vmatpush3.msra.mxu1 %v6738_v50  ;;  %v6926_v50 = vld [vmem:[#allocation6 + $0x3f0] sm:$0xff] }
0x26ab   :  { %8657 = vmatprep.subr.mxu1 %v6737_v61 }
0x26ac   :  { %8658 = vmatpush3.msra.mxu1 %v6737_v61  ;;  %v6921_v61 = vld [vmem:[#allocation6 + $0x3c8] sm:$0xff] }
0x26ad   :  { %8659 = vmatprep.subr.mxu1 %v6736_v26  ;;  %6953 = vmatprep.subr.mxu0 %v6921_v61  ;;  %v6865_v61 = vld [vmem:[#allocation6 + $0x208] sm:$0xff] }
0x26ae   :  { %8660 = vmatpush3.msra.mxu1 %v6736_v26  ;;  %v6923_v26 = vld [vmem:[#allocation6 + $0x3d8] sm:$0xff] }
0x26af   :  { %8661 = vmatprep.subr.mxu1 %v6735_v31 }
0x26b0   :  { %8662 = vmatpush3.msra.mxu1 %v6735_v31  ;;  %v6920_v31 = vld [vmem:[#allocation6 + $0x3c0] sm:$0xff] }
0x26b1   :  { %8663 = vmatprep.subr.mxu1 %v6734_v33  ;;  %6954 = vmatpush1.msra.mxu0 %v6920_v31  ;;  %v6864_v31 = vld [vmem:[#allocation6 + $0x200] sm:$0xff] }
0x26b2   :  { %8664 = vmatpush3.msra.mxu1 %v6734_v33  ;;  %v6922_v33 = vld [vmem:[#allocation6 + $0x3d0] sm:$0xff] }
0x26b3   :  { %8665 = vmatprep.subr.mxu1 %v6733_v2 }
0x26b4   :  { %8666 = vmatpush3.msra.mxu1 %v6733_v2  ;;  %v6917_v2 = vld [vmem:[#allocation6 + $0x3a8] sm:$0xff] }
0x26b5   :  { %8667 = vmatprep.subr.mxu1 %v6732_v48  ;;  %6955 = vmatprep.subr.mxu0 %v6917_v2  ;;  %v7145_v2 = vld [vmem:[#allocation7 + $0x2f8] sm:$0xff] }
0x26b6   :  { %8668 = vmatpush3.msra.mxu1 %v6732_v48  ;;  %v6919_v48 = vld [vmem:[#allocation6 + $0x3b8] sm:$0xff] }
0x26b7   :  { %8669 = vmatprep.subr.mxu1 %v6731_v19 }
0x26b8   :  { %8670 = vmatpush3.msra.mxu1 %v6731_v19  ;;  %v6916_v19 = vld [vmem:[#allocation6 + $0x3a0] sm:$0xff] }
0x26b9   :  { %8671 = vmatprep.subr.mxu1 %v6730_v5  ;;  %6956 = vmatpush1.msra.mxu0 %v6916_v19 }
0x26ba   :  { %8672 = vmatpush3.msra.mxu1 %v6730_v5  ;;  %v6918_v5 = vld [vmem:[#allocation6 + $0x3b0] sm:$0xff] }
0x26bb   :  { %8673 = vmatprep.subr.mxu1 %v6729_v46 }
0x26bc   :  { %8674 = vmatpush3.msra.mxu1 %v6729_v46  ;;  %v6913_v46 = vld [vmem:[#allocation6 + $0x388] sm:$0xff] }
0x26bd   :  { %8675 = vmatprep.subr.mxu1 %v6728_v8  ;;  %6957 = vmatprep.subr.mxu0 %v6913_v46 }
0x26be   :  { %8676 = vmatpush3.msra.mxu1 %v6728_v8  ;;  %v6915_v8 = vld [vmem:[#allocation6 + $0x398] sm:$0xff] }
0x26bf   :  { %8677 = vmatprep.subr.mxu1 %v6727_v21 }
0x26c0   :  { %8678 = vmatpush3.msra.mxu1 %v6727_v21  ;;  %v6912_v21 = vld [vmem:[#allocation6 + $0x380] sm:$0xff] }
0x26c1   :  { %8679 = vmatprep.subr.mxu1 %v6726_v22  ;;  %6958 = vmatpush1.msra.mxu0 %v6912_v21 }
0x26c2   :  { %8680 = vmatpush3.msra.mxu1 %v6726_v22  ;;  %v6914_v22 = vld [vmem:[#allocation6 + $0x390] sm:$0xff] }
0x26c3   :  { %7028 = vmatprep.subr.mxu1 %v6927_v57  ;;  %v6871_v57 = vld [vmem:[#allocation6 + $0x238] sm:$0xff] }
0x2763   :  { %v6575_v24 = vpop.f32.mrf.mxu1 }
0x2765   :  { %v8643_v28 = vpop.f32.mrf.mxu1 }
0x2766   :  { %v6911_v28 = vld [vmem:[#allocation6 + $0x378] sm:$0xff] }
0x2767   :  { %v6651_v32 = vpop.f32.mrf.mxu0 }
0x2768   :  { %v8839_v59 = vpack.i.bf16 %v6651_v32, %v6575_v24  ;;  %v6909_v24 = vld [vmem:[#allocation6 + $0x368] sm:$0xff]  ;;  %v6908_v32 = vld [vmem:[#allocation6 + $0x360] sm:$0xff] }
0x2769   :  { %v8648_v14 = vpop.f32.mrf.mxu0  ;;  %6959 = vmatprep.subr.mxu0 %v6909_v24 }
0x276a   :  { %8840 = vrot.lane.b32.xlu1 %v8839_v59, %s9122_s2  ;;  %v6910_v59 = vld [vmem:[#allocation6 + $0x370] sm:$0xff]  ;;  %6960 = vmatpush1.msra.mxu0 %v6908_v32  ;;  %v6905_v14 = vld [vmem:[#allocation6 + $0x348] sm:$0xff] }
0x276b   :  { %6961 = vmatprep.subr.mxu0 %v6905_v14 }
0x276c   :  { %6962 = vmatpush1.msra.mxu0 %v6904_v60 }
0x276d   :  { %6963 = vmatprep.subr.mxu0 %v6901_v35 }
0x276e   :  { %6964 = vmatpush1.msra.mxu0 %v6900_v37 }
0x276f   :  { %6965 = vmatprep.subr.mxu0 %v6897_v55 }
0x2770   :  { %6966 = vmatpush1.msra.mxu0 %v6896_v49 }
0x2771   :  { %6967 = vmatprep.subr.mxu0 %v6893_v1 }
0x2772   :  { %6968 = vmatpush1.msra.mxu0 %v6892_v10  ;;  %v7820_v10 = vld [vmem:[%s10137_s5 + $0x1] ss:$0 sm:$0xff] }
0x2773   :  { %6969 = vmatprep.subr.mxu0 %v6889_v15 }
0x2774   :  { %6970 = vmatpush1.msra.mxu0 %v6888_v27 }
0x2775   :  { %6971 = vmatprep.subr.mxu0 %v6885_v25 }
0x2776   :  { %6972 = vmatpush1.msra.mxu0 %v6884_v9  ;;  %v7161_v9 = vld [vmem:[#allocation7 + $0x378] sm:$0xff] }
0x2777   :  { %6973 = vmatprep.subr.mxu0 %v6881_v20  ;;  %v7176_v20 = vld [vmem:[#allocation7 + $0x3f0] sm:$0xff] }
0x2778   :  { %6974 = vmatpush1.msra.mxu0 %v6880_v47  ;;  %v7128_v47 = vld [vmem:[#allocation7 + $0x270] sm:$0xff] }
0x2779   :  { %6975 = vmatprep.subr.mxu0 %v6877_v39  ;;  %v7143_v39 = vld [vmem:[#allocation7 + $0x2e8] sm:$0xff] }
0x27dc   :  { %v8841_v63 = vpop.permute.xlu1 %8840 }
0x27dd   :  { %v8843_v58 = vunpack.i.h.bf16 %v8841_v63  ;;  %v8842_v38 = vunpack.i.l.bf16 %v8841_v63  ;;  %v6882_v63 = vld [vmem:[#allocation6 + $0x290] sm:$0xff] }
0x27df   :  { %v6723_v6 = vsel %vm3154_vm10, %v6721_v13, %v8842_v38  ;;  %v6724_v16 = vsel %vm3154_vm10, %v6722_v44, %v8843_v58  ;;  %v6879_v58 = vld [vmem:[#allocation6 + $0x278] sm:$0xff]  ;;  %v6876_v38 = vld [vmem:[#allocation6 + $0x260] sm:$0xff]  ;;  %v6873_v44 = vld [vmem:[#allocation6 + $0x248] sm:$0xff] }
0x27e0   :  { %8681 = vmatprep.mubr.f32.mxu1 %v6723_v6  ;;  %6976 = vmatpush1.msra.mxu0 %v6876_v38  ;;  %v6875_v13 = vld [vmem:[#allocation6 + $0x258] sm:$0xff]  ;;  %v6872_v6 = vld [vmem:[#allocation6 + $0x240] sm:$0xff]  ;;  %v7127_v38 = vld [vmem:[#allocation7 + $0x268] sm:$0xff] }
0x27e1   :  { %8682 = vmatmul.mubr.f32.vlgmr.msra.gmra.mxu1 %v6724_v16  ;;  %6977 = vmatprep.subr.mxu0 %v6873_v44  ;;  %v6874_v16 = vld [vmem:[#allocation6 + $0x250] sm:$0xff]  ;;  %v7142_v44 = vld [vmem:[#allocation7 + $0x2e0] sm:$0xff] }
0x27e2   :  { %7092 = vmatprep.mubr.f32.mxu1 %v9120_v51  ;;  %7029 = vmatpush1.msra.mxu1 %v6926_v50  ;;  %v6870_v50 = vld [vmem:[#allocation6 + $0x230] sm:$0xff] }
0x27e3   :  { %7030 = vmatprep.subr.mxu1 %v6923_v26  ;;  %6978 = vmatpush1.msra.mxu0 %v6872_v6  ;;  %v6867_v26 = vld [vmem:[#allocation6 + $0x218] sm:$0xff]  ;;  %v7126_v6 = vld [vmem:[#allocation7 + $0x260] sm:$0xff] }
0x27e4   :  { %7031 = vmatpush1.msra.mxu1 %v6922_v33  ;;  %6979 = vmatprep.subr.mxu0 %v6869_v17  ;;  %v6866_v33 = vld [vmem:[#allocation6 + $0x210] sm:$0xff]  ;;  %v7141_v17 = vld [vmem:[#allocation7 + $0x2d8] sm:$0xff] }
0x27e5   :  { %7032 = vmatprep.subr.mxu1 %v6919_v48  ;;  %6980 = vmatpush1.msra.mxu0 %v6868_v45  ;;  %v7177_v48 = vld [vmem:[#allocation7 + $0x3f8] sm:$0xff] }
0x27e6   :  { %7033 = vmatpush1.msra.mxu1 %v6918_v5  ;;  %6981 = vmatprep.subr.mxu0 %v6865_v61  ;;  %v7125_v45 = vld [vmem:[#allocation7 + $0x258] sm:$0xff]  ;;  %v7140_v61 = vld [vmem:[#allocation7 + $0x2d0] sm:$0xff] }
0x27e7   :  { %7034 = vmatprep.subr.mxu1 %v6915_v8  ;;  %6982 = vmatpush1.msra.mxu0 %v6864_v31  ;;  %v7124_v31 = vld [vmem:[#allocation7 + $0x250] sm:$0xff] }
0x27e8   :  { %7035 = vmatpush1.msra.mxu1 %v6914_v22  ;;  %8108 = vmatprep.subr.mxu0 %v7145_v2  ;;  %v7139_v2 = vld [vmem:[#allocation7 + $0x2c8] sm:$0xff] }
0x27e9   :  { %7036 = vmatprep.subr.mxu1 %v6911_v28 }
0x27ea   :  { %7037 = vmatpush1.msra.mxu1 %v6910_v59 }
0x27eb   :  { %7038 = vmatprep.subr.mxu1 %v6907_v62 }
0x27ec   :  { %7039 = vmatpush1.msra.mxu1 %v6906_v34 }
0x27ed   :  { %7040 = vmatprep.subr.mxu1 %v6903_v36 }
0x27ee   :  { %7041 = vmatpush1.msra.mxu1 %v6902_v56 }
0x27ef   :  { %7042 = vmatprep.subr.mxu1 %v6899_v42 }
0x27f0   :  { %7043 = vmatpush1.msra.mxu1 %v6898_v52 }
0x27f1   :  { %7044 = vmatprep.subr.mxu1 %v6895_v7 }
0x27f2   :  { %7045 = vmatpush1.msra.mxu1 %v6894_v30 }
0x27f3   :  { %7046 = vmatprep.subr.mxu1 %v6891_v12  ;;  %v7821_v12 = vld [vmem:[%s10138_s6 + $0x1] ss:$0 sm:$0xff] }
0x27f4   :  { %7047 = vmatpush1.msra.mxu1 %v6890_v23 }
0x27f5   :  { %7048 = vmatprep.subr.mxu1 %v6887_v29  ;;  %v7129_v29 = vld [vmem:[#allocation7 + $0x278] sm:$0xff] }
0x27f6   :  { %7049 = vmatpush1.msra.mxu1 %v6886_v18  ;;  %v7144_v18 = vld [vmem:[#allocation7 + $0x2f0] sm:$0xff] }
0x27f7   :  { %7050 = vmatprep.subr.mxu1 %v6883_v41 }
0x27f8   :  { %7051 = vmatpush1.msra.mxu1 %v6882_v63  ;;  %v7160_v63 = vld [vmem:[#allocation7 + $0x370] sm:$0xff] }
0x27f9   :  { %7052 = vmatprep.subr.mxu1 %v6879_v58  ;;  %v7175_v58 = vld [vmem:[#allocation7 + $0x3e8] sm:$0xff] }
0x27fa   :  { %7053 = vmatpush1.msra.mxu1 %v6878_v40  ;;  %v7159_v40 = vld [vmem:[#allocation7 + $0x368] sm:$0xff] }
0x27fb   :  { %7054 = vmatprep.subr.mxu1 %v6875_v13  ;;  %v7174_v13 = vld [vmem:[#allocation7 + $0x3e0] sm:$0xff] }
0x27fc   :  { %7055 = vmatpush1.msra.mxu1 %v6874_v16  ;;  %v7158_v16 = vld [vmem:[#allocation7 + $0x360] sm:$0xff] }
0x27fd   :  { %7056 = vmatprep.subr.mxu1 %v6871_v57  ;;  %v7173_v57 = vld [vmem:[#allocation7 + $0x3d8] sm:$0xff] }
0x27fe   :  { %7057 = vmatpush1.msra.mxu1 %v6870_v50  ;;  %v7157_v50 = vld [vmem:[#allocation7 + $0x358] sm:$0xff] }
0x27ff   :  { %7058 = vmatprep.subr.mxu1 %v6867_v26  ;;  %v7172_v26 = vld [vmem:[#allocation7 + $0x3d0] sm:$0xff] }
0x2800   :  { %7059 = vmatpush1.msra.mxu1 %v6866_v33  ;;  %v7156_v33 = vld [vmem:[#allocation7 + $0x350] sm:$0xff] }
0x2801   :  { %8146 = vmatprep.subr.mxu1 %v7177_v48  ;;  %v7171_v48 = vld [vmem:[#allocation7 + $0x3c8] sm:$0xff] }
0x28a1   :  { %v8683_v19 = vpop.f32.mrf.mxu1 }
0x28a2   :  { %v6818_v46 = vadd.f32 %v8683_v19, %v9677_v43  ;;  %v7123_v19 = vld [vmem:[#allocation7 + $0x248] sm:$0xff] }
0x28a3   :  { %v6808_v5 = vpop.f32.mrf.mxu1 }
0x28a4   :  { %v6817_v8 = vadd.f32 %v6808_v5, %v9675_v11  ;;  %v7155_v5 = vld [vmem:[#allocation7 + $0x348] sm:$0xff] }
0x28a6   :  { %v6823_v21 = vadd.f32 %v6818_v46, %v6817_v8 }
0x28a8   :  { %v6824_v22 = vrot.slane %v6823_v21, 4 }
0x28aa   :  { %v6825_v24 = vadd.f32 %v6824_v22, %v6823_v21  ;;  %v7122_v21 = vld [vmem:[#allocation7 + $0x240] sm:$0xff] }
0x28ab   :  { %v7154_v22 = vld [vmem:[#allocation7 + $0x340] sm:$0xff] }
0x28ac   :  { %v6826_v28 = vrot.slane %v6825_v24, 2 }
0x28ae   :  { %v6827_v32 = vadd.f32 %v6826_v28, %v6825_v24  ;;  %v7137_v24 = vld [vmem:[#allocation7 + $0x2b8] sm:$0xff] }
0x28af   :  { %v7169_v28 = vld [vmem:[#allocation7 + $0x3b8] sm:$0xff] }
0x28b0   :  { %v6828_v59 = vrot.slane %v6827_v32, 1 }
0x28b2   :  { %v6829_v14 = vadd.f32 %v6828_v59, %v6827_v32  ;;  %v7121_v32 = vld [vmem:[#allocation7 + $0x238] sm:$0xff] }
0x28b3   :  { %v7153_v59 = vld [vmem:[#allocation7 + $0x338] sm:$0xff] }
0x28b4   :  { %v6830_v62 = vmul.f32 0.0625, %v6829_v14  ;;  %v7136_v14 = vld [vmem:[#allocation7 + $0x2b0] sm:$0xff] }
0x28b6   :  { %v6831_v60 = vsub.f32 %v6817_v8, %v6830_v62  ;;  %v6832_v34 = vsub.f32 %v6818_v46, %v6830_v62  ;;  %v7138_v46 = vld [vmem:[#allocation7 + $0x2c0] sm:$0xff]  ;;  %v7168_v62 = vld [vmem:[#allocation7 + $0x3b0] sm:$0xff] }
0x28b7   :  { %v7170_v8 = vld [vmem:[#allocation7 + $0x3c0] sm:$0xff] }
0x28b8   :  { %v6833_v35 = vmul.f32 %v6831_v60, %v6831_v60  ;;  %v6834_v36 = vmul.f32 %v6832_v34, %v6832_v34 }
0x28ba   :  { %v6835_v37 = vadd.f32 %v6834_v36, %v6833_v35  ;;  %v7135_v35 = vld [vmem:[#allocation7 + $0x2a8] sm:$0xff] }
0x28bb   :  { %v7167_v36 = vld [vmem:[#allocation7 + $0x3a8] sm:$0xff] }
0x28bc   :  { %v6836_v56 = vrot.slane %v6835_v37, 4 }
0x28be   :  { %v6837_v55 = vadd.f32 %v6836_v56, %v6835_v37  ;;  %v7119_v37 = vld [vmem:[#allocation7 + $0x228] sm:$0xff] }
0x28bf   :  { %v7151_v56 = vld [vmem:[#allocation7 + $0x328] sm:$0xff] }
0x28c0   :  { %v6838_v42 = vrot.slane %v6837_v55, 2 }
0x28c2   :  { %v6839_v49 = vadd.f32 %v6838_v42, %v6837_v55  ;;  %v7134_v55 = vld [vmem:[#allocation7 + $0x2a0] sm:$0xff] }
0x28c3   :  { %v7166_v42 = vld [vmem:[#allocation7 + $0x3a0] sm:$0xff] }
0x28c4   :  { %v6840_v43 = vrot.slane %v6839_v49, 1 }
0x28c6   :  { %v6841_v52 = vadd.f32 %v6840_v43, %v6839_v49  ;;  %v7118_v49 = vld [vmem:[#allocation7 + $0x220] sm:$0xff] }
0x28c7   :  { %v7150_v43 = vld [vmem:[#allocation7 + $0x320] sm:$0xff] }
0x28c8   :  { %v6842_v11 = vmul.f32 0.0625, %v6841_v52  ;;  %v7133_v52 = vld [vmem:[#allocation7 + $0x298] sm:$0xff] }
0x28ca   :  { %v6843_v1 = vadd.f32 1e-05, %v6842_v11  ;;  %v7165_v11 = vld [vmem:[#allocation7 + $0x398] sm:$0xff] }
0x28cc   :  { %8976 = vrsqrt.f32 %v6843_v1  ;;  %v7117_v1 = vld [vmem:[#allocation7 + $0x218] sm:$0xff] }
0x28d9   :  { %v8977_v7 = vpop.eup %8976 }
0x28da   :  { %v6845_v30 = vmul.f32 %v8977_v7, %v6831_v60  ;;  %v6846_v15 = vmul.f32 %v8977_v7, %v6832_v34  ;;  %v7120_v60 = vld [vmem:[#allocation7 + $0x230] sm:$0xff]  ;;  %v7149_v7 = vld [vmem:[#allocation7 + $0x318] sm:$0xff] }
0x28db   :  { %v7152_v34 = vld [vmem:[#allocation7 + $0x330] sm:$0xff] }
0x28dc   :  { %v6853_v27 = vmul.f32 %v7820_v10, %v6845_v30  ;;  %v6854_v25 = vmul.f32 %v7820_v10, %v6846_v15  ;;  %v7132_v10 = vld [vmem:[#allocation7 + $0x290] sm:$0xff] }
0x28dd   :  { %v7164_v30 = vld [vmem:[#allocation7 + $0x390] sm:$0xff] }
0x28de   :  { %v10042_v23 = vadd.f32 %v7821_v12, %v6853_v27  ;;  %v10048_v41 = vadd.f32 %v7821_v12, %v6854_v25  ;;  %v7116_v15 = vld [vmem:[#allocation7 + $0x210] sm:$0xff]  ;;  %v7131_v27 = vld [vmem:[#allocation7 + $0x288] sm:$0xff] }
0x28df   :  { %v7148_v12 = vld [vmem:[#allocation7 + $0x310] sm:$0xff]  ;;  %v7163_v25 = vld [vmem:[#allocation7 + $0x388] sm:$0xff] }
0x28e0   :  { %7016 = vmatmul.mubr.f32.vlgmr.msra.gmra.mxu0 %v10042_v23  ;;  %7093 = vmatmul.mubr.f32.vlgmr.msra.gmra.mxu1 %v10042_v23 }
0x28e1   :  { %7021 = vmatprep.mubr.f32.mxu0 %v9120_v51  ;;  %7098 = vmatprep.mubr.f32.mxu1 %v9120_v51 }
0x28e2   :  { %8109 = vmatpush3.msra.mxu0 %v7129_v29  ;;  %8147 = vmatpush3.msra.mxu1 %v7161_v9  ;;  %v7115_v29 = vld [vmem:[#allocation7 + $0x208] sm:$0xff] }
0x28e3   :  { %8110 = vmatprep.subr.mxu0 %v7144_v18  ;;  %8148 = vmatprep.subr.mxu1 %v7176_v20  ;;  %v7147_v9 = vld [vmem:[#allocation7 + $0x308] sm:$0xff]  ;;  %v7130_v18 = vld [vmem:[#allocation7 + $0x280] sm:$0xff] }
0x28e4   :  { %7022 = vmatmul.mubr.f32.gmra.mxu0 %v10048_v41  ;;  %7099 = vmatmul.mubr.f32.gmra.mxu1 %v10048_v41  ;;  %v7162_v20 = vld [vmem:[#allocation7 + $0x380] sm:$0xff] }
0x28e5   :  { %8111 = vmatpush3.msra.mxu0 %v7128_v47  ;;  %8149 = vmatpush3.msra.mxu1 %v7160_v63  ;;  %v7114_v47 = vld [vmem:[#allocation7 + $0x200] sm:$0xff] }
0x28e6   :  { %8112 = vmatprep.subr.mxu0 %v7143_v39  ;;  %8150 = vmatprep.subr.mxu1 %v7175_v58  ;;  %v7146_v63 = vld [vmem:[#allocation7 + $0x300] sm:$0xff] }
0x28e7   :  { %8113 = vmatpush3.msra.mxu0 %v7127_v38  ;;  %8151 = vmatpush3.msra.mxu1 %v7159_v40  ;;  %v7822_v39 = vld [vmem:[%s10140_s8 + $0x4] sm:$0xf] }
0x28e8   :  { %8114 = vmatprep.subr.mxu0 %v7142_v44  ;;  %8152 = vmatprep.subr.mxu1 %v7174_v13  ;;  %v6934_v58 = vrot.slane %v7822_v39, %v3361_v54  ;;  %v6942_v38 = vrot.slane %v7822_v39, %v3369_v0  ;;  %v6938_v40 = vrot.slane %v7822_v39, %v3365_v3 }
0x28e9   :  { %8115 = vmatpush3.msra.mxu0 %v7126_v6  ;;  %8153 = vmatpush3.msra.mxu1 %v7158_v16  ;;  %v6946_v44 = vrot.slane %v7822_v39, %v3373_v4  ;;  %v7498_v39 = vld [vmem:[#allocation9 + $0x38] sm:$0xff] }
0x28ea   :  { %8116 = vmatprep.subr.mxu0 %v7141_v17  ;;  %8154 = vmatprep.subr.mxu1 %v7173_v57 }
0x28eb   :  { %8117 = vmatpush3.msra.mxu0 %v7125_v45  ;;  %8155 = vmatpush3.msra.mxu1 %v7157_v50 }
0x28ec   :  { %8118 = vmatprep.subr.mxu0 %v7140_v61  ;;  %8156 = vmatprep.subr.mxu1 %v7172_v26 }
0x28ed   :  { %8119 = vmatpush3.msra.mxu0 %v7124_v31  ;;  %8157 = vmatpush3.msra.mxu1 %v7156_v33 }
0x28ee   :  { %8120 = vmatprep.subr.mxu0 %v7139_v2  ;;  %8158 = vmatprep.subr.mxu1 %v7171_v48 }
0x28ef   :  { %8121 = vmatpush3.msra.mxu0 %v7123_v19  ;;  %8159 = vmatpush3.msra.mxu1 %v7155_v5 }
0x28f0   :  { %8122 = vmatprep.subr.mxu0 %v7138_v46  ;;  %8160 = vmatprep.subr.mxu1 %v7170_v8 }
0x28f1   :  { %8123 = vmatpush3.msra.mxu0 %v7122_v21  ;;  %8161 = vmatpush3.msra.mxu1 %v7154_v22 }
0x28f2   :  { %8124 = vmatprep.subr.mxu0 %v7137_v24  ;;  %8162 = vmatprep.subr.mxu1 %v7169_v28  ;;  %v7537_v24 = vld [vmem:[#allocation9 + $0x170] sm:$0xff]  ;;  %v7536_v28 = vld [vmem:[#allocation9 + $0x168] sm:$0xff] }
0x28f3   :  { %8125 = vmatpush3.msra.mxu0 %v7121_v32  ;;  %8163 = vmatpush3.msra.mxu1 %v7153_v59  ;;  %v7534_v32 = vld [vmem:[#allocation9 + $0x158] sm:$0xff]  ;;  %v7533_v59 = vld [vmem:[#allocation9 + $0x150] sm:$0xff] }
0x28f4   :  { %8126 = vmatprep.subr.mxu0 %v7136_v14  ;;  %8164 = vmatprep.subr.mxu1 %v7168_v62  ;;  %v7531_v14 = vld [vmem:[#allocation9 + $0x140] sm:$0xff]  ;;  %v7530_v62 = vld [vmem:[#allocation9 + $0x138] sm:$0xff] }
0x28f5   :  { %8127 = vmatpush3.msra.mxu0 %v7120_v60  ;;  %8165 = vmatpush3.msra.mxu1 %v7152_v34  ;;  %v7528_v60 = vld [vmem:[#allocation9 + $0x128] sm:$0xff]  ;;  %v7527_v34 = vld [vmem:[#allocation9 + $0x120] sm:$0xff] }
0x28f6   :  { %8128 = vmatprep.subr.mxu0 %v7135_v35  ;;  %8166 = vmatprep.subr.mxu1 %v7167_v36  ;;  %v7525_v35 = vld [vmem:[#allocation9 + $0x110] sm:$0xff]  ;;  %v7524_v36 = vld [vmem:[#allocation9 + $0x108] sm:$0xff] }
0x28f7   :  { %8129 = vmatpush3.msra.mxu0 %v7119_v37  ;;  %8167 = vmatpush3.msra.mxu1 %v7151_v56  ;;  %v7522_v37 = vld [vmem:[#allocation9 + $0xf8] sm:$0xff]  ;;  %v7521_v56 = vld [vmem:[#allocation9 + $0xf0] sm:$0xff] }
0x28f8   :  { %8130 = vmatprep.subr.mxu0 %v7134_v55  ;;  %8168 = vmatprep.subr.mxu1 %v7166_v42  ;;  %v7519_v55 = vld [vmem:[#allocation9 + $0xe0] sm:$0xff]  ;;  %v7518_v42 = vld [vmem:[#allocation9 + $0xd8] sm:$0xff] }
0x28f9   :  { %8131 = vmatpush3.msra.mxu0 %v7118_v49  ;;  %8169 = vmatpush3.msra.mxu1 %v7150_v43  ;;  %v7516_v49 = vld [vmem:[#allocation9 + $0xc8] sm:$0xff]  ;;  %v7414_v43 = vld [vmem:[#allocation10 + $0x78] sm:$0xff] }
0x28fa   :  { %8132 = vmatprep.subr.mxu0 %v7133_v52  ;;  %8170 = vmatprep.subr.mxu1 %v7165_v11  ;;  %v7515_v52 = vld [vmem:[#allocation9 + $0xc0] sm:$0xff]  ;;  %v7513_v11 = vld [vmem:[#allocation9 + $0xb0] sm:$0xff] }
0x28fb   :  { %8133 = vmatpush3.msra.mxu0 %v7117_v1  ;;  %8171 = vmatpush3.msra.mxu1 %v7149_v7  ;;  %v7413_v1 = vld [vmem:[#allocation10 + $0x70] sm:$0xff]  ;;  %v7512_v7 = vld [vmem:[#allocation9 + $0xa8] sm:$0xff] }
0x28fc   :  { %8134 = vmatprep.subr.mxu0 %v7132_v10  ;;  %8172 = vmatprep.subr.mxu1 %v7164_v30  ;;  %v7510_v10 = vld [vmem:[#allocation9 + $0x98] sm:$0xff]  ;;  %v7412_v30 = vld [vmem:[#allocation10 + $0x68] sm:$0xff] }
0x28fd   :  { %8135 = vmatpush3.msra.mxu0 %v7116_v15  ;;  %8173 = vmatpush3.msra.mxu1 %v7148_v12  ;;  %v7509_v15 = vld [vmem:[#allocation9 + $0x90] sm:$0xff]  ;;  %v7507_v12 = vld [vmem:[#allocation9 + $0x80] sm:$0xff] }
0x28fe   :  { %8136 = vmatprep.subr.mxu0 %v7131_v27  ;;  %8174 = vmatprep.subr.mxu1 %v7163_v25  ;;  %v7411_v27 = vld [vmem:[#allocation10 + $0x60] sm:$0xff]  ;;  %v7506_v25 = vld [vmem:[#allocation9 + $0x78] sm:$0xff] }
0x28ff   :  { %8137 = vmatpush3.msra.mxu0 %v7115_v29  ;;  %8175 = vmatpush3.msra.mxu1 %v7147_v9  ;;  %v7504_v29 = vld [vmem:[#allocation9 + $0x68] sm:$0xff]  ;;  %v7410_v9 = vld [vmem:[#allocation10 + $0x58] sm:$0xff] }
0x2900   :  { %8138 = vmatprep.subr.mxu0 %v7130_v18  ;;  %8176 = vmatprep.subr.mxu1 %v7162_v20  ;;  %v7503_v18 = vld [vmem:[#allocation9 + $0x60] sm:$0xff]  ;;  %v7501_v20 = vld [vmem:[#allocation9 + $0x50] sm:$0xff] }
0x2901   :  { %8139 = vmatpush3.msra.mxu0 %v7114_v47  ;;  %8177 = vmatpush3.msra.mxu1 %v7146_v63  ;;  %v7409_v47 = vld [vmem:[#allocation10 + $0x50] sm:$0xff]  ;;  %v7500_v63 = vld [vmem:[#allocation9 + $0x48] sm:$0xff] }
0x2902   :  { %8684 = vmatprep.subr.mxu0 %v9120_v51  ;;  %7539 = vmatprep.subr.mxu1 %v7537_v24 }
0x29a0   :  { %v7017_v13 = vpop.f32.mrf.mxu0  ;;  %v7094_v6 = vpop.f32.mrf.mxu1 }
0x29a1   :  { %v7018_v16 = vadd.f32 %v7017_v13, %v6934_v58  ;;  %v7095_v17 = vadd.f32 %v7094_v6, %v6942_v38  ;;  %v7494_v13 = vld [vmem:[#allocation9 + $0x18] sm:$0xff]  ;;  %v7492_v6 = vld [vmem:[#allocation9 + $0x8] sm:$0xff] }
0x29a2   :  { %v7019_v57 = vpop.f32.mrf.mxu0  ;;  %v7096_v45 = vpop.f32.mrf.mxu1 }
0x29a3   :  { %v7020_v50 = vadd.f32 %v7019_v57, %v6938_v40  ;;  %v7097_v61 = vadd.f32 %v7096_v45, %v6946_v44  ;;  %v7105_v2 = vmax.f32 %v7018_v16, 0.0  ;;  %v7107_v0 = vmax.f32 %v7095_v17, 0.0  ;;  %v7406_v16 = vld [vmem:[#allocation10 + $0x38] sm:$0xff]  ;;  %v7491_v17 = vld [vmem:[#allocation9] sm:$0xff]  ;;  %v7405_v57 = vld [vmem:[#allocation10 + $0x30] sm:$0xff] }
0x29a4   :  { %v7023_v26 = vpop.f32.mrf.mxu0  ;;  %v7100_v31 = vpop.f32.mrf.mxu1  ;;  %v7404_v45 = vld [vmem:[#allocation10 + $0x28] sm:$0xff] }
0x29a5   :  { %v7106_v54 = vmax.f32 %v7020_v50, 0.0  ;;  %v7108_v33 = vmax.f32 %v7097_v61, 0.0  ;;  %v7024_v48 = vadd.f32 %v7023_v26, %v6934_v58  ;;  %v7101_v19 = vadd.f32 %v7100_v31, %v6942_v38  ;;  %v7408_v58 = vld [vmem:[#allocation10 + $0x48] sm:$0xff]  ;;  %v7497_v38 = vld [vmem:[#allocation9 + $0x30] sm:$0xff]  ;;  %v7403_v50 = vld [vmem:[#allocation10 + $0x20] sm:$0xff] }
0x29a6   :  { %v7025_v3 = vpop.f32.mrf.mxu0  ;;  %v7102_v5 = vpop.f32.mrf.mxu1  ;;  %v7402_v61 = vld [vmem:[#allocation10 + $0x18] sm:$0xff]  ;;  %v7401_v26 = vld [vmem:[#allocation10 + $0x10] sm:$0xff]  ;;  %v7400_v31 = vld [vmem:[#allocation10 + $0x8] sm:$0xff] }
0x29a7   :  { %v7026_v53 = vadd.f32 %v7025_v3, %v6938_v40  ;;  %v7103_v4 = vadd.f32 %v7102_v5, %v6946_v44  ;;  %7250 = vmatprep.mubr.f32.mxu0 %v7106_v54  ;;  %7325 = vmatprep.mubr.f32.mxu1 %v7108_v33  ;;  %v7109_v21 = vmax.f32 %v7024_v48, 0.0  ;;  %v7111_v22 = vmax.f32 %v7101_v19, 0.0  ;;  %v7495_v40 = vld [vmem:[#allocation9 + $0x20] sm:$0xff]  ;;  %v10081_v33 = vld [vmem:[#allocation9 + $0x178] sm:$0xff] }
0x29a8   :  { %7251 = vmatmul.mubr.f32.vlgmr.msra.gmra.mxu0 %v7105_v2  ;;  %7326 = vmatmul.mubr.f32.vlgmr.msra.gmra.mxu1 %v7107_v0  ;;  %v7407_v44 = vld [vmem:[#allocation10 + $0x40] sm:$0xff] }
0x29a9   :  { %v7110_v46 = vmax.f32 %v7026_v53, 0.0  ;;  %v7112_v8 = vmax.f32 %v7103_v4, 0.0  ;;  %7540 = vmatpush1.msra.mxu1 %v7536_v28  ;;  %8685 = vmatpush3.msra.mxu0 %v7414_v43  ;;  %v7399_v54 = vld [vmem:[#allocation10] sm:$0xff] }
0x29aa   :  { %7541 = vmatprep.subr.mxu1 %v7534_v32  ;;  %8686 = vmatprep.subr.mxu0 %v9120_v51  ;;  %v7824_v48 = vld [vmem:[%s10142_s10 + $0x1] ss:$0 sm:$0xff] }
0x29ab   :  { %7255 = vmatprep.mubr.f32.mxu0 %v7110_v46  ;;  %7330 = vmatprep.mubr.f32.mxu1 %v7112_v8 }
0x29ac   :  { %7256 = vmatmul.mubr.f32.gmra.mxu0 %v7109_v21  ;;  %7331 = vmatmul.mubr.f32.gmra.mxu1 %v7111_v22 }
0x29ad   :  { %7603 = vmatprep.mubr.f32.mxu1 %v9120_v51  ;;  %8716 = vmatprep.mubr.msk.f32.mxu0 %vm9121_vm2, %v9120_v51 }
0x29ae   :  { %7542 = vmatpush1.msra.mxu1 %v7533_v59  ;;  %8687 = vmatpush3.msra.mxu0 %v7413_v1 }
0x29af   :  { %7543 = vmatprep.subr.mxu1 %v7531_v14  ;;  %8688 = vmatprep.subr.mxu0 %v9120_v51 }
0x29b0   :  { %7544 = vmatpush1.msra.mxu1 %v7530_v62  ;;  %8689 = vmatpush3.msra.mxu0 %v7412_v30 }
0x29b1   :  { %7545 = vmatprep.subr.mxu1 %v7528_v60  ;;  %8690 = vmatprep.subr.mxu0 %v9120_v51 }
0x29b2   :  { %7546 = vmatpush1.msra.mxu1 %v7527_v34  ;;  %8691 = vmatpush3.msra.mxu0 %v7411_v27 }
0x29b3   :  { %7547 = vmatprep.subr.mxu1 %v7525_v35  ;;  %8692 = vmatprep.subr.mxu0 %v9120_v51 }
0x29b4   :  { %7548 = vmatpush1.msra.mxu1 %v7524_v36  ;;  %8693 = vmatpush3.msra.mxu0 %v7410_v9  ;;  %v7827_v9 = vld [vmem:[%s10143_s11 + $0x1] ss:$0 sm:$0xff] }
0x29b5   :  { %7549 = vmatprep.subr.mxu1 %v7522_v37  ;;  %8694 = vmatprep.subr.mxu0 %v9120_v51 }
0x29b6   :  { %7550 = vmatpush1.msra.mxu1 %v7521_v56  ;;  %8695 = vmatpush3.msra.mxu0 %v7409_v47  ;;  %v7828_v47 = vld [vmem:[%s10144_s12 + $0x1] ss:$0 sm:$0xff] }
0x29b7   :  { %7551 = vmatprep.subr.mxu1 %v7519_v55  ;;  %8696 = vmatprep.subr.mxu0 %v9120_v51 }
0x29b8   :  { %7552 = vmatpush1.msra.mxu1 %v7518_v42  ;;  %8697 = vmatpush3.msra.mxu0 %v7408_v58 }
0x29b9   :  { %7553 = vmatprep.subr.mxu1 %v7516_v49  ;;  %8698 = vmatprep.subr.mxu0 %v9120_v51 }
0x29ba   :  { %7554 = vmatpush1.msra.mxu1 %v7515_v52  ;;  %8699 = vmatpush3.msra.mxu0 %v7407_v44 }
0x29bb   :  { %7555 = vmatprep.subr.mxu1 %v7513_v11  ;;  %8700 = vmatprep.subr.mxu0 %v9120_v51 }
0x29bc   :  { %7556 = vmatpush1.msra.mxu1 %v7512_v7  ;;  %8701 = vmatpush3.msra.mxu0 %v7406_v16 }
0x29bd   :  { %7557 = vmatprep.subr.mxu1 %v7510_v10  ;;  %8702 = vmatprep.subr.mxu0 %v9120_v51 }
0x29be   :  { %7558 = vmatpush1.msra.mxu1 %v7509_v15  ;;  %8703 = vmatpush3.msra.mxu0 %v7405_v57 }
0x29bf   :  { %7559 = vmatprep.subr.mxu1 %v7507_v12  ;;  %8704 = vmatprep.subr.mxu0 %v9120_v51 }
0x29c0   :  { %7560 = vmatpush1.msra.mxu1 %v7506_v25  ;;  %8705 = vmatpush3.msra.mxu0 %v7404_v45 }
0x29c1   :  { %7561 = vmatprep.subr.mxu1 %v7504_v29  ;;  %8706 = vmatprep.subr.mxu0 %v9120_v51 }
0x29c2   :  { %7562 = vmatpush1.msra.mxu1 %v7503_v18  ;;  %8707 = vmatpush3.msra.mxu0 %v7403_v50 }
0x29c3   :  { %7563 = vmatprep.subr.mxu1 %v7501_v20  ;;  %8708 = vmatprep.subr.mxu0 %v9120_v51 }
0x29c4   :  { %7564 = vmatpush1.msra.mxu1 %v7500_v63  ;;  %8709 = vmatpush3.msra.mxu0 %v7402_v61 }
0x29c5   :  { %7565 = vmatprep.subr.mxu1 %v7498_v39  ;;  %8710 = vmatprep.subr.mxu0 %v9120_v51 }
0x29c6   :  { %7566 = vmatpush1.msra.mxu1 %v7497_v38  ;;  %8711 = vmatpush3.msra.mxu0 %v7401_v26 }
0x29c7   :  { %7567 = vmatprep.subr.mxu1 %v7495_v40  ;;  %8712 = vmatprep.subr.mxu0 %v9120_v51 }
0x29c8   :  { %7568 = vmatpush1.msra.mxu1 %v7494_v13  ;;  %8713 = vmatpush3.msra.mxu0 %v7400_v31 }
0x29c9   :  { %7569 = vmatprep.subr.mxu1 %v7492_v6  ;;  %8714 = vmatprep.subr.mxu0 %v9120_v51 }
0x29ca   :  { %7570 = vmatpush1.msra.mxu1 %v7491_v17  ;;  %8715 = vmatpush3.msra.mxu0 %v7399_v54 }
0x29cb   :  { %8719 = vmatprep.subr.mxu0 %v10081_v33 }
0x2a68   :  { %v8140_v2 = vpop.f32.mrf.mxu0  ;;  %v8178_v0 = vpop.f32.mrf.mxu1 }
0x2a6a   :  { %v8141_v19 = vpop.f32.mrf.mxu0  ;;  %v8179_v3 = vpop.f32.mrf.mxu1 }
0x2a6b   :  { %v8142_v5 = vadd.f32 %v8141_v19, %v8140_v2  ;;  %v8180_v22 = vadd.f32 %v8179_v3, %v8178_v0  ;;  %v7529_v19 = vld [vmem:[#allocation9 + $0x130] sm:$0xff]  ;;  %v7526_v3 = vld [vmem:[#allocation9 + $0x118] sm:$0xff] }
0x2a6c   :  { %v8143_v53 = vpop.f32.mrf.mxu0  ;;  %v8181_v4 = vpop.f32.mrf.mxu1 }
0x2a6d   :  { %v7253_v46 = vadd.f32 %v8142_v5, %v7824_v48  ;;  %v7523_v5 = vld [vmem:[#allocation9 + $0x100] sm:$0xff] }
0x2a6e   :  { %v8144_v8 = vpop.f32.mrf.mxu0  ;;  %v8182_v21 = vpop.f32.mrf.mxu1 }
0x2a6f   :  { %v8145_v24 = vadd.f32 %v8144_v8, %v8143_v53  ;;  %v7328_v28 = vadd.f32 %v8180_v22, %v7253_v46  ;;  %v8183_v59 = vadd.f32 %v8182_v21, %v8181_v4  ;;  %v7520_v53 = vld [vmem:[#allocation9 + $0xe8] sm:$0xff]  ;;  %v7517_v4 = vld [vmem:[#allocation9 + $0xd0] sm:$0xff]  ;;  %v7511_v46 = vld [vmem:[#allocation9 + $0xa0] sm:$0xff] }
0x2a70   :  { %v7508_v8 = vld [vmem:[#allocation9 + $0x88] sm:$0xff]  ;;  %v7505_v21 = vld [vmem:[#allocation9 + $0x70] sm:$0xff]  ;;  %v7502_v22 = vld [vmem:[#allocation9 + $0x58] sm:$0xff] }
0x2a71   :  { %v7258_v32 = vadd.f32 %v8145_v24, %v7824_v48  ;;  %v7336_v62 = vadd.f32 %v7328_v28, %v10042_v23  ;;  %v7535_v48 = vld [vmem:[#allocation9 + $0x160] sm:$0xff]  ;;  %v7496_v28 = vld [vmem:[#allocation9 + $0x28] sm:$0xff] }
0x2a72   :  { %v7499_v24 = vld [vmem:[#allocation9 + $0x40] sm:$0xff] }
0x2a73   :  { %v7333_v14 = vadd.f32 %v8183_v59, %v7258_v32  ;;  %v7493_v32 = vld [vmem:[#allocation9 + $0x10] sm:$0xff] }
0x2a75   :  { %v7337_v60 = vadd.f32 %v7333_v14, %v10048_v41 }
0x2a77   :  { %v7342_v34 = vadd.f32 %v7337_v60, %v7336_v62 }
0x2a79   :  { %v7343_v35 = vrot.slane %v7342_v34, 4 }
0x2a7b   :  { %v7344_v36 = vadd.f32 %v7343_v35, %v7342_v34 }
0x2a7d   :  { %v7345_v37 = vrot.slane %v7344_v36, 2 }
0x2a7f   :  { %v7346_v56 = vadd.f32 %v7345_v37, %v7344_v36 }
0x2a81   :  { %v7347_v55 = vrot.slane %v7346_v56, 1 }
0x2a83   :  { %v7348_v42 = vadd.f32 %v7347_v55, %v7346_v56 }
0x2a85   :  { %v7349_v49 = vmul.f32 0.0625, %v7348_v42 }
0x2a87   :  { %v7350_v43 = vsub.f32 %v7336_v62, %v7349_v49  ;;  %v7351_v52 = vsub.f32 %v7337_v60, %v7349_v49 }
0x2a89   :  { %v7352_v11 = vmul.f32 %v7350_v43, %v7350_v43  ;;  %v7353_v1 = vmul.f32 %v7351_v52, %v7351_v52 }
0x2a8b   :  { %v7354_v7 = vadd.f32 %v7353_v1, %v7352_v11 }
0x2a8d   :  { %v7355_v10 = vrot.slane %v7354_v7, 4 }
0x2a8f   :  { %v7356_v30 = vadd.f32 %v7355_v10, %v7354_v7 }
0x2a91   :  { %v7357_v15 = vrot.slane %v7356_v30, 2 }
0x2a93   :  { %v7358_v12 = vadd.f32 %v7357_v15, %v7356_v30 }
0x2a95   :  { %v7359_v23 = vrot.slane %v7358_v12, 1 }
0x2a97   :  { %v7360_v27 = vadd.f32 %v7359_v23, %v7358_v12 }
0x2a99   :  { %v7361_v41 = vmul.f32 0.0625, %v7360_v27 }
0x2a9b   :  { %v7362_v25 = vadd.f32 1e-05, %v7361_v41 }
0x2a9d   :  { %8978 = vrsqrt.f32 %v7362_v25 }
0x2aaa   :  { %v8979_v29 = vpop.eup %8978 }
0x2aab   :  { %v7364_v18 = vmul.f32 %v8979_v29, %v7350_v43  ;;  %v7365_v20 = vmul.f32 %v8979_v29, %v7351_v52 }
0x2aad   :  { %v7372_v63 = vmul.f32 %v7827_v9, %v7364_v18  ;;  %v7373_v39 = vmul.f32 %v7827_v9, %v7365_v20 }
0x2aaf   :  { %v7380_v58 = vadd.f32 %v7828_v47, %v7372_v63  ;;  %v10096_v38 = vadd.f32 %v7828_v47, %v7373_v39 }
0x2ab1   :  { %7382 = vst [vmem:[%s10147_s15] sm:$0xff] %v7380_v58  ;;  %7604 = vmatmul.mubr.f32.vlgmr.msra.gmra.mxu1 %v7380_v58  ;;  %7383 = vst [vmem:[%s10147_s15 + $0x8] sm:$0xff] %v10096_v38  ;;  %v7384_v40 = vrot.slane %v7380_v58, 4  ;;  %v7390_v44 = vrot.slane %v10096_v38, 4 }
0x2ab2   :  { %7609 = vmatprep.mubr.f32.mxu1 %v9120_v51  ;;  %v7532_v51 = vld [vmem:[#allocation9 + $0x148] sm:$0xff] }
0x2ab3   :  { %v7385_v13 = vadd.f32 %v7384_v40, %v7380_v58  ;;  %v7391_v6 = vadd.f32 %v7390_v44, %v10096_v38 }
0x2ab5   :  { %7610 = vmatmul.mubr.f32.gmra.mxu1 %v10096_v38  ;;  %v7386_v16 = vrot.slane %v7385_v13, 2  ;;  %v7392_v17 = vrot.slane %v7391_v6, 2 }
0x2ab7   :  { %v7387_v57 = vadd.f32 %v7386_v16, %v7385_v13  ;;  %v7393_v45 = vadd.f32 %v7392_v17, %v7391_v6 }
0x2ab9   :  { %v7388_v50 = vrot.slane %v7387_v57, 1  ;;  %v7394_v61 = vrot.slane %v7393_v45, 1 }
0x2abb   :  { %v7389_v26 = vadd.f32 %v7388_v50, %v7387_v57  ;;  %v7395_v31 = vadd.f32 %v7394_v61, %v7393_v45 }
0x2abd   :  { %v7397_v54 = vmul.f32 0.125, %v7389_v26  ;;  %v7398_v2 = vmul.f32 0.125, %v7395_v31 }
0x2abf   :  { %v7418_v0 = vsel %vm7417_vm11, %v7398_v2, %v7397_v54 }
0x2ac0   :  { %8717 = vmatmul.mubr.f32.vlgmr.msra.gmra.mxu0 %v7418_v0 }
0x2ac1   :  { %8720 = vmatpush3.msra.mxu0 %v10081_v33  ;;  %8751 = vmatprep.mubr.f32.mxu0 %v7380_v58  ;;  %v7514_v33 = vld [vmem:[#allocation9 + $0xb8] sm:$0xff] }
0x2ac2   :  { %8721 = vmatprep.subr.mxu0 %v7535_v48 }
0x2ac3   :  { %8722 = vmatpush3.msra.mxu0 %v7535_v48 }
0x2ac4   :  { %8723 = vmatprep.subr.mxu0 %v7532_v51 }
0x2ac5   :  { %8724 = vmatpush3.msra.mxu0 %v7532_v51 }
0x2ac6   :  { %8725 = vmatprep.subr.mxu0 %v7529_v19 }
0x2ac7   :  { %8726 = vmatpush3.msra.mxu0 %v7529_v19 }
0x2ac8   :  { %8727 = vmatprep.subr.mxu0 %v7526_v3 }
0x2ac9   :  { %8728 = vmatpush3.msra.mxu0 %v7526_v3 }
0x2aca   :  { %8729 = vmatprep.subr.mxu0 %v7523_v5 }
0x2acb   :  { %8730 = vmatpush3.msra.mxu0 %v7523_v5 }
0x2acc   :  { %8731 = vmatprep.subr.mxu0 %v7520_v53 }
0x2acd   :  { %8732 = vmatpush3.msra.mxu0 %v7520_v53 }
0x2ace   :  { %8733 = vmatprep.subr.mxu0 %v7517_v4 }
0x2acf   :  { %8734 = vmatpush3.msra.mxu0 %v7517_v4 }
0x2ad0   :  { %8735 = vmatprep.subr.mxu0 %v7514_v33 }
0x2ad1   :  { %8736 = vmatpush3.msra.mxu0 %v7514_v33 }
0x2ad2   :  { %8737 = vmatprep.subr.mxu0 %v7511_v46 }
0x2ad3   :  { %8738 = vmatpush3.msra.mxu0 %v7511_v46 }
0x2ad4   :  { %8739 = vmatprep.subr.mxu0 %v7508_v8 }
0x2ad5   :  { %8740 = vmatpush3.msra.mxu0 %v7508_v8 }
0x2ad6   :  { %8741 = vmatprep.subr.mxu0 %v7505_v21 }
0x2ad7   :  { %8742 = vmatpush3.msra.mxu0 %v7505_v21 }
0x2ad8   :  { %8743 = vmatprep.subr.mxu0 %v7502_v22 }
0x2ad9   :  { %8744 = vmatpush3.msra.mxu0 %v7502_v22 }
0x2ada   :  { %8745 = vmatprep.subr.mxu0 %v7499_v24 }
0x2adb   :  { %8746 = vmatpush3.msra.mxu0 %v7499_v24 }
0x2adc   :  { %8747 = vmatprep.subr.mxu0 %v7496_v28 }
0x2add   :  { %8748 = vmatpush3.msra.mxu0 %v7496_v28 }
0x2ade   :  { %8749 = vmatprep.subr.mxu0 %v7493_v32 }
0x2adf   :  { %8750 = vmatpush3.msra.mxu0 %v7493_v32 }
0x2ae0   :  { %8752 = vmatmul.mubr.f32.vlgmr.msra.gmra.mxu0 %v10096_v38 }
0x2b71   :  { %v7605_v59 = vpop.f32.mrf.mxu1 }
0x2b72   :  { %7691 = vst [vmem:[%s10149_s17] sm:$0xff] %v7605_v59 }
0x2b73   :  { %v7607_v14 = vpop.f32.mrf.mxu1 }
0x2b74   :  { %7692 = vst [vmem:[%s10149_s17 + $0x8] sm:$0xff] %v7607_v14 }
0x2b75   :  { %v7611_v62 = vpop.f32.mrf.mxu1 }
0x2b76   :  { %7694 = vst [vmem:[%s10149_s17 + $0x18] sm:$0xff] %v7611_v62 }
0x2b77   :  { %v7613_v60 = vpop.f32.mrf.mxu1 }
0x2b78   :  { %7695 = vst [vmem:[%s10149_s17 + $0x20] sm:$0xff] %v7613_v60 }
0x2b80   :  { %v7486_v34 = vpop.f32.mrf.mxu0 }
0x2b81   :  { %7490 = vst [vmem:[%s10148_s16] sm:$0x3] %v7486_v34 }
0x2b82   :  { %v8718_v35 = vpop.f32.mrf.mxu0 }
0x2ba0   :  { %v8753_v36 = vpop.f32.mrf.mxu0 }
0x2ba1   :  { %7696 = vst [vmem:[%s10149_s17 + $0x28] sm:$0xff] %v8753_v36 }
0x2ba2   :  { %v7682_v37 = vpop.f32.mrf.mxu0 }
0x2ba3   :  { %7693 = vst [vmem:[%s10149_s17 + $0x10] sm:$0xff] %v7682_v37 }
0x2ba4   :  { %7709 = vsyncpa [#allocation3], 1 }
0x2ba5   :  { %7710 = vsyncpa [#allocation5], 1 }
0x2ba6   :  { %7711 = vsyncpa [#allocation8], 1 }
0x2ba7   :  { %7712 = vsyncpa [#allocation11], 1 }

</bundles_post_ra>
